<compile_context>
chip_gen: v6e
topology: v6e:2x2x1
jax: 0.10.0
libtpu: 0.0.40
codegen_flags: <defaults>
</compile_context>

<pallas_src>
import jax
import jax.numpy as jnp
from jax import lax
from jax.experimental import pallas as pl
from jax.experimental.pallas import tpu as pltpu

# ----------------------------- config -----------------------------
VOCAB_SIZE = 32
EMBED_DIM = 32
HIDDEN_DIM = 32
NUM_LAYERS = 2
BIDIRECTIONAL = True
FUSION_HIDDEN_DIM = 64
FUSION_INPUT_DIM = 4 * HIDDEN_DIM      # 2 encoders x (2 directions x H)
SEQ_LEN = 8

G = 4                                  # groups: subj-fwd, subj-bwd, body-fwd, body-bwd
GH = G * HIDDEN_DIM                    # combined hidden width  (128)
GATES = 4 * GH                         # combined gate width    (512)
GV = G * VOCAB_SIZE                    # combined one-hot width (128)
OUT_PAD = 128                          # lane-dense padded logit slab width
FPAD = 128                             # lane-dense padded fc1 width

B_TOTAL = 64                           # example pairs per call
B_BLK = 32                             # example pairs per grid step
NB = B_TOTAL // B_BLK                  # grid size
TBB = SEQ_LEN * B_BLK                  # rows of per-block flattened activations

assert NUM_LAYERS == 2 and BIDIRECTIONAL, "fused kernel specialized to 2-layer BiLSTM"
assert B_TOTAL % B_BLK == 0 and B_BLK % 8 == 0


# ----------------------------- fused Pallas kernel -----------------------------
def fused_model_kernel(onehot_ref, ew0_ref, whh0_ref, b0_ref,
                       wihA_ref, wihR_ref, whh1_ref, b1_ref,
                       fw1_ref, fb1_ref, fw2_ref, fb2_ref, out_ref):
    """Whole DualEncoderBilstmFusion forward for one block of B_BLK example pairs.

    onehot_ref: [T*Bb, 4V]  f32   per-row one-hot over the 4 group token streams
                                  (backward groups already time-reversed)
    ew0_ref:    [4V, 512]         embedding folded into layer-0 input->gate weights
    whh0_ref:   [4H, 512], b0_ref [1, 512]   layer-0 recurrent weights / folded bias
    wihA_ref:   [4H, 512]         layer-1 input proj for step-order layer-0 h
    wihR_ref:   [4H, 512]         layer-1 input proj for reversed-step layer-0 h
    whh1_ref:   [4H, 512], b1_ref [1, 512]
    fw1_ref:    [4H, 128] (cols 0:64 real), fb1_ref [1, 128]
    fw2_ref:    [128, 128] (row 0:64 x col 0 real), fb2_ref [1, 128]
    out_ref:    [Bb, 128]  lane-dense logit slab (col 0 = logit)
    """
    Bb = B_BLK

    def run_layer(xg_steps, whh):
        # Fully unrolled recurrence; zero initial h/c handled by skipping the
        # (zero) recurrent contributions on step 0.
        hs = []
        h = c = None
        for xg_t in xg_steps:
            gates = xg_t if h is None else (
                jnp.dot(h, whh, preferred_element_type=jnp.float32) + xg_t)
            act = jax.nn.sigmoid(gates[:, :3 * GH])          # i | f | o blocks
            i = act[:, 0 * GH:1 * GH]
            f = act[:, 1 * GH:2 * GH]
            o = act[:, 2 * GH:3 * GH]
            g = jnp.tanh(gates[:, 3 * GH:])                  # cell candidate block
            c = i * g if c is None else f * c + i * g
            h = o * jnp.tanh(c)
            hs.append(h)
        return hs

    # ---- layer 0: embedding + input projection fused into one wide matmul ----
    xg0 = (jnp.dot(onehot_ref[...], ew0_ref[...],
                   preferred_element_type=jnp.float32) + b0_ref[...])   # [T*Bb, 512]
    xg0_steps = [xg0[t * Bb:(t + 1) * Bb, :] for t in range(SEQ_LEN)]
    hs0 = run_layer(xg0_steps, whh0_ref[...])                           # T x [Bb, 4H]

    # ---- layer 1: input projection as two wide matmuls over stacked layer-0 h ----
    hA = jnp.concatenate(hs0, axis=0)                                   # [T*Bb, 4H]
    hR = jnp.concatenate(hs0[::-1], axis=0)                             # reversed steps
    xg1 = (jnp.dot(hA, wihA_ref[...], preferred_element_type=jnp.float32)
           + jnp.dot(hR, wihR_ref[...], preferred_element_type=jnp.float32)
           + b1_ref[...])                                               # [T*Bb, 512]
    xg1_steps = [xg1[t * Bb:(t + 1) * Bb, :] for t in range(SEQ_LEN)]
    hs1 = run_layer(xg1_steps, whh1_ref[...])

    # Final combined hidden = [h_fwd_subj | h_bwd_subj | h_fwd_body | h_bwd_body]
    # == torch.cat((subject_features, body_features), dim=1).
    feat = hs1[-1]                                                      # [Bb, 4H]

    # ---- fusion MLP (dropouts are identity in eval mode), lane-dense padded ----
    z = jnp.maximum(jnp.dot(feat, fw1_ref[...],
                            preferred_element_type=jnp.float32) + fb1_ref[...], 0.0)
    out_ref[...] = (jnp.dot(z, fw2_ref[...], preferred_element_type=jnp.float32)
                    + fb2_ref[...])                                     # [Bb, 128]


# ----------------------------- weight / input preparation -----------------------------
_HP = jax.lax.Precision.HIGHEST


def _gate_col_perm():
    """Columns: (group-major, per-group gate order i,f,g,o) -> gate-major blocks
    (i, f, o, g), each block group-major and 128 lanes wide."""
    H = HIDDEN_DIM
    src_gate = (0, 1, 3, 2)            # dest block m -> source gate index
    perm = []
    for m in range(4):
        for g in range(G):
            base = g * 4 * H + src_gate[m] * H
            perm.extend(range(base, base + H))
    return jnp.asarray(perm, dtype=jnp.int32)


def prepare_kernel_inputs(params):
    H, V, E = HIDDEN_DIM, VOCAB_SIZE, EMBED_DIM
    perm = _gate_col_perm()

    def layer_weights(groups, d_in):
        wih = jnp.zeros((G * d_in, GATES), jnp.float32)
        whh = jnp.zeros((G * H, GATES), jnp.float32)
        b = jnp.zeros((GATES,), jnp.float32)
        for g, p in enumerate(groups):
            wih = wih.at[g * d_in:(g + 1) * d_in, g * 4 * H:(g + 1) * 4 * H].set(p["w_ih"])
            whh = whh.at[g * H:(g + 1) * H, g * 4 * H:(g + 1) * 4 * H].set(p["w_hh"])
            b = b.at[g * 4 * H:(g + 1) * 4 * H].set(p["b"])
        return wih[:, perm], whh[:, perm], b[perm].reshape(1, GATES)

    g0 = [params["subject"]["l0_f"], params["subject"]["l0_b"],
          params["body"]["l0_f"], params["body"]["l0_b"]]
    g1 = [params["subject"]["l1_f"], params["subject"]["l1_b"],
          params["body"]["l1_f"], params["body"]["l1_b"]]
    wih0, whh0, b0 = layer_weights(g0, E)
    wih1, whh1, b1 = layer_weights(g1, 2 * H)

    # Fold layer-1 input regrouping into the projection weights.
    # Step-order layer-0 h columns [sf | sb | bf | bb] feed layer-1 input rows:
    #   sf -> group0 fwd half, sb -> group1 bwd half, bf -> group2 fwd, bb -> group3 bwd.
    idx_a = jnp.concatenate([jnp.arange(0 * H, 1 * H), jnp.arange(3 * H, 4 * H),
                             jnp.arange(4 * H, 5 * H), jnp.arange(7 * H, 8 * H)])
    # Reversed-step layer-0 h columns feed:
    #   sf -> group1 fwd half, sb -> group0 bwd half, bf -> group3 fwd, bb -> group2 bwd.
    idx_r = jnp.concatenate([jnp.arange(2 * H, 3 * H), jnp.arange(1 * H, 2 * H),
                             jnp.arange(6 * H, 7 * H), jnp.arange(5 * H, 6 * H)])
    wihA = jnp.take(wih1, idx_a, axis=0)               # [4H, 512]
    wihR = jnp.take(wih1, idx_r, axis=0)               # [4H, 512]

    # Block-diagonal embedding (padding_idx rows are zero), then fold into wih0 so
    # the kernel's prologue is a single one-hot matmul.
    embdiag = jnp.zeros((GV, G * E), jnp.float32)
    for g in range(G):
        emb = params["subject"]["emb"] if g < 2 else params["body"]["emb"]
        embdiag = embdiag.at[g * V:(g + 1) * V, g * E:(g + 1) * E].set(emb)
    emb_wih0 = jnp.dot(embdiag, wih0, precision=_HP)    # [4V, 512]

    # Lane-dense padded fusion MLP weights.
    fw1 = jnp.zeros((FUSION_INPUT_DIM, FPAD), jnp.float32).at[:, :FUSION_HIDDEN_DIM].set(
        params["fc1_w"])
    fb1 = jnp.zeros((1, FPAD), jnp.float32).at[0, :FUSION_HIDDEN_DIM].set(params["fc1_b"])
    fw2 = jnp.zeros((FPAD, OUT_PAD), jnp.float32).at[:FUSION_HIDDEN_DIM, 0].set(
        params["fc2_w"][:, 0])
    fb2 = jnp.zeros((1, OUT_PAD), jnp.float32).at[0, 0].set(params["fc2_b"][0])

    return dict(emb_wih0=emb_wih0, whh0=whh0, b0=b0,
                wihA=wihA, wihR=wihR, whh1=whh1, b1=b1,
                fw1=fw1, fb1=fb1, fw2=fw2, fb2=fb2)


def _order_tokens(tok, reverse):
    """tok [B_total, T] -> flat [NB*T*Bb] with row = blk*T*Bb + t*Bb + b."""
    t = jnp.flip(tok, axis=1) if reverse else tok
    t = t.reshape(NB, B_BLK, SEQ_LEN)
    t = jnp.transpose(t, (0, 2, 1))                     # [NB, T, Bb]
    return t.reshape(NB * SEQ_LEN * B_BLK)


_COST = pl.CostEstimate(
    flops=int(2 * GH * GATES * 5 * SEQ_LEN * B_TOTAL + 2 * GH * FPAD * 2 * B_TOTAL),
    transcendentals=int((3 * GH + 2 * GH) * SEQ_LEN * 2 * B_TOTAL),
    bytes_accessed=int(4 * (SEQ_LEN * B_TOTAL * GV          # one-hot
                            + 5 * GH * GATES + 2 * GATES    # gate weights + biases
                            + 2 * FPAD * FPAD + 2 * FPAD    # fusion MLP
                            + B_TOTAL * OUT_PAD)),          # output slab
)


def model_forward_pallas(subject_tokens, body_tokens, kin):
    # One-hot over global column ids (g*V + tok); tokens assumed in [0, VOCAB_SIZE).
    tok_all = jnp.stack(
        [_order_tokens(subject_tokens, False), _order_tokens(subject_tokens, True),
         _order_tokens(body_tokens, False), _order_tokens(body_tokens, True)],
        axis=1).astype(jnp.int32)                                        # [R, 4]
    gcols = tok_all + jnp.arange(G, dtype=jnp.int32)[None, :] * VOCAB_SIZE
    onehot = jax.nn.one_hot(gcols, GV, dtype=jnp.float32).sum(axis=1)    # [R, 4V]

    def wspec(shape):
        return pl.BlockSpec(shape, lambda i: (0, 0))

    out = pl.pallas_call(
        fused_model_kernel,
        out_shape=jax.ShapeDtypeStruct((B_TOTAL, OUT_PAD), jnp.float32),
        grid=(NB,),
        in_specs=[
            pl.BlockSpec((TBB, GV), lambda i: (i, 0)),   # per-block one-hot tokens
            wspec((GV, GATES)),                          # emb ∘ wih0 (resident)
            wspec((GH, GATES)),                          # whh0
            wspec((1, GATES)),                           # b0
            wspec((GH, GATES)),                          # wihA
            wspec((GH, GATES)),                          # wihR
            wspec((GH, GATES)),                          # whh1
            wspec((1, GATES)),                           # b1
            wspec((FUSION_INPUT_DIM, FPAD)),             # fw1
            wspec((1, FPAD)),                            # fb1
            wspec((FPAD, OUT_PAD)),                      # fw2
            wspec((1, OUT_PAD)),                         # fb2
        ],
        out_specs=pl.BlockSpec((B_BLK, OUT_PAD), lambda i: (i, 0)),
        compiler_params=pltpu.CompilerParams(dimension_semantics=("parallel",)),
        cost_estimate=_COST,
    )(onehot, kin["emb_wih0"], kin["whh0"], kin["b0"],
      kin["wihA"], kin["wihR"], kin["whh1"], kin["b1"],
      kin["fw1"], kin["fb1"], kin["fw2"], kin["fb2"])
    return out[:, :1]                                                    # [B_total, 1]


# ----------------------------- pure-JAX reference (PyTorch semantics) -----------------------------
def ref_lstm_layer_dir(x, w_ih, w_hh, b, reverse):
    T_, B_, _ = x.shape
    H = w_hh.shape[0]
    h = jnp.zeros((B_, H), jnp.float32)
    c = jnp.zeros((B_, H), jnp.float32)
    out = [None] * T_
    order = range(T_ - 1, -1, -1) if reverse else range(T_)
    for t in order:
        gates = (jnp.dot(x[t], w_ih, precision=_HP)
                 + jnp.dot(h, w_hh, precision=_HP) + b)
        i = jax.nn.sigmoid(gates[:, 0:H])
        f = jax.nn.sigmoid(gates[:, H:2 * H])
        g = jnp.tanh(gates[:, 2 * H:3 * H])
        o = jax.nn.sigmoid(gates[:, 3 * H:4 * H])
        c = f * c + i * g
        h = o * jnp.tanh(c)
        out[t] = h
    return jnp.stack(out, axis=0)


def ref_encoder(tokens, ep):
    emb = jnp.take(ep["emb"], tokens, axis=0)                       # [B, T, E]
    x = jnp.transpose(emb, (1, 0, 2)).astype(jnp.float32)           # [T, B, E]
    hf = hb = None
    for l in range(NUM_LAYERS):
        pf, pb = ep[f"l{l}_f"], ep[f"l{l}_b"]
        hf = ref_lstm_layer_dir(x, pf["w_ih"], pf["w_hh"], pf["b"], False)
        hb = ref_lstm_layer_dir(x, pb["w_ih"], pb["w_hh"], pb["b"], True)
        x = jnp.concatenate([hf, hb], axis=-1)
    return jnp.concatenate([hf[-1], hb[0]], axis=-1)                # [B, 2H]


def ref_model(subject_tokens, body_tokens, params):
    s = ref_encoder(subject_tokens, params["subject"])
    b = ref_encoder(body_tokens, params["body"])
    fused = jnp.concatenate([s, b], axis=-1)                        # [B, 4H]
    z = jnp.maximum(jnp.dot(fused, params["fc1_w"], precision=_HP)
                    + params["fc1_b"], 0.0)
    return jnp.dot(z, params["fc2_w"], precision=_HP) + params["fc2_b"]


# ----------------------------- parameter init -----------------------------
def init_params(key):
    def nrm(k, shape, scale=0.1):
        return (scale * jax.random.normal(k, shape)).astype(jnp.float32)

    keys = iter(jax.random.split(key, 64))
    params = {}
    for enc in ("subject", "body"):
        ep = {}
        emb = nrm(next(keys), (VOCAB_SIZE, EMBED_DIM))
        emb = emb.at[0].set(0.0)                       # padding_idx=0
        ep["emb"] = emb
        for l in range(NUM_LAYERS):
            d_in = EMBED_DIM if l == 0 else 2 * HIDDEN_DIM
            for d in ("f", "b"):
                ep[f"l{l}_{d}"] = {
                    "w_ih": nrm(next(keys), (d_in, 4 * HIDDEN_DIM)),   # gate order i,f,g,o
                    "w_hh": nrm(next(keys), (HIDDEN_DIM, 4 * HIDDEN_DIM)),
                    "b": nrm(next(keys), (4 * HIDDEN_DIM,)),           # b_ih + b_hh folded
                }
        params[enc] = ep
    params["fc1_w"] = nrm(next(keys), (FUSION_INPUT_DIM, FUSION_HIDDEN_DIM))
    params["fc1_b"] = nrm(next(keys), (FUSION_HIDDEN_DIM,))
    params["fc2_w"] = nrm(next(keys), (FUSION_HIDDEN_DIM, 1))
    params["fc2_b"] = nrm(next(keys), (1,))
    return params


# ----------------------------- main -----------------------------
if __name__ == "__main__":
    key = jax.random.PRNGKey(0)
    k_params, k_subj, k_body = jax.random.split(key, 3)
    params = init_params(k_params)
    kin = prepare_kernel_inputs(params)

    subject_input = jax.random.randint(k_subj, (B_TOTAL, SEQ_LEN), 0, VOCAB_SIZE,
                                       dtype=jnp.int32)
    body_input = jax.random.randint(k_body, (B_TOTAL, SEQ_LEN), 0, VOCAB_SIZE,
                                    dtype=jnp.int32)

    fwd = jax.jit(model_forward_pallas)
    out = jax.block_until_ready(fwd(subject_input, body_input, kin))

    ref = jax.block_until_ready(ref_model(subject_input, body_input, params))

    assert out.shape == (B_TOTAL, 1), out.shape
    assert jnp.allclose(out, ref, rtol=2e-3, atol=2e-3), (
        float(jnp.max(jnp.abs(out - ref))))
    print("KERNEL_OK")
</pallas_src>

<mosaic_0001>
module attributes {stable_mosaic.version = 11 : i64} {
  func.func @fused_model_kernel(%arg0: i32, %arg1: memref<256x128xf32, #tpu.memory_space<vmem>>, %arg2: memref<128x512xf32, #tpu.memory_space<vmem>>, %arg3: memref<128x512xf32, #tpu.memory_space<vmem>>, %arg4: memref<1x512xf32, #tpu.memory_space<vmem>>, %arg5: memref<128x512xf32, #tpu.memory_space<vmem>>, %arg6: memref<128x512xf32, #tpu.memory_space<vmem>>, %arg7: memref<128x512xf32, #tpu.memory_space<vmem>>, %arg8: memref<1x512xf32, #tpu.memory_space<vmem>>, %arg9: memref<128x128xf32, #tpu.memory_space<vmem>>, %arg10: memref<1x128xf32, #tpu.memory_space<vmem>>, %arg11: memref<128x128xf32, #tpu.memory_space<vmem>>, %arg12: memref<1x128xf32, #tpu.memory_space<vmem>>, %arg13: memref<32x128xf32, #tpu.memory_space<vmem>>) attributes {dimension_semantics = [#tpu.dimension_semantics<parallel>], iteration_bounds = array<i64: 2>, scalar_prefetch = 0 : i64, scratch_operands = 0 : i64, tpu.core_type = #tpu.core_type<tc>, window_params = [{transform_indices = @transform_0, window_bounds = array<i64: 256, 128>}, {pipeline_mode = #tpu.pipeline_mode<synchronous>, transform_indices = @transform_1, window_bounds = array<i64: 128, 512>}, {pipeline_mode = #tpu.pipeline_mode<synchronous>, transform_indices = @transform_2, window_bounds = array<i64: 128, 512>}, {pipeline_mode = #tpu.pipeline_mode<synchronous>, transform_indices = @transform_3, window_bounds = array<i64: 1, 512>}, {pipeline_mode = #tpu.pipeline_mode<synchronous>, transform_indices = @transform_4, window_bounds = array<i64: 128, 512>}, {pipeline_mode = #tpu.pipeline_mode<synchronous>, transform_indices = @transform_5, window_bounds = array<i64: 128, 512>}, {pipeline_mode = #tpu.pipeline_mode<synchronous>, transform_indices = @transform_6, window_bounds = array<i64: 128, 512>}, {pipeline_mode = #tpu.pipeline_mode<synchronous>, transform_indices = @transform_7, window_bounds = array<i64: 1, 512>}, {pipeline_mode = #tpu.pipeline_mode<synchronous>, transform_indices = @transform_8, window_bounds = array<i64: 128, 128>}, {pipeline_mode = #tpu.pipeline_mode<synchronous>, transform_indices = @transform_9, window_bounds = array<i64: 1, 128>}, {pipeline_mode = #tpu.pipeline_mode<synchronous>, transform_indices = @transform_10, window_bounds = array<i64: 128, 128>}, {pipeline_mode = #tpu.pipeline_mode<synchronous>, transform_indices = @transform_11, window_bounds = array<i64: 1, 128>}, {transform_indices = @transform_12, window_bounds = array<i64: 32, 128>}]} {
    %c0 = arith.constant 0 : index
    %c0_0 = arith.constant 0 : index
    %0 = vector.load %arg1[%c0, %c0_0] : memref<256x128xf32, #tpu.memory_space<vmem>>, vector<256x128xf32>
    %c0_1 = arith.constant 0 : index
    %c0_2 = arith.constant 0 : index
    %1 = vector.load %arg2[%c0_1, %c0_2] : memref<128x512xf32, #tpu.memory_space<vmem>>, vector<128x512xf32>
    %cst = arith.constant dense<0.000000e+00> : vector<256x512xf32>
    %2 = tpu.matmul %0, %1, %cst {dimension_numbers = #tpu.dot_dimension_numbers<[1], [0], [0], [1], [0, 0, 1, 1], [], []>} : vector<256x128xf32>, vector<128x512xf32>, vector<256x512xf32> -> vector<256x512xf32>
    %c0_3 = arith.constant 0 : index
    %c0_4 = arith.constant 0 : index
    %3 = vector.load %arg4[%c0_3, %c0_4] : memref<1x512xf32, #tpu.memory_space<vmem>>, vector<1x512xf32>
    %4 = vector.broadcast %3 : vector<1x512xf32> to vector<256x512xf32>
    %5 = arith.addf %2, %4 : vector<256x512xf32>
    %6 = vector.extract_strided_slice %5 {offsets = [0, 0], sizes = [32, 512], strides = [1, 1]} : vector<256x512xf32> to vector<32x512xf32>
    %7 = vector.extract_strided_slice %5 {offsets = [32, 0], sizes = [32, 512], strides = [1, 1]} : vector<256x512xf32> to vector<32x512xf32>
    %8 = vector.extract_strided_slice %5 {offsets = [64, 0], sizes = [32, 512], strides = [1, 1]} : vector<256x512xf32> to vector<32x512xf32>
    %9 = vector.extract_strided_slice %5 {offsets = [96, 0], sizes = [32, 512], strides = [1, 1]} : vector<256x512xf32> to vector<32x512xf32>
    %10 = vector.extract_strided_slice %5 {offsets = [128, 0], sizes = [32, 512], strides = [1, 1]} : vector<256x512xf32> to vector<32x512xf32>
    %11 = vector.extract_strided_slice %5 {offsets = [160, 0], sizes = [32, 512], strides = [1, 1]} : vector<256x512xf32> to vector<32x512xf32>
    %12 = vector.extract_strided_slice %5 {offsets = [192, 0], sizes = [32, 512], strides = [1, 1]} : vector<256x512xf32> to vector<32x512xf32>
    %13 = vector.extract_strided_slice %5 {offsets = [224, 0], sizes = [32, 512], strides = [1, 1]} : vector<256x512xf32> to vector<32x512xf32>
    %c0_5 = arith.constant 0 : index
    %c0_6 = arith.constant 0 : index
    %14 = vector.load %arg3[%c0_5, %c0_6] : memref<128x512xf32, #tpu.memory_space<vmem>>, vector<128x512xf32>
    %15 = vector.extract_strided_slice %6 {offsets = [0, 0], sizes = [32, 384], strides = [1, 1]} : vector<32x512xf32> to vector<32x384xf32>
    %16 = arith.negf %15 : vector<32x384xf32>
    %17 = math.exp %16 : vector<32x384xf32>
    %cst_7 = arith.constant 1.000000e+00 : f32
    %18 = vector.broadcast %cst_7 : f32 to vector<32x384xf32>
    %19 = arith.addf %18, %17 : vector<32x384xf32>
    %20 = arith.divf %18, %19 : vector<32x384xf32>
    %21 = vector.extract_strided_slice %20 {offsets = [0, 0], sizes = [32, 128], strides = [1, 1]} : vector<32x384xf32> to vector<32x128xf32>
    %22 = vector.extract_strided_slice %20 {offsets = [0, 256], sizes = [32, 128], strides = [1, 1]} : vector<32x384xf32> to vector<32x128xf32>
    %23 = vector.extract_strided_slice %6 {offsets = [0, 384], sizes = [32, 128], strides = [1, 1]} : vector<32x512xf32> to vector<32x128xf32>
    %24 = math.tanh %23 : vector<32x128xf32>
    %25 = arith.mulf %21, %24 : vector<32x128xf32>
    %26 = math.tanh %25 : vector<32x128xf32>
    %27 = arith.mulf %22, %26 : vector<32x128xf32>
    %cst_8 = arith.constant dense<0.000000e+00> : vector<32x512xf32>
    %28 = tpu.matmul %27, %14, %cst_8 {dimension_numbers = #tpu.dot_dimension_numbers<[1], [0], [0], [1], [0, 0, 1, 1], [], []>} : vector<32x128xf32>, vector<128x512xf32>, vector<32x512xf32> -> vector<32x512xf32>
    %29 = arith.addf %28, %7 : vector<32x512xf32>
    %30 = vector.extract_strided_slice %29 {offsets = [0, 0], sizes = [32, 384], strides = [1, 1]} : vector<32x512xf32> to vector<32x384xf32>
    %31 = arith.negf %30 : vector<32x384xf32>
    %32 = math.exp %31 : vector<32x384xf32>
    %cst_9 = arith.constant 1.000000e+00 : f32
    %33 = vector.broadcast %cst_9 : f32 to vector<32x384xf32>
    %34 = arith.addf %33, %32 : vector<32x384xf32>
    %35 = arith.divf %33, %34 : vector<32x384xf32>
    %36 = vector.extract_strided_slice %35 {offsets = [0, 0], sizes = [32, 128], strides = [1, 1]} : vector<32x384xf32> to vector<32x128xf32>
    %37 = vector.extract_strided_slice %35 {offsets = [0, 128], sizes = [32, 128], strides = [1, 1]} : vector<32x384xf32> to vector<32x128xf32>
    %38 = vector.extract_strided_slice %35 {offsets = [0, 256], sizes = [32, 128], strides = [1, 1]} : vector<32x384xf32> to vector<32x128xf32>
    %39 = vector.extract_strided_slice %29 {offsets = [0, 384], sizes = [32, 128], strides = [1, 1]} : vector<32x512xf32> to vector<32x128xf32>
    %40 = math.tanh %39 : vector<32x128xf32>
    %41 = arith.mulf %37, %25 : vector<32x128xf32>
    %42 = arith.mulf %36, %40 : vector<32x128xf32>
    %43 = arith.addf %41, %42 : vector<32x128xf32>
    %44 = math.tanh %43 : vector<32x128xf32>
    %45 = arith.mulf %38, %44 : vector<32x128xf32>
    %cst_10 = arith.constant dense<0.000000e+00> : vector<32x512xf32>
    %46 = tpu.matmul %45, %14, %cst_10 {dimension_numbers = #tpu.dot_dimension_numbers<[1], [0], [0], [1], [0, 0, 1, 1], [], []>} : vector<32x128xf32>, vector<128x512xf32>, vector<32x512xf32> -> vector<32x512xf32>
    %47 = arith.addf %46, %8 : vector<32x512xf32>
    %48 = vector.extract_strided_slice %47 {offsets = [0, 0], sizes = [32, 384], strides = [1, 1]} : vector<32x512xf32> to vector<32x384xf32>
    %49 = arith.negf %48 : vector<32x384xf32>
    %50 = math.exp %49 : vector<32x384xf32>
    %cst_11 = arith.constant 1.000000e+00 : f32
    %51 = vector.broadcast %cst_11 : f32 to vector<32x384xf32>
    %52 = arith.addf %51, %50 : vector<32x384xf32>
    %53 = arith.divf %51, %52 : vector<32x384xf32>
    %54 = vector.extract_strided_slice %53 {offsets = [0, 0], sizes = [32, 128], strides = [1, 1]} : vector<32x384xf32> to vector<32x128xf32>
    %55 = vector.extract_strided_slice %53 {offsets = [0, 128], sizes = [32, 128], strides = [1, 1]} : vector<32x384xf32> to vector<32x128xf32>
    %56 = vector.extract_strided_slice %53 {offsets = [0, 256], sizes = [32, 128], strides = [1, 1]} : vector<32x384xf32> to vector<32x128xf32>
    %57 = vector.extract_strided_slice %47 {offsets = [0, 384], sizes = [32, 128], strides = [1, 1]} : vector<32x512xf32> to vector<32x128xf32>
    %58 = math.tanh %57 : vector<32x128xf32>
    %59 = arith.mulf %55, %43 : vector<32x128xf32>
    %60 = arith.mulf %54, %58 : vector<32x128xf32>
    %61 = arith.addf %59, %60 : vector<32x128xf32>
    %62 = math.tanh %61 : vector<32x128xf32>
    %63 = arith.mulf %56, %62 : vector<32x128xf32>
    %cst_12 = arith.constant dense<0.000000e+00> : vector<32x512xf32>
    %64 = tpu.matmul %63, %14, %cst_12 {dimension_numbers = #tpu.dot_dimension_numbers<[1], [0], [0], [1], [0, 0, 1, 1], [], []>} : vector<32x128xf32>, vector<128x512xf32>, vector<32x512xf32> -> vector<32x512xf32>
    %65 = arith.addf %64, %9 : vector<32x512xf32>
    %66 = vector.extract_strided_slice %65 {offsets = [0, 0], sizes = [32, 384], strides = [1, 1]} : vector<32x512xf32> to vector<32x384xf32>
    %67 = arith.negf %66 : vector<32x384xf32>
    %68 = math.exp %67 : vector<32x384xf32>
    %cst_13 = arith.constant 1.000000e+00 : f32
    %69 = vector.broadcast %cst_13 : f32 to vector<32x384xf32>
    %70 = arith.addf %69, %68 : vector<32x384xf32>
    %71 = arith.divf %69, %70 : vector<32x384xf32>
    %72 = vector.extract_strided_slice %71 {offsets = [0, 0], sizes = [32, 128], strides = [1, 1]} : vector<32x384xf32> to vector<32x128xf32>
    %73 = vector.extract_strided_slice %71 {offsets = [0, 128], sizes = [32, 128], strides = [1, 1]} : vector<32x384xf32> to vector<32x128xf32>
    %74 = vector.extract_strided_slice %71 {offsets = [0, 256], sizes = [32, 128], strides = [1, 1]} : vector<32x384xf32> to vector<32x128xf32>
    %75 = vector.extract_strided_slice %65 {offsets = [0, 384], sizes = [32, 128], strides = [1, 1]} : vector<32x512xf32> to vector<32x128xf32>
    %76 = math.tanh %75 : vector<32x128xf32>
    %77 = arith.mulf %73, %61 : vector<32x128xf32>
    %78 = arith.mulf %72, %76 : vector<32x128xf32>
    %79 = arith.addf %77, %78 : vector<32x128xf32>
    %80 = math.tanh %79 : vector<32x128xf32>
    %81 = arith.mulf %74, %80 : vector<32x128xf32>
    %cst_14 = arith.constant dense<0.000000e+00> : vector<32x512xf32>
    %82 = tpu.matmul %81, %14, %cst_14 {dimension_numbers = #tpu.dot_dimension_numbers<[1], [0], [0], [1], [0, 0, 1, 1], [], []>} : vector<32x128xf32>, vector<128x512xf32>, vector<32x512xf32> -> vector<32x512xf32>
    %83 = arith.addf %82, %10 : vector<32x512xf32>
    %84 = vector.extract_strided_slice %83 {offsets = [0, 0], sizes = [32, 384], strides = [1, 1]} : vector<32x512xf32> to vector<32x384xf32>
    %85 = arith.negf %84 : vector<32x384xf32>
    %86 = math.exp %85 : vector<32x384xf32>
    %cst_15 = arith.constant 1.000000e+00 : f32
    %87 = vector.broadcast %cst_15 : f32 to vector<32x384xf32>
    %88 = arith.addf %87, %86 : vector<32x384xf32>
    %89 = arith.divf %87, %88 : vector<32x384xf32>
    %90 = vector.extract_strided_slice %89 {offsets = [0, 0], sizes = [32, 128], strides = [1, 1]} : vector<32x384xf32> to vector<32x128xf32>
    %91 = vector.extract_strided_slice %89 {offsets = [0, 128], sizes = [32, 128], strides = [1, 1]} : vector<32x384xf32> to vector<32x128xf32>
    %92 = vector.extract_strided_slice %89 {offsets = [0, 256], sizes = [32, 128], strides = [1, 1]} : vector<32x384xf32> to vector<32x128xf32>
    %93 = vector.extract_strided_slice %83 {offsets = [0, 384], sizes = [32, 128], strides = [1, 1]} : vector<32x512xf32> to vector<32x128xf32>
    %94 = math.tanh %93 : vector<32x128xf32>
    %95 = arith.mulf %91, %79 : vector<32x128xf32>
    %96 = arith.mulf %90, %94 : vector<32x128xf32>
    %97 = arith.addf %95, %96 : vector<32x128xf32>
    %98 = math.tanh %97 : vector<32x128xf32>
    %99 = arith.mulf %92, %98 : vector<32x128xf32>
    %cst_16 = arith.constant dense<0.000000e+00> : vector<32x512xf32>
    %100 = tpu.matmul %99, %14, %cst_16 {dimension_numbers = #tpu.dot_dimension_numbers<[1], [0], [0], [1], [0, 0, 1, 1], [], []>} : vector<32x128xf32>, vector<128x512xf32>, vector<32x512xf32> -> vector<32x512xf32>
    %101 = arith.addf %100, %11 : vector<32x512xf32>
    %102 = vector.extract_strided_slice %101 {offsets = [0, 0], sizes = [32, 384], strides = [1, 1]} : vector<32x512xf32> to vector<32x384xf32>
    %103 = arith.negf %102 : vector<32x384xf32>
    %104 = math.exp %103 : vector<32x384xf32>
    %cst_17 = arith.constant 1.000000e+00 : f32
    %105 = vector.broadcast %cst_17 : f32 to vector<32x384xf32>
    %106 = arith.addf %105, %104 : vector<32x384xf32>
    %107 = arith.divf %105, %106 : vector<32x384xf32>
    %108 = vector.extract_strided_slice %107 {offsets = [0, 0], sizes = [32, 128], strides = [1, 1]} : vector<32x384xf32> to vector<32x128xf32>
    %109 = vector.extract_strided_slice %107 {offsets = [0, 128], sizes = [32, 128], strides = [1, 1]} : vector<32x384xf32> to vector<32x128xf32>
    %110 = vector.extract_strided_slice %107 {offsets = [0, 256], sizes = [32, 128], strides = [1, 1]} : vector<32x384xf32> to vector<32x128xf32>
    %111 = vector.extract_strided_slice %101 {offsets = [0, 384], sizes = [32, 128], strides = [1, 1]} : vector<32x512xf32> to vector<32x128xf32>
    %112 = math.tanh %111 : vector<32x128xf32>
    %113 = arith.mulf %109, %97 : vector<32x128xf32>
    %114 = arith.mulf %108, %112 : vector<32x128xf32>
    %115 = arith.addf %113, %114 : vector<32x128xf32>
    %116 = math.tanh %115 : vector<32x128xf32>
    %117 = arith.mulf %110, %116 : vector<32x128xf32>
    %cst_18 = arith.constant dense<0.000000e+00> : vector<32x512xf32>
    %118 = tpu.matmul %117, %14, %cst_18 {dimension_numbers = #tpu.dot_dimension_numbers<[1], [0], [0], [1], [0, 0, 1, 1], [], []>} : vector<32x128xf32>, vector<128x512xf32>, vector<32x512xf32> -> vector<32x512xf32>
    %119 = arith.addf %118, %12 : vector<32x512xf32>
    %120 = vector.extract_strided_slice %119 {offsets = [0, 0], sizes = [32, 384], strides = [1, 1]} : vector<32x512xf32> to vector<32x384xf32>
    %121 = arith.negf %120 : vector<32x384xf32>
    %122 = math.exp %121 : vector<32x384xf32>
    %cst_19 = arith.constant 1.000000e+00 : f32
    %123 = vector.broadcast %cst_19 : f32 to vector<32x384xf32>
    %124 = arith.addf %123, %122 : vector<32x384xf32>
    %125 = arith.divf %123, %124 : vector<32x384xf32>
    %126 = vector.extract_strided_slice %125 {offsets = [0, 0], sizes = [32, 128], strides = [1, 1]} : vector<32x384xf32> to vector<32x128xf32>
    %127 = vector.extract_strided_slice %125 {offsets = [0, 128], sizes = [32, 128], strides = [1, 1]} : vector<32x384xf32> to vector<32x128xf32>
    %128 = vector.extract_strided_slice %125 {offsets = [0, 256], sizes = [32, 128], strides = [1, 1]} : vector<32x384xf32> to vector<32x128xf32>
    %129 = vector.extract_strided_slice %119 {offsets = [0, 384], sizes = [32, 128], strides = [1, 1]} : vector<32x512xf32> to vector<32x128xf32>
    %130 = math.tanh %129 : vector<32x128xf32>
    %131 = arith.mulf %127, %115 : vector<32x128xf32>
    %132 = arith.mulf %126, %130 : vector<32x128xf32>
    %133 = arith.addf %131, %132 : vector<32x128xf32>
    %134 = math.tanh %133 : vector<32x128xf32>
    %135 = arith.mulf %128, %134 : vector<32x128xf32>
    %cst_20 = arith.constant dense<0.000000e+00> : vector<32x512xf32>
    %136 = tpu.matmul %135, %14, %cst_20 {dimension_numbers = #tpu.dot_dimension_numbers<[1], [0], [0], [1], [0, 0, 1, 1], [], []>} : vector<32x128xf32>, vector<128x512xf32>, vector<32x512xf32> -> vector<32x512xf32>
    %137 = arith.addf %136, %13 : vector<32x512xf32>
    %138 = vector.extract_strided_slice %137 {offsets = [0, 0], sizes = [32, 384], strides = [1, 1]} : vector<32x512xf32> to vector<32x384xf32>
    %139 = arith.negf %138 : vector<32x384xf32>
    %140 = math.exp %139 : vector<32x384xf32>
    %cst_21 = arith.constant 1.000000e+00 : f32
    %141 = vector.broadcast %cst_21 : f32 to vector<32x384xf32>
    %142 = arith.addf %141, %140 : vector<32x384xf32>
    %143 = arith.divf %141, %142 : vector<32x384xf32>
    %144 = vector.extract_strided_slice %143 {offsets = [0, 0], sizes = [32, 128], strides = [1, 1]} : vector<32x384xf32> to vector<32x128xf32>
    %145 = vector.extract_strided_slice %143 {offsets = [0, 128], sizes = [32, 128], strides = [1, 1]} : vector<32x384xf32> to vector<32x128xf32>
    %146 = vector.extract_strided_slice %143 {offsets = [0, 256], sizes = [32, 128], strides = [1, 1]} : vector<32x384xf32> to vector<32x128xf32>
    %147 = vector.extract_strided_slice %137 {offsets = [0, 384], sizes = [32, 128], strides = [1, 1]} : vector<32x512xf32> to vector<32x128xf32>
    %148 = math.tanh %147 : vector<32x128xf32>
    %149 = arith.mulf %145, %133 : vector<32x128xf32>
    %150 = arith.mulf %144, %148 : vector<32x128xf32>
    %151 = arith.addf %149, %150 : vector<32x128xf32>
    %152 = math.tanh %151 : vector<32x128xf32>
    %153 = arith.mulf %146, %152 : vector<32x128xf32>
    %154 = tpu.concatenate %27, %45, %63, %81, %99, %117, %135, %153 in 0 : vector<32x128xf32>, vector<32x128xf32>, vector<32x128xf32>, vector<32x128xf32>, vector<32x128xf32>, vector<32x128xf32>, vector<32x128xf32>, vector<32x128xf32> -> vector<256x128xf32>
    %155 = tpu.concatenate %153, %135, %117, %99, %81, %63, %45, %27 in 0 : vector<32x128xf32>, vector<32x128xf32>, vector<32x128xf32>, vector<32x128xf32>, vector<32x128xf32>, vector<32x128xf32>, vector<32x128xf32>, vector<32x128xf32> -> vector<256x128xf32>
    %c0_22 = arith.constant 0 : index
    %c0_23 = arith.constant 0 : index
    %156 = vector.load %arg5[%c0_22, %c0_23] : memref<128x512xf32, #tpu.memory_space<vmem>>, vector<128x512xf32>
    %cst_24 = arith.constant dense<0.000000e+00> : vector<256x512xf32>
    %157 = tpu.matmul %154, %156, %cst_24 {dimension_numbers = #tpu.dot_dimension_numbers<[1], [0], [0], [1], [0, 0, 1, 1], [], []>} : vector<256x128xf32>, vector<128x512xf32>, vector<256x512xf32> -> vector<256x512xf32>
    %c0_25 = arith.constant 0 : index
    %c0_26 = arith.constant 0 : index
    %158 = vector.load %arg6[%c0_25, %c0_26] : memref<128x512xf32, #tpu.memory_space<vmem>>, vector<128x512xf32>
    %cst_27 = arith.constant dense<0.000000e+00> : vector<256x512xf32>
    %159 = tpu.matmul %155, %158, %cst_27 {dimension_numbers = #tpu.dot_dimension_numbers<[1], [0], [0], [1], [0, 0, 1, 1], [], []>} : vector<256x128xf32>, vector<128x512xf32>, vector<256x512xf32> -> vector<256x512xf32>
    %160 = arith.addf %157, %159 : vector<256x512xf32>
    %c0_28 = arith.constant 0 : index
    %c0_29 = arith.constant 0 : index
    %161 = vector.load %arg8[%c0_28, %c0_29] : memref<1x512xf32, #tpu.memory_space<vmem>>, vector<1x512xf32>
    %162 = vector.broadcast %161 : vector<1x512xf32> to vector<256x512xf32>
    %163 = arith.addf %160, %162 : vector<256x512xf32>
    %164 = vector.extract_strided_slice %163 {offsets = [0, 0], sizes = [32, 512], strides = [1, 1]} : vector<256x512xf32> to vector<32x512xf32>
    %165 = vector.extract_strided_slice %163 {offsets = [32, 0], sizes = [32, 512], strides = [1, 1]} : vector<256x512xf32> to vector<32x512xf32>
    %166 = vector.extract_strided_slice %163 {offsets = [64, 0], sizes = [32, 512], strides = [1, 1]} : vector<256x512xf32> to vector<32x512xf32>
    %167 = vector.extract_strided_slice %163 {offsets = [96, 0], sizes = [32, 512], strides = [1, 1]} : vector<256x512xf32> to vector<32x512xf32>
    %168 = vector.extract_strided_slice %163 {offsets = [128, 0], sizes = [32, 512], strides = [1, 1]} : vector<256x512xf32> to vector<32x512xf32>
    %169 = vector.extract_strided_slice %163 {offsets = [160, 0], sizes = [32, 512], strides = [1, 1]} : vector<256x512xf32> to vector<32x512xf32>
    %170 = vector.extract_strided_slice %163 {offsets = [192, 0], sizes = [32, 512], strides = [1, 1]} : vector<256x512xf32> to vector<32x512xf32>
    %171 = vector.extract_strided_slice %163 {offsets = [224, 0], sizes = [32, 512], strides = [1, 1]} : vector<256x512xf32> to vector<32x512xf32>
    %c0_30 = arith.constant 0 : index
    %c0_31 = arith.constant 0 : index
    %172 = vector.load %arg7[%c0_30, %c0_31] : memref<128x512xf32, #tpu.memory_space<vmem>>, vector<128x512xf32>
    %173 = vector.extract_strided_slice %164 {offsets = [0, 0], sizes = [32, 384], strides = [1, 1]} : vector<32x512xf32> to vector<32x384xf32>
    %174 = arith.negf %173 : vector<32x384xf32>
    %175 = math.exp %174 : vector<32x384xf32>
    %cst_32 = arith.constant 1.000000e+00 : f32
    %176 = vector.broadcast %cst_32 : f32 to vector<32x384xf32>
    %177 = arith.addf %176, %175 : vector<32x384xf32>
    %178 = arith.divf %176, %177 : vector<32x384xf32>
    %179 = vector.extract_strided_slice %178 {offsets = [0, 0], sizes = [32, 128], strides = [1, 1]} : vector<32x384xf32> to vector<32x128xf32>
    %180 = vector.extract_strided_slice %178 {offsets = [0, 256], sizes = [32, 128], strides = [1, 1]} : vector<32x384xf32> to vector<32x128xf32>
    %181 = vector.extract_strided_slice %164 {offsets = [0, 384], sizes = [32, 128], strides = [1, 1]} : vector<32x512xf32> to vector<32x128xf32>
    %182 = math.tanh %181 : vector<32x128xf32>
    %183 = arith.mulf %179, %182 : vector<32x128xf32>
    %184 = math.tanh %183 : vector<32x128xf32>
    %185 = arith.mulf %180, %184 : vector<32x128xf32>
    %cst_33 = arith.constant dense<0.000000e+00> : vector<32x512xf32>
    %186 = tpu.matmul %185, %172, %cst_33 {dimension_numbers = #tpu.dot_dimension_numbers<[1], [0], [0], [1], [0, 0, 1, 1], [], []>} : vector<32x128xf32>, vector<128x512xf32>, vector<32x512xf32> -> vector<32x512xf32>
    %187 = arith.addf %186, %165 : vector<32x512xf32>
    %188 = vector.extract_strided_slice %187 {offsets = [0, 0], sizes = [32, 384], strides = [1, 1]} : vector<32x512xf32> to vector<32x384xf32>
    %189 = arith.negf %188 : vector<32x384xf32>
    %190 = math.exp %189 : vector<32x384xf32>
    %cst_34 = arith.constant 1.000000e+00 : f32
    %191 = vector.broadcast %cst_34 : f32 to vector<32x384xf32>
    %192 = arith.addf %191, %190 : vector<32x384xf32>
    %193 = arith.divf %191, %192 : vector<32x384xf32>
    %194 = vector.extract_strided_slice %193 {offsets = [0, 0], sizes = [32, 128], strides = [1, 1]} : vector<32x384xf32> to vector<32x128xf32>
    %195 = vector.extract_strided_slice %193 {offsets = [0, 128], sizes = [32, 128], strides = [1, 1]} : vector<32x384xf32> to vector<32x128xf32>
    %196 = vector.extract_strided_slice %193 {offsets = [0, 256], sizes = [32, 128], strides = [1, 1]} : vector<32x384xf32> to vector<32x128xf32>
    %197 = vector.extract_strided_slice %187 {offsets = [0, 384], sizes = [32, 128], strides = [1, 1]} : vector<32x512xf32> to vector<32x128xf32>
    %198 = math.tanh %197 : vector<32x128xf32>
    %199 = arith.mulf %195, %183 : vector<32x128xf32>
    %200 = arith.mulf %194, %198 : vector<32x128xf32>
    %201 = arith.addf %199, %200 : vector<32x128xf32>
    %202 = math.tanh %201 : vector<32x128xf32>
    %203 = arith.mulf %196, %202 : vector<32x128xf32>
    %cst_35 = arith.constant dense<0.000000e+00> : vector<32x512xf32>
    %204 = tpu.matmul %203, %172, %cst_35 {dimension_numbers = #tpu.dot_dimension_numbers<[1], [0], [0], [1], [0, 0, 1, 1], [], []>} : vector<32x128xf32>, vector<128x512xf32>, vector<32x512xf32> -> vector<32x512xf32>
    %205 = arith.addf %204, %166 : vector<32x512xf32>
    %206 = vector.extract_strided_slice %205 {offsets = [0, 0], sizes = [32, 384], strides = [1, 1]} : vector<32x512xf32> to vector<32x384xf32>
    %207 = arith.negf %206 : vector<32x384xf32>
    %208 = math.exp %207 : vector<32x384xf32>
    %cst_36 = arith.constant 1.000000e+00 : f32
    %209 = vector.broadcast %cst_36 : f32 to vector<32x384xf32>
    %210 = arith.addf %209, %208 : vector<32x384xf32>
    %211 = arith.divf %209, %210 : vector<32x384xf32>
    %212 = vector.extract_strided_slice %211 {offsets = [0, 0], sizes = [32, 128], strides = [1, 1]} : vector<32x384xf32> to vector<32x128xf32>
    %213 = vector.extract_strided_slice %211 {offsets = [0, 128], sizes = [32, 128], strides = [1, 1]} : vector<32x384xf32> to vector<32x128xf32>
    %214 = vector.extract_strided_slice %211 {offsets = [0, 256], sizes = [32, 128], strides = [1, 1]} : vector<32x384xf32> to vector<32x128xf32>
    %215 = vector.extract_strided_slice %205 {offsets = [0, 384], sizes = [32, 128], strides = [1, 1]} : vector<32x512xf32> to vector<32x128xf32>
    %216 = math.tanh %215 : vector<32x128xf32>
    %217 = arith.mulf %213, %201 : vector<32x128xf32>
    %218 = arith.mulf %212, %216 : vector<32x128xf32>
    %219 = arith.addf %217, %218 : vector<32x128xf32>
    %220 = math.tanh %219 : vector<32x128xf32>
    %221 = arith.mulf %214, %220 : vector<32x128xf32>
    %cst_37 = arith.constant dense<0.000000e+00> : vector<32x512xf32>
    %222 = tpu.matmul %221, %172, %cst_37 {dimension_numbers = #tpu.dot_dimension_numbers<[1], [0], [0], [1], [0, 0, 1, 1], [], []>} : vector<32x128xf32>, vector<128x512xf32>, vector<32x512xf32> -> vector<32x512xf32>
    %223 = arith.addf %222, %167 : vector<32x512xf32>
    %224 = vector.extract_strided_slice %223 {offsets = [0, 0], sizes = [32, 384], strides = [1, 1]} : vector<32x512xf32> to vector<32x384xf32>
    %225 = arith.negf %224 : vector<32x384xf32>
    %226 = math.exp %225 : vector<32x384xf32>
    %cst_38 = arith.constant 1.000000e+00 : f32
    %227 = vector.broadcast %cst_38 : f32 to vector<32x384xf32>
    %228 = arith.addf %227, %226 : vector<32x384xf32>
    %229 = arith.divf %227, %228 : vector<32x384xf32>
    %230 = vector.extract_strided_slice %229 {offsets = [0, 0], sizes = [32, 128], strides = [1, 1]} : vector<32x384xf32> to vector<32x128xf32>
    %231 = vector.extract_strided_slice %229 {offsets = [0, 128], sizes = [32, 128], strides = [1, 1]} : vector<32x384xf32> to vector<32x128xf32>
    %232 = vector.extract_strided_slice %229 {offsets = [0, 256], sizes = [32, 128], strides = [1, 1]} : vector<32x384xf32> to vector<32x128xf32>
    %233 = vector.extract_strided_slice %223 {offsets = [0, 384], sizes = [32, 128], strides = [1, 1]} : vector<32x512xf32> to vector<32x128xf32>
    %234 = math.tanh %233 : vector<32x128xf32>
    %235 = arith.mulf %231, %219 : vector<32x128xf32>
    %236 = arith.mulf %230, %234 : vector<32x128xf32>
    %237 = arith.addf %235, %236 : vector<32x128xf32>
    %238 = math.tanh %237 : vector<32x128xf32>
    %239 = arith.mulf %232, %238 : vector<32x128xf32>
    %cst_39 = arith.constant dense<0.000000e+00> : vector<32x512xf32>
    %240 = tpu.matmul %239, %172, %cst_39 {dimension_numbers = #tpu.dot_dimension_numbers<[1], [0], [0], [1], [0, 0, 1, 1], [], []>} : vector<32x128xf32>, vector<128x512xf32>, vector<32x512xf32> -> vector<32x512xf32>
    %241 = arith.addf %240, %168 : vector<32x512xf32>
    %242 = vector.extract_strided_slice %241 {offsets = [0, 0], sizes = [32, 384], strides = [1, 1]} : vector<32x512xf32> to vector<32x384xf32>
    %243 = arith.negf %242 : vector<32x384xf32>
    %244 = math.exp %243 : vector<32x384xf32>
    %cst_40 = arith.constant 1.000000e+00 : f32
    %245 = vector.broadcast %cst_40 : f32 to vector<32x384xf32>
    %246 = arith.addf %245, %244 : vector<32x384xf32>
    %247 = arith.divf %245, %246 : vector<32x384xf32>
    %248 = vector.extract_strided_slice %247 {offsets = [0, 0], sizes = [32, 128], strides = [1, 1]} : vector<32x384xf32> to vector<32x128xf32>
    %249 = vector.extract_strided_slice %247 {offsets = [0, 128], sizes = [32, 128], strides = [1, 1]} : vector<32x384xf32> to vector<32x128xf32>
    %250 = vector.extract_strided_slice %247 {offsets = [0, 256], sizes = [32, 128], strides = [1, 1]} : vector<32x384xf32> to vector<32x128xf32>
    %251 = vector.extract_strided_slice %241 {offsets = [0, 384], sizes = [32, 128], strides = [1, 1]} : vector<32x512xf32> to vector<32x128xf32>
    %252 = math.tanh %251 : vector<32x128xf32>
    %253 = arith.mulf %249, %237 : vector<32x128xf32>
    %254 = arith.mulf %248, %252 : vector<32x128xf32>
    %255 = arith.addf %253, %254 : vector<32x128xf32>
    %256 = math.tanh %255 : vector<32x128xf32>
    %257 = arith.mulf %250, %256 : vector<32x128xf32>
    %cst_41 = arith.constant dense<0.000000e+00> : vector<32x512xf32>
    %258 = tpu.matmul %257, %172, %cst_41 {dimension_numbers = #tpu.dot_dimension_numbers<[1], [0], [0], [1], [0, 0, 1, 1], [], []>} : vector<32x128xf32>, vector<128x512xf32>, vector<32x512xf32> -> vector<32x512xf32>
    %259 = arith.addf %258, %169 : vector<32x512xf32>
    %260 = vector.extract_strided_slice %259 {offsets = [0, 0], sizes = [32, 384], strides = [1, 1]} : vector<32x512xf32> to vector<32x384xf32>
    %261 = arith.negf %260 : vector<32x384xf32>
    %262 = math.exp %261 : vector<32x384xf32>
    %cst_42 = arith.constant 1.000000e+00 : f32
    %263 = vector.broadcast %cst_42 : f32 to vector<32x384xf32>
    %264 = arith.addf %263, %262 : vector<32x384xf32>
    %265 = arith.divf %263, %264 : vector<32x384xf32>
    %266 = vector.extract_strided_slice %265 {offsets = [0, 0], sizes = [32, 128], strides = [1, 1]} : vector<32x384xf32> to vector<32x128xf32>
    %267 = vector.extract_strided_slice %265 {offsets = [0, 128], sizes = [32, 128], strides = [1, 1]} : vector<32x384xf32> to vector<32x128xf32>
    %268 = vector.extract_strided_slice %265 {offsets = [0, 256], sizes = [32, 128], strides = [1, 1]} : vector<32x384xf32> to vector<32x128xf32>
    %269 = vector.extract_strided_slice %259 {offsets = [0, 384], sizes = [32, 128], strides = [1, 1]} : vector<32x512xf32> to vector<32x128xf32>
    %270 = math.tanh %269 : vector<32x128xf32>
    %271 = arith.mulf %267, %255 : vector<32x128xf32>
    %272 = arith.mulf %266, %270 : vector<32x128xf32>
    %273 = arith.addf %271, %272 : vector<32x128xf32>
    %274 = math.tanh %273 : vector<32x128xf32>
    %275 = arith.mulf %268, %274 : vector<32x128xf32>
    %cst_43 = arith.constant dense<0.000000e+00> : vector<32x512xf32>
    %276 = tpu.matmul %275, %172, %cst_43 {dimension_numbers = #tpu.dot_dimension_numbers<[1], [0], [0], [1], [0, 0, 1, 1], [], []>} : vector<32x128xf32>, vector<128x512xf32>, vector<32x512xf32> -> vector<32x512xf32>
    %277 = arith.addf %276, %170 : vector<32x512xf32>
    %278 = vector.extract_strided_slice %277 {offsets = [0, 0], sizes = [32, 384], strides = [1, 1]} : vector<32x512xf32> to vector<32x384xf32>
    %279 = arith.negf %278 : vector<32x384xf32>
    %280 = math.exp %279 : vector<32x384xf32>
    %cst_44 = arith.constant 1.000000e+00 : f32
    %281 = vector.broadcast %cst_44 : f32 to vector<32x384xf32>
    %282 = arith.addf %281, %280 : vector<32x384xf32>
    %283 = arith.divf %281, %282 : vector<32x384xf32>
    %284 = vector.extract_strided_slice %283 {offsets = [0, 0], sizes = [32, 128], strides = [1, 1]} : vector<32x384xf32> to vector<32x128xf32>
    %285 = vector.extract_strided_slice %283 {offsets = [0, 128], sizes = [32, 128], strides = [1, 1]} : vector<32x384xf32> to vector<32x128xf32>
    %286 = vector.extract_strided_slice %283 {offsets = [0, 256], sizes = [32, 128], strides = [1, 1]} : vector<32x384xf32> to vector<32x128xf32>
    %287 = vector.extract_strided_slice %277 {offsets = [0, 384], sizes = [32, 128], strides = [1, 1]} : vector<32x512xf32> to vector<32x128xf32>
    %288 = math.tanh %287 : vector<32x128xf32>
    %289 = arith.mulf %285, %273 : vector<32x128xf32>
    %290 = arith.mulf %284, %288 : vector<32x128xf32>
    %291 = arith.addf %289, %290 : vector<32x128xf32>
    %292 = math.tanh %291 : vector<32x128xf32>
    %293 = arith.mulf %286, %292 : vector<32x128xf32>
    %cst_45 = arith.constant dense<0.000000e+00> : vector<32x512xf32>
    %294 = tpu.matmul %293, %172, %cst_45 {dimension_numbers = #tpu.dot_dimension_numbers<[1], [0], [0], [1], [0, 0, 1, 1], [], []>} : vector<32x128xf32>, vector<128x512xf32>, vector<32x512xf32> -> vector<32x512xf32>
    %295 = arith.addf %294, %171 : vector<32x512xf32>
    %296 = vector.extract_strided_slice %295 {offsets = [0, 0], sizes = [32, 384], strides = [1, 1]} : vector<32x512xf32> to vector<32x384xf32>
    %297 = arith.negf %296 : vector<32x384xf32>
    %298 = math.exp %297 : vector<32x384xf32>
    %cst_46 = arith.constant 1.000000e+00 : f32
    %299 = vector.broadcast %cst_46 : f32 to vector<32x384xf32>
    %300 = arith.addf %299, %298 : vector<32x384xf32>
    %301 = arith.divf %299, %300 : vector<32x384xf32>
    %302 = vector.extract_strided_slice %301 {offsets = [0, 0], sizes = [32, 128], strides = [1, 1]} : vector<32x384xf32> to vector<32x128xf32>
    %303 = vector.extract_strided_slice %301 {offsets = [0, 128], sizes = [32, 128], strides = [1, 1]} : vector<32x384xf32> to vector<32x128xf32>
    %304 = vector.extract_strided_slice %301 {offsets = [0, 256], sizes = [32, 128], strides = [1, 1]} : vector<32x384xf32> to vector<32x128xf32>
    %305 = vector.extract_strided_slice %295 {offsets = [0, 384], sizes = [32, 128], strides = [1, 1]} : vector<32x512xf32> to vector<32x128xf32>
    %306 = math.tanh %305 : vector<32x128xf32>
    %307 = arith.mulf %303, %291 : vector<32x128xf32>
    %308 = arith.mulf %302, %306 : vector<32x128xf32>
    %309 = arith.addf %307, %308 : vector<32x128xf32>
    %310 = math.tanh %309 : vector<32x128xf32>
    %311 = arith.mulf %304, %310 : vector<32x128xf32>
    %c0_47 = arith.constant 0 : index
    %c0_48 = arith.constant 0 : index
    %312 = vector.load %arg9[%c0_47, %c0_48] : memref<128x128xf32, #tpu.memory_space<vmem>>, vector<128x128xf32>
    %cst_49 = arith.constant dense<0.000000e+00> : vector<32x128xf32>
    %313 = tpu.matmul %311, %312, %cst_49 {dimension_numbers = #tpu.dot_dimension_numbers<[1], [0], [0], [1], [0, 0, 1, 1], [], []>} : vector<32x128xf32>, vector<128x128xf32>, vector<32x128xf32> -> vector<32x128xf32>
    %c0_50 = arith.constant 0 : index
    %c0_51 = arith.constant 0 : index
    %314 = vector.load %arg10[%c0_50, %c0_51] : memref<1x128xf32, #tpu.memory_space<vmem>>, vector<1x128xf32>
    %315 = vector.broadcast %314 : vector<1x128xf32> to vector<32x128xf32>
    %316 = arith.addf %313, %315 : vector<32x128xf32>
    %cst_52 = arith.constant 0.000000e+00 : f32
    %317 = vector.broadcast %cst_52 : f32 to vector<32x128xf32>
    %318 = arith.maximumf %316, %317 : vector<32x128xf32>
    %c0_53 = arith.constant 0 : index
    %c0_54 = arith.constant 0 : index
    %319 = vector.load %arg11[%c0_53, %c0_54] : memref<128x128xf32, #tpu.memory_space<vmem>>, vector<128x128xf32>
    %cst_55 = arith.constant dense<0.000000e+00> : vector<32x128xf32>
    %320 = tpu.matmul %318, %319, %cst_55 {dimension_numbers = #tpu.dot_dimension_numbers<[1], [0], [0], [1], [0, 0, 1, 1], [], []>} : vector<32x128xf32>, vector<128x128xf32>, vector<32x128xf32> -> vector<32x128xf32>
    %c0_56 = arith.constant 0 : index
    %c0_57 = arith.constant 0 : index
    %321 = vector.load %arg12[%c0_56, %c0_57] : memref<1x128xf32, #tpu.memory_space<vmem>>, vector<1x128xf32>
    %322 = vector.broadcast %321 : vector<1x128xf32> to vector<32x128xf32>
    %323 = arith.addf %320, %322 : vector<32x128xf32>
    %c0_58 = arith.constant 0 : index
    %c0_59 = arith.constant 0 : index
    %324 = vector.load %arg13[%c0_58, %c0_59] : memref<32x128xf32, #tpu.memory_space<vmem>>, vector<32x128xf32>
    tpu.vector_store %arg13[%c0_58, %c0_59], %323 {strides = array<i32>} : memref<32x128xf32, #tpu.memory_space<vmem>>, vector<32x128xf32>,
    return
  }
  func.func @transform_0(%arg0: i32) -> (i32, i32) {
    %c0_i32 = arith.constant 0 : i32
    %c0_i32_0 = arith.constant 0 : i32
    return %arg0, %c0_i32 : i32, i32
  }
  func.func @transform_1(%arg0: i32) -> (i32, i32) {
    %c0_i32 = arith.constant 0 : i32
    %c0_i32_0 = arith.constant 0 : i32
    %c0_i32_1 = arith.constant 0 : i32
    return %c0_i32, %c0_i32_0 : i32, i32
  }
  func.func @transform_2(%arg0: i32) -> (i32, i32) {
    %c0_i32 = arith.constant 0 : i32
    %c0_i32_0 = arith.constant 0 : i32
    %c0_i32_1 = arith.constant 0 : i32
    return %c0_i32, %c0_i32_0 : i32, i32
  }
  func.func @transform_3(%arg0: i32) -> (i32, i32) {
    %c0_i32 = arith.constant 0 : i32
    %c0_i32_0 = arith.constant 0 : i32
    %c0_i32_1 = arith.constant 0 : i32
    return %c0_i32, %c0_i32_0 : i32, i32
  }
  func.func @transform_4(%arg0: i32) -> (i32, i32) {
    %c0_i32 = arith.constant 0 : i32
    %c0_i32_0 = arith.constant 0 : i32
    %c0_i32_1 = arith.constant 0 : i32
    return %c0_i32, %c0_i32_0 : i32, i32
  }
  func.func @transform_5(%arg0: i32) -> (i32, i32) {
    %c0_i32 = arith.constant 0 : i32
    %c0_i32_0 = arith.constant 0 : i32
    %c0_i32_1 = arith.constant 0 : i32
    return %c0_i32, %c0_i32_0 : i32, i32
  }
  func.func @transform_6(%arg0: i32) -> (i32, i32) {
    %c0_i32 = arith.constant 0 : i32
    %c0_i32_0 = arith.constant 0 : i32
    %c0_i32_1 = arith.constant 0 : i32
    return %c0_i32, %c0_i32_0 : i32, i32
  }
  func.func @transform_7(%arg0: i32) -> (i32, i32) {
    %c0_i32 = arith.constant 0 : i32
    %c0_i32_0 = arith.constant 0 : i32
    %c0_i32_1 = arith.constant 0 : i32
    return %c0_i32, %c0_i32_0 : i32, i32
  }
  func.func @transform_8(%arg0: i32) -> (i32, i32) {
    %c0_i32 = arith.constant 0 : i32
    %c0_i32_0 = arith.constant 0 : i32
    %c0_i32_1 = arith.constant 0 : i32
    return %c0_i32, %c0_i32_0 : i32, i32
  }
  func.func @transform_9(%arg0: i32) -> (i32, i32) {
    %c0_i32 = arith.constant 0 : i32
    %c0_i32_0 = arith.constant 0 : i32
    %c0_i32_1 = arith.constant 0 : i32
    return %c0_i32, %c0_i32_0 : i32, i32
  }
  func.func @transform_10(%arg0: i32) -> (i32, i32) {
    %c0_i32 = arith.constant 0 : i32
    %c0_i32_0 = arith.constant 0 : i32
    %c0_i32_1 = arith.constant 0 : i32
    return %c0_i32, %c0_i32_0 : i32, i32
  }
  func.func @transform_11(%arg0: i32) -> (i32, i32) {
    %c0_i32 = arith.constant 0 : i32
    %c0_i32_0 = arith.constant 0 : i32
    %c0_i32_1 = arith.constant 0 : i32
    return %c0_i32, %c0_i32_0 : i32, i32
  }
  func.func @transform_12(%arg0: i32) -> (i32, i32) {
    %c0_i32 = arith.constant 0 : i32
    %c0_i32_0 = arith.constant 0 : i32
    return %arg0, %c0_i32 : i32, i32
  }
}

</mosaic_0001>

<bundles_post_ra>
// kernel: model_forward_pallas.1
= control target key start
LH: loop header
LB: loop body
LE: loop exit
PB: predicated region body
PF: predicated region fallthrough
CT: control target
= control target key end

     0   :  { %17 = vsyncpa [#allocation3], 0  ;;  %s12844_s0 = inlined_call_operand.vmem [shape: f32[512,128], index: 0, kind: input, shape index: {}]   ;;  %s12845_s1 = inlined_call_operand.vmem [shape: f32[128,512], index: 1, kind: input, shape index: {}]   ;;  %s12846_s2 = inlined_call_operand.hbm [shape: f32[128,512], index: 2, kind: input, shape index: {}]   ;;  %s12847_s3 = inlined_call_operand.vmem [shape: f32[1,512], index: 3, kind: input, shape index: {}]   ;;  %s12848_s4 = inlined_call_operand.hbm [shape: f32[128,512], index: 4, kind: input, shape index: {}]   ;;  %s12849_s5 = inlined_call_operand.hbm [shape: f32[128,512], index: 5, kind: input, shape index: {}]   ;;  %s12850_s6 = inlined_call_operand.hbm [shape: f32[128,512], index: 6, kind: input, shape index: {}]   ;;  %s12851_s7 = inlined_call_operand.vmem [shape: f32[1,512], index: 7, kind: input, shape index: {}]   ;;  %s12852_s8 = inlined_call_operand.vmem [shape: f32[128,128], index: 8, kind: input, shape index: {}]   ;;  %s12853_s9 = inlined_call_operand.vmem [shape: f32[1,128], index: 9, kind: input, shape index: {}]   ;;  %s12854_s10 = inlined_call_operand.vmem [shape: f32[128,128], index: 10, kind: input, shape index: {}]   ;;  %s12855_s11 = inlined_call_operand.vmem [shape: f32[1,128], index: 11, kind: input, shape index: {}]   ;;  %s12856_s12 = inlined_call_operand.vmem [shape: f32[64,128], index: 12, kind: output, shape index: {}]  }
   0x1   :  { %18 = vsyncpa [#allocation5], 0 }
   0x2   :  { %19 = vsyncpa [#allocation8], 0  ;;  %s8635_s21 = smov 0  }
   0x3 LB: > { %s8641_s22 = sadd.s32 4294967295, %s8561_s21   ;;  %p6813_p0 = scmp.ge.s32.totalorder %s8561_s21, 1  ;;  %s8561_s21 = sphi %s8635_s21, %s25_s21  }
   0x4   : > { %p313_p1 = scmp.lt.s32.totalorder %s8561_s21, 3  ;;  %p7161_p2 = scmp.eq.s32.totalorder %s8641_s22, 0 }
   0x5   : > { %s8563_s24 = smov [#allocation4]   ;;  %s8564_s26 = smov [#allocation2]  }
   0x6   : > { %p8646_p3 = pnand %p6813_p0, %p313_p1  ;;  %s344_s25 = sshll.u32 %s8563_s24, 4  ;;  %s345_s25 = int_to_ptr.vmem [resolvable:$true] %s344_s25 }
   0x7   : > { %s328_s27 = sshll.u32 %s8564_s26, 4  ;;  %s8565_s29 = smov [#allocation6]   ;;  %s8652_s27 = int_to_ptr.vmem [resolvable:$true] %s328_s27 }
   0x8   : > { %p7148_p4 = pneg %p8646_p3  ;;  %s357_s30 = sshll.u32 %s8565_s29, 4  ;;  %s8660_s30 = int_to_ptr.vmem [resolvable:$true] %s357_s30 }
   0x9   : > { %s8566_s13 = smov [#allocation7]   ;;  %s8450_s15 = scalar_lea.vmem %s345_s25, 8192 }
   0xa   : > { %p8656_p5 = pnand %p7161_p2, %p7148_p4  ;;  %s8662_s14 = sshll.u32 %s8566_s13, 4  ;;  %s371_s14 = int_to_ptr.vmem [resolvable:$true] %s8662_s14 }
   0xb   : > { %p8451_p7 = scmp.ne.s32.totalorder %s345_s25, %s8450_s15  ;;  %p8458_p10 = scmp.lt.s32.totalorder %s345_s25, %s345_s25 }
   0xc   : > { %p8441_p6 = pneg %p8656_p5  ;;  %p8459_p11 = scmp.lt.s32.totalorder %s8450_s15, %s8450_s15 }
   0xe   : > { %p8453_p8 = pnand %p8451_p7, %p8441_p6  ;;  %p8460_p12 = por %p8459_p11, %p8458_p10 }
  0x10   : > { %p8454_p9 = pneg %p8453_p8 }
  0x12   : > { %p8461_p13 = pnand %p8460_p12, %p8454_p9 }
  0x14   : > { %8464 = shalt.err (!%p8461_p13)
}
  0x15   : > { %s8567_s16 = smov 512   ;;  %s8568_s17 = smov 32  }
  0x16   : > { %7154 = dma.hbm_to_vmem [thread:$0]  (!%p8656_p5), %s12848_s4, 8192, %s345_s25, [#allocation5], %s8567_s16, %s8567_s16, %s8568_s17  }
  0x17   : > { %s8476_s20 = scalar_lea.vmem %s8652_s27, 8192  ;;  %p8484_p7 = scmp.lt.s32.totalorder %s8652_s27, %s8652_s27 }
  0x18   : > { %p8477_p0 = scmp.ne.s32.totalorder %s8652_s27, %s8476_s20  ;;  %p8485_p8 = scmp.lt.s32.totalorder %s8476_s20, %s8476_s20 }
  0x1a   : > { %p8479_p1 = pnand %p8477_p0, %p8441_p6  ;;  %p8486_p9 = por %p8485_p8, %p8484_p7 }
  0x1c   : > { %p8480_p4 = pneg %p8479_p1 }
  0x1e   : > { %p8487_p10 = pnand %p8486_p9, %p8480_p4 }
  0x20   : > { %8490 = shalt.err (!%p8487_p10)
}
  0x21   : > { %7151 = dma.hbm_to_vmem [thread:$0]  (!%p8656_p5), %s12846_s2, 8192, %s8652_s27, [#allocation3], %s8567_s16, %s8567_s16, %s8568_s17  }
  0x22   : > { %s8502_s26 = scalar_lea.vmem %s8660_s30, 8192  ;;  %p8510_p0 = scmp.lt.s32.totalorder %s8660_s30, %s8660_s30 }
  0x23   : > { %p8503_p11 = scmp.ne.s32.totalorder %s8660_s30, %s8502_s26  ;;  %p8511_p1 = scmp.lt.s32.totalorder %s8502_s26, %s8502_s26 }
  0x25   : > { %p8505_p12 = pnand %p8503_p11, %p8441_p6  ;;  %p8512_p4 = por %p8511_p1, %p8510_p0 }
  0x27   : > { %p8506_p13 = pneg %p8505_p12 }
  0x29   : > { %p8513_p7 = pnand %p8512_p4, %p8506_p13 }
  0x2b   : > { %8516 = shalt.err (!%p8513_p7)
}
  0x2c   : > { %7157 = dma.hbm_to_vmem [thread:$0]  (!%p8656_p5), %s12849_s5, 8192, %s8660_s30, [#allocation5], %s8567_s16, %s8567_s16, %s8568_s17  }
  0x2d   : > { %s8528_s13 = scalar_lea.vmem %s371_s14, 8192  ;;  %p8536_p11 = scmp.lt.s32.totalorder %s371_s14, %s371_s14 }
  0x2e   : > { %p8529_p8 = scmp.ne.s32.totalorder %s371_s14, %s8528_s13  ;;  %p8537_p12 = scmp.lt.s32.totalorder %s8528_s13, %s8528_s13 }
  0x30   : > { %p8531_p9 = pnand %p8529_p8, %p8441_p6  ;;  %p8538_p13 = por %p8537_p12, %p8536_p11 }
  0x32   : > { %p8532_p10 = pneg %p8531_p9 }
  0x34   : > { %p8539_p0 = pnand %p8538_p13, %p8532_p10 }
  0x36   : > { %8542 = shalt.err (!%p8539_p0)
}
  0x37   : > { %7160 = dma.hbm_to_vmem [thread:$0]  (!%p8656_p5), %s12850_s6, 8192, %s371_s14, [#allocation8], %s8567_s16, %s8567_s16, %s8568_s17  }
  0x38   : > { %410 = sbr.rel (%p8646_p3) target bundleno = 4616 (0x1208), region = 68 }
  0x3d   : > { %8548 = dma.done.wait (%p7161_p2), [#allocation3], 8192  }
  0x3e   : > { %8550 = vsyncadd (%p7161_p2), [#allocation3], 4294959104 }
  0x3f   : > { %8552 = dma.done.wait (%p7161_p2), [#allocation5], 16384  }
  0x40   : > { %8554 = vsyncadd (%p7161_p2), [#allocation5], 4294950912 }
  0x41   : > { %8556 = dma.done.wait (%p7161_p2), [#allocation8], 8192  }
  0x42   : > { %8558 = vsyncadd (%p7161_p2), [#allocation8], 4294959104  ;;  %v12864_v0 = vmov 0.0   ;;  %v569_v1 = vld [vmem:[%s12845_s1 + $0x1e8] sm:$0xff]  ;;  %v568_v2 = vld [vmem:[%s12845_s1 + $0x1e0] sm:$0xff]  ;;  %s6824_s19 = sshll.u32 %s8641_s22, 5 }
  0x43   : > { %658 = vmatprep.mubr.f32.mxu0 %v12864_v0  ;;  %911 = vmatprep.mubr.f32.mxu1 %v12864_v0  ;;  %v565_v3 = vld [vmem:[%s12845_s1 + $0x1c8] sm:$0xff]  ;;  %v564_v4 = vld [vmem:[%s12845_s1 + $0x1c0] sm:$0xff]  ;;  %v571_v9 = vld [vmem:[%s12845_s1 + $0x1f8] sm:$0xff]  ;;  %p8839_p2 = scmp.lt.s32.totalorder %s6824_s19, 63  ;;  %s6826_s15 = sshll.u32 %s8641_s22, 2 }
  0x44   : > { %594 = vmatprep.subr.mxu0 %v569_v1  ;;  %v561_v5 = vld [vmem:[%s12845_s1 + $0x1a8] sm:$0xff]  ;;  %v560_v6 = vld [vmem:[%s12845_s1 + $0x1a0] sm:$0xff]  ;;  %v570_v10 = vld [vmem:[%s12845_s1 + $0x1f0] sm:$0xff]  ;;  %847 = vmatprep.subr.mxu1 %v571_v9  ;;  %p471_p3 = scmp.lt.s32.totalorder %s6826_s15, 7 }
  0x45   : > { %595 = vmatpush1.msra.mxu0 %v568_v2  ;;  %v557_v7 = vld [vmem:[%s12845_s1 + $0x188] sm:$0xff]  ;;  %v556_v8 = vld [vmem:[%s12845_s1 + $0x180] sm:$0xff]  ;;  %v567_v12 = vld [vmem:[%s12845_s1 + $0x1d8] sm:$0xff]  ;;  %848 = vmatpush1.msra.mxu1 %v570_v10  ;;  %s14248_s19 = smov (!%p8839_p2, %s6824_s19), 63 }
  0x46   : > { %596 = vmatprep.subr.mxu0 %v565_v3  ;;  %v553_v11 = vld [vmem:[%s12845_s1 + $0x168] sm:$0xff]  ;;  %v552_v13 = vld [vmem:[%s12845_s1 + $0x160] sm:$0xff]  ;;  %v566_v14 = vld [vmem:[%s12845_s1 + $0x1d0] sm:$0xff]  ;;  %849 = vmatprep.subr.mxu1 %v567_v12  ;;  %s6825_s17 = sshll.u32 %s14248_s19, 3  ;;  %s14250_s15 = smov (!%p471_p3, %s6826_s15), 7 }
  0x47   : > { %597 = vmatpush1.msra.mxu0 %v564_v4  ;;  %v563_v15 = vld [vmem:[%s12845_s1 + $0x1b8] sm:$0xff]  ;;  %v549_v16 = vld [vmem:[%s12845_s1 + $0x148] sm:$0xff]  ;;  %v562_v17 = vld [vmem:[%s12845_s1 + $0x1b0] sm:$0xff]  ;;  %850 = vmatpush1.msra.mxu1 %v566_v14  ;;  %s8916_s16 = scalar_lea.vmem %s12844_s0, %s6825_s17  ;;  %s6827_s18 = sshll.u32 %s14250_s15, 3 }
  0x48   : > { %598 = vmatprep.subr.mxu0 %v561_v5  ;;  %v548_v18 = vld [vmem:[%s12845_s1 + $0x140] sm:$0xff]  ;;  %v559_v19 = vld [vmem:[%s12845_s1 + $0x198] sm:$0xff]  ;;  %v545_v20 = vld [vmem:[%s12845_s1 + $0x128] sm:$0xff]  ;;  %851 = vmatprep.subr.mxu1 %v563_v15  ;;  %s474_s24 = scalar_lea.vmem %s12856_s12, %s6827_s18 }
  0x49   : > { %599 = vmatpush1.msra.mxu0 %v560_v6  ;;  %v558_v21 = vld [vmem:[%s12845_s1 + $0x190] sm:$0xff]  ;;  %v544_v22 = vld [vmem:[%s12845_s1 + $0x120] sm:$0xff]  ;;  %852 = vmatpush1.msra.mxu1 %v562_v17  ;;  %v555_v23 = vld [vmem:[%s12845_s1 + $0x178] sm:$0xff] }
  0x4a   : > { %600 = vmatprep.subr.mxu0 %v557_v7  ;;  %v541_v24 = vld [vmem:[%s12845_s1 + $0x108] sm:$0xff]  ;;  %853 = vmatprep.subr.mxu1 %v559_v19  ;;  %v554_v25 = vld [vmem:[%s12845_s1 + $0x170] sm:$0xff]  ;;  %v540_v26 = vld [vmem:[%s12845_s1 + $0x100] sm:$0xff] }
  0x4b   : > { %601 = vmatpush1.msra.mxu0 %v556_v8  ;;  %854 = vmatpush1.msra.mxu1 %v558_v21  ;;  %v551_v27 = vld [vmem:[%s12845_s1 + $0x158] sm:$0xff]  ;;  %v537_v28 = vld [vmem:[%s12845_s1 + $0xe8] sm:$0xff]  ;;  %v550_v29 = vld [vmem:[%s12845_s1 + $0x150] sm:$0xff] }
  0x4c   : > { %602 = vmatprep.subr.mxu0 %v553_v11  ;;  %855 = vmatprep.subr.mxu1 %v555_v23  ;;  %v536_v30 = vld [vmem:[%s12845_s1 + $0xe0] sm:$0xff]  ;;  %v547_v31 = vld [vmem:[%s12845_s1 + $0x138] sm:$0xff]  ;;  %v533_v32 = vld [vmem:[%s12845_s1 + $0xc8] sm:$0xff] }
  0x4d   : > { %603 = vmatpush1.msra.mxu0 %v552_v13  ;;  %856 = vmatpush1.msra.mxu1 %v554_v25  ;;  %v546_v33 = vld [vmem:[%s12845_s1 + $0x130] sm:$0xff]  ;;  %v532_v34 = vld [vmem:[%s12845_s1 + $0xc0] sm:$0xff]  ;;  %v543_v35 = vld [vmem:[%s12845_s1 + $0x118] sm:$0xff] }
  0x4e   : > { %604 = vmatprep.subr.mxu0 %v549_v16  ;;  %857 = vmatprep.subr.mxu1 %v551_v27  ;;  %v529_v36 = vld [vmem:[%s12845_s1 + $0xa8] sm:$0xff]  ;;  %v542_v37 = vld [vmem:[%s12845_s1 + $0x110] sm:$0xff]  ;;  %v528_v38 = vld [vmem:[%s12845_s1 + $0xa0] sm:$0xff] }
  0x4f   : > { %605 = vmatpush1.msra.mxu0 %v548_v18  ;;  %858 = vmatpush1.msra.mxu1 %v550_v29  ;;  %v539_v39 = vld [vmem:[%s12845_s1 + $0xf8] sm:$0xff]  ;;  %v525_v40 = vld [vmem:[%s12845_s1 + $0x88] sm:$0xff]  ;;  %v538_v41 = vld [vmem:[%s12845_s1 + $0xf0] sm:$0xff] }
  0x50   : > { %606 = vmatprep.subr.mxu0 %v545_v20  ;;  %859 = vmatprep.subr.mxu1 %v547_v31  ;;  %v524_v42 = vld [vmem:[%s12845_s1 + $0x80] sm:$0xff]  ;;  %v535_v43 = vld [vmem:[%s12845_s1 + $0xd8] sm:$0xff]  ;;  %v521_v44 = vld [vmem:[%s12845_s1 + $0x68] sm:$0xff] }
  0x51   : > { %607 = vmatpush1.msra.mxu0 %v544_v22  ;;  %860 = vmatpush1.msra.mxu1 %v546_v33  ;;  %v534_v45 = vld [vmem:[%s12845_s1 + $0xd0] sm:$0xff]  ;;  %v520_v46 = vld [vmem:[%s12845_s1 + $0x60] sm:$0xff]  ;;  %v531_v47 = vld [vmem:[%s12845_s1 + $0xb8] sm:$0xff] }
  0x52   : > { %608 = vmatprep.subr.mxu0 %v541_v24  ;;  %861 = vmatprep.subr.mxu1 %v543_v35  ;;  %v517_v48 = vld [vmem:[%s12845_s1 + $0x48] sm:$0xff]  ;;  %v530_v49 = vld [vmem:[%s12845_s1 + $0xb0] sm:$0xff]  ;;  %v516_v50 = vld [vmem:[%s12845_s1 + $0x40] sm:$0xff] }
  0x53   : > { %609 = vmatpush1.msra.mxu0 %v540_v26  ;;  %862 = vmatpush1.msra.mxu1 %v542_v37  ;;  %v527_v51 = vld [vmem:[%s12845_s1 + $0x98] sm:$0xff]  ;;  %v513_v52 = vld [vmem:[%s12845_s1 + $0x28] sm:$0xff]  ;;  %v526_v53 = vld [vmem:[%s12845_s1 + $0x90] sm:$0xff] }
  0x54   : > { %610 = vmatprep.subr.mxu0 %v537_v28  ;;  %863 = vmatprep.subr.mxu1 %v539_v39  ;;  %v512_v54 = vld [vmem:[%s12845_s1 + $0x20] sm:$0xff]  ;;  %v523_v55 = vld [vmem:[%s12845_s1 + $0x78] sm:$0xff]  ;;  %v509_v56 = vld [vmem:[%s12845_s1 + $0x8] sm:$0xff] }
  0x55   : > { %611 = vmatpush1.msra.mxu0 %v536_v30  ;;  %864 = vmatpush1.msra.mxu1 %v538_v41  ;;  %v522_v57 = vld [vmem:[%s12845_s1 + $0x70] sm:$0xff]  ;;  %v508_v58 = vld [vmem:[%s12845_s1] sm:$0xff]  ;;  %v519_v59 = vld [vmem:[%s12845_s1 + $0x58] sm:$0xff] }
  0x56   : > { %612 = vmatprep.subr.mxu0 %v533_v32  ;;  %865 = vmatprep.subr.mxu1 %v535_v43  ;;  %v476_v60 = vld [vmem:[%s8916_s16] sm:$0xff]  ;;  %v518_v61 = vld [vmem:[%s12845_s1 + $0x50] sm:$0xff]  ;;  %v515_v62 = vld [vmem:[%s12845_s1 + $0x38] sm:$0xff] }
  0x57   : > { %613 = vmatpush1.msra.mxu0 %v532_v34  ;;  %866 = vmatpush1.msra.mxu1 %v534_v45  ;;  %v514_v63 = vld [vmem:[%s12845_s1 + $0x30] sm:$0xff]  ;;  %v8943_v1 = vld [vmem:[#allocation2 + $0x1e8] sm:$0xff]  ;;  %v511_v2 = vld [vmem:[%s12845_s1 + $0x18] sm:$0xff] }
  0x58   : > { %614 = vmatprep.subr.mxu0 %v529_v36  ;;  %867 = vmatprep.subr.mxu1 %v531_v47  ;;  %v8948_v3 = vld [vmem:[#allocation2 + $0x1e0] sm:$0xff]  ;;  %v477_v4 = vld [vmem:[%s8916_s16 + $0x8] sm:$0xff]  ;;  %v510_v5 = vld [vmem:[%s12845_s1 + $0x10] sm:$0xff] }
  0x59   : > { %615 = vmatpush1.msra.mxu0 %v528_v38  ;;  %868 = vmatpush1.msra.mxu1 %v530_v49  ;;  %v8957_v6 = vld [vmem:[#allocation2 + $0x1c8] sm:$0xff]  ;;  %v8959_v7 = vld [vmem:[#allocation2 + $0x1c0] sm:$0xff]  ;;  %v8961_v8 = vld [vmem:[#allocation2 + $0x1f8] sm:$0xff] }
  0x5a   : > { %616 = vmatprep.subr.mxu0 %v525_v40  ;;  %869 = vmatprep.subr.mxu1 %v527_v51  ;;  %13182 = vst [vmem:[#allocation12_spill] sm:$0xff] %v8961_v8  ;;  %v478_v9 = vld [vmem:[%s8916_s16 + $0x10] sm:$0xff]  ;;  %v8965_v10 = vld [vmem:[#allocation2 + $0x1a8] sm:$0xff]  ;;  %v8970_v11 = vld [vmem:[#allocation2 + $0x1a0] sm:$0xff] }
  0x5b   : > { %617 = vmatpush1.msra.mxu0 %v524_v42  ;;  %870 = vmatpush1.msra.mxu1 %v526_v53  ;;  %v8974_v12 = vld [vmem:[#allocation2 + $0x1f0] sm:$0xff]  ;;  %v8976_v13 = vld [vmem:[#allocation2 + $0x188] sm:$0xff]  ;;  %v479_v14 = vld [vmem:[%s8916_s16 + $0x18] sm:$0xff] }
  0x5c   : > { %618 = vmatprep.subr.mxu0 %v521_v44  ;;  %871 = vmatprep.subr.mxu1 %v523_v55  ;;  %v8980_v15 = vld [vmem:[#allocation2 + $0x1d8] sm:$0xff]  ;;  %v8986_v16 = vld [vmem:[#allocation2 + $0x180] sm:$0xff]  ;;  %v8989_v17 = vld [vmem:[#allocation2 + $0x1d0] sm:$0xff] }
  0x5d   : > { %619 = vmatpush1.msra.mxu0 %v520_v46  ;;  %872 = vmatpush1.msra.mxu1 %v522_v57  ;;  %v8991_v18 = vld [vmem:[#allocation2 + $0x168] sm:$0xff]  ;;  %v480_v19 = vld [vmem:[%s8916_s16 + $0x20] sm:$0xff]  ;;  %v8995_v20 = vld [vmem:[#allocation2 + $0x1b8] sm:$0xff] }
  0x5e   : > { %620 = vmatprep.subr.mxu0 %v517_v48  ;;  %873 = vmatprep.subr.mxu1 %v519_v59  ;;  %v9001_v21 = vld [vmem:[#allocation2 + $0x160] sm:$0xff]  ;;  %v9004_v22 = vld [vmem:[#allocation2 + $0x1b0] sm:$0xff]  ;;  %v9006_v23 = vld [vmem:[#allocation2 + $0x148] sm:$0xff] }
  0x5f   : > { %621 = vmatpush1.msra.mxu0 %v516_v50  ;;  %874 = vmatpush1.msra.mxu1 %v518_v61  ;;  %v481_v24 = vld [vmem:[%s8916_s16 + $0x28] sm:$0xff]  ;;  %v9010_v25 = vld [vmem:[#allocation2 + $0x198] sm:$0xff]  ;;  %v9016_v26 = vld [vmem:[#allocation2 + $0x140] sm:$0xff] }
  0x60   : > { %622 = vmatprep.subr.mxu0 %v513_v52  ;;  %875 = vmatprep.subr.mxu1 %v515_v62  ;;  %v9019_v27 = vld [vmem:[#allocation2 + $0x190] sm:$0xff]  ;;  %v9021_v28 = vld [vmem:[#allocation2 + $0x128] sm:$0xff]  ;;  %v9025_v30 = vld [vmem:[#allocation2 + $0x178] sm:$0xff] }
  0x61   : > { %623 = vmatpush1.msra.mxu0 %v512_v54  ;;  %876 = vmatpush1.msra.mxu1 %v514_v63  ;;  %v482_v29 = vld [vmem:[%s8916_s16 + $0x30] sm:$0xff]  ;;  %v9031_v31 = vld [vmem:[#allocation2 + $0x120] sm:$0xff]  ;;  %v9036_v33 = vld [vmem:[#allocation2 + $0x108] sm:$0xff] }
  0x62   : > { %624 = vmatprep.subr.mxu0 %v509_v56  ;;  %877 = vmatprep.subr.mxu1 %v511_v2  ;;  %v9034_v32 = vld [vmem:[#allocation2 + $0x170] sm:$0xff]  ;;  %v483_v34 = vld [vmem:[%s8916_s16 + $0x38] sm:$0xff]  ;;  %v9046_v36 = vld [vmem:[#allocation2 + $0x100] sm:$0xff] }
  0x63   : > { %625 = vmatpush1.msra.mxu0 %v508_v58  ;;  %878 = vmatpush1.msra.mxu1 %v510_v5  ;;  %v9040_v35 = vld [vmem:[#allocation2 + $0x158] sm:$0xff]  ;;  %v9049_v37 = vld [vmem:[#allocation2 + $0x150] sm:$0xff]  ;;  %v9051_v38 = vld [vmem:[#allocation2 + $0xe8] sm:$0xff] }
  0x64   : > { %659 = vmatmul.mubr.f32.vlgmr.msra.gmra.mxu0 %v476_v60  ;;  %1232 = vmatprep.subr.mxu0 %v8943_v1  ;;  %v484_v39 = vld [vmem:[%s8916_s16 + $0x40] sm:$0xff]  ;;  %v9055_v40 = vld [vmem:[#allocation2 + $0x138] sm:$0xff]  ;;  %v9064_v42 = vld [vmem:[#allocation2 + $0x130] sm:$0xff] }
  0x65   : > { %663 = vmatprep.mubr.f32.mxu0 %v12864_v0  ;;  %1233 = vmatpush1.msra.mxu0 %v8948_v3  ;;  %v9061_v41 = vld [vmem:[#allocation2 + $0xe0] sm:$0xff]  ;;  %v9066_v43 = vld [vmem:[#allocation2 + $0xc8] sm:$0xff]  ;;  %v9070_v45 = vld [vmem:[#allocation2 + $0x118] sm:$0xff] }
  0x66   : > { %912 = vmatmul.mubr.f32.vlgmr.msra.gmra.mxu1 %v476_v60  ;;  %1234 = vmatprep.subr.mxu0 %v8957_v6  ;;  %v485_v44 = vld [vmem:[%s8916_s16 + $0x48] sm:$0xff]  ;;  %v9076_v46 = vld [vmem:[#allocation2 + $0xc0] sm:$0xff]  ;;  %v9079_v47 = vld [vmem:[#allocation2 + $0x110] sm:$0xff] }
  0x67   : > { %917 = vmatprep.mubr.f32.mxu1 %v12864_v0  ;;  %1235 = vmatpush1.msra.mxu0 %v8959_v7  ;;  %v486_v48 = vld [vmem:[%s8916_s16 + $0x50] sm:$0xff]  ;;  %v487_v49 = vld [vmem:[%s8916_s16 + $0x58] sm:$0xff]  ;;  %v488_v50 = vld [vmem:[%s8916_s16 + $0x60] sm:$0xff] }
  0x68   : > { %664 = vmatmul.mubr.f32.gmra.mxu0 %v477_v4  ;;  %1321 = vmatprep.subr.mxu1 %v8961_v8  ;;  %v489_v51 = vld [vmem:[%s8916_s16 + $0x68] sm:$0xff]  ;;  %v490_v52 = vld [vmem:[%s8916_s16 + $0x70] sm:$0xff]  ;;  %v491_v53 = vld [vmem:[%s8916_s16 + $0x78] sm:$0xff] }
  0x69   : > { %668 = vmatprep.mubr.f32.mxu0 %v12864_v0  ;;  %1236 = vmatprep.subr.mxu0 %v8965_v10  ;;  %v492_v54 = vld [vmem:[%s8916_s16 + $0x80] sm:$0xff]  ;;  %v493_v55 = vld [vmem:[%s8916_s16 + $0x88] sm:$0xff]  ;;  %v494_v56 = vld [vmem:[%s8916_s16 + $0x90] sm:$0xff] }
  0x6a   : > { %918 = vmatmul.mubr.f32.gmra.mxu1 %v477_v4  ;;  %1237 = vmatpush1.msra.mxu0 %v8970_v11  ;;  %v495_v57 = vld [vmem:[%s8916_s16 + $0x98] sm:$0xff]  ;;  %v496_v58 = vld [vmem:[%s8916_s16 + $0xa0] sm:$0xff]  ;;  %v497_v59 = vld [vmem:[%s8916_s16 + $0xa8] sm:$0xff] }
  0x6b   : > { %923 = vmatprep.mubr.f32.mxu1 %v12864_v0  ;;  %1322 = vmatpush1.msra.mxu1 %v8974_v12  ;;  %v498_v60 = vld [vmem:[%s8916_s16 + $0xb0] sm:$0xff]  ;;  %v499_v61 = vld [vmem:[%s8916_s16 + $0xb8] sm:$0xff]  ;;  %v9123_v62 = vld [vmem:[#allocation2 + $0xa8] sm:$0xff] }
  0x6c   : > { %669 = vmatmul.mubr.f32.gmra.mxu0 %v478_v9  ;;  %1238 = vmatprep.subr.mxu0 %v8976_v13  ;;  %v9125_v63 = vld [vmem:[#allocation2 + $0xa0] sm:$0xff]  ;;  %v9127_v2 = vld [vmem:[#allocation2 + $0xf8] sm:$0xff]  ;;  %v9132_v4 = vld [vmem:[#allocation2 + $0xf0] sm:$0xff] }
  0x6d   : > { %673 = vmatprep.mubr.f32.mxu0 %v12864_v0  ;;  %1323 = vmatprep.subr.mxu1 %v8980_v15  ;;  %v500_v5 = vld [vmem:[%s8916_s16 + $0xc0] sm:$0xff] }
  0x6e   : > { %924 = vmatmul.mubr.f32.gmra.mxu1 %v478_v9  ;;  %1239 = vmatpush1.msra.mxu0 %v8986_v16  ;;  %v501_v9 = vld [vmem:[%s8916_s16 + $0xc8] sm:$0xff] }
  0x6f   : > { %929 = vmatprep.mubr.f32.mxu1 %v12864_v0  ;;  %1324 = vmatpush1.msra.mxu1 %v8989_v17 }
  0x70   : > { %674 = vmatmul.mubr.f32.gmra.mxu0 %v479_v14  ;;  %1240 = vmatprep.subr.mxu0 %v8991_v18 }
  0x71   : > { %678 = vmatprep.mubr.f32.mxu0 %v12864_v0  ;;  %1325 = vmatprep.subr.mxu1 %v8995_v20 }
  0x72   : > { %930 = vmatmul.mubr.f32.gmra.mxu1 %v479_v14  ;;  %1241 = vmatpush1.msra.mxu0 %v9001_v21  ;;  %v9141_v14 = vld [vmem:[#allocation2 + $0x88] sm:$0xff] }
  0x73   : > { %935 = vmatprep.mubr.f32.mxu1 %v12864_v0  ;;  %1326 = vmatpush1.msra.mxu1 %v9004_v22  ;;  %13183 = vst [vmem:[#allocation13_spill] sm:$0xff] %v9141_v14 }
  0x74   : > { %679 = vmatmul.mubr.f32.gmra.mxu0 %v480_v19  ;;  %1242 = vmatprep.subr.mxu0 %v9006_v23 }
  0x75   : > { %684 = vmatprep.mubr.f32.mxu0 %v12864_v0  ;;  %1327 = vmatprep.subr.mxu1 %v9010_v25 }
  0x76   : > { %936 = vmatmul.mubr.f32.gmra.mxu1 %v480_v19  ;;  %1243 = vmatpush1.msra.mxu0 %v9016_v26  ;;  %v9143_v19 = vld [vmem:[#allocation2 + $0x80] sm:$0xff] }
  0x77   : > { %941 = vmatprep.mubr.f32.mxu1 %v12864_v0  ;;  %1328 = vmatpush1.msra.mxu1 %v9019_v27  ;;  %13184 = vst [vmem:[#allocation14_spill] sm:$0xff] %v9143_v19 }
  0x78   : > { %685 = vmatmul.mubr.f32.gmra.mxu0 %v481_v24  ;;  %1244 = vmatprep.subr.mxu0 %v9021_v28 }
  0x79   : > { %690 = vmatprep.mubr.f32.mxu0 %v12864_v0  ;;  %1329 = vmatprep.subr.mxu1 %v9025_v30 }
  0x7a   : > { %942 = vmatmul.mubr.f32.gmra.mxu1 %v481_v24  ;;  %1245 = vmatpush1.msra.mxu0 %v9031_v31  ;;  %v9145_v24 = vld [vmem:[#allocation2 + $0xd8] sm:$0xff] }
  0x7b   : > { %947 = vmatprep.mubr.f32.mxu1 %v12864_v0  ;;  %1330 = vmatpush1.msra.mxu1 %v9034_v32 }
  0x7c   : > { %691 = vmatmul.mubr.f32.gmra.mxu0 %v482_v29  ;;  %1246 = vmatprep.subr.mxu0 %v9036_v33 }
  0x7d   : > { %696 = vmatprep.mubr.f32.mxu0 %v12864_v0  ;;  %1331 = vmatprep.subr.mxu1 %v9040_v35 }
  0x7e   : > { %948 = vmatmul.mubr.f32.gmra.mxu1 %v482_v29  ;;  %1247 = vmatpush1.msra.mxu0 %v9046_v36  ;;  %v9150_v29 = vld [vmem:[#allocation2 + $0xd0] sm:$0xff] }
  0x7f   : > { %953 = vmatprep.mubr.f32.mxu1 %v12864_v0  ;;  %1332 = vmatpush1.msra.mxu1 %v9049_v37 }
  0x80   : > { %697 = vmatmul.mubr.f32.gmra.mxu0 %v483_v34  ;;  %1248 = vmatprep.subr.mxu0 %v9051_v38 }
  0x81   : > { %702 = vmatprep.mubr.f32.mxu0 %v12864_v0  ;;  %1333 = vmatprep.subr.mxu1 %v9055_v40 }
  0x82   : > { %954 = vmatmul.mubr.f32.gmra.mxu1 %v483_v34  ;;  %1249 = vmatpush1.msra.mxu0 %v9061_v41  ;;  %v502_v34 = vld [vmem:[%s8916_s16 + $0xd0] sm:$0xff] }
  0x83   : > { %959 = vmatprep.mubr.f32.mxu1 %v12864_v0  ;;  %1334 = vmatpush1.msra.mxu1 %v9064_v42 }
  0x84   : > { %703 = vmatmul.mubr.f32.gmra.mxu0 %v484_v39  ;;  %1250 = vmatprep.subr.mxu0 %v9066_v43 }
  0x85   : > { %708 = vmatprep.mubr.f32.mxu0 %v12864_v0  ;;  %1335 = vmatprep.subr.mxu1 %v9070_v45 }
  0x86   : > { %960 = vmatmul.mubr.f32.gmra.mxu1 %v484_v39  ;;  %1251 = vmatpush1.msra.mxu0 %v9076_v46  ;;  %v9158_v39 = vld [vmem:[#allocation2 + $0xb8] sm:$0xff] }
  0x87   : > { %965 = vmatprep.mubr.f32.mxu1 %v12864_v0  ;;  %1336 = vmatpush1.msra.mxu1 %v9079_v47 }
  0x88   : > { %709 = vmatmul.mubr.f32.gmra.mxu0 %v485_v44  ;;  %1252 = vmatprep.subr.mxu0 %v9123_v62 }
  0x89   : > { %714 = vmatprep.mubr.f32.mxu0 %v12864_v0  ;;  %1337 = vmatprep.subr.mxu1 %v9127_v2 }
  0x8a   : > { %966 = vmatmul.mubr.f32.gmra.mxu1 %v485_v44  ;;  %1253 = vmatpush1.msra.mxu0 %v9125_v63  ;;  %v9160_v44 = vld [vmem:[#allocation2 + $0x68] sm:$0xff] }
  0x8b   : > { %971 = vmatprep.mubr.f32.mxu1 %v12864_v0  ;;  %1338 = vmatpush1.msra.mxu1 %v9132_v4  ;;  %13185 = vst [vmem:[#allocation15_spill] sm:$0xff] %v9160_v44 }
  0x8c   : > { %715 = vmatmul.mubr.f32.gmra.mxu0 %v486_v48  ;;  %1254 = vmatprep.subr.mxu0 %v9141_v14 }
  0x8d   : > { %720 = vmatprep.mubr.f32.mxu0 %v12864_v0  ;;  %1339 = vmatprep.subr.mxu1 %v9145_v24 }
  0x8e   : > { %972 = vmatmul.mubr.f32.gmra.mxu1 %v486_v48  ;;  %1255 = vmatpush1.msra.mxu0 %v9143_v19  ;;  %v9162_v48 = vld [vmem:[#allocation2 + $0x60] sm:$0xff] }
  0x8f   : > { %977 = vmatprep.mubr.f32.mxu1 %v12864_v0  ;;  %1340 = vmatpush1.msra.mxu1 %v9150_v29  ;;  %13186 = vst [vmem:[#allocation16_spill] sm:$0xff] %v9162_v48 }
  0x90   : > { %721 = vmatmul.mubr.f32.gmra.mxu0 %v487_v49  ;;  %1341 = vmatprep.subr.mxu1 %v9158_v39 }
  0x91   : > { %726 = vmatprep.mubr.f32.mxu0 %v12864_v0  ;;  %1256 = vmatprep.subr.mxu0 %v9160_v44 }
  0x92   : > { %978 = vmatmul.mubr.f32.gmra.mxu1 %v487_v49  ;;  %v9165_v49 = vld [vmem:[#allocation2 + $0xb0] sm:$0xff]  ;;  %1257 = vmatpush1.msra.mxu0 %v9162_v48 }
  0x93   : > { %983 = vmatprep.mubr.f32.mxu1 %v12864_v0  ;;  %1342 = vmatpush1.msra.mxu1 %v9165_v49 }
  0x94   : > { %727 = vmatmul.mubr.f32.gmra.mxu0 %v488_v50 }
  0x95   : > { %732 = vmatprep.mubr.f32.mxu0 %v12864_v0 }
  0x96   : > { %984 = vmatmul.mubr.f32.gmra.mxu1 %v488_v50  ;;  %v9169_v50 = vld [vmem:[#allocation2 + $0x98] sm:$0xff] }
  0x97   : > { %989 = vmatprep.mubr.f32.mxu1 %v12864_v0  ;;  %13187 = vst [vmem:[#allocation17_spill] sm:$0xff] %v9169_v50  ;;  %1343 = vmatprep.subr.mxu1 %v9169_v50 }
  0x98   : > { %733 = vmatmul.mubr.f32.gmra.mxu0 %v489_v51 }
  0x99   : > { %738 = vmatprep.mubr.f32.mxu0 %v12864_v0 }
  0x9a   : > { %990 = vmatmul.mubr.f32.gmra.mxu1 %v489_v51  ;;  %v503_v51 = vld [vmem:[%s8916_s16 + $0xd8] sm:$0xff] }
  0x9b   : > { %995 = vmatprep.mubr.f32.mxu1 %v12864_v0 }
  0x9c   : > { %739 = vmatmul.mubr.f32.gmra.mxu0 %v490_v52 }
  0x9d   : > { %744 = vmatprep.mubr.f32.mxu0 %v12864_v0 }
  0x9e   : > { %996 = vmatmul.mubr.f32.gmra.mxu1 %v490_v52  ;;  %v9174_v52 = vld [vmem:[#allocation2 + $0x90] sm:$0xff] }
  0x9f   : > { %1001 = vmatprep.mubr.f32.mxu1 %v12864_v0  ;;  %13188 = vst [vmem:[#allocation18_spill] sm:$0xff] %v9174_v52  ;;  %1344 = vmatpush1.msra.mxu1 %v9174_v52 }
  0xa0   : > { %745 = vmatmul.mubr.f32.gmra.mxu0 %v491_v53 }
  0xa1   : > { %750 = vmatprep.mubr.f32.mxu0 %v12864_v0 }
  0xa2   : > { %1002 = vmatmul.mubr.f32.gmra.mxu1 %v491_v53  ;;  %v9178_v53 = vld [vmem:[#allocation2 + $0x78] sm:$0xff] }
  0xa3   : > { %1007 = vmatprep.mubr.f32.mxu1 %v12864_v0  ;;  %13189 = vst [vmem:[#allocation19_spill] sm:$0xff] %v9178_v53  ;;  %1345 = vmatprep.subr.mxu1 %v9178_v53 }
  0xa4   : > { %751 = vmatmul.mubr.f32.gmra.mxu0 %v492_v54 }
  0xa5   : > { %756 = vmatprep.mubr.f32.mxu0 %v12864_v0 }
  0xa6   : > { %1008 = vmatmul.mubr.f32.gmra.mxu1 %v492_v54  ;;  %v9180_v54 = vld [vmem:[#allocation2 + $0x48] sm:$0xff] }
  0xa7   : > { %1013 = vmatprep.mubr.f32.mxu1 %v12864_v0  ;;  %13190 = vst [vmem:[#allocation20_spill] sm:$0xff] %v9180_v54  ;;  %1258 = vmatprep.subr.mxu0 %v9180_v54 }
  0xa8   : > { %757 = vmatmul.mubr.f32.gmra.mxu0 %v493_v55 }
  0xa9   : > { %762 = vmatprep.mubr.f32.mxu0 %v12864_v0 }
  0xaa   : > { %1014 = vmatmul.mubr.f32.gmra.mxu1 %v493_v55  ;;  %v504_v55 = vld [vmem:[%s8916_s16 + $0xe0] sm:$0xff] }
  0xab   : > { %1019 = vmatprep.mubr.f32.mxu1 %v12864_v0 }
  0xac   : > { %763 = vmatmul.mubr.f32.gmra.mxu0 %v494_v56 }
  0xad   : > { %768 = vmatprep.mubr.f32.mxu0 %v12864_v0 }
  0xae   : > { %1020 = vmatmul.mubr.f32.gmra.mxu1 %v494_v56  ;;  %v9186_v56 = vld [vmem:[#allocation2 + $0x40] sm:$0xff] }
  0xaf   : > { %1025 = vmatprep.mubr.f32.mxu1 %v12864_v0  ;;  %13191 = vst [vmem:[#allocation21_spill] sm:$0xff] %v9186_v56  ;;  %1259 = vmatpush1.msra.mxu0 %v9186_v56 }
  0xb0   : > { %769 = vmatmul.mubr.f32.gmra.mxu0 %v495_v57 }
  0xb1   : > { %774 = vmatprep.mubr.f32.mxu0 %v12864_v0 }
  0xb2   : > { %1026 = vmatmul.mubr.f32.gmra.mxu1 %v495_v57  ;;  %v9190_v57 = vld [vmem:[#allocation2 + $0x28] sm:$0xff] }
  0xb3   : > { %1031 = vmatprep.mubr.f32.mxu1 %v12864_v0  ;;  %13192 = vst [vmem:[#allocation22_spill] sm:$0xff] %v9190_v57  ;;  %1260 = vmatprep.subr.mxu0 %v9190_v57  ;;  %v9230_v57 = vld [vmem:[#allocation2 + $0x10] sm:$0xff] }
  0xb4   : > { %775 = vmatmul.mubr.f32.gmra.mxu0 %v496_v58  ;;  %13202 = vst [vmem:[#allocation32_spill] sm:$0xff] %v9230_v57 }
  0xb5   : > { %780 = vmatprep.mubr.f32.mxu0 %v12864_v0 }
  0xb6   : > { %1032 = vmatmul.mubr.f32.gmra.mxu1 %v496_v58  ;;  %v9193_v58 = vld [vmem:[#allocation2 + $0x20] sm:$0xff] }
  0xb7   : > { %1037 = vmatprep.mubr.f32.mxu1 %v12864_v0  ;;  %13193 = vst [vmem:[#allocation23_spill] sm:$0xff] %v9193_v58  ;;  %1261 = vmatpush1.msra.mxu0 %v9193_v58  ;;  %v507_v58 = vld [vmem:[%s8916_s16 + $0xf8] sm:$0xff] }
  0xb8   : > { %781 = vmatmul.mubr.f32.gmra.mxu0 %v497_v59 }
  0xb9   : > { %786 = vmatprep.mubr.f32.mxu0 %v12864_v0 }
  0xba   : > { %1038 = vmatmul.mubr.f32.gmra.mxu1 %v497_v59  ;;  %v9195_v59 = vld [vmem:[#allocation2 + $0x70] sm:$0xff] }
  0xbb   : > { %1043 = vmatprep.mubr.f32.mxu1 %v12864_v0  ;;  %13194 = vst [vmem:[#allocation24_spill] sm:$0xff] %v9195_v59  ;;  %1346 = vmatpush1.msra.mxu1 %v9195_v59 }
  0xbc   : > { %787 = vmatmul.mubr.f32.gmra.mxu0 %v498_v60 }
  0xbd   : > { %792 = vmatprep.mubr.f32.mxu0 %v12864_v0 }
  0xbe   : > { %1044 = vmatmul.mubr.f32.gmra.mxu1 %v498_v60  ;;  %v9197_v60 = vld [vmem:[#allocation2 + $0x8] sm:$0xff] }
  0xbf   : > { %1049 = vmatprep.mubr.f32.mxu1 %v12864_v0  ;;  %13195 = vst [vmem:[#allocation25_spill] sm:$0xff] %v9197_v60  ;;  %1262 = vmatprep.subr.mxu0 %v9197_v60  ;;  %v9218_v60 = vld [vmem:[#allocation2 + $0x38] sm:$0xff] }
  0xc0   : > { %793 = vmatmul.mubr.f32.gmra.mxu0 %v499_v61  ;;  %13199 = vst [vmem:[#allocation29_spill] sm:$0xff] %v9218_v60 }
  0xc1   : > { %798 = vmatprep.mubr.f32.mxu0 %v12864_v0 }
  0xc2   : > { %1050 = vmatmul.mubr.f32.gmra.mxu1 %v499_v61  ;;  %v505_v61 = vld [vmem:[%s8916_s16 + $0xe8] sm:$0xff] }
  0xc3   : > { %1055 = vmatprep.mubr.f32.mxu1 %v12864_v0 }
  0xc4   : > { %799 = vmatmul.mubr.f32.gmra.mxu0 %v500_v5 }
  0xc5   : > { %804 = vmatprep.mubr.f32.mxu0 %v12864_v0 }
  0xc6   : > { %1056 = vmatmul.mubr.f32.gmra.mxu1 %v500_v5  ;;  %v9206_v5 = vld [vmem:[#allocation2] sm:$0xff] }
  0xc7   : > { %1061 = vmatprep.mubr.f32.mxu1 %v12864_v0  ;;  %13196 = vst [vmem:[#allocation26_spill] sm:$0xff] %v9206_v5  ;;  %1263 = vmatpush1.msra.mxu0 %v9206_v5  ;;  %v9227_v5 = vld [vmem:[#allocation2 + $0x18] sm:$0xff] }
  0xc8   : > { %805 = vmatmul.mubr.f32.gmra.mxu0 %v501_v9  ;;  %1506 = vmatprep.subr.mxu0 %v8943_v1  ;;  %13201 = vst [vmem:[#allocation31_spill] sm:$0xff] %v9227_v5  ;;  %v574_v1 = vlaneseq }
  0xc9   : > { %810 = vmatprep.mubr.f32.mxu0 %v12864_v0 }
  0xca   : > { %1062 = vmatmul.mubr.f32.gmra.mxu1 %v501_v9  ;;  %v9208_v9 = vld [vmem:[#allocation2 + $0x58] sm:$0xff] }
  0xcb   : > { %1067 = vmatprep.mubr.f32.mxu1 %v12864_v0  ;;  %13197 = vst [vmem:[#allocation27_spill] sm:$0xff] %v9208_v9  ;;  %1347 = vmatprep.subr.mxu1 %v9208_v9 }
  0xcc   : > { %811 = vmatmul.mubr.f32.gmra.mxu0 %v502_v34 }
  0xcd   : > { %816 = vmatprep.mubr.f32.mxu0 %v12864_v0 }
  0xce   : > { %1068 = vmatmul.mubr.f32.gmra.mxu1 %v502_v34  ;;  %v9210_v34 = vld [vmem:[#allocation2 + $0x50] sm:$0xff] }
  0xcf   : > { %1073 = vmatprep.mubr.f32.mxu1 %v12864_v0  ;;  %13198 = vst [vmem:[#allocation28_spill] sm:$0xff] %v9210_v34  ;;  %1348 = vmatpush1.msra.mxu1 %v9210_v34 }
  0xd0   : > { %817 = vmatmul.mubr.f32.gmra.mxu0 %v503_v51  ;;  %1349 = vmatprep.subr.mxu1 %v9218_v60 }
  0xd1   : > { %822 = vmatprep.mubr.f32.mxu0 %v12864_v0 }
  0xd2   : > { %1074 = vmatmul.mubr.f32.gmra.mxu1 %v503_v51  ;;  %v506_v51 = vld [vmem:[%s8916_s16 + $0xf0] sm:$0xff] }
  0xd3   : > { %1079 = vmatprep.mubr.f32.mxu1 %v12864_v0 }
  0xd4   : > { %823 = vmatmul.mubr.f32.gmra.mxu0 %v504_v55 }
  0xd5   : > { %828 = vmatprep.mubr.f32.mxu0 %v12864_v0 }
  0xd6   : > { %1080 = vmatmul.mubr.f32.gmra.mxu1 %v504_v55  ;;  %v9221_v55 = vld [vmem:[#allocation2 + $0x30] sm:$0xff] }
  0xd7   : > { %1085 = vmatprep.mubr.f32.mxu1 %v12864_v0  ;;  %13200 = vst [vmem:[#allocation30_spill] sm:$0xff] %v9221_v55  ;;  %1350 = vmatpush1.msra.mxu1 %v9221_v55 }
  0xd8   : > { %829 = vmatmul.mubr.f32.gmra.mxu0 %v505_v61  ;;  %1351 = vmatprep.subr.mxu1 %v9227_v5 }
  0xd9   : > { %834 = vmatprep.mubr.f32.mxu0 %v12864_v0  ;;  %1352 = vmatpush1.msra.mxu1 %v9230_v57 }
  0xda   : > { %1086 = vmatmul.mubr.f32.gmra.mxu1 %v505_v61  ;;  %1595 = vmatprep.subr.mxu1 %v8961_v8  ;;  %v9238_v61 = vshrl.u32 %v574_v1, 7 }
  0xdb   : > { %1091 = vmatprep.mubr.f32.mxu1 %v12864_v0 }
  0xdc   : > { %835 = vmatmul.mubr.f32.gmra.mxu0 %v506_v51  ;;  %13203 = vst [vmem:[#allocation33_spill] sm:$0xff] %v9238_v61  ;;  %v12872_v55 = vsub.s32 0, %v9238_v61  ;;  %v12877_v8 = vsub.s32 2, %v9238_v61 }
  0xdd   : > { %840 = vmatprep.mubr.f32.mxu0 %v12864_v0 }
  0xde   : > { %1092 = vmatmul.mubr.f32.gmra.mxu1 %v506_v51  ;;  %v9244_v51 = vld [vmem:[%s12847_s3] sm:$0xf] }
  0xdf   : > { %1097 = vmatprep.mubr.f32.mxu1 %v12864_v0  ;;  %13204 = vst [vmem:[#allocation34_spill] sm:$0xff] %v9244_v51  ;;  %v9249_v5 = vrot.slane %v9244_v51, %v12872_v55  ;;  %v9256_v60 = vrot.slane %v9244_v51, %v12877_v8 }
  0xe0   : > { %841 = vmatmul.mubr.f32.gmra.mxu0 %v507_v58 }
  0xe1   : > { %1296 = vmatprep.mubr.f32.mxu0 %v12864_v0 }
  0xe2   : > { %1098 = vmatmul.mubr.f32.gmra.mxu1 %v507_v58 }
  0xe3   : > { %1385 = vmatprep.mubr.f32.mxu1 %v12864_v0 }
 0x124   : > { %v660_v58 = vpop.f32.mrf.mxu0 }
 0x125   : > { %v661_v0 = vadd.f32 %v660_v58, %v9249_v5  ;;  %v12884_v58 = vsub.s32 3, %v9238_v61 }
 0x126   : > { %v662_v57 = vpop.f32.mrf.mxu0  ;;  %v913_v9 = vpop.f32.mrf.mxu1 }
 0x127   : > { %v6828_v1 = vmul.f32 -1.442695, %v661_v0  ;;  %v914_v59 = vadd.f32 %v913_v9, %v9256_v60 }
 0x128   : > { %v665_v34 = vpop.f32.mrf.mxu0  ;;  %v915_v48 = vpop.f32.mrf.mxu1 }
 0x129   : > { %7184 = vpow2.f32 %v6828_v1  ;;  %v666_v56 = vadd.f32 %v665_v34, %v9249_v5  ;;  %v6829_v52 = vmul.f32 -1.442695, %v914_v59 }
 0x12a   : > { %v667_v54 = vpop.f32.mrf.mxu0  ;;  %v919_v57 = vpop.f32.mrf.mxu1 }
 0x12b   : > { %v6830_v55 = vmul.f32 -1.442695, %v666_v56  ;;  %v920_v1 = vadd.f32 %v919_v57, %v9256_v60  ;;  %v9266_v54 = vrot.slane %v9244_v51, %v12884_v58 }
 0x12c   : > { %v670_v53 = vpop.f32.mrf.mxu0  ;;  %v921_v19 = vpop.f32.mrf.mxu1 }
 0x12d   : > { %7186 = vpow2.f32 %v6830_v55  ;;  %v671_v0 = vadd.f32 %v670_v53, %v9249_v5  ;;  %13205 = vst [vmem:[#allocation35_spill] sm:$0xff] %v9266_v54  ;;  %v6831_v53 = vmul.f32 -1.442695, %v920_v1 }
 0x12e   : > { %v672_v44 = vpop.f32.mrf.mxu0  ;;  %v925_v9 = vpop.f32.mrf.mxu1 }
 0x12f   : > { %v6832_v8 = vmul.f32 -1.442695, %v671_v0  ;;  %v926_v44 = vadd.f32 %v925_v9, %v9256_v60  ;;  %v916_v0 = vadd.f32 %v915_v48, %v9266_v54 }
 0x130   : > { %v675_v34 = vpop.f32.mrf.mxu0  ;;  %v927_v59 = vpop.f32.mrf.mxu1 }
 0x131   : > { %7188 = vpow2.f32 %v6832_v8  ;;  %v676_v56 = vadd.f32 %v675_v34, %v9249_v5  ;;  %v6833_v58 = vmul.f32 -1.442695, %v926_v44  ;;  %v922_v34 = vadd.f32 %v921_v19, %v9266_v54 }
 0x132   : > { %v677_v55 = vpop.f32.mrf.mxu0  ;;  %7190 = vpow2.f32 %v6829_v52  ;;  %v931_v57 = vpop.f32.mrf.mxu1 }
 0x133   : > { %v6834_v50 = vmul.f32 -1.442695, %v676_v56  ;;  %v932_v8 = vadd.f32 %v931_v57, %v9256_v60 }
 0x134   : > { %v933_v51 = vpop.f32.mrf.mxu1  ;;  %v9275_v48 = vpop.f32.mrf.mxu0 }
 0x135   : > { %7192 = vpow2.f32 %v6834_v50  ;;  %v6835_v9 = vmul.f32 -1.442695, %v932_v8 }
 0x136   : > { %v7185_v14 = vpop.eup %7184  ;;  %7194 = vpow2.f32 %v6831_v53  ;;  %v9273_v52 = vpop.f32.mrf.mxu1 }
 0x137   : > { %v1192_v61 = vadd.f32 1.0, %v7185_v14  ;;  %7196 = vtanh.f32 %v916_v0  ;;  %v928_v14 = vadd.f32 %v927_v59, %v9266_v54  ;;  %v9280_v44 = vpop.f32.mrf.mxu0 }
 0x138   : > { %v9278_v50 = vpop.f32.mrf.mxu1 }
 0x139   : > { %7198 = vrcp.f32 %v1192_v61  ;;  %13206 = vst [vmem:[#allocation36_spill] sm:$0xff] %v9278_v50  ;;  %v934_v61 = vadd.f32 %v933_v51, %v9266_v54 }
 0x13a   : > { %v7187_v1 = vpop.eup %7186  ;;  %7200 = vpow2.f32 %v6833_v58  ;;  %v9283_v58 = vpop.f32.mrf.mxu1 }
 0x13b   : > { %v1194_v56 = vadd.f32 1.0, %v7187_v1  ;;  %7202 = vtanh.f32 %v922_v34  ;;  %13207 = vst [vmem:[#allocation37_spill] sm:$0xff] %v9283_v58  ;;  %v9285_v34 = vpop.f32.mrf.mxu0 }
 0x13d   : > { %7204 = vrcp.f32 %v1194_v56  ;;  %v9287_v56 = vpop.f32.mrf.mxu1  ;;  %v9291_v51 = vpop.f32.mrf.mxu0 }
 0x13e   : > { %v7189_v55 = vpop.eup %7188  ;;  %7206 = vpow2.f32 %v6835_v9  ;;  %13208 = vst [vmem:[#allocation38_spill] sm:$0xff] %v9287_v56 }
 0x13f   : > { %v1196_v53 = vadd.f32 1.0, %v7189_v55  ;;  %v7191_v19 = vpop.eup %7190  ;;  %7208 = vtanh.f32 %v928_v14  ;;  %v9298_v54 = vpop.f32.mrf.mxu0 }
 0x140   : > { %v1193_v8 = vadd.f32 1.0, %v7191_v19  ;;  %v9294_v19 = vpop.f32.mrf.mxu1 }
 0x141   : > { %7210 = vrcp.f32 %v1196_v53  ;;  %13210 = vst [vmem:[#allocation40_spill] sm:$0xff] %v9294_v19  ;;  %v9305_v58 = vpop.f32.mrf.mxu0 }
 0x142   : > { %v7193_v0 = vpop.eup %7192  ;;  %7212 = vtanh.f32 %v934_v61 }
 0x143   : > { %v1198_v57 = vadd.f32 1.0, %v7193_v0  ;;  %v7195_v59 = vpop.eup %7194 }
 0x144   : > { %v7197_v1 = vpop.eup %7196  ;;  %v1195_v14 = vadd.f32 1.0, %v7195_v59  ;;  %v9301_v59 = vpop.f32.mrf.mxu1 }
 0x145   : > { %7214 = vrcp.f32 %v1198_v57  ;;  %13212 = vst [vmem:[#allocation42_spill] sm:$0xff] %v9301_v59 }
 0x146   : > { %v7199_v9 = vpop.eup %7198  ;;  %7216 = vrcp.f32 %v1193_v8 }
 0x147   : > { %v9289_v55 = vmul.f32 %v7199_v9, %v7197_v1  ;;  %v7201_v53 = vpop.eup %7200 }
 0x148   : > { %v7203_v50 = vpop.eup %7202  ;;  %v1197_v57 = vadd.f32 1.0, %v7201_v53 }
 0x149   : > { %13209 = vst [vmem:[#allocation39_spill] sm:$0xff] %v9289_v55  ;;  %7218 = vtanh.f32 %v9289_v55 }
 0x14a   : > { %v7205_v0 = vpop.eup %7204  ;;  %7220 = vrcp.f32 %v1195_v14 }
 0x14b   : > { %v9296_v61 = vmul.f32 %v7205_v0, %v7203_v50  ;;  %v7207_v56 = vpop.eup %7206  ;;  %v9308_v50 = vpop.f32.mrf.mxu1 }
 0x14c   : > { %v7209_v8 = vpop.eup %7208  ;;  %v1199_v55 = vadd.f32 1.0, %v7207_v56  ;;  %v9312_v0 = vpop.f32.mrf.mxu0 }
 0x14d   : > { %13211 = vst [vmem:[#allocation41_spill] sm:$0xff] %v9296_v61  ;;  %7222 = vtanh.f32 %v9296_v61 }
 0x14e   : > { %v7211_v1 = vpop.eup %7210  ;;  %7224 = vrcp.f32 %v1197_v57  ;;  %v9315_v57 = vpop.f32.mrf.mxu1 }
 0x14f   : > { %v9303_v9 = vmul.f32 %v7211_v1, %v7209_v8  ;;  %v7213_v19 = vpop.eup %7212  ;;  %v9319_v1 = vpop.f32.mrf.mxu0 }
 0x151   : > { %13213 = vst [vmem:[#allocation43_spill] sm:$0xff] %v9303_v9  ;;  %7226 = vtanh.f32 %v9303_v9  ;;  %v9329_v9 = vpop.f32.mrf.mxu0 }
 0x152   : > { %v7215_v14 = vpop.eup %7214  ;;  %7228 = vrcp.f32 %v1199_v55  ;;  %v9323_v55 = vpop.f32.mrf.mxu1 }
 0x153   : > { %v9310_v53 = vmul.f32 %v7215_v14, %v7213_v19  ;;  %v7217_v61 = vpop.eup %7216  ;;  %v13216_v14 = vmov 0.0  }
 0x155   : > { %13214 = vst [vmem:[#allocation44_spill] sm:$0xff] %v9310_v53  ;;  %7230 = vtanh.f32 %v9310_v53 }
 0x156   : > { %v7219_v8 = vpop.eup %7218 }
 0x157   : > { %v9317_v56 = vmul.f32 %v7219_v8, %v7217_v61  ;;  %v7221_v59 = vpop.eup %7220  ;;  %v9337_v8 = vpop.f32.mrf.mxu1 }
 0x159   : > { %13215 = vst [vmem:[#allocation45_spill] sm:$0xff] %v9317_v56  ;;  %1297 = vmatmul.mubr.f32.vlgmr.msra.gmra.mxu0 %v9317_v56  ;;  %1386 = vmatmul.mubr.f32.vlgmr.msra.gmra.mxu1 %v9317_v56 }
 0x15a   : > { %v7223_v19 = vpop.eup %7222  ;;  %1302 = vmatprep.mubr.f32.mxu0 %v13216_v14  ;;  %1391 = vmatprep.mubr.f32.mxu1 %v13216_v14 }
 0x15b   : > { %v9327_v53 = vmul.f32 %v7223_v19, %v7221_v59  ;;  %1507 = vmatpush1.msra.mxu0 %v8948_v3  ;;  %1596 = vmatpush1.msra.mxu1 %v8974_v12  ;;  %v7225_v61 = vpop.eup %7224  ;;  %v9343_v3 = vpop.f32.mrf.mxu0 }
 0x15c   : > { %1508 = vmatprep.subr.mxu0 %v8957_v6  ;;  %1597 = vmatprep.subr.mxu1 %v8980_v15  ;;  %v9351_v12 = vpop.f32.mrf.mxu1 }
 0x15d   : > { %13217 = vst [vmem:[#allocation46_spill] sm:$0xff] %v9327_v53  ;;  %1303 = vmatmul.mubr.f32.gmra.mxu0 %v9327_v53  ;;  %1392 = vmatmul.mubr.f32.gmra.mxu1 %v9327_v53 }
 0x15e   : > { %v7227_v56 = vpop.eup %7226  ;;  %1308 = vmatprep.mubr.f32.mxu0 %v13216_v14  ;;  %1397 = vmatprep.mubr.f32.mxu1 %v13216_v14 }
 0x15f   : > { %v9341_v59 = vmul.f32 %v7227_v56, %v7225_v61  ;;  %1509 = vmatpush1.msra.mxu0 %v8959_v7  ;;  %1598 = vmatpush1.msra.mxu1 %v8989_v17  ;;  %v7229_v6 = vpop.eup %7228  ;;  %v9357_v7 = vpop.f32.mrf.mxu0 }
 0x160   : > { %1510 = vmatprep.subr.mxu0 %v8965_v10  ;;  %1599 = vmatprep.subr.mxu1 %v8995_v20  ;;  %v9365_v10 = vpop.f32.mrf.mxu1 }
 0x161   : > { %13218 = vst [vmem:[#allocation47_spill] sm:$0xff] %v9341_v59  ;;  %1309 = vmatmul.mubr.f32.gmra.mxu0 %v9341_v59  ;;  %1398 = vmatmul.mubr.f32.gmra.mxu1 %v9341_v59  ;;  %v9369_v17 = vpop.f32.mrf.mxu0 }
 0x162   : > { %v7231_v15 = vpop.eup %7230  ;;  %1314 = vmatprep.mubr.f32.mxu0 %v13216_v14  ;;  %1403 = vmatprep.mubr.f32.mxu1 %v13216_v14 }
 0x163   : > { %v9355_v56 = vmul.f32 %v7231_v15, %v7229_v6  ;;  %1511 = vmatpush1.msra.mxu0 %v8970_v11  ;;  %1600 = vmatpush1.msra.mxu1 %v9004_v22  ;;  %v9375_v11 = vpop.f32.mrf.mxu1 }
 0x164   : > { %1512 = vmatprep.subr.mxu0 %v8976_v13  ;;  %1601 = vmatprep.subr.mxu1 %v9010_v25  ;;  %v9381_v13 = vpop.f32.mrf.mxu0  ;;  %v13221_v25 = vld [vmem:[#allocation17_spill] sm:$0xff] }
 0x165   : > { %13219 = vst [vmem:[#allocation48_spill] sm:$0xff] %v9355_v56  ;;  %1315 = vmatmul.mubr.f32.gmra.mxu0 %v9355_v56  ;;  %1404 = vmatmul.mubr.f32.gmra.mxu1 %v9355_v56 }
 0x166   : > { %1513 = vmatpush1.msra.mxu0 %v8986_v16  ;;  %1602 = vmatpush1.msra.mxu1 %v9019_v27  ;;  %v9387_v16 = vpop.f32.mrf.mxu1  ;;  %v13223_v27 = vld [vmem:[#allocation18_spill] sm:$0xff] }
 0x167   : > { %1514 = vmatprep.subr.mxu0 %v8991_v18  ;;  %1603 = vmatprep.subr.mxu1 %v9025_v30  ;;  %v9393_v18 = vpop.f32.mrf.mxu0  ;;  %v13224_v30 = vld [vmem:[#allocation15_spill] sm:$0xff] }
 0x168   : > { %1515 = vmatpush1.msra.mxu0 %v9001_v21  ;;  %1604 = vmatpush1.msra.mxu1 %v9034_v32  ;;  %v9399_v20 = vpop.f32.mrf.mxu1  ;;  %v13226_v32 = vld [vmem:[#allocation16_spill] sm:$0xff] }
 0x169   : > { %1516 = vmatprep.subr.mxu0 %v9006_v23  ;;  %1605 = vmatprep.subr.mxu1 %v9040_v35  ;;  %v9405_v21 = vpop.f32.mrf.mxu0  ;;  %v13220_v23 = vld [vmem:[#allocation13_spill] sm:$0xff] }
 0x16a   : > { %1517 = vmatpush1.msra.mxu0 %v9016_v26  ;;  %1606 = vmatpush1.msra.mxu1 %v9049_v37  ;;  %v9411_v22 = vpop.f32.mrf.mxu1  ;;  %v13222_v26 = vld [vmem:[#allocation14_spill] sm:$0xff]  ;;  %v13230_v37 = vld [vmem:[#allocation27_spill] sm:$0xff] }
 0x16b   : > { %1518 = vmatprep.subr.mxu0 %v9021_v28  ;;  %1607 = vmatprep.subr.mxu1 %v9055_v40  ;;  %v9417_v28 = vpop.f32.mrf.mxu0  ;;  %v13232_v40 = vld [vmem:[#allocation28_spill] sm:$0xff] }
 0x16c   : > { %1519 = vmatpush1.msra.mxu0 %v9031_v31  ;;  %1608 = vmatpush1.msra.mxu1 %v9064_v42  ;;  %v13225_v31 = vld [vmem:[#allocation19_spill] sm:$0xff]  ;;  %v9423_v35 = vpop.f32.mrf.mxu1  ;;  %v13234_v42 = vld [vmem:[#allocation22_spill] sm:$0xff] }
 0x16d   : > { %1520 = vmatprep.subr.mxu0 %v9036_v33  ;;  %1609 = vmatprep.subr.mxu1 %v9070_v45  ;;  %v13227_v33 = vld [vmem:[#allocation24_spill] sm:$0xff]  ;;  %13228 = vst [vmem:[#allocation13_spill] sm:$0xff] %v9423_v35  ;;  %v13236_v45 = vld [vmem:[#allocation23_spill] sm:$0xff] }
 0x16e   : > { %1521 = vmatpush1.msra.mxu0 %v9046_v36  ;;  %1610 = vmatpush1.msra.mxu1 %v9079_v47  ;;  %v13229_v36 = vld [vmem:[#allocation20_spill] sm:$0xff]  ;;  %v9435_v47 = vpop.f32.mrf.mxu1  ;;  %v9770_v35 = vld [vmem:[#allocation2 + $0xf8] sm:$0xff] }
 0x16f   : > { %1522 = vmatprep.subr.mxu0 %v9051_v38  ;;  %1611 = vmatprep.subr.mxu1 %v9127_v2  ;;  %v13231_v38 = vld [vmem:[#allocation21_spill] sm:$0xff]  ;;  %13238 = vst [vmem:[#allocation14_spill] sm:$0xff] %v9435_v47  ;;  %v13241_v2 = vld [vmem:[#allocation26_spill] sm:$0xff]  ;;  %v9758_v47 = vld [vmem:[#allocation2 + $0x118] sm:$0xff] }
 0x170   : > { %1523 = vmatpush1.msra.mxu0 %v9061_v41  ;;  %1612 = vmatpush1.msra.mxu1 %v9132_v4  ;;  %v9429_v41 = vpop.f32.mrf.mxu0  ;;  %13345 = vst [vmem:[#allocation109_spill] sm:$0xff] %v9770_v35 }
 0x171   : > { %1524 = vmatprep.subr.mxu0 %v9066_v43  ;;  %1613 = vmatprep.subr.mxu1 %v9145_v24  ;;  %13233 = vst [vmem:[#allocation17_spill] sm:$0xff] %v9429_v41  ;;  %v13235_v43 = vld [vmem:[#allocation29_spill] sm:$0xff]  ;;  %v13243_v24 = vld [vmem:[#allocation32_spill] sm:$0xff]  ;;  %v9788_v41 = vld [vmem:[#allocation2 + $0xd0] sm:$0xff] }
 0x172   : > { %1525 = vmatpush1.msra.mxu0 %v9076_v46  ;;  %1614 = vmatpush1.msra.mxu1 %v9150_v29  ;;  %v13237_v46 = vld [vmem:[#allocation30_spill] sm:$0xff]  ;;  %v9441_v4 = vpop.f32.mrf.mxu0  ;;  %v9445_v29 = vld [vmem:[#allocation2 + $0x1e8] sm:$0xff]  ;;  %13351 = vst [vmem:[#allocation115_spill] sm:$0xff] %v9788_v41 }
 0x173   : > { %1526 = vmatprep.subr.mxu0 %v9123_v62  ;;  %1615 = vmatprep.subr.mxu1 %v9158_v39  ;;  %v13239_v62 = vld [vmem:[#allocation25_spill] sm:$0xff]  ;;  %13242 = vst [vmem:[#allocation18_spill] sm:$0xff] %v9441_v4  ;;  %v13244_v39 = vld [vmem:[#allocation12_spill] sm:$0xff] }
 0x174   : > { %1527 = vmatpush1.msra.mxu0 %v9125_v63  ;;  %1616 = vmatpush1.msra.mxu1 %v9165_v49  ;;  %v13240_v63 = vld [vmem:[#allocation31_spill] sm:$0xff]  ;;  %v9449_v49 = vpop.f32.mrf.mxu1  ;;  %v9451_v19 = vpop.f32.mrf.mxu0  ;;  %v9785_v4 = vld [vmem:[#allocation2 + $0xc0] sm:$0xff] }
 0x175   : > { %1528 = vmatprep.subr.mxu0 %v13220_v23  ;;  %1617 = vmatprep.subr.mxu1 %v13221_v25  ;;  %13245 = vst [vmem:[#allocation15_spill] sm:$0xff] %v9449_v49  ;;  %13246 = vst [vmem:[#allocation19_spill] sm:$0xff] %v9451_v19  ;;  %v9761_v49 = vld [vmem:[#allocation2 + $0x100] sm:$0xff]  ;;  %v9782_v19 = vld [vmem:[#allocation2 + $0xd8] sm:$0xff] }
 0x176   : > { %1529 = vmatpush1.msra.mxu0 %v13222_v26  ;;  %1618 = vmatpush1.msra.mxu1 %v13223_v27  ;;  %v9453_v61 = vpop.f32.mrf.mxu1  ;;  %v9455_v6 = vpop.f32.mrf.mxu0  ;;  %13349 = vst [vmem:[#allocation113_spill] sm:$0xff] %v9782_v19  ;;  %13350 = vst [vmem:[#allocation114_spill] sm:$0xff] %v9785_v4 }
 0x177   : > { %1530 = vmatprep.subr.mxu0 %v13224_v30  ;;  %1619 = vmatprep.subr.mxu1 %v13225_v31  ;;  %13247 = vst [vmem:[#allocation16_spill] sm:$0xff] %v9453_v61  ;;  %13248 = vst [vmem:[#allocation24_spill] sm:$0xff] %v9455_v6  ;;  %v9752_v61 = vld [vmem:[#allocation2 + $0x130] sm:$0xff]  ;;  %v9779_v6 = vld [vmem:[#allocation2 + $0xc8] sm:$0xff] }
 0x178   : > { %1531 = vmatpush1.msra.mxu0 %v13226_v32  ;;  %1620 = vmatpush1.msra.mxu1 %v13227_v33  ;;  %v9457_v15 = vpop.f32.mrf.mxu1  ;;  %v9459_v23 = vpop.f32.mrf.mxu0  ;;  %13348 = vst [vmem:[#allocation112_spill] sm:$0xff] %v9779_v6 }
 0x179   : > { %1532 = vmatprep.subr.mxu0 %v13229_v36  ;;  %1621 = vmatprep.subr.mxu1 %v13230_v37  ;;  %13249 = vst [vmem:[#allocation20_spill] sm:$0xff] %v9457_v15  ;;  %13250 = vst [vmem:[#allocation27_spill] sm:$0xff] %v9459_v23  ;;  %v9755_v15 = vld [vmem:[#allocation2 + $0x108] sm:$0xff]  ;;  %v9776_v23 = vld [vmem:[#allocation2 + $0xf0] sm:$0xff] }
 0x17a   : > { %1533 = vmatpush1.msra.mxu0 %v13231_v38  ;;  %1622 = vmatpush1.msra.mxu1 %v13232_v40  ;;  %v9461_v25 = vpop.f32.mrf.mxu1  ;;  %v9463_v26 = vpop.f32.mrf.mxu0  ;;  %13347 = vst [vmem:[#allocation111_spill] sm:$0xff] %v9776_v23 }
 0x17b   : > { %1534 = vmatprep.subr.mxu0 %v13234_v42  ;;  %1623 = vmatprep.subr.mxu1 %v13235_v43  ;;  %13251 = vst [vmem:[#allocation21_spill] sm:$0xff] %v9461_v25  ;;  %13252 = vst [vmem:[#allocation28_spill] sm:$0xff] %v9463_v26  ;;  %v9746_v25 = vld [vmem:[#allocation2 + $0x138] sm:$0xff]  ;;  %v9773_v26 = vld [vmem:[#allocation2 + $0xe0] sm:$0xff] }
 0x17c   : > { %1535 = vmatpush1.msra.mxu0 %v13236_v45  ;;  %1624 = vmatpush1.msra.mxu1 %v13237_v46  ;;  %v9465_v27 = vpop.f32.mrf.mxu1  ;;  %v9467_v30 = vpop.f32.mrf.mxu0  ;;  %13346 = vst [vmem:[#allocation110_spill] sm:$0xff] %v9773_v26 }
 0x17d   : > { %1536 = vmatprep.subr.mxu0 %v13239_v62  ;;  %1625 = vmatprep.subr.mxu1 %v13240_v63  ;;  %13253 = vst [vmem:[#allocation22_spill] sm:$0xff] %v9465_v27  ;;  %13254 = vst [vmem:[#allocation29_spill] sm:$0xff] %v9467_v30  ;;  %v9749_v27 = vld [vmem:[#allocation2 + $0x120] sm:$0xff]  ;;  %v9767_v30 = vld [vmem:[#allocation2 + $0xe8] sm:$0xff] }
 0x17e   : > { %1537 = vmatpush1.msra.mxu0 %v13241_v2  ;;  %1570 = vmatprep.mubr.f32.mxu0 %v13216_v14  ;;  %v9469_v31 = vpop.f32.mrf.mxu1  ;;  %v9471_v32 = vpop.f32.mrf.mxu0  ;;  %13344 = vst [vmem:[#allocation108_spill] sm:$0xff] %v9767_v30 }
 0x17f   : > { %1626 = vmatpush1.msra.mxu1 %v13243_v24  ;;  %1659 = vmatprep.mubr.f32.mxu1 %v13216_v14  ;;  %13255 = vst [vmem:[#allocation23_spill] sm:$0xff] %v9469_v31  ;;  %13256 = vst [vmem:[#allocation30_spill] sm:$0xff] %v9471_v32  ;;  %v9743_v31 = vld [vmem:[#allocation2 + $0x128] sm:$0xff]  ;;  %v9764_v32 = vld [vmem:[#allocation2 + $0x110] sm:$0xff] }
 0x180   : > { %1780 = vmatprep.subr.mxu0 %v9445_v29  ;;  %1869 = vmatprep.subr.mxu1 %v13244_v39  ;;  %v9473_v33 = vpop.f32.mrf.mxu1  ;;  %v9475_v36 = vpop.f32.mrf.mxu0  ;;  %13343 = vst [vmem:[#allocation107_spill] sm:$0xff] %v9764_v32 }
 0x181   : > { %13257 = vst [vmem:[#allocation25_spill] sm:$0xff] %v9473_v33  ;;  %13258 = vst [vmem:[#allocation31_spill] sm:$0xff] %v9475_v36 }
 0x182   : > { %v9477_v37 = vpop.f32.mrf.mxu1  ;;  %v9479_v38 = vpop.f32.mrf.mxu0 }
 0x183   : > { %13259 = vst [vmem:[#allocation26_spill] sm:$0xff] %v9477_v37  ;;  %13260 = vst [vmem:[#allocation32_spill] sm:$0xff] %v9479_v38 }
 0x184   : > { %v9481_v40 = vpop.f32.mrf.mxu1  ;;  %v9483_v42 = vpop.f32.mrf.mxu0 }
 0x185   : > { %13261 = vst [vmem:[#allocation12_spill] sm:$0xff] %v9481_v40  ;;  %13262 = vst [vmem:[#allocation49_spill] sm:$0xff] %v9483_v42 }
 0x186   : > { %v9485_v43 = vpop.f32.mrf.mxu1  ;;  %v9487_v45 = vpop.f32.mrf.mxu0 }
 0x187   : > { %13263 = vst [vmem:[#allocation50_spill] sm:$0xff] %v9485_v43  ;;  %13264 = vst [vmem:[#allocation51_spill] sm:$0xff] %v9487_v45 }
 0x188   : > { %v9489_v46 = vpop.f32.mrf.mxu1  ;;  %v9491_v62 = vpop.f32.mrf.mxu0 }
 0x189   : > { %13265 = vst [vmem:[#allocation52_spill] sm:$0xff] %v9489_v46  ;;  %13266 = vst [vmem:[#allocation53_spill] sm:$0xff] %v9491_v62 }
 0x18a   : > { %v9493_v63 = vpop.f32.mrf.mxu1  ;;  %v9495_v2 = vpop.f32.mrf.mxu0 }
 0x18b   : > { %13267 = vst [vmem:[#allocation54_spill] sm:$0xff] %v9493_v63  ;;  %13268 = vst [vmem:[#allocation55_spill] sm:$0xff] %v9495_v2 }
 0x18c   : > { %v9497_v24 = vpop.f32.mrf.mxu1  ;;  %v9499_v39 = vpop.f32.mrf.mxu0 }
 0x18d   : > { %13269 = vst [vmem:[#allocation56_spill] sm:$0xff] %v9497_v24  ;;  %13270 = vst [vmem:[#allocation57_spill] sm:$0xff] %v9499_v39 }
 0x18e   : > { %v9501_v56 = vpop.f32.mrf.mxu1  ;;  %v9503_v59 = vpop.f32.mrf.mxu0 }
 0x18f   : > { %13271 = vst [vmem:[#allocation58_spill] sm:$0xff] %v9501_v56  ;;  %13272 = vst [vmem:[#allocation59_spill] sm:$0xff] %v9503_v59 }
 0x190   : > { %v9505_v53 = vpop.f32.mrf.mxu1  ;;  %v9507_v43 = vpop.f32.mrf.mxu0 }
 0x191   : > { %13273 = vst [vmem:[#allocation60_spill] sm:$0xff] %v9505_v53  ;;  %13274 = vst [vmem:[#allocation61_spill] sm:$0xff] %v9507_v43 }
 0x192   : > { %v9509_v37 = vpop.f32.mrf.mxu1  ;;  %v9511_v46 = vpop.f32.mrf.mxu0 }
 0x193   : > { %13275 = vst [vmem:[#allocation62_spill] sm:$0xff] %v9509_v37  ;;  %13276 = vst [vmem:[#allocation63_spill] sm:$0xff] %v9511_v46 }
 0x194   : > { %v9513_v40 = vpop.f32.mrf.mxu1  ;;  %v9515_v63 = vpop.f32.mrf.mxu0 }
 0x195   : > { %13277 = vst [vmem:[#allocation64_spill] sm:$0xff] %v9513_v40  ;;  %13278 = vst [vmem:[#allocation65_spill] sm:$0xff] %v9515_v63 }
 0x196   : > { %v9517_v33 = vpop.f32.mrf.mxu1  ;;  %v9519_v24 = vpop.f32.mrf.mxu0 }
 0x197   : > { %13279 = vst [vmem:[#allocation66_spill] sm:$0xff] %v9517_v33  ;;  %13280 = vst [vmem:[#allocation67_spill] sm:$0xff] %v9519_v24 }
 0x198   : > { %v9521_v39 = vpop.f32.mrf.mxu1  ;;  %v9523_v56 = vpop.f32.mrf.mxu0 }
 0x199   : > { %13281 = vst [vmem:[#allocation68_spill] sm:$0xff] %v9521_v39  ;;  %13282 = vst [vmem:[#allocation69_spill] sm:$0xff] %v9523_v56 }
 0x19a   : > { %v9525_v59 = vpop.f32.mrf.mxu1  ;;  %v9527_v53 = vpop.f32.mrf.mxu0 }
 0x19b   : > { %13283 = vst [vmem:[#allocation70_spill] sm:$0xff] %v9525_v59  ;;  %13284 = vst [vmem:[#allocation71_spill] sm:$0xff] %v9527_v53 }
 0x19c   : > { %v9529_v43 = vpop.f32.mrf.mxu1  ;;  %v9531_v37 = vpop.f32.mrf.mxu0 }
 0x19d   : > { %13285 = vst [vmem:[#allocation72_spill] sm:$0xff] %v9529_v43  ;;  %13286 = vst [vmem:[#allocation73_spill] sm:$0xff] %v9531_v37 }
 0x19e   : > { %v9533_v46 = vpop.f32.mrf.mxu1  ;;  %v9535_v40 = vpop.f32.mrf.mxu0 }
 0x19f   : > { %13287 = vst [vmem:[#allocation74_spill] sm:$0xff] %v9533_v46  ;;  %13288 = vst [vmem:[#allocation75_spill] sm:$0xff] %v9535_v40 }
 0x1a0   : > { %v9537_v63 = vpop.f32.mrf.mxu1  ;;  %v9539_v33 = vpop.f32.mrf.mxu0 }
 0x1a1   : > { %13289 = vst [vmem:[#allocation76_spill] sm:$0xff] %v9537_v63  ;;  %13290 = vst [vmem:[#allocation77_spill] sm:$0xff] %v9539_v33 }
 0x1a2   : > { %v9541_v24 = vpop.f32.mrf.mxu1  ;;  %v9543_v39 = vpop.f32.mrf.mxu0 }
 0x1a3   : > { %13291 = vst [vmem:[#allocation78_spill] sm:$0xff] %v9541_v24  ;;  %13292 = vst [vmem:[#allocation79_spill] sm:$0xff] %v9543_v39 }
 0x1a4   : > { %v9545_v56 = vpop.f32.mrf.mxu1  ;;  %v9547_v59 = vpop.f32.mrf.mxu0 }
 0x1a5   : > { %13293 = vst [vmem:[#allocation80_spill] sm:$0xff] %v9545_v56  ;;  %13294 = vst [vmem:[#allocation81_spill] sm:$0xff] %v9547_v59 }
 0x1a6   : > { %v9549_v53 = vpop.f32.mrf.mxu1  ;;  %v9551_v43 = vpop.f32.mrf.mxu0 }
 0x1a7   : > { %13295 = vst [vmem:[#allocation82_spill] sm:$0xff] %v9549_v53  ;;  %13296 = vst [vmem:[#allocation83_spill] sm:$0xff] %v9551_v43 }
 0x1a8   : > { %v9553_v37 = vpop.f32.mrf.mxu1  ;;  %v9555_v46 = vpop.f32.mrf.mxu0 }
 0x1a9   : > { %13297 = vst [vmem:[#allocation84_spill] sm:$0xff] %v9553_v37  ;;  %13298 = vst [vmem:[#allocation85_spill] sm:$0xff] %v9555_v46 }
 0x1aa   : > { %v9557_v40 = vpop.f32.mrf.mxu1  ;;  %v9559_v63 = vpop.f32.mrf.mxu0 }
 0x1ab   : > { %13299 = vst [vmem:[#allocation86_spill] sm:$0xff] %v9557_v40  ;;  %13300 = vst [vmem:[#allocation87_spill] sm:$0xff] %v9559_v63 }
 0x1ac   : > { %v9561_v33 = vpop.f32.mrf.mxu1  ;;  %v9563_v24 = vpop.f32.mrf.mxu0 }
 0x1ad   : > { %13301 = vst [vmem:[#allocation88_spill] sm:$0xff] %v9561_v33  ;;  %13302 = vst [vmem:[#allocation89_spill] sm:$0xff] %v9563_v24 }
 0x1ae   : > { %v9565_v39 = vpop.f32.mrf.mxu1  ;;  %v9567_v56 = vpop.f32.mrf.mxu0 }
 0x1af   : > { %13303 = vst [vmem:[#allocation90_spill] sm:$0xff] %v9565_v39  ;;  %13304 = vst [vmem:[#allocation91_spill] sm:$0xff] %v9567_v56 }
 0x1b0   : > { %v9569_v59 = vpop.f32.mrf.mxu1  ;;  %v9571_v53 = vpop.f32.mrf.mxu0 }
 0x1b1   : > { %13305 = vst [vmem:[#allocation92_spill] sm:$0xff] %v9569_v59  ;;  %13306 = vst [vmem:[#allocation93_spill] sm:$0xff] %v9571_v53 }
 0x1b2   : > { %v9573_v43 = vpop.f32.mrf.mxu1  ;;  %v9575_v37 = vpop.f32.mrf.mxu0 }
 0x1b3   : > { %13307 = vst [vmem:[#allocation94_spill] sm:$0xff] %v9573_v43  ;;  %13308 = vst [vmem:[#allocation95_spill] sm:$0xff] %v9575_v37  ;;  %v13318_v43 = vld [vmem:[#allocation33_spill] sm:$0xff] }
 0x1b4   : > { %v9577_v46 = vpop.f32.mrf.mxu1  ;;  %v9579_v40 = vpop.f32.mrf.mxu0  ;;  %v12901_v37 = vsub.s32 1, %v13318_v43 }
 0x1b5   : > { %13309 = vst [vmem:[#allocation96_spill] sm:$0xff] %v9577_v46  ;;  %13310 = vst [vmem:[#allocation97_spill] sm:$0xff] %v9579_v40 }
 0x1b6   : > { %v9581_v63 = vpop.f32.mrf.mxu1  ;;  %v9583_v33 = vpop.f32.mrf.mxu0 }
 0x1b7   : > { %13311 = vst [vmem:[#allocation98_spill] sm:$0xff] %v9581_v63  ;;  %13312 = vst [vmem:[#allocation99_spill] sm:$0xff] %v9583_v33  ;;  %v13321_v63 = vld [vmem:[#allocation34_spill] sm:$0xff] }
 0x1b8   : > { %v9585_v24 = vpop.f32.mrf.mxu1  ;;  %v9587_v39 = vpop.f32.mrf.mxu0  ;;  %v9603_v33 = vrot.slane %v13321_v63, %v12901_v37 }
 0x1b9   : > { %13313 = vst [vmem:[#allocation100_spill] sm:$0xff] %v9585_v24  ;;  %13314 = vst [vmem:[#allocation101_spill] sm:$0xff] %v9587_v39 }
 0x1ba   : > { %v9589_v56 = vpop.f32.mrf.mxu1  ;;  %v9591_v59 = vpop.f32.mrf.mxu0  ;;  %v689_v37 = vadd.f32 %v9291_v51, %v9603_v33  ;;  %v938_v51 = vadd.f32 %v9273_v52, %v9256_v60 }
 0x1bb   : > { %13315 = vst [vmem:[#allocation102_spill] sm:$0xff] %v9589_v56  ;;  %13316 = vst [vmem:[#allocation103_spill] sm:$0xff] %v9591_v59  ;;  %v681_v56 = vadd.f32 %v9275_v48, %v9249_v5 }
 0x1bc   : > { %v9593_v53 = vpop.f32.mrf.mxu1  ;;  %v9596_v2 = vpop.f32.mrf.mxu0 }
 0x1bd   : > { %13317 = vst [vmem:[#allocation104_spill] sm:$0xff] %v9593_v53  ;;  %13319 = vst [vmem:[#allocation105_spill] sm:$0xff] %v9596_v2  ;;  %v683_v53 = vadd.f32 %v9280_v44, %v9603_v33  ;;  %v693_v44 = vadd.f32 %v9298_v54, %v9249_v5 }
 0x1be   : > { %v9598_v46 = vpop.f32.mrf.mxu1  ;;  %v9605_v24 = vpop.f32.mrf.mxu0 }
 0x1bf   : > { %13320 = vst [vmem:[#allocation106_spill] sm:$0xff] %v9598_v46  ;;  %13322 = vst [vmem:[#allocation34_spill] sm:$0xff] %v9605_v24  ;;  %v687_v46 = vadd.f32 %v9285_v34, %v9249_v5  ;;  %v695_v34 = vadd.f32 %v9305_v58, %v9603_v33 }
 0x219   : > { %v1298_v39 = vpop.f32.mrf.mxu0  ;;  %v1387_v59 = vpop.f32.mrf.mxu1 }
 0x21a   : > { %v1299_v40 = vadd.f32 %v1298_v39, %v681_v56 }
 0x21b   : > { %v1300_v62 = vpop.f32.mrf.mxu0  ;;  %v1389_v2 = vpop.f32.mrf.mxu1 }
 0x21c   : > { %v6836_v43 = vmul.f32 -1.442695, %v1299_v40  ;;  %v1301_v45 = vadd.f32 %v1300_v62, %v683_v53 }
 0x21d   : > { %v1304_v63 = vpop.f32.mrf.mxu0  ;;  %v1393_v42 = vpop.f32.mrf.mxu1 }
 0x21e   : > { %7232 = vpow2.f32 %v6836_v43  ;;  %v6837_v24 = vmul.f32 -1.442695, %v1301_v45  ;;  %v1305_v48 = vadd.f32 %v1304_v63, %v687_v46  ;;  %v699_v45 = vadd.f32 %v9312_v0, %v9249_v5  ;;  %v13324_v0 = vld [vmem:[#allocation35_spill] sm:$0xff] }
 0x21f   : > { %v1306_v38 = vpop.f32.mrf.mxu0  ;;  %v1395_v40 = vpop.f32.mrf.mxu1 }
 0x220   : > { %7234 = vpow2.f32 %v6837_v24  ;;  %v6839_v56 = vmul.f32 -1.442695, %v1305_v48  ;;  %v1307_v39 = vadd.f32 %v1306_v38, %v689_v37  ;;  %v1388_v24 = vadd.f32 %v1387_v59, %v938_v51 }
 0x221   : > { %v1310_v36 = vpop.f32.mrf.mxu0  ;;  %v701_v38 = vadd.f32 %v9319_v1, %v9603_v33  ;;  %v1399_v58 = vpop.f32.mrf.mxu1 }
 0x222   : > { %7236 = vpow2.f32 %v6839_v56  ;;  %v6840_v53 = vmul.f32 -1.442695, %v1307_v39  ;;  %v1311_v62 = vadd.f32 %v1310_v36, %v693_v44  ;;  %v13323_v36 = vld [vmem:[#allocation37_spill] sm:$0xff] }
 0x223   : > { %v1312_v43 = vpop.f32.mrf.mxu0  ;;  %v944_v44 = vadd.f32 %v13323_v36, %v9256_v60  ;;  %v1401_v51 = vpop.f32.mrf.mxu1 }
 0x224   : > { %7238 = vpow2.f32 %v6840_v53  ;;  %v6842_v54 = vmul.f32 -1.442695, %v1311_v62  ;;  %v1313_v46 = vadd.f32 %v1312_v43, %v695_v34  ;;  %v13325_v53 = vld [vmem:[#allocation36_spill] sm:$0xff]  ;;  %v6838_v34 = vmul.f32 -1.442695, %v1388_v24 }
 0x225   : > { %v1316_v37 = vpop.f32.mrf.mxu0  ;;  %v940_v62 = vadd.f32 %v13325_v53, %v13324_v0  ;;  %v1394_v59 = vadd.f32 %v1393_v42, %v944_v44  ;;  %v1405_v42 = vpop.f32.mrf.mxu1 }
 0x226   : > { %7240 = vpow2.f32 %v6842_v54  ;;  %v6843_v63 = vmul.f32 -1.442695, %v1313_v46  ;;  %v1317_v48 = vadd.f32 %v1316_v37, %v699_v45  ;;  %v13326_v54 = vld [vmem:[#allocation40_spill] sm:$0xff] }
 0x227   : > { %v1318_v52 = vpop.f32.mrf.mxu0  ;;  %v950_v46 = vadd.f32 %v13326_v54, %v9256_v60  ;;  %v1390_v45 = vadd.f32 %v1389_v2, %v940_v62  ;;  %v13328_v62 = vld [vmem:[#allocation42_spill] sm:$0xff] }
 0x228   : > { %7242 = vpow2.f32 %v6843_v63  ;;  %v6845_v56 = vmul.f32 -1.442695, %v1317_v48  ;;  %v1319_v39 = vadd.f32 %v1318_v52, %v701_v38  ;;  %v13327_v63 = vld [vmem:[#allocation38_spill] sm:$0xff]  ;;  %v6841_v38 = vmul.f32 -1.442695, %v1394_v59  ;;  %13338 = vst [vmem:[#allocation42_spill] sm:$0xff] %v9749_v27 }
 0x229   : > { %v946_v48 = vadd.f32 %v13327_v63, %v13324_v0  ;;  %v1400_v52 = vadd.f32 %v1399_v58, %v950_v46  ;;  %13337 = vst [vmem:[#allocation38_spill] sm:$0xff] %v9746_v25 }
 0x22a   : > { %7244 = vpow2.f32 %v6845_v56  ;;  %v6846_v43 = vmul.f32 -1.442695, %v1319_v39  ;;  %v956_v56 = vadd.f32 %v9308_v50, %v9256_v60 }
 0x22b   : > { %v7233_v1 = vpop.eup %7232  ;;  %v1396_v39 = vadd.f32 %v1395_v40, %v946_v48  ;;  %v958_v40 = vadd.f32 %v9315_v57, %v13324_v0 }
 0x22c   : > { %v1446_v37 = vadd.f32 1.0, %v7233_v1  ;;  %7246 = vpow2.f32 %v6846_v43  ;;  %v952_v43 = vadd.f32 %v13328_v62, %v13324_v0  ;;  %v6844_v1 = vmul.f32 -1.442695, %v1400_v52 }
 0x22d   : > { %v7235_v36 = vpop.eup %7234  ;;  %7248 = vpow2.f32 %v6838_v34  ;;  %v1406_v34 = vadd.f32 %v1405_v42, %v956_v56 }
 0x22e   : > { %7250 = vrcp.f32 %v1446_v37  ;;  %v1447_v24 = vadd.f32 1.0, %v7235_v36  ;;  %v1402_v54 = vadd.f32 %v1401_v51, %v952_v43  ;;  %v1407_v37 = vpop.f32.mrf.mxu1 }
 0x22f   : > { %v7237_v44 = vpop.eup %7236  ;;  %7252 = vtanh.f32 %v1390_v45  ;;  %v6847_v45 = vmul.f32 -1.442695, %v1406_v34  ;;  %v1408_v48 = vadd.f32 %v1407_v37, %v958_v40 }
 0x230   : > { %7254 = vrcp.f32 %v1447_v24  ;;  %v1449_v2 = vadd.f32 1.0, %v7237_v44 }
 0x231   : > { %v7239_v53 = vpop.eup %7238  ;;  %7256 = vpow2.f32 %v6841_v38 }
 0x232   : > { %7258 = vrcp.f32 %v1449_v2  ;;  %v1450_v58 = vadd.f32 1.0, %v7239_v53  ;;  %v13329_v2 = vld [vmem:[#allocation39_spill] sm:$0xff] }
 0x233   : > { %v7241_v59 = vpop.eup %7240  ;;  %7260 = vtanh.f32 %v1396_v39  ;;  %13339 = vst [vmem:[#allocation39_spill] sm:$0xff] %v9752_v61 }
 0x234   : > { %7262 = vrcp.f32 %v1450_v58  ;;  %v1452_v46 = vadd.f32 1.0, %v7241_v59 }
 0x235   : > { %v7243_v50 = vpop.eup %7242  ;;  %7264 = vpow2.f32 %v6844_v1 }
 0x236   : > { %7266 = vrcp.f32 %v1452_v46  ;;  %v1453_v36 = vadd.f32 1.0, %v7243_v50  ;;  %v13330_v46 = vld [vmem:[#allocation41_spill] sm:$0xff] }
 0x237   : > { %v7245_v63 = vpop.eup %7244  ;;  %7268 = vtanh.f32 %v1402_v54  ;;  %13340 = vst [vmem:[#allocation41_spill] sm:$0xff] %v9755_v15 }
 0x238   : > { %7270 = vrcp.f32 %v1453_v36  ;;  %v1455_v38 = vadd.f32 1.0, %v7245_v63 }
 0x239   : > { %v7247_v52 = vpop.eup %7246  ;;  %7272 = vpow2.f32 %v6847_v45 }
 0x23a   : > { %v7249_v24 = vpop.eup %7248  ;;  %7274 = vrcp.f32 %v1455_v38  ;;  %v1456_v51 = vadd.f32 1.0, %v7247_v52  ;;  %v13331_v52 = vld [vmem:[#allocation43_spill] sm:$0xff] }
 0x23b   : > { %v7251_v42 = vpop.eup %7250  ;;  %7276 = vtanh.f32 %v1408_v48  ;;  %v1448_v57 = vadd.f32 1.0, %v7249_v24  ;;  %13341 = vst [vmem:[#allocation43_spill] sm:$0xff] %v9758_v47 }
 0x23c   : > { %v7253_v44 = vpop.eup %7252  ;;  %7278 = vrcp.f32 %v1456_v51 }
 0x23d   : > { %v7255_v56 = vpop.eup %7254  ;;  %v1490_v62 = vmul.f32 %v7253_v44, %v7251_v42  ;;  %7280 = vrcp.f32 %v1448_v57 }
 0x23e   : > { %v7257_v39 = vpop.eup %7256  ;;  %v1486_v53 = vmul.f32 %v7255_v56, %v13329_v2  ;;  %v13332_v2 = vld [vmem:[#allocation44_spill] sm:$0xff] }
 0x23f   : > { %v7259_v43 = vpop.eup %7258  ;;  %v1451_v59 = vadd.f32 1.0, %v7257_v39  ;;  %13342 = vst [vmem:[#allocation44_spill] sm:$0xff] %v9761_v49 }
 0x240   : > { %v7261_v1 = vpop.eup %7260  ;;  %v9640_v34 = vadd.f32 %v1490_v62, %v1486_v53 }
 0x241   : > { %v7263_v58 = vpop.eup %7262  ;;  %v1491_v50 = vmul.f32 %v7261_v1, %v7259_v43 }
 0x242   : > { %v7265_v54 = vpop.eup %7264  ;;  %7282 = vtanh.f32 %v9640_v34  ;;  %v1487_v37 = vmul.f32 %v7263_v58, %v13330_v46 }
 0x243   : > { %v7267_v40 = vpop.eup %7266  ;;  %7284 = vrcp.f32 %v1451_v59  ;;  %v1454_v48 = vadd.f32 1.0, %v7265_v54 }
 0x244   : > { %v7269_v45 = vpop.eup %7268  ;;  %v9644_v36 = vadd.f32 %v1491_v50, %v1487_v37  ;;  %v9663_v50 = vld [vmem:[#allocation2 + $0x1e0] sm:$0xff] }
 0x245   : > { %v7271_v63 = vpop.eup %7270  ;;  %v1492_v51 = vmul.f32 %v7269_v45, %v7267_v40  ;;  %v9666_v40 = vld [vmem:[#allocation2 + $0x1f0] sm:$0xff]  ;;  %v9669_v45 = vld [vmem:[#allocation2 + $0x1c8] sm:$0xff] }
 0x246   : > { %v7273_v38 = vpop.eup %7272  ;;  %7286 = vtanh.f32 %v9644_v36  ;;  %v1488_v24 = vmul.f32 %v7271_v63, %v13331_v52  ;;  %v9672_v63 = vld [vmem:[#allocation2 + $0x1d8] sm:$0xff] }
 0x247   : > { %v7275_v42 = vpop.eup %7274  ;;  %7288 = vrcp.f32 %v1454_v48  ;;  %v1457_v39 = vadd.f32 1.0, %v7273_v38 }
 0x248   : > { %v7277_v44 = vpop.eup %7276  ;;  %v9648_v56 = vadd.f32 %v1492_v51, %v1488_v24  ;;  %v9681_v24 = vld [vmem:[#allocation2 + $0x1c0] sm:$0xff]  ;;  %v9684_v51 = vld [vmem:[#allocation2 + $0x1d0] sm:$0xff] }
 0x249   : > { %v7279_v57 = vpop.eup %7278  ;;  %v1493_v62 = vmul.f32 %v7277_v44, %v7275_v42  ;;  %v9687_v42 = vld [vmem:[#allocation2 + $0x1a8] sm:$0xff]  ;;  %v9690_v44 = vld [vmem:[#allocation2 + $0x1b8] sm:$0xff] }
 0x24a   : > { %7290 = vtanh.f32 %v9648_v56  ;;  %v1489_v53 = vmul.f32 %v7279_v57, %v13332_v2  ;;  %v7281_v1 = vpop.eup %7280 }
 0x24b   : > { %7292 = vrcp.f32 %v1457_v39 }
 0x24c   : > { %v9652_v43 = vadd.f32 %v1493_v62, %v1489_v53  ;;  %v9699_v53 = vld [vmem:[#allocation2 + $0x1a0] sm:$0xff]  ;;  %v9702_v62 = vld [vmem:[#allocation2 + $0x1b0] sm:$0xff] }
 0x24e   : > { %7294 = vtanh.f32 %v9652_v43 }
 0x24f   : > { %v7283_v58 = vpop.eup %7282 }
 0x250   : > { %v9655_v59 = vmul.f32 %v7283_v58, %v7281_v1  ;;  %v7285_v54 = vpop.eup %7284  ;;  %v9705_v1 = vld [vmem:[#allocation2 + $0x188] sm:$0xff]  ;;  %v9708_v58 = vld [vmem:[#allocation2 + $0x198] sm:$0xff] }
 0x252   : > { %13333 = vst [vmem:[#allocation37_spill] sm:$0xff] %v9655_v59  ;;  %1571 = vmatmul.mubr.f32.vlgmr.msra.gmra.mxu0 %v9655_v59  ;;  %1660 = vmatmul.mubr.f32.vlgmr.msra.gmra.mxu1 %v9655_v59  ;;  %v9740_v59 = vld [vmem:[#allocation2 + $0x150] sm:$0xff] }
 0x253   : > { %v7287_v46 = vpop.eup %7286  ;;  %1576 = vmatprep.mubr.f32.mxu0 %v13216_v14  ;;  %1665 = vmatprep.mubr.f32.mxu1 %v13216_v14 }
 0x254   : > { %v9661_v37 = vmul.f32 %v7287_v46, %v7285_v54  ;;  %1781 = vmatpush1.msra.mxu0 %v9663_v50  ;;  %1870 = vmatpush1.msra.mxu1 %v9666_v40  ;;  %v7289_v48 = vpop.eup %7288  ;;  %v9713_v54 = vld [vmem:[#allocation2 + $0x180] sm:$0xff]  ;;  %v9716_v46 = vld [vmem:[#allocation2 + $0x190] sm:$0xff] }
 0x255   : > { %1782 = vmatprep.subr.mxu0 %v9669_v45  ;;  %1871 = vmatprep.subr.mxu1 %v9672_v63 }
 0x256   : > { %13334 = vst [vmem:[#allocation35_spill] sm:$0xff] %v9661_v37  ;;  %1577 = vmatmul.mubr.f32.gmra.mxu0 %v9661_v37  ;;  %1666 = vmatmul.mubr.f32.gmra.mxu1 %v9661_v37  ;;  %v9737_v37 = vld [vmem:[#allocation2 + $0x140] sm:$0xff] }
 0x257   : > { %v7291_v38 = vpop.eup %7290  ;;  %1582 = vmatprep.mubr.f32.mxu0 %v13216_v14  ;;  %1671 = vmatprep.mubr.f32.mxu1 %v13216_v14 }
 0x258   : > { %v9679_v52 = vmul.f32 %v7291_v38, %v7289_v48  ;;  %1783 = vmatpush1.msra.mxu0 %v9681_v24  ;;  %1872 = vmatpush1.msra.mxu1 %v9684_v51  ;;  %v7293_v57 = vpop.eup %7292  ;;  %v9719_v48 = vld [vmem:[#allocation2 + $0x168] sm:$0xff]  ;;  %v9722_v38 = vld [vmem:[#allocation2 + $0x178] sm:$0xff] }
 0x259   : > { %1784 = vmatprep.subr.mxu0 %v9687_v42  ;;  %1873 = vmatprep.subr.mxu1 %v9690_v44 }
 0x25a   : > { %13335 = vst [vmem:[#allocation36_spill] sm:$0xff] %v9679_v52  ;;  %1583 = vmatmul.mubr.f32.gmra.mxu0 %v9679_v52  ;;  %1672 = vmatmul.mubr.f32.gmra.mxu1 %v9679_v52  ;;  %v9734_v52 = vld [vmem:[#allocation2 + $0x158] sm:$0xff] }
 0x25b   : > { %v7295_v39 = vpop.eup %7294  ;;  %1588 = vmatprep.mubr.f32.mxu0 %v13216_v14  ;;  %1677 = vmatprep.mubr.f32.mxu1 %v13216_v14 }
 0x25c   : > { %v9697_v2 = vmul.f32 %v7295_v39, %v7293_v57  ;;  %1785 = vmatpush1.msra.mxu0 %v9699_v53  ;;  %1874 = vmatpush1.msra.mxu1 %v9702_v62  ;;  %v9725_v57 = vld [vmem:[#allocation2 + $0x160] sm:$0xff]  ;;  %v9728_v39 = vld [vmem:[#allocation2 + $0x170] sm:$0xff] }
 0x25d   : > { %1786 = vmatprep.subr.mxu0 %v9705_v1  ;;  %1875 = vmatprep.subr.mxu1 %v9708_v58 }
 0x25e   : > { %13336 = vst [vmem:[#allocation40_spill] sm:$0xff] %v9697_v2  ;;  %1589 = vmatmul.mubr.f32.gmra.mxu0 %v9697_v2  ;;  %1678 = vmatmul.mubr.f32.gmra.mxu1 %v9697_v2  ;;  %v9731_v2 = vld [vmem:[#allocation2 + $0x148] sm:$0xff] }
 0x25f   : > { %1787 = vmatpush1.msra.mxu0 %v9713_v54  ;;  %1876 = vmatpush1.msra.mxu1 %v9716_v46 }
 0x260   : > { %1788 = vmatprep.subr.mxu0 %v9719_v48  ;;  %1877 = vmatprep.subr.mxu1 %v9722_v38 }
 0x261   : > { %1789 = vmatpush1.msra.mxu0 %v9725_v57  ;;  %1878 = vmatpush1.msra.mxu1 %v9728_v39 }
 0x262   : > { %1790 = vmatprep.subr.mxu0 %v9731_v2  ;;  %1879 = vmatprep.subr.mxu1 %v9734_v52 }
 0x263   : > { %1791 = vmatpush1.msra.mxu0 %v9737_v37  ;;  %1880 = vmatpush1.msra.mxu1 %v9740_v59 }
 0x264   : > { %1792 = vmatprep.subr.mxu0 %v9743_v31  ;;  %1881 = vmatprep.subr.mxu1 %v9746_v25 }
 0x265   : > { %1793 = vmatpush1.msra.mxu0 %v9749_v27  ;;  %1882 = vmatpush1.msra.mxu1 %v9752_v61 }
 0x266   : > { %1794 = vmatprep.subr.mxu0 %v9755_v15  ;;  %1883 = vmatprep.subr.mxu1 %v9758_v47 }
 0x267   : > { %1795 = vmatpush1.msra.mxu0 %v9761_v49  ;;  %1884 = vmatpush1.msra.mxu1 %v9764_v32 }
 0x268   : > { %1796 = vmatprep.subr.mxu0 %v9767_v30  ;;  %1885 = vmatprep.subr.mxu1 %v9770_v35 }
 0x269   : > { %1797 = vmatpush1.msra.mxu0 %v9773_v26  ;;  %1886 = vmatpush1.msra.mxu1 %v9776_v23  ;;  %v9791_v26 = vld [vmem:[#allocation2 + $0xa8] sm:$0xff]  ;;  %v9794_v23 = vld [vmem:[#allocation2 + $0xb8] sm:$0xff] }
 0x26a   : > { %1798 = vmatprep.subr.mxu0 %v9779_v6  ;;  %1887 = vmatprep.subr.mxu1 %v9782_v19  ;;  %13352 = vst [vmem:[#allocation116_spill] sm:$0xff] %v9791_v26  ;;  %13353 = vst [vmem:[#allocation117_spill] sm:$0xff] %v9794_v23  ;;  %v9797_v6 = vld [vmem:[#allocation2 + $0xa0] sm:$0xff]  ;;  %v9800_v19 = vld [vmem:[#allocation2 + $0xb0] sm:$0xff] }
 0x26b   : > { %1799 = vmatpush1.msra.mxu0 %v9785_v4  ;;  %1888 = vmatpush1.msra.mxu1 %v9788_v41  ;;  %13354 = vst [vmem:[#allocation118_spill] sm:$0xff] %v9797_v6  ;;  %13355 = vst [vmem:[#allocation119_spill] sm:$0xff] %v9800_v19  ;;  %v9803_v4 = vld [vmem:[#allocation2 + $0x88] sm:$0xff]  ;;  %v9806_v41 = vld [vmem:[#allocation2 + $0x98] sm:$0xff] }
 0x26c   : > { %1800 = vmatprep.subr.mxu0 %v9791_v26  ;;  %1889 = vmatprep.subr.mxu1 %v9794_v23  ;;  %13356 = vst [vmem:[#allocation120_spill] sm:$0xff] %v9803_v4  ;;  %13357 = vst [vmem:[#allocation121_spill] sm:$0xff] %v9806_v41  ;;  %v9809_v26 = vld [vmem:[#allocation2 + $0x80] sm:$0xff]  ;;  %v9812_v23 = vld [vmem:[#allocation2 + $0x90] sm:$0xff] }
 0x26d   : > { %1801 = vmatpush1.msra.mxu0 %v9797_v6  ;;  %1890 = vmatpush1.msra.mxu1 %v9800_v19  ;;  %13358 = vst [vmem:[#allocation122_spill] sm:$0xff] %v9809_v26  ;;  %13359 = vst [vmem:[#allocation123_spill] sm:$0xff] %v9812_v23  ;;  %v9815_v6 = vld [vmem:[#allocation2 + $0x68] sm:$0xff]  ;;  %v9818_v19 = vld [vmem:[#allocation2 + $0x78] sm:$0xff] }
 0x26e   : > { %1802 = vmatprep.subr.mxu0 %v9803_v4  ;;  %1891 = vmatprep.subr.mxu1 %v9806_v41  ;;  %13360 = vst [vmem:[#allocation124_spill] sm:$0xff] %v9815_v6  ;;  %13361 = vst [vmem:[#allocation125_spill] sm:$0xff] %v9818_v19  ;;  %v9821_v4 = vld [vmem:[#allocation2 + $0x60] sm:$0xff]  ;;  %v9824_v41 = vld [vmem:[#allocation2 + $0x70] sm:$0xff] }
 0x26f   : > { %1803 = vmatpush1.msra.mxu0 %v9809_v26  ;;  %1892 = vmatpush1.msra.mxu1 %v9812_v23  ;;  %13362 = vst [vmem:[#allocation126_spill] sm:$0xff] %v9821_v4  ;;  %13363 = vst [vmem:[#allocation127_spill] sm:$0xff] %v9824_v41  ;;  %v9827_v26 = vld [vmem:[#allocation2 + $0x48] sm:$0xff]  ;;  %v9830_v23 = vld [vmem:[#allocation2 + $0x58] sm:$0xff] }
 0x270   : > { %1804 = vmatprep.subr.mxu0 %v9815_v6  ;;  %1893 = vmatprep.subr.mxu1 %v9818_v19  ;;  %13364 = vst [vmem:[#allocation128_spill] sm:$0xff] %v9827_v26  ;;  %13365 = vst [vmem:[#allocation129_spill] sm:$0xff] %v9830_v23  ;;  %v9833_v6 = vld [vmem:[#allocation2 + $0x40] sm:$0xff]  ;;  %v9836_v19 = vld [vmem:[#allocation2 + $0x50] sm:$0xff] }
 0x271   : > { %1805 = vmatpush1.msra.mxu0 %v9821_v4  ;;  %1894 = vmatpush1.msra.mxu1 %v9824_v41  ;;  %13366 = vst [vmem:[#allocation130_spill] sm:$0xff] %v9833_v6  ;;  %13367 = vst [vmem:[#allocation131_spill] sm:$0xff] %v9836_v19  ;;  %v9839_v4 = vld [vmem:[#allocation2 + $0x28] sm:$0xff]  ;;  %v9842_v41 = vld [vmem:[#allocation2 + $0x38] sm:$0xff] }
 0x272   : > { %1806 = vmatprep.subr.mxu0 %v9827_v26  ;;  %1895 = vmatprep.subr.mxu1 %v9830_v23  ;;  %13368 = vst [vmem:[#allocation132_spill] sm:$0xff] %v9839_v4  ;;  %13369 = vst [vmem:[#allocation133_spill] sm:$0xff] %v9842_v41  ;;  %v9845_v26 = vld [vmem:[#allocation2 + $0x20] sm:$0xff]  ;;  %v9848_v23 = vld [vmem:[#allocation2 + $0x30] sm:$0xff] }
 0x273   : > { %1807 = vmatpush1.msra.mxu0 %v9833_v6  ;;  %1896 = vmatpush1.msra.mxu1 %v9836_v19  ;;  %13370 = vst [vmem:[#allocation134_spill] sm:$0xff] %v9845_v26  ;;  %13371 = vst [vmem:[#allocation135_spill] sm:$0xff] %v9848_v23  ;;  %v9851_v6 = vld [vmem:[#allocation2 + $0x8] sm:$0xff]  ;;  %v9854_v19 = vld [vmem:[#allocation2 + $0x18] sm:$0xff] }
 0x274   : > { %1808 = vmatprep.subr.mxu0 %v9839_v4  ;;  %1897 = vmatprep.subr.mxu1 %v9842_v41  ;;  %13372 = vst [vmem:[#allocation136_spill] sm:$0xff] %v9851_v6  ;;  %13373 = vst [vmem:[#allocation137_spill] sm:$0xff] %v9854_v19  ;;  %v9857_v4 = vld [vmem:[#allocation2] sm:$0xff]  ;;  %v9861_v41 = vld [vmem:[#allocation2 + $0x10] sm:$0xff] }
 0x275   : > { %1809 = vmatpush1.msra.mxu0 %v9845_v26  ;;  %1898 = vmatpush1.msra.mxu1 %v9848_v23  ;;  %13374 = vst [vmem:[#allocation138_spill] sm:$0xff] %v9857_v4  ;;  %13375 = vst [vmem:[#allocation139_spill] sm:$0xff] %v9861_v41  ;;  %v9866_v23 = vld [vmem:[#allocation2 + $0x1f8] sm:$0xff] }
 0x276   : > { %1810 = vmatprep.subr.mxu0 %v9851_v6  ;;  %1899 = vmatprep.subr.mxu1 %v9854_v19  ;;  %13376 = vst [vmem:[#allocation140_spill] sm:$0xff] %v9866_v23  ;;  %v705_v19 = vadd.f32 %v9329_v9, %v9249_v5 }
 0x277   : > { %1811 = vmatpush1.msra.mxu0 %v9857_v4  ;;  %1844 = vmatprep.mubr.f32.mxu0 %v13216_v14  ;;  %v707_v4 = vadd.f32 %v9343_v3, %v9603_v33  ;;  %v717_v3 = vadd.f32 %v9381_v13, %v9249_v5 }
 0x278   : > { %1900 = vmatpush1.msra.mxu1 %v9861_v41  ;;  %1933 = vmatprep.mubr.f32.mxu1 %v13216_v14  ;;  %v711_v41 = vadd.f32 %v9357_v7, %v9249_v5  ;;  %v719_v7 = vadd.f32 %v9393_v18, %v9603_v33 }
 0x279   : > { %2054 = vmatprep.subr.mxu0 %v9445_v29  ;;  %2143 = vmatprep.subr.mxu1 %v9866_v23  ;;  %v713_v23 = vadd.f32 %v9369_v17, %v9603_v33  ;;  %v962_v17 = vadd.f32 %v9323_v55, %v9256_v60 }
 0x312   : > { %v1572_v6 = vpop.f32.mrf.mxu0  ;;  %v1661_v26 = vpop.f32.mrf.mxu1 }
 0x313   : > { %v1573_v35 = vadd.f32 %v1572_v6, %v705_v19 }
 0x314   : > { %v1574_v30 = vpop.f32.mrf.mxu0  ;;  %v1663_v32 = vpop.f32.mrf.mxu1 }
 0x315   : > { %v6848_v49 = vmul.f32 -1.442695, %v1573_v35  ;;  %v1575_v29 = vadd.f32 %v1574_v30, %v707_v4 }
 0x316   : > { %v1578_v47 = vpop.f32.mrf.mxu0  ;;  %v1667_v61 = vpop.f32.mrf.mxu1 }
 0x317   : > { %7296 = vpow2.f32 %v6848_v49  ;;  %v6849_v15 = vmul.f32 -1.442695, %v1575_v29  ;;  %v1579_v9 = vadd.f32 %v1578_v47, %v711_v41  ;;  %v723_v47 = vadd.f32 %v9405_v21, %v9249_v5 }
 0x318   : > { %v1580_v27 = vpop.f32.mrf.mxu0  ;;  %v1669_v4 = vpop.f32.mrf.mxu1  ;;  %v964_v21 = vadd.f32 %v9337_v8, %v13324_v0 }
 0x319   : > { %7298 = vpow2.f32 %v6849_v15  ;;  %v6851_v19 = vmul.f32 -1.442695, %v1579_v9  ;;  %v1581_v6 = vadd.f32 %v1580_v27, %v713_v23  ;;  %v1662_v15 = vadd.f32 %v1661_v26, %v962_v17 }
 0x31a   : > { %v1584_v25 = vpop.f32.mrf.mxu0  ;;  %v725_v27 = vadd.f32 %v9417_v28, %v9603_v33  ;;  %v1673_v18 = vpop.f32.mrf.mxu1  ;;  %v1664_v17 = vadd.f32 %v1663_v32, %v964_v21 }
 0x31b   : > { %7300 = vpow2.f32 %v6851_v19  ;;  %v6852_v35 = vmul.f32 -1.442695, %v1581_v6  ;;  %v1585_v30 = vadd.f32 %v1584_v25, %v717_v3  ;;  %v968_v25 = vadd.f32 %v9351_v12, %v9256_v60 }
 0x31c   : > { %v1586_v41 = vpop.f32.mrf.mxu0  ;;  %v6850_v6 = vmul.f32 -1.442695, %v1662_v15 }
 0x31d   : > { %7302 = vpow2.f32 %v6852_v35  ;;  %v6854_v13 = vmul.f32 -1.442695, %v1585_v30  ;;  %v1587_v49 = vadd.f32 %v1586_v41, %v719_v7  ;;  %v1668_v26 = vadd.f32 %v1667_v61, %v968_v25  ;;  %v1675_v7 = vpop.f32.mrf.mxu1 }
 0x31e   : > { %v1590_v23 = vpop.f32.mrf.mxu0  ;;  %v974_v30 = vadd.f32 %v9375_v11, %v9256_v60 }
 0x31f   : > { %7304 = vpow2.f32 %v6854_v13  ;;  %v6855_v29 = vmul.f32 -1.442695, %v1587_v49  ;;  %v1591_v9 = vadd.f32 %v1590_v23, %v723_v47  ;;  %v970_v47 = vadd.f32 %v9365_v10, %v13324_v0  ;;  %v1679_v61 = vpop.f32.mrf.mxu1 }
 0x320   : > { %v1592_v55 = vpop.f32.mrf.mxu0  ;;  %v6853_v13 = vmul.f32 -1.442695, %v1668_v26  ;;  %v1674_v49 = vadd.f32 %v1673_v18, %v974_v30  ;;  %v980_v23 = vadd.f32 %v9399_v20, %v9256_v60 }
 0x321   : > { %7306 = vpow2.f32 %v6855_v29  ;;  %v6857_v3 = vmul.f32 -1.442695, %v1591_v9  ;;  %v1593_v19 = vadd.f32 %v1592_v55, %v725_v27  ;;  %v1670_v27 = vadd.f32 %v1669_v4, %v970_v47 }
 0x322   : > { %v976_v29 = vadd.f32 %v9387_v16, %v13324_v0  ;;  %v6856_v10 = vmul.f32 -1.442695, %v1674_v49  ;;  %v1680_v9 = vadd.f32 %v1679_v61, %v980_v23  ;;  %v982_v4 = vadd.f32 %v9411_v22, %v13324_v0 }
 0x323   : > { %7308 = vpow2.f32 %v6857_v3  ;;  %v6858_v35 = vmul.f32 -1.442695, %v1593_v19  ;;  %v1681_v19 = vpop.f32.mrf.mxu1 }
 0x324   : > { %v7297_v28 = vpop.eup %7296  ;;  %v1676_v55 = vadd.f32 %v1675_v7, %v976_v29  ;;  %v6859_v21 = vmul.f32 -1.442695, %v1680_v9  ;;  %v1682_v26 = vadd.f32 %v1681_v19, %v982_v4 }
 0x325   : > { %v1720_v41 = vadd.f32 1.0, %v7297_v28  ;;  %7310 = vpow2.f32 %v6858_v35 }
 0x326   : > { %v7299_v12 = vpop.eup %7298  ;;  %7312 = vpow2.f32 %v6850_v6 }
 0x327   : > { %7314 = vrcp.f32 %v1720_v41  ;;  %v1721_v8 = vadd.f32 1.0, %v7299_v12 }
 0x328   : > { %v7301_v15 = vpop.eup %7300  ;;  %7316 = vtanh.f32 %v1664_v17 }
 0x329   : > { %7318 = vrcp.f32 %v1721_v8  ;;  %v1723_v11 = vadd.f32 1.0, %v7301_v15 }
 0x32a   : > { %v7303_v32 = vpop.eup %7302  ;;  %7320 = vpow2.f32 %v6853_v13 }
 0x32b   : > { %7322 = vrcp.f32 %v1723_v11  ;;  %v1724_v18 = vadd.f32 1.0, %v7303_v32 }
 0x32c   : > { %v7305_v25 = vpop.eup %7304  ;;  %7324 = vtanh.f32 %v1670_v27 }
 0x32d   : > { %7326 = vrcp.f32 %v1724_v18  ;;  %v1726_v3 = vadd.f32 1.0, %v7305_v25 }
 0x32e   : > { %v7307_v20 = vpop.eup %7306  ;;  %7328 = vpow2.f32 %v6856_v10 }
 0x32f   : > { %7330 = vrcp.f32 %v1726_v3  ;;  %v1727_v6 = vadd.f32 1.0, %v7307_v20 }
 0x330   : > { %v7309_v16 = vpop.eup %7308  ;;  %7332 = vtanh.f32 %v1676_v55 }
 0x331   : > { %7334 = vrcp.f32 %v1727_v6  ;;  %v1729_v35 = vadd.f32 1.0, %v7309_v16 }
 0x332   : > { %v7311_v28 = vpop.eup %7310  ;;  %7336 = vpow2.f32 %v6859_v21 }
 0x333   : > { %v7313_v30 = vpop.eup %7312  ;;  %7338 = vrcp.f32 %v1729_v35  ;;  %v1730_v7 = vadd.f32 1.0, %v7311_v28 }
 0x334   : > { %v7315_v17 = vpop.eup %7314  ;;  %7340 = vtanh.f32 %v1682_v26  ;;  %v1722_v22 = vadd.f32 1.0, %v7313_v30 }
 0x335   : > { %v7317_v41 = vpop.eup %7316  ;;  %7342 = vrcp.f32 %v1730_v7 }
 0x336   : > { %v7319_v12 = vpop.eup %7318  ;;  %v1764_v49 = vmul.f32 %v7317_v41, %v7315_v17  ;;  %7344 = vrcp.f32 %v1722_v22 }
 0x337   : > { %v7321_v47 = vpop.eup %7320  ;;  %v1760_v13 = vmul.f32 %v7319_v12, %v9640_v34 }
 0x338   : > { %v7323_v8 = vpop.eup %7322  ;;  %v1725_v27 = vadd.f32 1.0, %v7321_v47 }
 0x339   : > { %v7325_v61 = vpop.eup %7324  ;;  %v9902_v15 = vadd.f32 %v1764_v49, %v1760_v13 }
 0x33a   : > { %v7327_v23 = vpop.eup %7326  ;;  %v1765_v29 = vmul.f32 %v7325_v61, %v7323_v8  ;;  %v13381_v8 = vld [vmem:[#allocation38_spill] sm:$0xff] }
 0x33b   : > { %v7329_v11 = vpop.eup %7328  ;;  %7346 = vtanh.f32 %v9902_v15  ;;  %v1761_v32 = vmul.f32 %v7327_v23, %v9644_v36  ;;  %v13382_v61 = vld [vmem:[#allocation42_spill] sm:$0xff]  ;;  %v13383_v23 = vld [vmem:[#allocation39_spill] sm:$0xff] }
 0x33c   : > { %v7331_v10 = vpop.eup %7330  ;;  %7348 = vrcp.f32 %v1725_v27  ;;  %v1728_v34 = vadd.f32 1.0, %v7329_v11  ;;  %v13384_v27 = vld [vmem:[#allocation41_spill] sm:$0xff]  ;;  %v13385_v11 = vld [vmem:[#allocation43_spill] sm:$0xff] }
 0x33d   : > { %v7333_v9 = vpop.eup %7332  ;;  %v9906_v18 = vadd.f32 %v1765_v29, %v1761_v32  ;;  %v13386_v32 = vld [vmem:[#allocation44_spill] sm:$0xff]  ;;  %v13387_v29 = vld [vmem:[#allocation107_spill] sm:$0xff] }
 0x33e   : > { %v7335_v25 = vpop.eup %7334  ;;  %v1766_v19 = vmul.f32 %v7333_v9, %v7331_v10  ;;  %v13388_v10 = vld [vmem:[#allocation108_spill] sm:$0xff]  ;;  %v13389_v9 = vld [vmem:[#allocation109_spill] sm:$0xff] }
 0x33f   : > { %v7337_v55 = vpop.eup %7336  ;;  %7350 = vtanh.f32 %v9906_v18  ;;  %v1762_v3 = vmul.f32 %v7335_v25, %v9648_v56  ;;  %v13390_v25 = vld [vmem:[#allocation110_spill] sm:$0xff] }
 0x340   : > { %v7339_v20 = vpop.eup %7338  ;;  %7352 = vrcp.f32 %v1728_v34  ;;  %v1731_v36 = vadd.f32 1.0, %v7337_v55  ;;  %v13391_v34 = vld [vmem:[#allocation111_spill] sm:$0xff]  ;;  %v13392_v55 = vld [vmem:[#allocation112_spill] sm:$0xff] }
 0x341   : > { %v7341_v4 = vpop.eup %7340  ;;  %v9910_v21 = vadd.f32 %v1766_v19, %v1762_v3  ;;  %v13393_v3 = vld [vmem:[#allocation113_spill] sm:$0xff]  ;;  %v13394_v19 = vld [vmem:[#allocation114_spill] sm:$0xff] }
 0x342   : > { %v7343_v6 = vpop.eup %7342  ;;  %v1767_v26 = vmul.f32 %v7341_v4, %v7339_v20  ;;  %v13395_v20 = vld [vmem:[#allocation115_spill] sm:$0xff]  ;;  %v13396_v4 = vld [vmem:[#allocation116_spill] sm:$0xff] }
 0x343   : > { %7354 = vtanh.f32 %v9910_v21  ;;  %v1763_v16 = vmul.f32 %v7343_v6, %v9652_v43  ;;  %v7345_v28 = vpop.eup %7344  ;;  %v13397_v6 = vld [vmem:[#allocation117_spill] sm:$0xff] }
 0x344   : > { %7356 = vrcp.f32 %v1731_v36  ;;  %v13398_v36 = vld [vmem:[#allocation118_spill] sm:$0xff] }
 0x345   : > { %v9914_v35 = vadd.f32 %v1767_v26, %v1763_v16  ;;  %v13399_v16 = vld [vmem:[#allocation119_spill] sm:$0xff]  ;;  %v13400_v26 = vld [vmem:[#allocation120_spill] sm:$0xff] }
 0x347   : > { %7358 = vtanh.f32 %v9914_v35 }
 0x348   : > { %v7347_v56 = vpop.eup %7346 }
 0x349   : > { %v9917_v30 = vmul.f32 %v7347_v56, %v7345_v28  ;;  %v7349_v7 = vpop.eup %7348  ;;  %v13401_v28 = vld [vmem:[#allocation121_spill] sm:$0xff]  ;;  %v13402_v56 = vld [vmem:[#allocation122_spill] sm:$0xff] }
 0x34b   : > { %13377 = vst [vmem:[#allocation141_spill] sm:$0xff] %v9917_v30  ;;  %1845 = vmatmul.mubr.f32.vlgmr.msra.gmra.mxu0 %v9917_v30  ;;  %1934 = vmatmul.mubr.f32.vlgmr.msra.gmra.mxu1 %v9917_v30  ;;  %v13412_v30 = vld [vmem:[#allocation132_spill] sm:$0xff] }
 0x34c   : > { %v7351_v17 = vpop.eup %7350  ;;  %1850 = vmatprep.mubr.f32.mxu0 %v13216_v14  ;;  %1939 = vmatprep.mubr.f32.mxu1 %v13216_v14 }
 0x34d   : > { %v9923_v43 = vmul.f32 %v7351_v17, %v7349_v7  ;;  %2055 = vmatpush1.msra.mxu0 %v9663_v50  ;;  %2144 = vmatpush1.msra.mxu1 %v9666_v40  ;;  %v7353_v41 = vpop.eup %7352  ;;  %v13403_v7 = vld [vmem:[#allocation123_spill] sm:$0xff]  ;;  %v13404_v17 = vld [vmem:[#allocation124_spill] sm:$0xff] }
 0x34e   : > { %2056 = vmatprep.subr.mxu0 %v9669_v45  ;;  %2145 = vmatprep.subr.mxu1 %v9672_v63 }
 0x34f   : > { %13378 = vst [vmem:[#allocation142_spill] sm:$0xff] %v9923_v43  ;;  %1851 = vmatmul.mubr.f32.gmra.mxu0 %v9923_v43  ;;  %1940 = vmatmul.mubr.f32.gmra.mxu1 %v9923_v43  ;;  %v13411_v43 = vld [vmem:[#allocation131_spill] sm:$0xff] }
 0x350   : > { %v7355_v12 = vpop.eup %7354  ;;  %1856 = vmatprep.mubr.f32.mxu0 %v13216_v14  ;;  %1945 = vmatprep.mubr.f32.mxu1 %v13216_v14 }
 0x351   : > { %v9933_v22 = vmul.f32 %v7355_v12, %v7353_v41  ;;  %2057 = vmatpush1.msra.mxu0 %v9681_v24  ;;  %2146 = vmatpush1.msra.mxu1 %v9684_v51  ;;  %v7357_v47 = vpop.eup %7356  ;;  %v13405_v41 = vld [vmem:[#allocation125_spill] sm:$0xff]  ;;  %v13406_v12 = vld [vmem:[#allocation126_spill] sm:$0xff] }
 0x352   : > { %2058 = vmatprep.subr.mxu0 %v9687_v42  ;;  %2147 = vmatprep.subr.mxu1 %v9690_v44 }
 0x353   : > { %13379 = vst [vmem:[#allocation143_spill] sm:$0xff] %v9933_v22  ;;  %1857 = vmatmul.mubr.f32.gmra.mxu0 %v9933_v22  ;;  %1946 = vmatmul.mubr.f32.gmra.mxu1 %v9933_v22  ;;  %v13410_v22 = vld [vmem:[#allocation130_spill] sm:$0xff] }
 0x354   : > { %v7359_v13 = vpop.eup %7358  ;;  %1862 = vmatprep.mubr.f32.mxu0 %v13216_v14  ;;  %1951 = vmatprep.mubr.f32.mxu1 %v13216_v14 }
 0x355   : > { %v9943_v49 = vmul.f32 %v7359_v13, %v7357_v47  ;;  %2059 = vmatpush1.msra.mxu0 %v9699_v53  ;;  %2148 = vmatpush1.msra.mxu1 %v9702_v62  ;;  %v13407_v47 = vld [vmem:[#allocation127_spill] sm:$0xff]  ;;  %v13408_v13 = vld [vmem:[#allocation128_spill] sm:$0xff] }
 0x356   : > { %2060 = vmatprep.subr.mxu0 %v9705_v1  ;;  %2149 = vmatprep.subr.mxu1 %v9708_v58 }
 0x357   : > { %13380 = vst [vmem:[#allocation144_spill] sm:$0xff] %v9943_v49  ;;  %1863 = vmatmul.mubr.f32.gmra.mxu0 %v9943_v49  ;;  %1952 = vmatmul.mubr.f32.gmra.mxu1 %v9943_v49  ;;  %v13409_v49 = vld [vmem:[#allocation129_spill] sm:$0xff] }
 0x358   : > { %2061 = vmatpush1.msra.mxu0 %v9713_v54  ;;  %2150 = vmatpush1.msra.mxu1 %v9716_v46 }
 0x359   : > { %2062 = vmatprep.subr.mxu0 %v9719_v48  ;;  %2151 = vmatprep.subr.mxu1 %v9722_v38 }
 0x35a   : > { %2063 = vmatpush1.msra.mxu0 %v9725_v57  ;;  %2152 = vmatpush1.msra.mxu1 %v9728_v39 }
 0x35b   : > { %2064 = vmatprep.subr.mxu0 %v9731_v2  ;;  %2153 = vmatprep.subr.mxu1 %v9734_v52 }
 0x35c   : > { %2065 = vmatpush1.msra.mxu0 %v9737_v37  ;;  %2154 = vmatpush1.msra.mxu1 %v9740_v59 }
 0x35d   : > { %2066 = vmatprep.subr.mxu0 %v9743_v31  ;;  %2155 = vmatprep.subr.mxu1 %v13381_v8 }
 0x35e   : > { %2067 = vmatpush1.msra.mxu0 %v13382_v61  ;;  %2156 = vmatpush1.msra.mxu1 %v13383_v23 }
 0x35f   : > { %2068 = vmatprep.subr.mxu0 %v13384_v27  ;;  %2157 = vmatprep.subr.mxu1 %v13385_v11 }
 0x360   : > { %2069 = vmatpush1.msra.mxu0 %v13386_v32  ;;  %2158 = vmatpush1.msra.mxu1 %v13387_v29 }
 0x361   : > { %2070 = vmatprep.subr.mxu0 %v13388_v10  ;;  %2159 = vmatprep.subr.mxu1 %v13389_v9 }
 0x362   : > { %2071 = vmatpush1.msra.mxu0 %v13390_v25  ;;  %2160 = vmatpush1.msra.mxu1 %v13391_v34 }
 0x363   : > { %2072 = vmatprep.subr.mxu0 %v13392_v55  ;;  %2161 = vmatprep.subr.mxu1 %v13393_v3  ;;  %v13426_v3 = vld [vmem:[#allocation27_spill] sm:$0xff] }
 0x364   : > { %2073 = vmatpush1.msra.mxu0 %v13394_v19  ;;  %2162 = vmatpush1.msra.mxu1 %v13395_v20 }
 0x365   : > { %2074 = vmatprep.subr.mxu0 %v13396_v4  ;;  %2163 = vmatprep.subr.mxu1 %v13397_v6 }
 0x366   : > { %2075 = vmatpush1.msra.mxu0 %v13398_v36  ;;  %2164 = vmatpush1.msra.mxu1 %v13399_v16 }
 0x367   : > { %2076 = vmatprep.subr.mxu0 %v13400_v26  ;;  %2165 = vmatprep.subr.mxu1 %v13401_v28 }
 0x368   : > { %2077 = vmatpush1.msra.mxu0 %v13402_v56  ;;  %2166 = vmatpush1.msra.mxu1 %v13403_v7  ;;  %v13413_v56 = vld [vmem:[#allocation133_spill] sm:$0xff]  ;;  %v13414_v7 = vld [vmem:[#allocation134_spill] sm:$0xff] }
 0x369   : > { %2078 = vmatprep.subr.mxu0 %v13404_v17  ;;  %2167 = vmatprep.subr.mxu1 %v13405_v41  ;;  %v13415_v17 = vld [vmem:[#allocation135_spill] sm:$0xff]  ;;  %v13416_v41 = vld [vmem:[#allocation136_spill] sm:$0xff] }
 0x36a   : > { %2079 = vmatpush1.msra.mxu0 %v13406_v12  ;;  %2168 = vmatpush1.msra.mxu1 %v13407_v47  ;;  %v13417_v12 = vld [vmem:[#allocation137_spill] sm:$0xff]  ;;  %v13418_v47 = vld [vmem:[#allocation138_spill] sm:$0xff] }
 0x36b   : > { %2080 = vmatprep.subr.mxu0 %v13408_v13  ;;  %2169 = vmatprep.subr.mxu1 %v13409_v49  ;;  %v13419_v49 = vld [vmem:[#allocation139_spill] sm:$0xff] }
 0x36c   : > { %2081 = vmatpush1.msra.mxu0 %v13410_v22  ;;  %2170 = vmatpush1.msra.mxu1 %v13411_v43  ;;  %v10003_v43 = vld [vmem:[#allocation2 + $0x1e8] sm:$0xff] }
 0x36d   : > { %2082 = vmatprep.subr.mxu0 %v13412_v30  ;;  %2171 = vmatprep.subr.mxu1 %v13413_v56  ;;  %13420 = vst [vmem:[#allocation38_spill] sm:$0xff] %v10003_v43  ;;  %v13421_v56 = vld [vmem:[#allocation140_spill] sm:$0xff] }
 0x36e   : > { %2083 = vmatpush1.msra.mxu0 %v13414_v7  ;;  %2172 = vmatpush1.msra.mxu1 %v13415_v17  ;;  %v13422_v17 = vld [vmem:[#allocation17_spill] sm:$0xff] }
 0x36f   : > { %2084 = vmatprep.subr.mxu0 %v13416_v41  ;;  %2173 = vmatprep.subr.mxu1 %v13417_v12  ;;  %v729_v7 = vadd.f32 %v13422_v17, %v9249_v5  ;;  %v13423_v12 = vld [vmem:[#allocation18_spill] sm:$0xff] }
 0x370   : > { %2085 = vmatpush1.msra.mxu0 %v13418_v47  ;;  %2118 = vmatprep.mubr.f32.mxu0 %v13216_v14  ;;  %v731_v47 = vadd.f32 %v13423_v12, %v9603_v33  ;;  %v741_v12 = vadd.f32 %v13426_v3, %v9249_v5 }
 0x371   : > { %2174 = vmatpush1.msra.mxu1 %v13419_v49  ;;  %2207 = vmatprep.mubr.f32.mxu1 %v13216_v14  ;;  %v13424_v49 = vld [vmem:[#allocation19_spill] sm:$0xff] }
 0x372   : > { %2328 = vmatprep.subr.mxu0 %v10003_v43  ;;  %2417 = vmatprep.subr.mxu1 %v13421_v56  ;;  %v735_v26 = vadd.f32 %v13424_v49, %v9249_v5  ;;  %v13425_v43 = vld [vmem:[#allocation24_spill] sm:$0xff] }
 0x373   : > { %v737_v56 = vadd.f32 %v13425_v43, %v9603_v33  ;;  %v13427_v49 = vld [vmem:[#allocation28_spill] sm:$0xff]  ;;  %v13428_v43 = vld [vmem:[#allocation13_spill] sm:$0xff] }
 0x40b   : > { %v1846_v41 = vpop.f32.mrf.mxu0  ;;  %v1935_v30 = vpop.f32.mrf.mxu1 }
 0x40c   : > { %v1847_v22 = vadd.f32 %v1846_v41, %v729_v7 }
 0x40d   : > { %v1848_v13 = vpop.f32.mrf.mxu0  ;;  %v1937_v28 = vpop.f32.mrf.mxu1 }
 0x40e   : > { %v6860_v16 = vmul.f32 -1.442695, %v1847_v22  ;;  %v1849_v36 = vadd.f32 %v1848_v13, %v731_v47  ;;  %v743_v22 = vadd.f32 %v13427_v49, %v9603_v33 }
 0x40f   : > { %v1852_v6 = vpop.f32.mrf.mxu0  ;;  %v1941_v20 = vpop.f32.mrf.mxu1 }
 0x410   : > { %7360 = vpow2.f32 %v6860_v16  ;;  %v6861_v4 = vmul.f32 -1.442695, %v1849_v36  ;;  %v1853_v17 = vadd.f32 %v1852_v6, %v735_v26  ;;  %v986_v36 = vadd.f32 %v13428_v43, %v9256_v60  ;;  %v13429_v16 = vld [vmem:[#allocation29_spill] sm:$0xff] }
 0x411   : > { %v1854_v19 = vpop.f32.mrf.mxu0  ;;  %v1943_v13 = vpop.f32.mrf.mxu1  ;;  %v747_v26 = vadd.f32 %v13429_v16, %v9249_v5 }
 0x412   : > { %7362 = vpow2.f32 %v6861_v4  ;;  %v6863_v7 = vmul.f32 -1.442695, %v1853_v17  ;;  %v1855_v41 = vadd.f32 %v1854_v19, %v737_v56  ;;  %v1936_v17 = vadd.f32 %v1935_v30, %v986_v36  ;;  %v13430_v56 = vld [vmem:[#allocation30_spill] sm:$0xff] }
 0x413   : > { %v1858_v55 = vpop.f32.mrf.mxu0  ;;  %v749_v25 = vadd.f32 %v13430_v56, %v9603_v33 }
 0x414   : > { %7364 = vpow2.f32 %v6863_v7  ;;  %v6864_v47 = vmul.f32 -1.442695, %v1855_v41  ;;  %v1859_v34 = vadd.f32 %v1858_v55, %v741_v12  ;;  %v1947_v7 = vpop.f32.mrf.mxu1  ;;  %v13431_v55 = vld [vmem:[#allocation15_spill] sm:$0xff] }
 0x415   : > { %v1860_v6 = vpop.f32.mrf.mxu0  ;;  %v992_v12 = vadd.f32 %v13431_v55, %v9256_v60 }
 0x416   : > { %7366 = vpow2.f32 %v6864_v47  ;;  %v6866_v3 = vmul.f32 -1.442695, %v1859_v34  ;;  %v1861_v4 = vadd.f32 %v1860_v6, %v743_v22  ;;  %v13432_v47 = vld [vmem:[#allocation14_spill] sm:$0xff]  ;;  %v6862_v22 = vmul.f32 -1.442695, %v1936_v17  ;;  %v1949_v36 = vpop.f32.mrf.mxu1 }
 0x417   : > { %v1864_v19 = vpop.f32.mrf.mxu0  ;;  %v988_v34 = vadd.f32 %v13432_v47, %v13324_v0  ;;  %v1942_v30 = vadd.f32 %v1941_v20, %v992_v12 }
 0x418   : > { %7368 = vpow2.f32 %v6866_v3  ;;  %v6867_v41 = vmul.f32 -1.442695, %v1861_v4  ;;  %v1865_v49 = vadd.f32 %v1864_v19, %v747_v26  ;;  %v13433_v3 = vld [vmem:[#allocation20_spill] sm:$0xff]  ;;  %v1953_v20 = vpop.f32.mrf.mxu1 }
 0x419   : > { %v1866_v43 = vpop.f32.mrf.mxu0  ;;  %v998_v4 = vadd.f32 %v13433_v3, %v9256_v60  ;;  %v1938_v26 = vadd.f32 %v1937_v28, %v988_v34  ;;  %v13436_v34 = vld [vmem:[#allocation21_spill] sm:$0xff] }
 0x41a   : > { %7370 = vpow2.f32 %v6867_v41  ;;  %v6869_v9 = vmul.f32 -1.442695, %v1865_v49  ;;  %v1867_v10 = vadd.f32 %v1866_v43, %v749_v25  ;;  %v13434_v41 = vld [vmem:[#allocation16_spill] sm:$0xff]  ;;  %v6865_v25 = vmul.f32 -1.442695, %v1942_v30 }
 0x41b   : > { %v994_v49 = vadd.f32 %v13434_v41, %v13324_v0  ;;  %v1948_v55 = vadd.f32 %v1947_v7, %v998_v4 }
 0x41c   : > { %7372 = vpow2.f32 %v6869_v9  ;;  %v6870_v6 = vmul.f32 -1.442695, %v1867_v10  ;;  %v13435_v10 = vld [vmem:[#allocation22_spill] sm:$0xff] }
 0x41d   : > { %v7361_v16 = vpop.eup %7360  ;;  %v1004_v9 = vadd.f32 %v13435_v10, %v9256_v60  ;;  %v1944_v43 = vadd.f32 %v1943_v13, %v994_v49  ;;  %v13437_v13 = vld [vmem:[#allocation23_spill] sm:$0xff] }
 0x41e   : > { %v1994_v19 = vadd.f32 1.0, %v7361_v16  ;;  %7374 = vpow2.f32 %v6870_v6  ;;  %v1000_v6 = vadd.f32 %v13436_v34, %v13324_v0  ;;  %v6868_v16 = vmul.f32 -1.442695, %v1948_v55 }
 0x41f   : > { %v7363_v56 = vpop.eup %7362  ;;  %7376 = vpow2.f32 %v6862_v22  ;;  %v1954_v22 = vadd.f32 %v1953_v20, %v1004_v9 }
 0x420   : > { %7378 = vrcp.f32 %v1994_v19  ;;  %v1995_v17 = vadd.f32 1.0, %v7363_v56  ;;  %v1950_v3 = vadd.f32 %v1949_v36, %v1000_v6  ;;  %v1955_v19 = vpop.f32.mrf.mxu1 }
 0x421   : > { %v7365_v12 = vpop.eup %7364  ;;  %7380 = vtanh.f32 %v1938_v26  ;;  %v1006_v26 = vadd.f32 %v13437_v13, %v13324_v0  ;;  %v6871_v41 = vmul.f32 -1.442695, %v1954_v22 }
 0x422   : > { %7382 = vrcp.f32 %v1995_v17  ;;  %v1997_v28 = vadd.f32 1.0, %v7365_v12 }
 0x423   : > { %v7367_v47 = vpop.eup %7366  ;;  %7384 = vpow2.f32 %v6865_v25  ;;  %v1956_v25 = vadd.f32 %v1955_v19, %v1006_v26 }
 0x424   : > { %7386 = vrcp.f32 %v1997_v28  ;;  %v1998_v7 = vadd.f32 1.0, %v7367_v47 }
 0x425   : > { %v7369_v30 = vpop.eup %7368  ;;  %7388 = vtanh.f32 %v1944_v43 }
 0x426   : > { %7390 = vrcp.f32 %v1998_v7  ;;  %v2000_v4 = vadd.f32 1.0, %v7369_v30 }
 0x427   : > { %v7371_v56 = vpop.eup %7370  ;;  %7392 = vpow2.f32 %v6868_v16 }
 0x428   : > { %7394 = vrcp.f32 %v2000_v4  ;;  %v2001_v49 = vadd.f32 1.0, %v7371_v56 }
 0x429   : > { %v7373_v17 = vpop.eup %7372  ;;  %7396 = vtanh.f32 %v1950_v3 }
 0x42a   : > { %7398 = vrcp.f32 %v2001_v49  ;;  %v2003_v55 = vadd.f32 1.0, %v7373_v17 }
 0x42b   : > { %v7375_v20 = vpop.eup %7374  ;;  %7400 = vpow2.f32 %v6871_v41 }
 0x42c   : > { %v7377_v12 = vpop.eup %7376  ;;  %7402 = vrcp.f32 %v2003_v55  ;;  %v2004_v36 = vadd.f32 1.0, %v7375_v20 }
 0x42d   : > { %v7379_v10 = vpop.eup %7378  ;;  %7404 = vtanh.f32 %v1956_v25  ;;  %v1996_v28 = vadd.f32 1.0, %v7377_v12 }
 0x42e   : > { %v7381_v9 = vpop.eup %7380  ;;  %7406 = vrcp.f32 %v2004_v36 }
 0x42f   : > { %v7383_v43 = vpop.eup %7382  ;;  %v2038_v6 = vmul.f32 %v7381_v9, %v7379_v10  ;;  %7408 = vrcp.f32 %v1996_v28 }
 0x430   : > { %v7385_v47 = vpop.eup %7384  ;;  %v2034_v34 = vmul.f32 %v7383_v43, %v9902_v15 }
 0x431   : > { %v7387_v16 = vpop.eup %7386  ;;  %v1999_v3 = vadd.f32 1.0, %v7385_v47 }
 0x432   : > { %v7389_v22 = vpop.eup %7388  ;;  %v10040_v7 = vadd.f32 %v2038_v6, %v2034_v34 }
 0x433   : > { %v7391_v30 = vpop.eup %7390  ;;  %v2039_v56 = vmul.f32 %v7389_v22, %v7387_v16 }
 0x434   : > { %v7393_v4 = vpop.eup %7392  ;;  %7410 = vtanh.f32 %v10040_v7  ;;  %v2035_v19 = vmul.f32 %v7391_v30, %v9906_v18 }
 0x435   : > { %v7395_v13 = vpop.eup %7394  ;;  %7412 = vrcp.f32 %v1999_v3  ;;  %v2002_v15 = vadd.f32 1.0, %v7393_v4  ;;  %v13469_v4 = vld [vmem:[#allocation135_spill] sm:$0xff] }
 0x436   : > { %v7397_v26 = vpop.eup %7396  ;;  %v10044_v41 = vadd.f32 %v2039_v56, %v2035_v19  ;;  %v13470_v19 = vld [vmem:[#allocation136_spill] sm:$0xff]  ;;  %v13471_v56 = vld [vmem:[#allocation137_spill] sm:$0xff] }
 0x437   : > { %v7399_v49 = vpop.eup %7398  ;;  %v2040_v55 = vmul.f32 %v7397_v26, %v7395_v13  ;;  %v13472_v13 = vld [vmem:[#allocation138_spill] sm:$0xff]  ;;  %v13473_v26 = vld [vmem:[#allocation139_spill] sm:$0xff] }
 0x438   : > { %v7401_v17 = vpop.eup %7400  ;;  %7414 = vtanh.f32 %v10044_v41  ;;  %v2036_v25 = vmul.f32 %v7399_v49, %v9910_v21  ;;  %v13474_v49 = vld [vmem:[#allocation38_spill] sm:$0xff] }
 0x439   : > { %v7403_v20 = vpop.eup %7402  ;;  %7416 = vrcp.f32 %v2002_v15  ;;  %v2005_v18 = vadd.f32 1.0, %v7401_v17  ;;  %v13475_v15 = vld [vmem:[#allocation140_spill] sm:$0xff]  ;;  %v13476_v17 = vld [vmem:[#allocation31_spill] sm:$0xff] }
 0x43a   : > { %v7405_v12 = vpop.eup %7404  ;;  %v10048_v36 = vadd.f32 %v2040_v55, %v2036_v25  ;;  %v753_v25 = vadd.f32 %v13476_v17, %v9249_v5 }
 0x43b   : > { %v7407_v10 = vpop.eup %7406  ;;  %v2041_v43 = vmul.f32 %v7405_v12, %v7403_v20  ;;  %v13477_v12 = vld [vmem:[#allocation32_spill] sm:$0xff] }
 0x43c   : > { %7418 = vtanh.f32 %v10048_v36  ;;  %v2037_v9 = vmul.f32 %v7407_v10, %v9914_v35  ;;  %v7409_v47 = vpop.eup %7408  ;;  %v755_v10 = vadd.f32 %v13477_v12, %v9603_v33 }
 0x43d   : > { %7420 = vrcp.f32 %v2005_v18 }
 0x43e   : > { %v10052_v28 = vadd.f32 %v2041_v43, %v2037_v9 }
 0x440   : > { %7422 = vtanh.f32 %v10052_v28 }
 0x441   : > { %v7411_v21 = vpop.eup %7410 }
 0x442   : > { %v10055_v34 = vmul.f32 %v7411_v21, %v7409_v47  ;;  %v7413_v6 = vpop.eup %7412  ;;  %v13478_v47 = vld [vmem:[#allocation49_spill] sm:$0xff] }
 0x443   : > { %v759_v21 = vadd.f32 %v13478_v47, %v9249_v5 }
 0x444   : > { %13438 = vst [vmem:[#allocation42_spill] sm:$0xff] %v10055_v34  ;;  %2119 = vmatmul.mubr.f32.vlgmr.msra.gmra.mxu0 %v10055_v34  ;;  %2208 = vmatmul.mubr.f32.vlgmr.msra.gmra.mxu1 %v10055_v34  ;;  %v10360_v34 = vld [vmem:[#allocation2 + $0x70] sm:$0xff] }
 0x445   : > { %v7415_v16 = vpop.eup %7414  ;;  %2124 = vmatprep.mubr.f32.mxu0 %v13216_v14  ;;  %2213 = vmatprep.mubr.f32.mxu1 %v13216_v14 }
 0x446   : > { %v10061_v35 = vmul.f32 %v7415_v16, %v7413_v6  ;;  %2329 = vmatpush1.msra.mxu0 %v9663_v50  ;;  %2418 = vmatpush1.msra.mxu1 %v9666_v40  ;;  %v7417_v22 = vpop.eup %7416 }
 0x447   : > { %2330 = vmatprep.subr.mxu0 %v9669_v45  ;;  %2419 = vmatprep.subr.mxu1 %v9672_v63  ;;  %v13442_v63 = vld [vmem:[#allocation108_spill] sm:$0xff] }
 0x448   : > { %13439 = vst [vmem:[#allocation39_spill] sm:$0xff] %v10061_v35  ;;  %2125 = vmatmul.mubr.f32.gmra.mxu0 %v10061_v35  ;;  %2214 = vmatmul.mubr.f32.gmra.mxu1 %v10061_v35  ;;  %v10357_v35 = vld [vmem:[#allocation2 + $0x60] sm:$0xff] }
 0x449   : > { %v7419_v30 = vpop.eup %7418  ;;  %2130 = vmatprep.mubr.f32.mxu0 %v13216_v14  ;;  %2219 = vmatprep.mubr.f32.mxu1 %v13216_v14 }
 0x44a   : > { %v10071_v3 = vmul.f32 %v7419_v30, %v7417_v22  ;;  %2331 = vmatpush1.msra.mxu0 %v9681_v24  ;;  %2420 = vmatpush1.msra.mxu1 %v9684_v51  ;;  %v7421_v50 = vpop.eup %7420  ;;  %v13447_v24 = vld [vmem:[#allocation113_spill] sm:$0xff]  ;;  %v13448_v51 = vld [vmem:[#allocation114_spill] sm:$0xff]  ;;  %v13479_v30 = vld [vmem:[#allocation51_spill] sm:$0xff] }
 0x44b   : > { %2332 = vmatprep.subr.mxu0 %v9687_v42  ;;  %2421 = vmatprep.subr.mxu1 %v9690_v44  ;;  %v13449_v42 = vld [vmem:[#allocation115_spill] sm:$0xff]  ;;  %v13450_v44 = vld [vmem:[#allocation116_spill] sm:$0xff]  ;;  %13515 = vst [vmem:[#allocation113_spill] sm:$0xff] %v10360_v34 }
 0x44c   : > { %13440 = vst [vmem:[#allocation41_spill] sm:$0xff] %v10071_v3  ;;  %2131 = vmatmul.mubr.f32.gmra.mxu0 %v10071_v3  ;;  %2220 = vmatmul.mubr.f32.gmra.mxu1 %v10071_v3  ;;  %v10354_v3 = vld [vmem:[#allocation2 + $0x78] sm:$0xff] }
 0x44d   : > { %v7423_v40 = vpop.eup %7422  ;;  %2136 = vmatprep.mubr.f32.mxu0 %v13216_v14  ;;  %2225 = vmatprep.mubr.f32.mxu1 %v13216_v14 }
 0x44e   : > { %v10081_v45 = vmul.f32 %v7423_v40, %v7421_v50  ;;  %2333 = vmatpush1.msra.mxu0 %v9699_v53  ;;  %2422 = vmatpush1.msra.mxu1 %v9702_v62  ;;  %v13452_v53 = vld [vmem:[#allocation118_spill] sm:$0xff]  ;;  %v13453_v62 = vld [vmem:[#allocation119_spill] sm:$0xff]  ;;  %v761_v50 = vadd.f32 %v13479_v30, %v9603_v33 }
 0x44f   : > { %2334 = vmatprep.subr.mxu0 %v9705_v1  ;;  %2423 = vmatprep.subr.mxu1 %v9708_v58  ;;  %v13454_v1 = vld [vmem:[#allocation120_spill] sm:$0xff]  ;;  %v13455_v58 = vld [vmem:[#allocation121_spill] sm:$0xff] }
 0x450   : > { %13441 = vst [vmem:[#allocation43_spill] sm:$0xff] %v10081_v45  ;;  %2137 = vmatmul.mubr.f32.gmra.mxu0 %v10081_v45  ;;  %2226 = vmatmul.mubr.f32.gmra.mxu1 %v10081_v45  ;;  %v10351_v45 = vld [vmem:[#allocation2 + $0x68] sm:$0xff] }
 0x451   : > { %2335 = vmatpush1.msra.mxu0 %v9713_v54  ;;  %2424 = vmatpush1.msra.mxu1 %v9716_v46  ;;  %v13456_v54 = vld [vmem:[#allocation122_spill] sm:$0xff]  ;;  %v13457_v46 = vld [vmem:[#allocation123_spill] sm:$0xff] }
 0x452   : > { %2336 = vmatprep.subr.mxu0 %v9719_v48  ;;  %2425 = vmatprep.subr.mxu1 %v9722_v38  ;;  %v13458_v48 = vld [vmem:[#allocation124_spill] sm:$0xff]  ;;  %v13459_v38 = vld [vmem:[#allocation125_spill] sm:$0xff] }
 0x453   : > { %2337 = vmatpush1.msra.mxu0 %v9725_v57  ;;  %2426 = vmatpush1.msra.mxu1 %v9728_v39  ;;  %v13460_v57 = vld [vmem:[#allocation126_spill] sm:$0xff]  ;;  %v13461_v39 = vld [vmem:[#allocation127_spill] sm:$0xff] }
 0x454   : > { %2338 = vmatprep.subr.mxu0 %v9731_v2  ;;  %2427 = vmatprep.subr.mxu1 %v9734_v52  ;;  %v13446_v52 = vld [vmem:[#allocation112_spill] sm:$0xff]  ;;  %v13451_v2 = vld [vmem:[#allocation117_spill] sm:$0xff] }
 0x455   : > { %2339 = vmatpush1.msra.mxu0 %v9737_v37  ;;  %2428 = vmatpush1.msra.mxu1 %v9740_v59  ;;  %v13443_v37 = vld [vmem:[#allocation109_spill] sm:$0xff]  ;;  %v13444_v59 = vld [vmem:[#allocation110_spill] sm:$0xff]  ;;  %13514 = vst [vmem:[#allocation112_spill] sm:$0xff] %v10357_v35 }
 0x456   : > { %2340 = vmatprep.subr.mxu0 %v9743_v31  ;;  %2429 = vmatprep.subr.mxu1 %v13381_v8  ;;  %v13445_v31 = vld [vmem:[#allocation111_spill] sm:$0xff]  ;;  %v13462_v8 = vld [vmem:[#allocation128_spill] sm:$0xff]  ;;  %13512 = vst [vmem:[#allocation110_spill] sm:$0xff] %v10351_v45 }
 0x457   : > { %2341 = vmatpush1.msra.mxu0 %v13382_v61  ;;  %2430 = vmatpush1.msra.mxu1 %v13383_v23  ;;  %v13463_v61 = vld [vmem:[#allocation129_spill] sm:$0xff]  ;;  %v13464_v23 = vld [vmem:[#allocation130_spill] sm:$0xff]  ;;  %13513 = vst [vmem:[#allocation111_spill] sm:$0xff] %v10354_v3 }
 0x458   : > { %2342 = vmatprep.subr.mxu0 %v13384_v27  ;;  %2431 = vmatprep.subr.mxu1 %v13385_v11  ;;  %v13465_v27 = vld [vmem:[#allocation131_spill] sm:$0xff]  ;;  %v13466_v11 = vld [vmem:[#allocation132_spill] sm:$0xff] }
 0x459   : > { %2343 = vmatpush1.msra.mxu0 %v13386_v32  ;;  %2432 = vmatpush1.msra.mxu1 %v13387_v29  ;;  %v13467_v32 = vld [vmem:[#allocation133_spill] sm:$0xff]  ;;  %v13468_v29 = vld [vmem:[#allocation134_spill] sm:$0xff] }
 0x45a   : > { %2344 = vmatprep.subr.mxu0 %v13442_v63  ;;  %2433 = vmatprep.subr.mxu1 %v13443_v37 }
 0x45b   : > { %2345 = vmatpush1.msra.mxu0 %v13444_v59  ;;  %2434 = vmatpush1.msra.mxu1 %v13445_v31  ;;  %v13480_v31 = vld [vmem:[#allocation53_spill] sm:$0xff] }
 0x45c   : > { %2346 = vmatprep.subr.mxu0 %v13446_v52  ;;  %2435 = vmatprep.subr.mxu1 %v13447_v24  ;;  %v765_v52 = vadd.f32 %v13480_v31, %v9249_v5 }
 0x45d   : > { %2347 = vmatpush1.msra.mxu0 %v13448_v51  ;;  %2436 = vmatpush1.msra.mxu1 %v13449_v42 }
 0x45e   : > { %2348 = vmatprep.subr.mxu0 %v13450_v44  ;;  %2437 = vmatprep.subr.mxu1 %v13451_v2  ;;  %v13481_v44 = vld [vmem:[#allocation55_spill] sm:$0xff] }
 0x45f   : > { %2349 = vmatpush1.msra.mxu0 %v13452_v53  ;;  %2438 = vmatpush1.msra.mxu1 %v13453_v62  ;;  %v767_v2 = vadd.f32 %v13481_v44, %v9603_v33 }
 0x460   : > { %2350 = vmatprep.subr.mxu0 %v13454_v1  ;;  %2439 = vmatprep.subr.mxu1 %v13455_v58  ;;  %v13482_v58 = vld [vmem:[#allocation25_spill] sm:$0xff] }
 0x461   : > { %2351 = vmatpush1.msra.mxu0 %v13456_v54  ;;  %2440 = vmatpush1.msra.mxu1 %v13457_v46  ;;  %v1010_v54 = vadd.f32 %v13482_v58, %v9256_v60 }
 0x462   : > { %2352 = vmatprep.subr.mxu0 %v13458_v48  ;;  %2441 = vmatprep.subr.mxu1 %v13459_v38  ;;  %v13483_v48 = vld [vmem:[#allocation57_spill] sm:$0xff] }
 0x463   : > { %2353 = vmatpush1.msra.mxu0 %v13460_v57  ;;  %2442 = vmatpush1.msra.mxu1 %v13461_v39  ;;  %v771_v38 = vadd.f32 %v13483_v48, %v9249_v5 }
 0x464   : > { %2354 = vmatprep.subr.mxu0 %v13462_v8  ;;  %2443 = vmatprep.subr.mxu1 %v13463_v61 }
 0x465   : > { %2355 = vmatpush1.msra.mxu0 %v13464_v23  ;;  %2444 = vmatpush1.msra.mxu1 %v13465_v27  ;;  %v13484_v23 = vld [vmem:[#allocation59_spill] sm:$0xff] }
 0x466   : > { %2356 = vmatprep.subr.mxu0 %v13466_v11  ;;  %2445 = vmatprep.subr.mxu1 %v13467_v32  ;;  %v773_v27 = vadd.f32 %v13484_v23, %v9603_v33 }
 0x467   : > { %2357 = vmatpush1.msra.mxu0 %v13468_v29  ;;  %2446 = vmatpush1.msra.mxu1 %v13469_v4  ;;  %v13485_v4 = vld [vmem:[#allocation12_spill] sm:$0xff] }
 0x468   : > { %2358 = vmatprep.subr.mxu0 %v13470_v19  ;;  %2447 = vmatprep.subr.mxu1 %v13471_v56  ;;  %v1016_v19 = vadd.f32 %v13485_v4, %v9256_v60 }
 0x469   : > { %2359 = vmatpush1.msra.mxu0 %v13472_v13  ;;  %2392 = vmatprep.mubr.f32.mxu0 %v13216_v14 }
 0x46a   : > { %2448 = vmatpush1.msra.mxu1 %v13473_v26  ;;  %2481 = vmatprep.mubr.f32.mxu1 %v13216_v14 }
 0x46b   : > { %2602 = vmatprep.subr.mxu0 %v13474_v49  ;;  %2691 = vmatprep.subr.mxu1 %v13475_v15  ;;  %v13486_v15 = vld [vmem:[#allocation26_spill] sm:$0xff] }
 0x46c   : > { %v1012_v17 = vadd.f32 %v13486_v15, %v13324_v0 }
 0x504   : > { %v2120_v55 = vpop.f32.mrf.mxu0  ;;  %v2209_v20 = vpop.f32.mrf.mxu1 }
 0x505   : > { %v2121_v18 = vadd.f32 %v2120_v55, %v753_v25  ;;  %v2210_v8 = vadd.f32 %v2209_v20, %v1010_v54 }
 0x506   : > { %v2122_v9 = vpop.f32.mrf.mxu0  ;;  %v2211_v43 = vpop.f32.mrf.mxu1 }
 0x507   : > { %v6872_v6 = vmul.f32 -1.442695, %v2121_v18  ;;  %v2123_v16 = vadd.f32 %v2122_v9, %v755_v10  ;;  %v6874_v25 = vmul.f32 -1.442695, %v2210_v8  ;;  %v13487_v18 = vld [vmem:[#allocation52_spill] sm:$0xff]  ;;  %v2212_v47 = vadd.f32 %v2211_v43, %v1012_v17 }
 0x508   : > { %v2126_v22 = vpop.f32.mrf.mxu0  ;;  %v2215_v37 = vpop.f32.mrf.mxu1  ;;  %v1022_v9 = vadd.f32 %v13487_v18, %v9256_v60 }
 0x509   : > { %7424 = vpow2.f32 %v6872_v6  ;;  %v6873_v40 = vmul.f32 -1.442695, %v2123_v16  ;;  %v2127_v63 = vadd.f32 %v2126_v22, %v759_v21  ;;  %v2216_v55 = vadd.f32 %v2215_v37, %v1016_v19  ;;  %v13488_v16 = vld [vmem:[#allocation50_spill] sm:$0xff] }
 0x50a   : > { %v2128_v59 = vpop.f32.mrf.mxu0  ;;  %v2217_v62 = vpop.f32.mrf.mxu1  ;;  %v1018_v22 = vadd.f32 %v13488_v16, %v13324_v0 }
 0x50b   : > { %7426 = vpow2.f32 %v6873_v40  ;;  %v6875_v24 = vmul.f32 -1.442695, %v2127_v63  ;;  %v2129_v51 = vadd.f32 %v2128_v59, %v761_v50  ;;  %v6877_v30 = vmul.f32 -1.442695, %v2216_v55  ;;  %v13489_v59 = vld [vmem:[#allocation56_spill] sm:$0xff] }
 0x50c   : > { %v2132_v42 = vpop.f32.mrf.mxu0  ;;  %v2221_v11 = vpop.f32.mrf.mxu1  ;;  %v1028_v31 = vadd.f32 %v13489_v59, %v9256_v60 }
 0x50d   : > { %7428 = vpow2.f32 %v6875_v24  ;;  %v6876_v53 = vmul.f32 -1.442695, %v2129_v51  ;;  %v2133_v1 = vadd.f32 %v2132_v42, %v765_v52  ;;  %v2222_v50 = vadd.f32 %v2221_v11, %v1022_v9  ;;  %v13490_v51 = vld [vmem:[#allocation54_spill] sm:$0xff] }
 0x50e   : > { %v2134_v46 = vpop.f32.mrf.mxu0  ;;  %v2223_v20 = vpop.f32.mrf.mxu1  ;;  %v2218_v52 = vadd.f32 %v2217_v62, %v1018_v22  ;;  %v1024_v42 = vadd.f32 %v13490_v51, %v13324_v0  ;;  %v13491_v62 = vld [vmem:[#allocation58_spill] sm:$0xff] }
 0x50f   : > { %7430 = vpow2.f32 %v6876_v53  ;;  %v6878_v57 = vmul.f32 -1.442695, %v2133_v1  ;;  %v2135_v39 = vadd.f32 %v2134_v46, %v767_v2  ;;  %v6880_v44 = vmul.f32 -1.442695, %v2222_v50 }
 0x510   : > { %v2138_v61 = vpop.f32.mrf.mxu0  ;;  %v2227_v63 = vpop.f32.mrf.mxu1  ;;  %v2224_v58 = vadd.f32 %v2223_v20, %v1024_v42 }
 0x511   : > { %7432 = vpow2.f32 %v6878_v57  ;;  %v6879_v32 = vmul.f32 -1.442695, %v2135_v39  ;;  %v2139_v29 = vadd.f32 %v2138_v61, %v771_v38  ;;  %v2228_v2 = vadd.f32 %v2227_v63, %v1028_v31 }
 0x512   : > { %v2140_v56 = vpop.f32.mrf.mxu0  ;;  %v2229_v46 = vpop.f32.mrf.mxu1  ;;  %v1030_v38 = vadd.f32 %v13491_v62, %v13324_v0  ;;  %v10217_v62 = vld [vmem:[#allocation2 + $0x1c0] sm:$0xff] }
 0x513   : > { %7434 = vpow2.f32 %v6879_v32  ;;  %v6881_v13 = vmul.f32 -1.442695, %v2139_v29  ;;  %v2141_v26 = vadd.f32 %v2140_v56, %v773_v27  ;;  %v6883_v57 = vmul.f32 -1.442695, %v2228_v2  ;;  %v10199_v2 = vld [vmem:[#allocation2 + $0x1e0] sm:$0xff] }
 0x514   : > { %v2230_v61 = vadd.f32 %v2229_v46, %v1030_v38  ;;  %v10220_v38 = vld [vmem:[#allocation2 + $0x1d0] sm:$0xff] }
 0x515   : > { %7436 = vpow2.f32 %v6881_v13  ;;  %v6882_v12 = vmul.f32 -1.442695, %v2141_v26 }
 0x516   : > { %v7425_v10 = vpop.eup %7424 }
 0x517   : > { %v2268_v21 = vadd.f32 1.0, %v7425_v10  ;;  %7438 = vpow2.f32 %v6882_v12 }
 0x518   : > { %v7427_v6 = vpop.eup %7426  ;;  %7440 = vpow2.f32 %v6874_v25 }
 0x519   : > { %7442 = vrcp.f32 %v2268_v21  ;;  %v2269_v40 = vadd.f32 1.0, %v7427_v6 }
 0x51a   : > { %v7429_v37 = vpop.eup %7428  ;;  %7444 = vtanh.f32 %v2212_v47 }
 0x51b   : > { %7446 = vrcp.f32 %v2269_v40  ;;  %v2271_v43 = vadd.f32 1.0, %v7429_v37 }
 0x51c   : > { %v7431_v24 = vpop.eup %7430  ;;  %7448 = vpow2.f32 %v6877_v30 }
 0x51d   : > { %7450 = vrcp.f32 %v2271_v43  ;;  %v2272_v53 = vadd.f32 1.0, %v7431_v24 }
 0x51e   : > { %v7433_v1 = vpop.eup %7432  ;;  %7452 = vtanh.f32 %v2218_v52 }
 0x51f   : > { %7454 = vrcp.f32 %v2272_v53  ;;  %v2274_v54 = vadd.f32 1.0, %v7433_v1  ;;  %v10202_v53 = vld [vmem:[#allocation2 + $0x1f0] sm:$0xff]  ;;  %v10205_v1 = vld [vmem:[#allocation2 + $0x1c8] sm:$0xff] }
 0x520   : > { %v7435_v48 = vpop.eup %7434  ;;  %7456 = vpow2.f32 %v6880_v44 }
 0x521   : > { %7458 = vrcp.f32 %v2274_v54  ;;  %v2275_v39 = vadd.f32 1.0, %v7435_v48 }
 0x522   : > { %v7437_v8 = vpop.eup %7436  ;;  %7460 = vtanh.f32 %v2224_v58  ;;  %v10208_v58 = vld [vmem:[#allocation2 + $0x1d8] sm:$0xff] }
 0x523   : > { %7462 = vrcp.f32 %v2275_v39  ;;  %v2277_v23 = vadd.f32 1.0, %v7437_v8  ;;  %v10226_v39 = vld [vmem:[#allocation2 + $0x1b8] sm:$0xff] }
 0x524   : > { %v7439_v27 = vpop.eup %7438  ;;  %7464 = vpow2.f32 %v6883_v57  ;;  %v10223_v57 = vld [vmem:[#allocation2 + $0x1a8] sm:$0xff] }
 0x525   : > { %v7441_v11 = vpop.eup %7440  ;;  %7466 = vrcp.f32 %v2277_v23  ;;  %v2278_v32 = vadd.f32 1.0, %v7439_v27  ;;  %v10235_v27 = vld [vmem:[#allocation2 + $0x1a0] sm:$0xff] }
 0x526   : > { %v7443_v29 = vpop.eup %7442  ;;  %7468 = vtanh.f32 %v2230_v61  ;;  %v2270_v56 = vadd.f32 1.0, %v7441_v11  ;;  %v10238_v11 = vld [vmem:[#allocation2 + $0x1b0] sm:$0xff] }
 0x527   : > { %v7445_v4 = vpop.eup %7444  ;;  %7470 = vrcp.f32 %v2278_v32  ;;  %v10241_v32 = vld [vmem:[#allocation2 + $0x188] sm:$0xff] }
 0x528   : > { %v7447_v19 = vpop.eup %7446  ;;  %v2312_v15 = vmul.f32 %v7445_v4, %v7443_v29  ;;  %7472 = vrcp.f32 %v2270_v56  ;;  %v10244_v29 = vld [vmem:[#allocation2 + $0x198] sm:$0xff]  ;;  %v10249_v4 = vld [vmem:[#allocation2 + $0x180] sm:$0xff]  ;;  %v10255_v56 = vld [vmem:[#allocation2 + $0x168] sm:$0xff] }
 0x529   : > { %v7449_v13 = vpop.eup %7448  ;;  %v2308_v26 = vmul.f32 %v7447_v19, %v10040_v7  ;;  %v10252_v19 = vld [vmem:[#allocation2 + $0x190] sm:$0xff] }
 0x52a   : > { %v7451_v17 = vpop.eup %7450  ;;  %v2273_v12 = vadd.f32 1.0, %v7449_v13  ;;  %v10258_v13 = vld [vmem:[#allocation2 + $0x178] sm:$0xff] }
 0x52b   : > { %v7453_v25 = vpop.eup %7452  ;;  %v10176_v55 = vadd.f32 %v2312_v15, %v2308_v26  ;;  %v10261_v26 = vld [vmem:[#allocation2 + $0x160] sm:$0xff]  ;;  %v10264_v15 = vld [vmem:[#allocation2 + $0x170] sm:$0xff] }
 0x52c   : > { %v7455_v20 = vpop.eup %7454  ;;  %v2313_v9 = vmul.f32 %v7453_v25, %v7451_v17  ;;  %v10267_v17 = vld [vmem:[#allocation2 + $0x148] sm:$0xff]  ;;  %v10270_v25 = vld [vmem:[#allocation2 + $0x158] sm:$0xff] }
 0x52d   : > { %v7457_v10 = vpop.eup %7456  ;;  %7474 = vtanh.f32 %v10176_v55  ;;  %v2309_v18 = vmul.f32 %v7455_v20, %v10044_v41  ;;  %v10273_v20 = vld [vmem:[#allocation2 + $0x140] sm:$0xff] }
 0x52e   : > { %v7459_v47 = vpop.eup %7458  ;;  %7476 = vrcp.f32 %v2273_v12  ;;  %v2276_v7 = vadd.f32 1.0, %v7457_v10  ;;  %v10276_v12 = vld [vmem:[#allocation2 + $0x150] sm:$0xff]  ;;  %v10279_v10 = vld [vmem:[#allocation2 + $0x128] sm:$0xff] }
 0x52f   : > { %v7461_v21 = vpop.eup %7460  ;;  %v10180_v6 = vadd.f32 %v2313_v9, %v2309_v18  ;;  %v10282_v18 = vld [vmem:[#allocation2 + $0x138] sm:$0xff]  ;;  %v10285_v9 = vld [vmem:[#allocation2 + $0x120] sm:$0xff] }
 0x530   : > { %v7463_v16 = vpop.eup %7462  ;;  %v2314_v50 = vmul.f32 %v7461_v21, %v7459_v47  ;;  %v10288_v47 = vld [vmem:[#allocation2 + $0x130] sm:$0xff]  ;;  %v10291_v21 = vld [vmem:[#allocation2 + $0x108] sm:$0xff] }
 0x531   : > { %v7465_v22 = vpop.eup %7464  ;;  %7478 = vtanh.f32 %v10180_v6  ;;  %v2310_v30 = vmul.f32 %v7463_v16, %v10048_v36  ;;  %v10294_v16 = vld [vmem:[#allocation2 + $0x118] sm:$0xff] }
 0x532   : > { %v7467_v40 = vpop.eup %7466  ;;  %7480 = vrcp.f32 %v2276_v7  ;;  %v2279_v41 = vadd.f32 1.0, %v7465_v22  ;;  %v10297_v7 = vld [vmem:[#allocation2 + $0x100] sm:$0xff]  ;;  %v10300_v22 = vld [vmem:[#allocation2 + $0x110] sm:$0xff] }
 0x533   : > { %v7469_v63 = vpop.eup %7468  ;;  %v10184_v37 = vadd.f32 %v2314_v50, %v2310_v30  ;;  %v10303_v30 = vld [vmem:[#allocation2 + $0xe8] sm:$0xff]  ;;  %v10306_v50 = vld [vmem:[#allocation2 + $0xf8] sm:$0xff] }
 0x534   : > { %v7471_v59 = vpop.eup %7470  ;;  %v2315_v52 = vmul.f32 %v7469_v63, %v7467_v40  ;;  %13496 = vst [vmem:[#allocation19_spill] sm:$0xff] %v10303_v30  ;;  %13497 = vst [vmem:[#allocation24_spill] sm:$0xff] %v10306_v50  ;;  %v10309_v40 = vld [vmem:[#allocation2 + $0xe0] sm:$0xff]  ;;  %v10312_v63 = vld [vmem:[#allocation2 + $0xf0] sm:$0xff] }
 0x535   : > { %7482 = vtanh.f32 %v10184_v37  ;;  %v2311_v31 = vmul.f32 %v7471_v59, %v10052_v28  ;;  %v7473_v24 = vpop.eup %7472  ;;  %13498 = vst [vmem:[#allocation27_spill] sm:$0xff] %v10309_v40  ;;  %13499 = vst [vmem:[#allocation28_spill] sm:$0xff] %v10312_v63  ;;  %v10315_v59 = vld [vmem:[#allocation2 + $0xc8] sm:$0xff] }
 0x536   : > { %7484 = vrcp.f32 %v2279_v41  ;;  %13500 = vst [vmem:[#allocation13_spill] sm:$0xff] %v10315_v59  ;;  %v10318_v41 = vld [vmem:[#allocation2 + $0xd8] sm:$0xff] }
 0x537   : > { %v10188_v43 = vadd.f32 %v2315_v52, %v2311_v31  ;;  %13501 = vst [vmem:[#allocation29_spill] sm:$0xff] %v10318_v41  ;;  %v10321_v31 = vld [vmem:[#allocation2 + $0xc0] sm:$0xff]  ;;  %v10324_v52 = vld [vmem:[#allocation2 + $0xd0] sm:$0xff] }
 0x538   : > { %13502 = vst [vmem:[#allocation30_spill] sm:$0xff] %v10321_v31  ;;  %13503 = vst [vmem:[#allocation15_spill] sm:$0xff] %v10324_v52 }
 0x539   : > { %7486 = vtanh.f32 %v10188_v43 }
 0x53a   : > { %v7475_v36 = vpop.eup %7474 }
 0x53b   : > { %v10191_v51 = vmul.f32 %v7475_v36, %v7473_v24  ;;  %v7477_v42 = vpop.eup %7476  ;;  %v10327_v24 = vld [vmem:[#allocation2 + $0xa8] sm:$0xff]  ;;  %v10330_v36 = vld [vmem:[#allocation2 + $0xb8] sm:$0xff] }
 0x53c   : > { %13504 = vst [vmem:[#allocation14_spill] sm:$0xff] %v10327_v24  ;;  %13505 = vst [vmem:[#allocation20_spill] sm:$0xff] %v10330_v36 }
 0x53d   : > { %13492 = vst [vmem:[#allocation44_spill] sm:$0xff] %v10191_v51  ;;  %2393 = vmatmul.mubr.f32.vlgmr.msra.gmra.mxu0 %v10191_v51  ;;  %2482 = vmatmul.mubr.f32.vlgmr.msra.gmra.mxu1 %v10191_v51  ;;  %v10372_v51 = vld [vmem:[#allocation2 + $0x50] sm:$0xff] }
 0x53e   : > { %v7479_v44 = vpop.eup %7478  ;;  %2398 = vmatprep.mubr.f32.mxu0 %v13216_v14  ;;  %2487 = vmatprep.mubr.f32.mxu1 %v13216_v14  ;;  %13519 = vst [vmem:[#allocation117_spill] sm:$0xff] %v10372_v51 }
 0x53f   : > { %v10197_v28 = vmul.f32 %v7479_v44, %v7477_v42  ;;  %2603 = vmatpush1.msra.mxu0 %v10199_v2  ;;  %2692 = vmatpush1.msra.mxu1 %v10202_v53  ;;  %v7481_v54 = vpop.eup %7480  ;;  %v10333_v42 = vld [vmem:[#allocation2 + $0xa0] sm:$0xff]  ;;  %v10336_v44 = vld [vmem:[#allocation2 + $0xb0] sm:$0xff] }
 0x540   : > { %2604 = vmatprep.subr.mxu0 %v10205_v1  ;;  %2693 = vmatprep.subr.mxu1 %v10208_v58  ;;  %13506 = vst [vmem:[#allocation16_spill] sm:$0xff] %v10333_v42  ;;  %13507 = vst [vmem:[#allocation22_spill] sm:$0xff] %v10336_v44 }
 0x541   : > { %13493 = vst [vmem:[#allocation107_spill] sm:$0xff] %v10197_v28  ;;  %2399 = vmatmul.mubr.f32.gmra.mxu0 %v10197_v28  ;;  %2488 = vmatmul.mubr.f32.gmra.mxu1 %v10197_v28  ;;  %v10369_v28 = vld [vmem:[#allocation2 + $0x40] sm:$0xff] }
 0x542   : > { %v7483_v46 = vpop.eup %7482  ;;  %2404 = vmatprep.mubr.f32.mxu0 %v13216_v14  ;;  %2493 = vmatprep.mubr.f32.mxu1 %v13216_v14  ;;  %13518 = vst [vmem:[#allocation116_spill] sm:$0xff] %v10369_v28 }
 0x543   : > { %v10215_v48 = vmul.f32 %v7483_v46, %v7481_v54  ;;  %2605 = vmatpush1.msra.mxu0 %v10217_v62  ;;  %2694 = vmatpush1.msra.mxu1 %v10220_v38  ;;  %v7485_v8 = vpop.eup %7484  ;;  %v10339_v54 = vld [vmem:[#allocation2 + $0x88] sm:$0xff]  ;;  %v10342_v46 = vld [vmem:[#allocation2 + $0x98] sm:$0xff] }
 0x544   : > { %2606 = vmatprep.subr.mxu0 %v10223_v57  ;;  %2695 = vmatprep.subr.mxu1 %v10226_v39  ;;  %13508 = vst [vmem:[#allocation21_spill] sm:$0xff] %v10339_v54  ;;  %13509 = vst [vmem:[#allocation23_spill] sm:$0xff] %v10342_v46 }
 0x545   : > { %13494 = vst [vmem:[#allocation17_spill] sm:$0xff] %v10215_v48  ;;  %2405 = vmatmul.mubr.f32.gmra.mxu0 %v10215_v48  ;;  %2494 = vmatmul.mubr.f32.gmra.mxu1 %v10215_v48  ;;  %v10366_v48 = vld [vmem:[#allocation2 + $0x58] sm:$0xff] }
 0x546   : > { %v7487_v61 = vpop.eup %7486  ;;  %2410 = vmatprep.mubr.f32.mxu0 %v13216_v14  ;;  %2499 = vmatprep.mubr.f32.mxu1 %v13216_v14  ;;  %13517 = vst [vmem:[#allocation115_spill] sm:$0xff] %v10366_v48 }
 0x547   : > { %v10233_v23 = vmul.f32 %v7487_v61, %v7485_v8  ;;  %2607 = vmatpush1.msra.mxu0 %v10235_v27  ;;  %2696 = vmatpush1.msra.mxu1 %v10238_v11  ;;  %v10345_v8 = vld [vmem:[#allocation2 + $0x80] sm:$0xff]  ;;  %v10348_v61 = vld [vmem:[#allocation2 + $0x90] sm:$0xff] }
 0x548   : > { %2608 = vmatprep.subr.mxu0 %v10241_v32  ;;  %2697 = vmatprep.subr.mxu1 %v10244_v29  ;;  %13510 = vst [vmem:[#allocation108_spill] sm:$0xff] %v10345_v8  ;;  %13511 = vst [vmem:[#allocation109_spill] sm:$0xff] %v10348_v61 }
 0x549   : > { %13495 = vst [vmem:[#allocation18_spill] sm:$0xff] %v10233_v23  ;;  %2411 = vmatmul.mubr.f32.gmra.mxu0 %v10233_v23  ;;  %2500 = vmatmul.mubr.f32.gmra.mxu1 %v10233_v23  ;;  %v10363_v23 = vld [vmem:[#allocation2 + $0x48] sm:$0xff] }
 0x54a   : > { %2609 = vmatpush1.msra.mxu0 %v10249_v4  ;;  %2698 = vmatpush1.msra.mxu1 %v10252_v19  ;;  %13516 = vst [vmem:[#allocation114_spill] sm:$0xff] %v10363_v23 }
 0x54b   : > { %2610 = vmatprep.subr.mxu0 %v10255_v56  ;;  %2699 = vmatprep.subr.mxu1 %v10258_v13 }
 0x54c   : > { %2611 = vmatpush1.msra.mxu0 %v10261_v26  ;;  %2700 = vmatpush1.msra.mxu1 %v10264_v15 }
 0x54d   : > { %2612 = vmatprep.subr.mxu0 %v10267_v17  ;;  %2701 = vmatprep.subr.mxu1 %v10270_v25 }
 0x54e   : > { %2613 = vmatpush1.msra.mxu0 %v10273_v20  ;;  %2702 = vmatpush1.msra.mxu1 %v10276_v12 }
 0x54f   : > { %2614 = vmatprep.subr.mxu0 %v10279_v10  ;;  %2703 = vmatprep.subr.mxu1 %v10282_v18 }
 0x550   : > { %2615 = vmatpush1.msra.mxu0 %v10285_v9  ;;  %2704 = vmatpush1.msra.mxu1 %v10288_v47 }
 0x551   : > { %2616 = vmatprep.subr.mxu0 %v10291_v21  ;;  %2705 = vmatprep.subr.mxu1 %v10294_v16 }
 0x552   : > { %2617 = vmatpush1.msra.mxu0 %v10297_v7  ;;  %2706 = vmatpush1.msra.mxu1 %v10300_v22 }
 0x553   : > { %2618 = vmatprep.subr.mxu0 %v10303_v30  ;;  %2707 = vmatprep.subr.mxu1 %v10306_v50 }
 0x554   : > { %2619 = vmatpush1.msra.mxu0 %v10309_v40  ;;  %2708 = vmatpush1.msra.mxu1 %v10312_v63 }
 0x555   : > { %2620 = vmatprep.subr.mxu0 %v10315_v59  ;;  %2709 = vmatprep.subr.mxu1 %v10318_v41  ;;  %v13532_v41 = vld [vmem:[#allocation69_spill] sm:$0xff] }
 0x556   : > { %2621 = vmatpush1.msra.mxu0 %v10321_v31  ;;  %2710 = vmatpush1.msra.mxu1 %v10324_v52 }
 0x557   : > { %2622 = vmatprep.subr.mxu0 %v10327_v24  ;;  %2711 = vmatprep.subr.mxu1 %v10330_v36 }
 0x558   : > { %2623 = vmatpush1.msra.mxu0 %v10333_v42  ;;  %2712 = vmatpush1.msra.mxu1 %v10336_v44 }
 0x559   : > { %2624 = vmatprep.subr.mxu0 %v10339_v54  ;;  %2713 = vmatprep.subr.mxu1 %v10342_v46  ;;  %v13530_v54 = vld [vmem:[#allocation65_spill] sm:$0xff] }
 0x55a   : > { %2625 = vmatpush1.msra.mxu0 %v10345_v8  ;;  %2714 = vmatpush1.msra.mxu1 %v10348_v61 }
 0x55b   : > { %2626 = vmatprep.subr.mxu0 %v10351_v45  ;;  %2715 = vmatprep.subr.mxu1 %v10354_v3  ;;  %v13529_v45 = vld [vmem:[#allocation63_spill] sm:$0xff] }
 0x55c   : > { %2627 = vmatpush1.msra.mxu0 %v10357_v35  ;;  %2716 = vmatpush1.msra.mxu1 %v10360_v34  ;;  %v10375_v35 = vld [vmem:[#allocation2 + $0x28] sm:$0xff]  ;;  %v10378_v34 = vld [vmem:[#allocation2 + $0x38] sm:$0xff] }
 0x55d   : > { %2628 = vmatprep.subr.mxu0 %v10363_v23  ;;  %2717 = vmatprep.subr.mxu1 %v10366_v48  ;;  %13520 = vst [vmem:[#allocation118_spill] sm:$0xff] %v10375_v35  ;;  %13521 = vst [vmem:[#allocation119_spill] sm:$0xff] %v10378_v34  ;;  %v10381_v23 = vld [vmem:[#allocation2 + $0x20] sm:$0xff]  ;;  %v10384_v48 = vld [vmem:[#allocation2 + $0x30] sm:$0xff] }
 0x55e   : > { %2629 = vmatpush1.msra.mxu0 %v10369_v28  ;;  %2718 = vmatpush1.msra.mxu1 %v10372_v51  ;;  %13522 = vst [vmem:[#allocation120_spill] sm:$0xff] %v10381_v23  ;;  %13523 = vst [vmem:[#allocation121_spill] sm:$0xff] %v10384_v48  ;;  %v10387_v28 = vld [vmem:[#allocation2 + $0x8] sm:$0xff]  ;;  %v10390_v51 = vld [vmem:[#allocation2 + $0x18] sm:$0xff] }
 0x55f   : > { %2630 = vmatprep.subr.mxu0 %v10375_v35  ;;  %2719 = vmatprep.subr.mxu1 %v10378_v34  ;;  %13524 = vst [vmem:[#allocation122_spill] sm:$0xff] %v10387_v28  ;;  %13525 = vst [vmem:[#allocation123_spill] sm:$0xff] %v10390_v51  ;;  %v10393_v35 = vld [vmem:[#allocation2] sm:$0xff]  ;;  %v10397_v34 = vld [vmem:[#allocation2 + $0x10] sm:$0xff] }
 0x560   : > { %2631 = vmatpush1.msra.mxu0 %v10381_v23  ;;  %2720 = vmatpush1.msra.mxu1 %v10384_v48  ;;  %13526 = vst [vmem:[#allocation124_spill] sm:$0xff] %v10393_v35  ;;  %13527 = vst [vmem:[#allocation125_spill] sm:$0xff] %v10397_v34  ;;  %v8303_v48 = vld [vmem:[#allocation2 + $0x1f8] sm:$0xff] }
 0x561   : > { %2632 = vmatprep.subr.mxu0 %v10387_v28  ;;  %2721 = vmatprep.subr.mxu1 %v10390_v51  ;;  %v13528_v28 = vld [vmem:[#allocation61_spill] sm:$0xff] }
 0x562   : > { %2633 = vmatpush1.msra.mxu0 %v10393_v35  ;;  %2666 = vmatprep.mubr.f32.mxu0 %v13216_v14  ;;  %v777_v23 = vadd.f32 %v13528_v28, %v9249_v5  ;;  %v779_v35 = vadd.f32 %v13529_v45, %v9603_v33  ;;  %v789_v45 = vadd.f32 %v13532_v41, %v9249_v5 }
 0x563   : > { %2722 = vmatpush1.msra.mxu1 %v10397_v34  ;;  %2755 = vmatprep.mubr.f32.mxu1 %v13216_v14  ;;  %v783_v34 = vadd.f32 %v13530_v54, %v9249_v5  ;;  %v13533_v54 = vld [vmem:[#allocation71_spill] sm:$0xff] }
 0x564   : > { %2876 = vmatprep.subr.mxu0 %v13474_v49  ;;  %2965 = vmatprep.subr.mxu1 %v8303_v48  ;;  %v13531_v49 = vld [vmem:[#allocation67_spill] sm:$0xff] }
 0x565   : > { %v785_v48 = vadd.f32 %v13531_v49, %v9603_v33 }
 0x5fd   : > { %v2394_v51 = vpop.f32.mrf.mxu0  ;;  %v2483_v3 = vpop.f32.mrf.mxu1 }
 0x5fe   : > { %v2395_v61 = vadd.f32 %v2394_v51, %v777_v23 }
 0x5ff   : > { %v2396_v8 = vpop.f32.mrf.mxu0  ;;  %v2485_v46 = vpop.f32.mrf.mxu1 }
 0x600   : > { %v6884_v44 = vmul.f32 -1.442695, %v2395_v61  ;;  %v2397_v42 = vadd.f32 %v2396_v8, %v779_v35  ;;  %v791_v61 = vadd.f32 %v13533_v54, %v9603_v33 }
 0x601   : > { %v2400_v36 = vpop.f32.mrf.mxu0  ;;  %v2489_v52 = vpop.f32.mrf.mxu1 }
 0x602   : > { %7488 = vpow2.f32 %v6884_v44  ;;  %v6885_v24 = vmul.f32 -1.442695, %v2397_v42  ;;  %v2401_v28 = vadd.f32 %v2400_v36, %v783_v34  ;;  %v13534_v44 = vld [vmem:[#allocation60_spill] sm:$0xff]  ;;  %v13535_v36 = vld [vmem:[#allocation73_spill] sm:$0xff] }
 0x603   : > { %v2402_v31 = vpop.f32.mrf.mxu0  ;;  %v2491_v8 = vpop.f32.mrf.mxu1  ;;  %v1034_v42 = vadd.f32 %v13534_v44, %v9256_v60  ;;  %v795_v49 = vadd.f32 %v13535_v36, %v9249_v5 }
 0x604   : > { %7490 = vpow2.f32 %v6885_v24  ;;  %v6887_v51 = vmul.f32 -1.442695, %v2401_v28  ;;  %v2403_v23 = vadd.f32 %v2402_v31, %v785_v48  ;;  %v13536_v48 = vld [vmem:[#allocation75_spill] sm:$0xff] }
 0x605   : > { %v2406_v59 = vpop.f32.mrf.mxu0  ;;  %v2484_v28 = vadd.f32 %v2483_v3, %v1034_v42  ;;  %v797_v40 = vadd.f32 %v13536_v48, %v9603_v33 }
 0x606   : > { %7492 = vpow2.f32 %v6887_v51  ;;  %v6888_v35 = vmul.f32 -1.442695, %v2403_v23  ;;  %v2407_v63 = vadd.f32 %v2406_v59, %v789_v45  ;;  %v2495_v51 = vpop.f32.mrf.mxu1  ;;  %v13537_v59 = vld [vmem:[#allocation64_spill] sm:$0xff] }
 0x607   : > { %v2408_v34 = vpop.f32.mrf.mxu0  ;;  %v1040_v45 = vadd.f32 %v13537_v59, %v9256_v60 }
 0x608   : > { %7494 = vpow2.f32 %v6888_v35  ;;  %v6890_v41 = vmul.f32 -1.442695, %v2407_v63  ;;  %v2409_v24 = vadd.f32 %v2408_v34, %v791_v61  ;;  %v13538_v35 = vld [vmem:[#allocation62_spill] sm:$0xff]  ;;  %v6886_v61 = vmul.f32 -1.442695, %v2484_v28  ;;  %v2497_v42 = vpop.f32.mrf.mxu1 }
 0x609   : > { %v2412_v31 = vpop.f32.mrf.mxu0  ;;  %v1036_v63 = vadd.f32 %v13538_v35, %v13324_v0  ;;  %v2490_v3 = vadd.f32 %v2489_v52, %v1040_v45 }
 0x60a   : > { %7496 = vpow2.f32 %v6890_v41  ;;  %v6891_v23 = vmul.f32 -1.442695, %v2409_v24  ;;  %v2413_v54 = vadd.f32 %v2412_v31, %v795_v49  ;;  %v13539_v41 = vld [vmem:[#allocation68_spill] sm:$0xff]  ;;  %v2501_v52 = vpop.f32.mrf.mxu1 }
 0x60b   : > { %v2414_v44 = vpop.f32.mrf.mxu0  ;;  %v1046_v24 = vadd.f32 %v13539_v41, %v9256_v60  ;;  %v2486_v49 = vadd.f32 %v2485_v46, %v1036_v63  ;;  %v13542_v63 = vld [vmem:[#allocation70_spill] sm:$0xff] }
 0x60c   : > { %7498 = vpow2.f32 %v6891_v23  ;;  %v6893_v50 = vmul.f32 -1.442695, %v2413_v54  ;;  %v2415_v30 = vadd.f32 %v2414_v44, %v797_v40  ;;  %v13540_v23 = vld [vmem:[#allocation66_spill] sm:$0xff]  ;;  %v6889_v40 = vmul.f32 -1.442695, %v2490_v3 }
 0x60d   : > { %v1042_v54 = vadd.f32 %v13540_v23, %v13324_v0  ;;  %v2496_v59 = vadd.f32 %v2495_v51, %v1046_v24 }
 0x60e   : > { %7500 = vpow2.f32 %v6893_v50  ;;  %v6894_v34 = vmul.f32 -1.442695, %v2415_v30  ;;  %v13541_v30 = vld [vmem:[#allocation72_spill] sm:$0xff] }
 0x60f   : > { %v7489_v36 = vpop.eup %7488  ;;  %v1052_v50 = vadd.f32 %v13541_v30, %v9256_v60  ;;  %v2492_v44 = vadd.f32 %v2491_v8, %v1042_v54  ;;  %v13543_v8 = vld [vmem:[#allocation74_spill] sm:$0xff] }
 0x610   : > { %v2542_v31 = vadd.f32 1.0, %v7489_v36  ;;  %7502 = vpow2.f32 %v6894_v34  ;;  %v1048_v34 = vadd.f32 %v13542_v63, %v13324_v0  ;;  %v6892_v36 = vmul.f32 -1.442695, %v2496_v59 }
 0x611   : > { %v7491_v48 = vpop.eup %7490  ;;  %7504 = vpow2.f32 %v6886_v61  ;;  %v2502_v61 = vadd.f32 %v2501_v52, %v1052_v50 }
 0x612   : > { %7506 = vrcp.f32 %v2542_v31  ;;  %v2543_v28 = vadd.f32 1.0, %v7491_v48  ;;  %v2498_v41 = vadd.f32 %v2497_v42, %v1048_v34  ;;  %v2503_v31 = vpop.f32.mrf.mxu1 }
 0x613   : > { %v7493_v45 = vpop.eup %7492  ;;  %7508 = vtanh.f32 %v2486_v49  ;;  %v1054_v49 = vadd.f32 %v13543_v8, %v13324_v0  ;;  %v6895_v23 = vmul.f32 -1.442695, %v2502_v61 }
 0x614   : > { %7510 = vrcp.f32 %v2543_v28  ;;  %v2545_v46 = vadd.f32 1.0, %v7493_v45 }
 0x615   : > { %v7495_v35 = vpop.eup %7494  ;;  %7512 = vpow2.f32 %v6889_v40  ;;  %v2504_v40 = vadd.f32 %v2503_v31, %v1054_v49 }
 0x616   : > { %7514 = vrcp.f32 %v2545_v46  ;;  %v2546_v51 = vadd.f32 1.0, %v7495_v35 }
 0x617   : > { %v7497_v3 = vpop.eup %7496  ;;  %7516 = vtanh.f32 %v2492_v44 }
 0x618   : > { %7518 = vrcp.f32 %v2546_v51  ;;  %v2548_v24 = vadd.f32 1.0, %v7497_v3 }
 0x619   : > { %v7499_v48 = vpop.eup %7498  ;;  %7520 = vpow2.f32 %v6892_v36 }
 0x61a   : > { %7522 = vrcp.f32 %v2548_v24  ;;  %v2549_v54 = vadd.f32 1.0, %v7499_v48 }
 0x61b   : > { %v7501_v28 = vpop.eup %7500  ;;  %7524 = vtanh.f32 %v2498_v41 }
 0x61c   : > { %7526 = vrcp.f32 %v2549_v54  ;;  %v2551_v59 = vadd.f32 1.0, %v7501_v28 }
 0x61d   : > { %v7503_v52 = vpop.eup %7502  ;;  %7528 = vpow2.f32 %v6895_v23 }
 0x61e   : > { %v7505_v45 = vpop.eup %7504  ;;  %7530 = vrcp.f32 %v2551_v59  ;;  %v2552_v42 = vadd.f32 1.0, %v7503_v52 }
 0x61f   : > { %v7507_v30 = vpop.eup %7506  ;;  %7532 = vtanh.f32 %v2504_v40  ;;  %v2544_v46 = vadd.f32 1.0, %v7505_v45 }
 0x620   : > { %v7509_v50 = vpop.eup %7508  ;;  %7534 = vrcp.f32 %v2552_v42 }
 0x621   : > { %v7511_v44 = vpop.eup %7510  ;;  %v2586_v34 = vmul.f32 %v7509_v50, %v7507_v30  ;;  %7536 = vrcp.f32 %v2544_v46 }
 0x622   : > { %v7513_v35 = vpop.eup %7512  ;;  %v2582_v63 = vmul.f32 %v7511_v44, %v10176_v55 }
 0x623   : > { %v7515_v36 = vpop.eup %7514  ;;  %v2547_v41 = vadd.f32 1.0, %v7513_v35 }
 0x624   : > { %v7517_v61 = vpop.eup %7516  ;;  %v10435_v51 = vadd.f32 %v2586_v34, %v2582_v63 }
 0x625   : > { %v7519_v3 = vpop.eup %7518  ;;  %v2587_v48 = vmul.f32 %v7517_v61, %v7515_v36 }
 0x626   : > { %v7521_v24 = vpop.eup %7520  ;;  %7538 = vtanh.f32 %v10435_v51  ;;  %v2583_v31 = vmul.f32 %v7519_v3, %v10180_v6 }
 0x627   : > { %v7523_v8 = vpop.eup %7522  ;;  %7540 = vrcp.f32 %v2547_v41  ;;  %v2550_v55 = vadd.f32 1.0, %v7521_v24  ;;  %v13571_v24 = vld [vmem:[#allocation121_spill] sm:$0xff] }
 0x628   : > { %v7525_v49 = vpop.eup %7524  ;;  %v10439_v23 = vadd.f32 %v2587_v48, %v2583_v31  ;;  %v13572_v31 = vld [vmem:[#allocation122_spill] sm:$0xff]  ;;  %v13573_v48 = vld [vmem:[#allocation123_spill] sm:$0xff] }
 0x629   : > { %v7527_v54 = vpop.eup %7526  ;;  %v2588_v59 = vmul.f32 %v7525_v49, %v7523_v8  ;;  %v13574_v8 = vld [vmem:[#allocation124_spill] sm:$0xff]  ;;  %v13575_v49 = vld [vmem:[#allocation125_spill] sm:$0xff] }
 0x62a   : > { %v7529_v28 = vpop.eup %7528  ;;  %7542 = vtanh.f32 %v10439_v23  ;;  %v2584_v40 = vmul.f32 %v7527_v54, %v10184_v37  ;;  %v13576_v54 = vld [vmem:[#allocation77_spill] sm:$0xff] }
 0x62b   : > { %v7531_v52 = vpop.eup %7530  ;;  %7544 = vrcp.f32 %v2550_v55  ;;  %v2553_v6 = vadd.f32 1.0, %v7529_v28  ;;  %v801_v55 = vadd.f32 %v13576_v54, %v9249_v5 }
 0x62c   : > { %v7533_v45 = vpop.eup %7532  ;;  %v10443_v42 = vadd.f32 %v2588_v59, %v2584_v40  ;;  %v13577_v59 = vld [vmem:[#allocation79_spill] sm:$0xff] }
 0x62d   : > { %v7535_v30 = vpop.eup %7534  ;;  %v2589_v44 = vmul.f32 %v7533_v45, %v7531_v52  ;;  %v803_v52 = vadd.f32 %v13577_v59, %v9603_v33 }
 0x62e   : > { %7546 = vtanh.f32 %v10443_v42  ;;  %v2585_v50 = vmul.f32 %v7535_v30, %v10188_v43  ;;  %v7537_v35 = vpop.eup %7536 }
 0x62f   : > { %7548 = vrcp.f32 %v2553_v6 }
 0x630   : > { %v10447_v46 = vadd.f32 %v2589_v44, %v2585_v50  ;;  %v13578_v50 = vld [vmem:[#allocation81_spill] sm:$0xff] }
 0x631   : > { %v807_v44 = vadd.f32 %v13578_v50, %v9249_v5 }
 0x632   : > { %7550 = vtanh.f32 %v10447_v46 }
 0x633   : > { %v7539_v37 = vpop.eup %7538 }
 0x634   : > { %v10450_v63 = vmul.f32 %v7539_v37, %v7537_v35  ;;  %v7541_v34 = vpop.eup %7540 }
 0x636   : > { %2667 = vmatmul.mubr.f32.vlgmr.msra.gmra.mxu0 %v10450_v63  ;;  %2756 = vmatmul.mubr.f32.vlgmr.msra.gmra.mxu1 %v10450_v63 }
 0x637   : > { %v7543_v36 = vpop.eup %7542  ;;  %2672 = vmatprep.mubr.f32.mxu0 %v13216_v14  ;;  %2761 = vmatprep.mubr.f32.mxu1 %v13216_v14 }
 0x638   : > { %v10456_v43 = vmul.f32 %v7543_v36, %v7541_v34  ;;  %2877 = vmatpush1.msra.mxu0 %v10199_v2  ;;  %2966 = vmatpush1.msra.mxu1 %v10202_v53  ;;  %v7545_v61 = vpop.eup %7544  ;;  %v13579_v36 = vld [vmem:[#allocation83_spill] sm:$0xff] }
 0x639   : > { %2878 = vmatprep.subr.mxu0 %v10205_v1  ;;  %2967 = vmatprep.subr.mxu1 %v10208_v58  ;;  %v13544_v58 = vld [vmem:[#allocation19_spill] sm:$0xff] }
 0x63a   : > { %2673 = vmatmul.mubr.f32.gmra.mxu0 %v10456_v43  ;;  %2762 = vmatmul.mubr.f32.gmra.mxu1 %v10456_v43 }
 0x63b   : > { %v7547_v3 = vpop.eup %7546  ;;  %2678 = vmatprep.mubr.f32.mxu0 %v13216_v14  ;;  %2767 = vmatprep.mubr.f32.mxu1 %v13216_v14 }
 0x63c   : > { %v10466_v41 = vmul.f32 %v7547_v3, %v7545_v61  ;;  %2879 = vmatpush1.msra.mxu0 %v10217_v62  ;;  %2968 = vmatpush1.msra.mxu1 %v10220_v38  ;;  %v7549_v2 = vpop.eup %7548  ;;  %v13545_v62 = vld [vmem:[#allocation24_spill] sm:$0xff]  ;;  %v13546_v38 = vld [vmem:[#allocation27_spill] sm:$0xff]  ;;  %v809_v61 = vadd.f32 %v13579_v36, %v9603_v33 }
 0x63d   : > { %2880 = vmatprep.subr.mxu0 %v10223_v57  ;;  %2969 = vmatprep.subr.mxu1 %v10226_v39  ;;  %v13547_v57 = vld [vmem:[#allocation28_spill] sm:$0xff]  ;;  %v13548_v39 = vld [vmem:[#allocation13_spill] sm:$0xff] }
 0x63e   : > { %2679 = vmatmul.mubr.f32.gmra.mxu0 %v10466_v41  ;;  %2768 = vmatmul.mubr.f32.gmra.mxu1 %v10466_v41 }
 0x63f   : > { %v7551_v53 = vpop.eup %7550  ;;  %2684 = vmatprep.mubr.f32.mxu0 %v13216_v14  ;;  %2773 = vmatprep.mubr.f32.mxu1 %v13216_v14 }
 0x640   : > { %v10476_v1 = vmul.f32 %v7551_v53, %v7549_v2  ;;  %2881 = vmatpush1.msra.mxu0 %v10235_v27  ;;  %2970 = vmatpush1.msra.mxu1 %v10238_v11  ;;  %v13549_v27 = vld [vmem:[#allocation29_spill] sm:$0xff]  ;;  %v13550_v11 = vld [vmem:[#allocation30_spill] sm:$0xff] }
 0x641   : > { %2882 = vmatprep.subr.mxu0 %v10241_v32  ;;  %2971 = vmatprep.subr.mxu1 %v10244_v29  ;;  %v13551_v32 = vld [vmem:[#allocation15_spill] sm:$0xff]  ;;  %v13552_v29 = vld [vmem:[#allocation14_spill] sm:$0xff] }
 0x642   : > { %2685 = vmatmul.mubr.f32.gmra.mxu0 %v10476_v1  ;;  %2774 = vmatmul.mubr.f32.gmra.mxu1 %v10476_v1 }
 0x643   : > { %2883 = vmatpush1.msra.mxu0 %v10249_v4  ;;  %2972 = vmatpush1.msra.mxu1 %v10252_v19  ;;  %v13553_v4 = vld [vmem:[#allocation20_spill] sm:$0xff] }
 0x644   : > { %2884 = vmatprep.subr.mxu0 %v10255_v56  ;;  %2973 = vmatprep.subr.mxu1 %v10258_v13  ;;  %v13554_v19 = vld [vmem:[#allocation16_spill] sm:$0xff]  ;;  %v13555_v56 = vld [vmem:[#allocation22_spill] sm:$0xff]  ;;  %v13556_v13 = vld [vmem:[#allocation21_spill] sm:$0xff] }
 0x645   : > { %2885 = vmatpush1.msra.mxu0 %v10261_v26  ;;  %2974 = vmatpush1.msra.mxu1 %v10264_v15  ;;  %v13557_v26 = vld [vmem:[#allocation23_spill] sm:$0xff]  ;;  %v13558_v15 = vld [vmem:[#allocation108_spill] sm:$0xff] }
 0x646   : > { %2886 = vmatprep.subr.mxu0 %v10267_v17  ;;  %2975 = vmatprep.subr.mxu1 %v10270_v25  ;;  %v13559_v17 = vld [vmem:[#allocation109_spill] sm:$0xff]  ;;  %v13560_v25 = vld [vmem:[#allocation110_spill] sm:$0xff] }
 0x647   : > { %2887 = vmatpush1.msra.mxu0 %v10273_v20  ;;  %2976 = vmatpush1.msra.mxu1 %v10276_v12  ;;  %v13561_v20 = vld [vmem:[#allocation111_spill] sm:$0xff]  ;;  %v13562_v12 = vld [vmem:[#allocation112_spill] sm:$0xff] }
 0x648   : > { %2888 = vmatprep.subr.mxu0 %v10279_v10  ;;  %2977 = vmatprep.subr.mxu1 %v10282_v18  ;;  %v13563_v10 = vld [vmem:[#allocation113_spill] sm:$0xff]  ;;  %v13564_v18 = vld [vmem:[#allocation114_spill] sm:$0xff] }
 0x649   : > { %2889 = vmatpush1.msra.mxu0 %v10285_v9  ;;  %2978 = vmatpush1.msra.mxu1 %v10288_v47  ;;  %v13565_v9 = vld [vmem:[#allocation115_spill] sm:$0xff]  ;;  %v13566_v47 = vld [vmem:[#allocation116_spill] sm:$0xff] }
 0x64a   : > { %2890 = vmatprep.subr.mxu0 %v10291_v21  ;;  %2979 = vmatprep.subr.mxu1 %v10294_v16  ;;  %v13567_v21 = vld [vmem:[#allocation117_spill] sm:$0xff]  ;;  %v13568_v16 = vld [vmem:[#allocation118_spill] sm:$0xff] }
 0x64b   : > { %2891 = vmatpush1.msra.mxu0 %v10297_v7  ;;  %2980 = vmatpush1.msra.mxu1 %v10300_v22  ;;  %v13569_v7 = vld [vmem:[#allocation119_spill] sm:$0xff]  ;;  %v13570_v22 = vld [vmem:[#allocation120_spill] sm:$0xff] }
 0x64c   : > { %2892 = vmatprep.subr.mxu0 %v13544_v58  ;;  %2981 = vmatprep.subr.mxu1 %v13545_v62  ;;  %v13580_v62 = vld [vmem:[#allocation85_spill] sm:$0xff] }
 0x64d   : > { %2893 = vmatpush1.msra.mxu0 %v13546_v38  ;;  %2982 = vmatpush1.msra.mxu1 %v13547_v57  ;;  %v813_v38 = vadd.f32 %v13580_v62, %v9249_v5 }
 0x64e   : > { %2894 = vmatprep.subr.mxu0 %v13548_v39  ;;  %2983 = vmatprep.subr.mxu1 %v13549_v27 }
 0x64f   : > { %2895 = vmatpush1.msra.mxu0 %v13550_v11  ;;  %2984 = vmatpush1.msra.mxu1 %v13551_v32  ;;  %v13581_v11 = vld [vmem:[#allocation87_spill] sm:$0xff] }
 0x650   : > { %2896 = vmatprep.subr.mxu0 %v13552_v29  ;;  %2985 = vmatprep.subr.mxu1 %v13553_v4  ;;  %v815_v32 = vadd.f32 %v13581_v11, %v9603_v33 }
 0x651   : > { %2897 = vmatpush1.msra.mxu0 %v13554_v19  ;;  %2986 = vmatpush1.msra.mxu1 %v13555_v56  ;;  %v13582_v56 = vld [vmem:[#allocation76_spill] sm:$0xff] }
 0x652   : > { %2898 = vmatprep.subr.mxu0 %v13556_v13  ;;  %2987 = vmatprep.subr.mxu1 %v13557_v26  ;;  %v1058_v13 = vadd.f32 %v13582_v56, %v9256_v60 }
 0x653   : > { %2899 = vmatpush1.msra.mxu0 %v13558_v15  ;;  %2988 = vmatpush1.msra.mxu1 %v13559_v17  ;;  %v13583_v15 = vld [vmem:[#allocation89_spill] sm:$0xff] }
 0x654   : > { %2900 = vmatprep.subr.mxu0 %v13560_v25  ;;  %2989 = vmatprep.subr.mxu1 %v13561_v20  ;;  %v819_v17 = vadd.f32 %v13583_v15, %v9249_v5 }
 0x655   : > { %2901 = vmatpush1.msra.mxu0 %v13562_v12  ;;  %2990 = vmatpush1.msra.mxu1 %v13563_v10 }
 0x656   : > { %2902 = vmatprep.subr.mxu0 %v13564_v18  ;;  %2991 = vmatprep.subr.mxu1 %v13565_v9  ;;  %v13584_v18 = vld [vmem:[#allocation91_spill] sm:$0xff] }
 0x657   : > { %2903 = vmatpush1.msra.mxu0 %v13566_v47  ;;  %2992 = vmatpush1.msra.mxu1 %v13567_v21  ;;  %v821_v9 = vadd.f32 %v13584_v18, %v9603_v33 }
 0x658   : > { %2904 = vmatprep.subr.mxu0 %v13568_v16  ;;  %2993 = vmatprep.subr.mxu1 %v13569_v7  ;;  %v13585_v7 = vld [vmem:[#allocation80_spill] sm:$0xff] }
 0x659   : > { %2905 = vmatpush1.msra.mxu0 %v13570_v22  ;;  %2994 = vmatpush1.msra.mxu1 %v13571_v24  ;;  %v1064_v22 = vadd.f32 %v13585_v7, %v9256_v60 }
 0x65a   : > { %2906 = vmatprep.subr.mxu0 %v13572_v31  ;;  %2995 = vmatprep.subr.mxu1 %v13573_v48 }
 0x65b   : > { %2907 = vmatpush1.msra.mxu0 %v13574_v8  ;;  %2940 = vmatprep.mubr.f32.mxu0 %v13216_v14  ;;  %v13586_v8 = vld [vmem:[#allocation78_spill] sm:$0xff] }
 0x65c   : > { %2996 = vmatpush1.msra.mxu1 %v13575_v49  ;;  %3029 = vmatprep.mubr.f32.mxu1 %v13216_v14  ;;  %v1060_v49 = vadd.f32 %v13586_v8, %v13324_v0 }
 0x6f6   : > { %v2668_v28 = vpop.f32.mrf.mxu0  ;;  %v2757_v40 = vpop.f32.mrf.mxu1 }
 0x6f7   : > { %v2669_v45 = vadd.f32 %v2668_v28, %v801_v55  ;;  %v2758_v12 = vadd.f32 %v2757_v40, %v1058_v13 }
 0x6f8   : > { %v2670_v30 = vpop.f32.mrf.mxu0  ;;  %v2759_v6 = vpop.f32.mrf.mxu1 }
 0x6f9   : > { %v6896_v35 = vmul.f32 -1.442695, %v2669_v45  ;;  %v2671_v37 = vadd.f32 %v2670_v30, %v803_v52  ;;  %v6898_v54 = vmul.f32 -1.442695, %v2758_v12  ;;  %v13587_v52 = vld [vmem:[#allocation84_spill] sm:$0xff]  ;;  %v2760_v30 = vadd.f32 %v2759_v6, %v1060_v49 }
 0x6fa   : > { %v2674_v34 = vpop.f32.mrf.mxu0  ;;  %v2763_v53 = vpop.f32.mrf.mxu1  ;;  %v1070_v45 = vadd.f32 %v13587_v52, %v9256_v60 }
 0x6fb   : > { %7552 = vpow2.f32 %v6896_v35  ;;  %v6897_v3 = vmul.f32 -1.442695, %v2671_v37  ;;  %v2675_v2 = vadd.f32 %v2674_v34, %v807_v44  ;;  %v2764_v55 = vadd.f32 %v2763_v53, %v1064_v22  ;;  %v13588_v35 = vld [vmem:[#allocation82_spill] sm:$0xff]  ;;  %v13589_v53 = vld [vmem:[#allocation88_spill] sm:$0xff] }
 0x6fc   : > { %v2676_v58 = vpop.f32.mrf.mxu0  ;;  %v2765_v4 = vpop.f32.mrf.mxu1  ;;  %v1066_v37 = vadd.f32 %v13588_v35, %v13324_v0 }
 0x6fd   : > { %7554 = vpow2.f32 %v6897_v3  ;;  %v6899_v57 = vmul.f32 -1.442695, %v2675_v2  ;;  %v2677_v39 = vadd.f32 %v2676_v58, %v809_v61  ;;  %v6901_v34 = vmul.f32 -1.442695, %v2764_v55 }
 0x6fe   : > { %v2680_v27 = vpop.f32.mrf.mxu0  ;;  %v2769_v47 = vpop.f32.mrf.mxu1  ;;  %v1076_v58 = vadd.f32 %v13589_v53, %v9256_v60  ;;  %v2766_v62 = vadd.f32 %v2765_v4, %v1066_v37  ;;  %v13591_v4 = vld [vmem:[#allocation90_spill] sm:$0xff] }
 0x6ff   : > { %7556 = vpow2.f32 %v6899_v57  ;;  %v6900_v29 = vmul.f32 -1.442695, %v2677_v39  ;;  %v2681_v19 = vadd.f32 %v2680_v27, %v813_v38  ;;  %v2770_v36 = vadd.f32 %v2769_v47, %v1070_v45  ;;  %v13590_v57 = vld [vmem:[#allocation86_spill] sm:$0xff] }
 0x700   : > { %v2682_v26 = vpop.f32.mrf.mxu0  ;;  %v2771_v28 = vpop.f32.mrf.mxu1  ;;  %v1072_v39 = vadd.f32 %v13590_v57, %v13324_v0  ;;  %v1078_v15 = vadd.f32 %v13591_v4, %v13324_v0  ;;  %v3274_v4 = vld [vmem:[#allocation6 + $0x1e0] sm:$0xff] }
 0x701   : > { %7558 = vpow2.f32 %v6900_v29  ;;  %v6902_v25 = vmul.f32 -1.442695, %v2681_v19  ;;  %v2683_v20 = vadd.f32 %v2682_v26, %v815_v32  ;;  %v6904_v27 = vmul.f32 -1.442695, %v2770_v36 }
 0x702   : > { %v2686_v10 = vpop.f32.mrf.mxu0  ;;  %v2775_v3 = vpop.f32.mrf.mxu1  ;;  %v2772_v19 = vadd.f32 %v2771_v28, %v1072_v39 }
 0x703   : > { %7560 = vpow2.f32 %v6902_v25  ;;  %v6903_v21 = vmul.f32 -1.442695, %v2683_v20  ;;  %v2687_v16 = vadd.f32 %v2686_v10, %v819_v17  ;;  %v2776_v11 = vadd.f32 %v2775_v3, %v1076_v58 }
 0x704   : > { %v2688_v24 = vpop.f32.mrf.mxu0  ;;  %v2777_v13 = vpop.f32.mrf.mxu1 }
 0x705   : > { %7562 = vpow2.f32 %v6903_v21  ;;  %v6905_v31 = vmul.f32 -1.442695, %v2687_v16  ;;  %v2689_v48 = vadd.f32 %v2688_v24, %v821_v9  ;;  %v6907_v17 = vmul.f32 -1.442695, %v2776_v11 }
 0x706   : > { %v2778_v12 = vadd.f32 %v2777_v13, %v1078_v15  ;;  %v3275_v13 = vld [vmem:[#allocation6 + $0x1e8] sm:$0xff]  ;;  %v3276_v15 = vld [vmem:[#allocation6 + $0x1f0] sm:$0xff] }
 0x707   : > { %7564 = vpow2.f32 %v6905_v31  ;;  %v6906_v40 = vmul.f32 -1.442695, %v2689_v48  ;;  %3278 = vmatprep.subr.mxu0 %v3275_v13  ;;  %v3232_v13 = vld [vmem:[#allocation6 + $0x90] sm:$0xff] }
 0x708   : > { %v7553_v59 = vpop.eup %7552 }
 0x709   : > { %v2816_v50 = vadd.f32 1.0, %v7553_v59  ;;  %7566 = vpow2.f32 %v6906_v40 }
 0x70a   : > { %v7555_v44 = vpop.eup %7554  ;;  %7568 = vpow2.f32 %v6898_v54 }
 0x70b   : > { %7570 = vrcp.f32 %v2816_v50  ;;  %v2817_v61 = vadd.f32 1.0, %v7555_v44 }
 0x70c   : > { %v7557_v2 = vpop.eup %7556  ;;  %7572 = vtanh.f32 %v2760_v30 }
 0x70d   : > { %7574 = vrcp.f32 %v2817_v61  ;;  %v2819_v6 = vadd.f32 1.0, %v7557_v2 }
 0x70e   : > { %v7559_v38 = vpop.eup %7558  ;;  %7576 = vpow2.f32 %v6901_v34 }
 0x70f   : > { %7578 = vrcp.f32 %v2819_v6  ;;  %v2820_v32 = vadd.f32 1.0, %v7559_v38 }
 0x710   : > { %v7561_v29 = vpop.eup %7560  ;;  %7580 = vtanh.f32 %v2766_v62 }
 0x711   : > { %7582 = vrcp.f32 %v2820_v32  ;;  %v2822_v56 = vadd.f32 1.0, %v7561_v29 }
 0x712   : > { %v7563_v26 = vpop.eup %7562  ;;  %7584 = vpow2.f32 %v6904_v27 }
 0x713   : > { %7586 = vrcp.f32 %v2822_v56  ;;  %v2823_v25 = vadd.f32 1.0, %v7563_v26  ;;  %v3277_v26 = vld [vmem:[#allocation6 + $0x1f8] sm:$0xff] }
 0x714   : > { %v7565_v20 = vpop.eup %7564  ;;  %7588 = vtanh.f32 %v2772_v19  ;;  %3531 = vmatprep.subr.mxu1 %v3277_v26  ;;  %v3227_v26 = vld [vmem:[#allocation6 + $0x68] sm:$0xff] }
 0x715   : > { %7590 = vrcp.f32 %v2823_v25  ;;  %v2825_v10 = vadd.f32 1.0, %v7565_v20  ;;  %v3273_v25 = vld [vmem:[#allocation6 + $0x1d8] sm:$0xff]  ;;  %v3270_v20 = vld [vmem:[#allocation6 + $0x1c0] sm:$0xff] }
 0x716   : > { %v7567_v18 = vpop.eup %7566  ;;  %7592 = vpow2.f32 %v6907_v17  ;;  %v3271_v17 = vld [vmem:[#allocation6 + $0x1c8] sm:$0xff] }
 0x717   : > { %v7569_v9 = vpop.eup %7568  ;;  %7594 = vrcp.f32 %v2825_v10  ;;  %v2826_v47 = vadd.f32 1.0, %v7567_v18  ;;  %v3267_v10 = vld [vmem:[#allocation6 + $0x1a8] sm:$0xff]  ;;  %v3269_v18 = vld [vmem:[#allocation6 + $0x1b8] sm:$0xff] }
 0x718   : > { %v7571_v21 = vpop.eup %7570  ;;  %7596 = vtanh.f32 %v2778_v12  ;;  %v2818_v22 = vadd.f32 1.0, %v7569_v9  ;;  %v3272_v12 = vld [vmem:[#allocation6 + $0x1d0] sm:$0xff]  ;;  %v3266_v9 = vld [vmem:[#allocation6 + $0x1a0] sm:$0xff] }
 0x719   : > { %v7573_v16 = vpop.eup %7572  ;;  %7598 = vrcp.f32 %v2826_v47  ;;  %v3268_v47 = vld [vmem:[#allocation6 + $0x1b0] sm:$0xff] }
 0x71a   : > { %v7575_v7 = vpop.eup %7574  ;;  %v2860_v48 = vmul.f32 %v7573_v16, %v7571_v21  ;;  %7600 = vrcp.f32 %v2818_v22  ;;  %v3263_v21 = vld [vmem:[#allocation6 + $0x188] sm:$0xff]  ;;  %v3265_v16 = vld [vmem:[#allocation6 + $0x198] sm:$0xff]  ;;  %v3264_v22 = vld [vmem:[#allocation6 + $0x190] sm:$0xff] }
 0x71b   : > { %v7577_v24 = vpop.eup %7576  ;;  %v2856_v31 = vmul.f32 %v7575_v7, %v10435_v51  ;;  %v3262_v7 = vld [vmem:[#allocation6 + $0x180] sm:$0xff] }
 0x71c   : > { %v7579_v8 = vpop.eup %7578  ;;  %v2821_v28 = vadd.f32 1.0, %v7577_v24  ;;  %v3259_v24 = vld [vmem:[#allocation6 + $0x168] sm:$0xff] }
 0x71d   : > { %v7581_v49 = vpop.eup %7580  ;;  %v10569_v54 = vadd.f32 %v2860_v48, %v2856_v31  ;;  %v3261_v31 = vld [vmem:[#allocation6 + $0x178] sm:$0xff]  ;;  %v3258_v48 = vld [vmem:[#allocation6 + $0x160] sm:$0xff] }
 0x71e   : > { %v7583_v55 = vpop.eup %7582  ;;  %v2861_v52 = vmul.f32 %v7581_v49, %v7579_v8  ;;  %v3260_v8 = vld [vmem:[#allocation6 + $0x170] sm:$0xff]  ;;  %v3255_v49 = vld [vmem:[#allocation6 + $0x148] sm:$0xff] }
 0x71f   : > { %v7585_v40 = vpop.eup %7584  ;;  %7602 = vtanh.f32 %v10569_v54  ;;  %v2857_v59 = vmul.f32 %v7583_v55, %v10439_v23  ;;  %v3257_v55 = vld [vmem:[#allocation6 + $0x158] sm:$0xff] }
 0x720   : > { %v7587_v45 = vpop.eup %7586  ;;  %7604 = vrcp.f32 %v2821_v28  ;;  %v2824_v51 = vadd.f32 1.0, %v7585_v40  ;;  %v3254_v28 = vld [vmem:[#allocation6 + $0x140] sm:$0xff]  ;;  %v3256_v40 = vld [vmem:[#allocation6 + $0x150] sm:$0xff] }
 0x721   : > { %v7589_v30 = vpop.eup %7588  ;;  %v10573_v50 = vadd.f32 %v2861_v52, %v2857_v59  ;;  %v3251_v59 = vld [vmem:[#allocation6 + $0x128] sm:$0xff]  ;;  %v3253_v52 = vld [vmem:[#allocation6 + $0x138] sm:$0xff] }
 0x722   : > { %v7591_v44 = vpop.eup %7590  ;;  %v2862_v34 = vmul.f32 %v7589_v30, %v7587_v45  ;;  %v3250_v45 = vld [vmem:[#allocation6 + $0x120] sm:$0xff]  ;;  %v3252_v30 = vld [vmem:[#allocation6 + $0x130] sm:$0xff] }
 0x723   : > { %v7593_v35 = vpop.eup %7592  ;;  %7606 = vtanh.f32 %v10573_v50  ;;  %v2858_v37 = vmul.f32 %v7591_v44, %v10443_v42  ;;  %v3247_v44 = vld [vmem:[#allocation6 + $0x108] sm:$0xff] }
 0x724   : > { %v7595_v36 = vpop.eup %7594  ;;  %7608 = vrcp.f32 %v2824_v51  ;;  %v2827_v23 = vadd.f32 1.0, %v7593_v35  ;;  %v3249_v51 = vld [vmem:[#allocation6 + $0x118] sm:$0xff]  ;;  %v3246_v35 = vld [vmem:[#allocation6 + $0x100] sm:$0xff] }
 0x725   : > { %v7597_v61 = vpop.eup %7596  ;;  %v10577_v3 = vadd.f32 %v2862_v34, %v2858_v37  ;;  %v3248_v37 = vld [vmem:[#allocation6 + $0x110] sm:$0xff]  ;;  %v3243_v34 = vld [vmem:[#allocation6 + $0xe8] sm:$0xff] }
 0x726   : > { %v7599_v2 = vpop.eup %7598  ;;  %v2863_v58 = vmul.f32 %v7597_v61, %v7595_v36  ;;  %v3245_v36 = vld [vmem:[#allocation6 + $0xf8] sm:$0xff]  ;;  %v3242_v61 = vld [vmem:[#allocation6 + $0xe0] sm:$0xff] }
 0x727   : > { %7610 = vtanh.f32 %v10577_v3  ;;  %v2859_v53 = vmul.f32 %v7599_v2, %v10447_v46  ;;  %v7601_v6 = vpop.eup %7600  ;;  %v3244_v2 = vld [vmem:[#allocation6 + $0xf0] sm:$0xff] }
 0x728   : > { %7612 = vrcp.f32 %v2827_v23  ;;  %v3239_v23 = vld [vmem:[#allocation6 + $0xc8] sm:$0xff] }
 0x729   : > { %v10581_v62 = vadd.f32 %v2863_v58, %v2859_v53  ;;  %v3241_v53 = vld [vmem:[#allocation6 + $0xd8] sm:$0xff]  ;;  %v3238_v58 = vld [vmem:[#allocation6 + $0xc0] sm:$0xff] }
 0x72b   : > { %7614 = vtanh.f32 %v10581_v62 }
 0x72c   : > { %v7603_v42 = vpop.eup %7602 }
 0x72d   : > { %v10584_v38 = vmul.f32 %v7603_v42, %v7601_v6  ;;  %v7605_v57 = vpop.eup %7604  ;;  %v3240_v6 = vld [vmem:[#allocation6 + $0xd0] sm:$0xff]  ;;  %v3235_v42 = vld [vmem:[#allocation6 + $0xa8] sm:$0xff] }
 0x72f   : > { %2941 = vmatmul.mubr.f32.vlgmr.msra.gmra.mxu0 %v10584_v38  ;;  %3030 = vmatmul.mubr.f32.vlgmr.msra.gmra.mxu1 %v10584_v38 }
 0x730   : > { %v7607_v39 = vpop.eup %7606  ;;  %2946 = vmatprep.mubr.f32.mxu0 %v13216_v14  ;;  %3035 = vmatprep.mubr.f32.mxu1 %v13216_v14 }
 0x731   : > { %v10590_v46 = vmul.f32 %v7607_v39, %v7605_v57  ;;  %v7609_v27 = vpop.eup %7608  ;;  %3279 = vmatpush1.msra.mxu0 %v3274_v4  ;;  %3532 = vmatpush1.msra.mxu1 %v3276_v15  ;;  %v3237_v57 = vld [vmem:[#allocation6 + $0xb8] sm:$0xff]  ;;  %v3234_v39 = vld [vmem:[#allocation6 + $0xa0] sm:$0xff] }
 0x732   : > { %3280 = vmatprep.subr.mxu0 %v3271_v17  ;;  %3533 = vmatprep.subr.mxu1 %v3273_v25  ;;  %v3229_v4 = vld [vmem:[#allocation6 + $0x78] sm:$0xff]  ;;  %v3226_v15 = vld [vmem:[#allocation6 + $0x60] sm:$0xff]  ;;  %v3228_v17 = vld [vmem:[#allocation6 + $0x70] sm:$0xff] }
 0x733   : > { %2947 = vmatmul.mubr.f32.gmra.mxu0 %v10590_v46  ;;  %3036 = vmatmul.mubr.f32.gmra.mxu1 %v10590_v46  ;;  %v3223_v25 = vld [vmem:[#allocation6 + $0x48] sm:$0xff] }
 0x734   : > { %v7611_v11 = vpop.eup %7610  ;;  %2952 = vmatprep.mubr.f32.mxu0 %v13216_v14  ;;  %3041 = vmatprep.mubr.f32.mxu1 %v13216_v14 }
 0x735   : > { %v10596_v32 = vmul.f32 %v7611_v11, %v7609_v27  ;;  %v7613_v29 = vpop.eup %7612  ;;  %3281 = vmatpush1.msra.mxu0 %v3270_v20  ;;  %3534 = vmatpush1.msra.mxu1 %v3272_v12  ;;  %v3236_v27 = vld [vmem:[#allocation6 + $0xb0] sm:$0xff]  ;;  %v3231_v11 = vld [vmem:[#allocation6 + $0x88] sm:$0xff]  ;;  %v3222_v20 = vld [vmem:[#allocation6 + $0x40] sm:$0xff] }
 0x736   : > { %3282 = vmatprep.subr.mxu0 %v3267_v10  ;;  %3535 = vmatprep.subr.mxu1 %v3269_v18  ;;  %v3225_v12 = vld [vmem:[#allocation6 + $0x58] sm:$0xff]  ;;  %v3219_v10 = vld [vmem:[#allocation6 + $0x28] sm:$0xff]  ;;  %v3224_v18 = vld [vmem:[#allocation6 + $0x50] sm:$0xff] }
 0x737   : > { %2953 = vmatmul.mubr.f32.gmra.mxu0 %v10596_v32  ;;  %3042 = vmatmul.mubr.f32.gmra.mxu1 %v10596_v32 }
 0x738   : > { %v7615_v19 = vpop.eup %7614  ;;  %2958 = vmatprep.mubr.f32.mxu0 %v13216_v14  ;;  %3047 = vmatprep.mubr.f32.mxu1 %v13216_v14 }
 0x739   : > { %v10602_v56 = vmul.f32 %v7615_v19, %v7613_v29  ;;  %3283 = vmatpush1.msra.mxu0 %v3266_v9  ;;  %3536 = vmatpush1.msra.mxu1 %v3268_v47  ;;  %v3233_v29 = vld [vmem:[#allocation6 + $0x98] sm:$0xff]  ;;  %v3230_v19 = vld [vmem:[#allocation6 + $0x80] sm:$0xff] }
 0x73a   : > { %3284 = vmatprep.subr.mxu0 %v3263_v21  ;;  %3537 = vmatprep.subr.mxu1 %v3265_v16  ;;  %v3218_v9 = vld [vmem:[#allocation6 + $0x20] sm:$0xff]  ;;  %v3221_v47 = vld [vmem:[#allocation6 + $0x38] sm:$0xff]  ;;  %v3215_v21 = vld [vmem:[#allocation6 + $0x8] sm:$0xff] }
 0x73b   : > { %2959 = vmatmul.mubr.f32.gmra.mxu0 %v10602_v56  ;;  %3048 = vmatmul.mubr.f32.gmra.mxu1 %v10602_v56  ;;  %v3220_v16 = vld [vmem:[#allocation6 + $0x30] sm:$0xff] }
 0x73c   : > { %3342 = vmatprep.mubr.f32.mxu0 %v13216_v14  ;;  %3595 = vmatprep.mubr.f32.mxu1 %v13216_v14 }
 0x73d   : > { %3285 = vmatpush1.msra.mxu0 %v3262_v7  ;;  %3538 = vmatpush1.msra.mxu1 %v3264_v22  ;;  %v3214_v7 = vld [vmem:[#allocation6] sm:$0xff]  ;;  %v3217_v22 = vld [vmem:[#allocation6 + $0x18] sm:$0xff] }
 0x73e   : > { %3286 = vmatprep.subr.mxu0 %v3259_v24  ;;  %3539 = vmatprep.subr.mxu1 %v3261_v31  ;;  %v3216_v24 = vld [vmem:[#allocation6 + $0x10] sm:$0xff]  ;;  %v3211_v31 = vld [vmem:[#allocation4 + $0x1e8] sm:$0xff] }
 0x73f   : > { %3287 = vmatpush1.msra.mxu0 %v3258_v48  ;;  %3540 = vmatpush1.msra.mxu1 %v3260_v8  ;;  %v3213_v48 = vld [vmem:[#allocation4 + $0x1f8] sm:$0xff]  ;;  %v13592_v8 = vld [vmem:[#allocation93_spill] sm:$0xff] }
 0x740   : > { %3288 = vmatprep.subr.mxu0 %v3255_v49  ;;  %3541 = vmatprep.subr.mxu1 %v3257_v55  ;;  %v825_v49 = vadd.f32 %v13592_v8, %v9249_v5 }
 0x741   : > { %3289 = vmatpush1.msra.mxu0 %v3254_v28  ;;  %3542 = vmatpush1.msra.mxu1 %v3256_v40  ;;  %v13593_v40 = vld [vmem:[#allocation95_spill] sm:$0xff] }
 0x742   : > { %3290 = vmatprep.subr.mxu0 %v3251_v59  ;;  %3543 = vmatprep.subr.mxu1 %v3253_v52  ;;  %v827_v59 = vadd.f32 %v13593_v40, %v9603_v33 }
 0x743   : > { %3291 = vmatpush1.msra.mxu0 %v3250_v45  ;;  %3544 = vmatpush1.msra.mxu1 %v3252_v30 }
 0x744   : > { %3292 = vmatprep.subr.mxu0 %v3247_v44  ;;  %3545 = vmatprep.subr.mxu1 %v3249_v51  ;;  %v13594_v44 = vld [vmem:[#allocation97_spill] sm:$0xff] }
 0x745   : > { %3293 = vmatpush1.msra.mxu0 %v3246_v35  ;;  %3546 = vmatpush1.msra.mxu1 %v3248_v37  ;;  %v831_v51 = vadd.f32 %v13594_v44, %v9249_v5 }
 0x746   : > { %3294 = vmatprep.subr.mxu0 %v3243_v34  ;;  %3547 = vmatprep.subr.mxu1 %v3245_v36  ;;  %v13595_v36 = vld [vmem:[#allocation99_spill] sm:$0xff] }
 0x747   : > { %3295 = vmatpush1.msra.mxu0 %v3242_v61  ;;  %3548 = vmatpush1.msra.mxu1 %v3244_v2  ;;  %v833_v61 = vadd.f32 %v13595_v36, %v9603_v33 }
 0x748   : > { %3296 = vmatprep.subr.mxu0 %v3239_v23  ;;  %3549 = vmatprep.subr.mxu1 %v3241_v53 }
 0x749   : > { %3297 = vmatpush1.msra.mxu0 %v3238_v58  ;;  %3550 = vmatpush1.msra.mxu1 %v3240_v6  ;;  %v13596_v6 = vld [vmem:[#allocation101_spill] sm:$0xff] }
 0x74a   : > { %3298 = vmatprep.subr.mxu0 %v3235_v42  ;;  %3551 = vmatprep.subr.mxu1 %v3237_v57  ;;  %v837_v42 = vadd.f32 %v13596_v6, %v9249_v5  ;;  %v13605_v6 = vld [vmem:[#allocation104_spill] sm:$0xff] }
 0x74b   : > { %3299 = vmatpush1.msra.mxu0 %v3234_v39  ;;  %3552 = vmatpush1.msra.mxu1 %v3236_v27 }
 0x74c   : > { %3300 = vmatprep.subr.mxu0 %v3231_v11  ;;  %3553 = vmatprep.subr.mxu1 %v3233_v29  ;;  %v13597_v11 = vld [vmem:[#allocation103_spill] sm:$0xff] }
 0x74d   : > { %3301 = vmatpush1.msra.mxu0 %v3230_v19  ;;  %3554 = vmatpush1.msra.mxu1 %v3232_v13  ;;  %v839_v29 = vadd.f32 %v13597_v11, %v9603_v33 }
 0x74e   : > { %3302 = vmatprep.subr.mxu0 %v3227_v26  ;;  %3555 = vmatprep.subr.mxu1 %v3229_v4  ;;  %v13598_v4 = vld [vmem:[#allocation92_spill] sm:$0xff] }
 0x74f   : > { %3303 = vmatpush1.msra.mxu0 %v3226_v15  ;;  %3556 = vmatpush1.msra.mxu1 %v3228_v17  ;;  %v1082_v15 = vadd.f32 %v13598_v4, %v9256_v60 }
 0x750   : > { %3304 = vmatprep.subr.mxu0 %v3223_v25  ;;  %3557 = vmatprep.subr.mxu1 %v3225_v12  ;;  %v13599_v25 = vld [vmem:[#allocation105_spill] sm:$0xff] }
 0x751   : > { %3305 = vmatpush1.msra.mxu0 %v3222_v20  ;;  %3558 = vmatpush1.msra.mxu1 %v3224_v18  ;;  %v843_v20 = vadd.f32 %v13599_v25, %v9249_v5  ;;  %v13602_v5 = vld [vmem:[#allocation94_spill] sm:$0xff] }
 0x752   : > { %3306 = vmatprep.subr.mxu0 %v3219_v10  ;;  %3559 = vmatprep.subr.mxu1 %v3221_v47  ;;  %v13600_v47 = vld [vmem:[#allocation34_spill] sm:$0xff] }
 0x753   : > { %3307 = vmatpush1.msra.mxu0 %v3218_v9  ;;  %3560 = vmatpush1.msra.mxu1 %v3220_v16 }
 0x754   : > { %3308 = vmatprep.subr.mxu0 %v3215_v21  ;;  %3561 = vmatprep.subr.mxu1 %v3217_v22  ;;  %v845_v21 = vadd.f32 %v13600_v47, %v9603_v33 }
 0x755   : > { %3309 = vmatpush1.msra.mxu0 %v3214_v7  ;;  %3562 = vmatpush1.msra.mxu1 %v3216_v24  ;;  %v13601_v24 = vld [vmem:[#allocation96_spill] sm:$0xff] }
 0x756   : > { %3788 = vmatprep.subr.mxu0 %v3211_v31  ;;  %4041 = vmatprep.subr.mxu1 %v3213_v48  ;;  %v1088_v31 = vadd.f32 %v13601_v24, %v9256_v60 }
 0x7ef   : > { %v2942_v55 = vpop.f32.mrf.mxu0  ;;  %v3031_v28 = vpop.f32.mrf.mxu1 }
 0x7f0   : > { %v2943_v52 = vadd.f32 %v2942_v55, %v825_v49  ;;  %v3032_v18 = vadd.f32 %v3031_v28, %v1082_v15  ;;  %v1084_v55 = vadd.f32 %v13602_v5, %v13324_v0 }
 0x7f1   : > { %v2944_v45 = vpop.f32.mrf.mxu0  ;;  %v3033_v30 = vpop.f32.mrf.mxu1 }
 0x7f2   : > { %v6908_v35 = vmul.f32 -1.442695, %v2943_v52  ;;  %v2945_v37 = vadd.f32 %v2944_v45, %v827_v59  ;;  %v6910_v40 = vmul.f32 -1.442695, %v3032_v18  ;;  %v13603_v45 = vld [vmem:[#allocation100_spill] sm:$0xff] }
 0x7f3   : > { %v2948_v34 = vpop.f32.mrf.mxu0  ;;  %v3037_v53 = vpop.f32.mrf.mxu1  ;;  %v1094_v44 = vadd.f32 %v13603_v45, %v9256_v60 }
 0x7f4   : > { %7616 = vpow2.f32 %v6908_v35  ;;  %v6909_v2 = vmul.f32 -1.442695, %v2945_v37  ;;  %v2949_v23 = vadd.f32 %v2948_v34, %v831_v51  ;;  %v3038_v28 = vadd.f32 %v3037_v53, %v1088_v31  ;;  %v13604_v34 = vld [vmem:[#allocation98_spill] sm:$0xff] }
 0x7f5   : > { %v2950_v58 = vpop.f32.mrf.mxu0  ;;  %v3039_v13 = vpop.f32.mrf.mxu1  ;;  %v3034_v51 = vadd.f32 %v3033_v30, %v1084_v55  ;;  %v1090_v36 = vadd.f32 %v13604_v34, %v13324_v0 }
 0x7f6   : > { %7618 = vpow2.f32 %v6909_v2  ;;  %v6911_v57 = vmul.f32 -1.442695, %v2949_v23  ;;  %v2951_v39 = vadd.f32 %v2950_v58, %v833_v61  ;;  %v6913_v61 = vmul.f32 -1.442695, %v3038_v28 }
 0x7f7   : > { %v2954_v27 = vpop.f32.mrf.mxu0  ;;  %v3043_v16 = vpop.f32.mrf.mxu1 }
 0x7f8   : > { %7620 = vpow2.f32 %v6911_v57  ;;  %v6912_v19 = vmul.f32 -1.442695, %v2951_v39  ;;  %v2955_v26 = vadd.f32 %v2954_v27, %v837_v42  ;;  %v3044_v2 = vadd.f32 %v3043_v16, %v1094_v44  ;;  %v13606_v27 = vld [vmem:[#allocation102_spill] sm:$0xff] }
 0x7f9   : > { %v2956_v17 = vpop.f32.mrf.mxu0  ;;  %v3045_v59 = vpop.f32.mrf.mxu1  ;;  %v1100_v42 = vadd.f32 %v13605_v6, %v9256_v60  ;;  %v3040_v57 = vadd.f32 %v3039_v13, %v1090_v36  ;;  %v1096_v11 = vadd.f32 %v13606_v27, %v13324_v0  ;;  %v13607_v13 = vld [vmem:[#allocation106_spill] sm:$0xff] }
 0x7fa   : > { %7622 = vpow2.f32 %v6912_v19  ;;  %v6914_v12 = vmul.f32 -1.442695, %v2955_v26  ;;  %v2957_v10 = vadd.f32 %v2956_v17, %v839_v29  ;;  %v6916_v29 = vmul.f32 -1.442695, %v3044_v2 }
 0x7fb   : > { %v2960_v9 = vpop.f32.mrf.mxu0  ;;  %v3049_v53 = vpop.f32.mrf.mxu1  ;;  %v3046_v15 = vadd.f32 %v3045_v59, %v1096_v11  ;;  %v3210_v11 = vld [vmem:[#allocation4 + $0x1e0] sm:$0xff] }
 0x7fc   : > { %7624 = vpow2.f32 %v6914_v12  ;;  %v6915_v7 = vmul.f32 -1.442695, %v2957_v10  ;;  %v2961_v22 = vadd.f32 %v2960_v9, %v843_v20  ;;  %v3050_v19 = vadd.f32 %v3049_v53, %v1100_v42 }
 0x7fd   : > { %v2962_v48 = vpop.f32.mrf.mxu0  ;;  %v3051_v25 = vpop.f32.mrf.mxu1  ;;  %v1102_v20 = vadd.f32 %v13607_v13, %v13324_v0  ;;  %v3208_v13 = vld [vmem:[#allocation4 + $0x1d0] sm:$0xff] }
 0x7fe   : > { %7626 = vpow2.f32 %v6915_v7  ;;  %v6917_v8 = vmul.f32 -1.442695, %v2961_v22  ;;  %v2963_v49 = vadd.f32 %v2962_v48, %v845_v21  ;;  %v6919_v12 = vmul.f32 -1.442695, %v3050_v19  ;;  %v3206_v19 = vld [vmem:[#allocation4 + $0x1c0] sm:$0xff] }
 0x7ff   : > { %v3052_v9 = vadd.f32 %v3051_v25, %v1102_v20 }
 0x800   : > { %7628 = vpow2.f32 %v6917_v8  ;;  %v6918_v52 = vmul.f32 -1.442695, %v2963_v49 }
 0x801   : > { %v7617_v33 = vpop.eup %7616 }
 0x802   : > { %v3090_v35 = vadd.f32 1.0, %v7617_v33  ;;  %7630 = vpow2.f32 %v6918_v52 }
 0x803   : > { %v7619_v37 = vpop.eup %7618  ;;  %7632 = vpow2.f32 %v6910_v40 }
 0x804   : > { %7634 = vrcp.f32 %v3090_v35  ;;  %v3091_v23 = vadd.f32 1.0, %v7619_v37 }
 0x805   : > { %v7621_v58 = vpop.eup %7620  ;;  %7636 = vtanh.f32 %v3034_v51 }
 0x806   : > { %7638 = vrcp.f32 %v3091_v23  ;;  %v3093_v30 = vadd.f32 1.0, %v7621_v58 }
 0x807   : > { %v7623_v39 = vpop.eup %7622  ;;  %7640 = vpow2.f32 %v6913_v61 }
 0x808   : > { %7642 = vrcp.f32 %v3093_v30  ;;  %v3094_v26 = vadd.f32 1.0, %v7623_v39 }
 0x809   : > { %v7625_v4 = vpop.eup %7624  ;;  %7644 = vtanh.f32 %v3040_v57 }
 0x80a   : > { %7646 = vrcp.f32 %v3094_v26  ;;  %v3096_v17 = vadd.f32 1.0, %v7625_v4  ;;  %v3212_v26 = vld [vmem:[#allocation4 + $0x1f0] sm:$0xff] }
 0x80b   : > { %v7627_v60 = vpop.eup %7626  ;;  %7648 = vpow2.f32 %v6916_v29 }
 0x80c   : > { %7650 = vrcp.f32 %v3096_v17  ;;  %v3097_v10 = vadd.f32 1.0, %v7627_v60  ;;  %v3209_v17 = vld [vmem:[#allocation4 + $0x1d8] sm:$0xff]  ;;  %v3202_v60 = vld [vmem:[#allocation4 + $0x1a0] sm:$0xff] }
 0x80d   : > { %v7629_v18 = vpop.eup %7628  ;;  %7652 = vtanh.f32 %v3046_v15  ;;  %v3203_v15 = vld [vmem:[#allocation4 + $0x1a8] sm:$0xff] }
 0x80e   : > { %7654 = vrcp.f32 %v3097_v10  ;;  %v3099_v47 = vadd.f32 1.0, %v7629_v18  ;;  %v3199_v10 = vld [vmem:[#allocation4 + $0x188] sm:$0xff]  ;;  %v3205_v18 = vld [vmem:[#allocation4 + $0x1b8] sm:$0xff] }
 0x80f   : > { %v7631_v21 = vpop.eup %7630  ;;  %7656 = vpow2.f32 %v6919_v12 }
 0x810   : > { %v7633_v16 = vpop.eup %7632  ;;  %7658 = vrcp.f32 %v3099_v47  ;;  %v3100_v7 = vadd.f32 1.0, %v7631_v21  ;;  %v3198_v47 = vld [vmem:[#allocation4 + $0x180] sm:$0xff]  ;;  %v3204_v21 = vld [vmem:[#allocation4 + $0x1b0] sm:$0xff] }
 0x811   : > { %v7635_v22 = vpop.eup %7634  ;;  %7660 = vtanh.f32 %v3052_v9  ;;  %v3092_v0 = vadd.f32 1.0, %v7633_v16 }
 0x812   : > { %v7637_v24 = vpop.eup %7636  ;;  %7662 = vrcp.f32 %v3100_v7 }
 0x813   : > { %v7639_v31 = vpop.eup %7638  ;;  %v3134_v49 = vmul.f32 %v7637_v24, %v7635_v22  ;;  %7664 = vrcp.f32 %v3092_v0  ;;  %v3195_v22 = vld [vmem:[#allocation4 + $0x168] sm:$0xff]  ;;  %v3201_v24 = vld [vmem:[#allocation4 + $0x198] sm:$0xff]  ;;  %v3200_v0 = vld [vmem:[#allocation4 + $0x190] sm:$0xff] }
 0x814   : > { %v7641_v48 = vpop.eup %7640  ;;  %v3130_v8 = vmul.f32 %v7639_v31, %v10569_v54  ;;  %v3194_v31 = vld [vmem:[#allocation4 + $0x160] sm:$0xff] }
 0x815   : > { %v7643_v5 = vpop.eup %7642  ;;  %v3095_v59 = vadd.f32 1.0, %v7641_v48  ;;  %v3191_v48 = vld [vmem:[#allocation4 + $0x148] sm:$0xff] }
 0x816   : > { %v7645_v55 = vpop.eup %7644  ;;  %v3138_v40 = vadd.f32 %v3134_v49, %v3130_v8  ;;  %v3197_v8 = vld [vmem:[#allocation4 + $0x178] sm:$0xff]  ;;  %v3190_v49 = vld [vmem:[#allocation4 + $0x140] sm:$0xff] }
 0x817   : > { %v7647_v28 = vpop.eup %7646  ;;  %v3135_v45 = vmul.f32 %v7645_v55, %v7643_v5  ;;  %v3196_v5 = vld [vmem:[#allocation4 + $0x170] sm:$0xff]  ;;  %v3187_v55 = vld [vmem:[#allocation4 + $0x128] sm:$0xff] }
 0x818   : > { %v7649_v52 = vpop.eup %7648  ;;  %7666 = vtanh.f32 %v3138_v40  ;;  %v3131_v33 = vmul.f32 %v7647_v28, %v10573_v50  ;;  %v3193_v40 = vld [vmem:[#allocation4 + $0x158] sm:$0xff]  ;;  %v3186_v28 = vld [vmem:[#allocation4 + $0x120] sm:$0xff] }
 0x819   : > { %v7651_v44 = vpop.eup %7650  ;;  %7668 = vrcp.f32 %v3095_v59  ;;  %v3098_v34 = vadd.f32 1.0, %v7649_v52  ;;  %v3192_v59 = vld [vmem:[#allocation4 + $0x150] sm:$0xff]  ;;  %v3183_v52 = vld [vmem:[#allocation4 + $0x108] sm:$0xff] }
 0x81a   : > { %v7653_v51 = vpop.eup %7652  ;;  %v3139_v35 = vadd.f32 %v3135_v45, %v3131_v33  ;;  %v3189_v33 = vld [vmem:[#allocation4 + $0x138] sm:$0xff]  ;;  %v3182_v45 = vld [vmem:[#allocation4 + $0x100] sm:$0xff] }
 0x81b   : > { %v7655_v37 = vpop.eup %7654  ;;  %v3136_v61 = vmul.f32 %v7653_v51, %v7651_v44  ;;  %v3188_v44 = vld [vmem:[#allocation4 + $0x130] sm:$0xff]  ;;  %v3179_v51 = vld [vmem:[#allocation4 + $0xe8] sm:$0xff] }
 0x81c   : > { %v7657_v36 = vpop.eup %7656  ;;  %7670 = vtanh.f32 %v3139_v35  ;;  %v3132_v54 = vmul.f32 %v7655_v37, %v10577_v3  ;;  %v3207_v3 = vld [vmem:[#allocation4 + $0x1c8] sm:$0xff]  ;;  %v3185_v35 = vld [vmem:[#allocation4 + $0x118] sm:$0xff]  ;;  %v3178_v37 = vld [vmem:[#allocation4 + $0xe0] sm:$0xff] }
 0x81d   : > { %v7659_v2 = vpop.eup %7658  ;;  %7672 = vrcp.f32 %v3098_v34  ;;  %v3101_v6 = vadd.f32 1.0, %v7657_v36  ;;  %v3184_v34 = vld [vmem:[#allocation4 + $0x110] sm:$0xff]  ;;  %v3175_v36 = vld [vmem:[#allocation4 + $0xc8] sm:$0xff] }
 0x81e   : > { %v7661_v23 = vpop.eup %7660  ;;  %v3140_v53 = vadd.f32 %v3136_v61, %v3132_v54  ;;  %v3181_v54 = vld [vmem:[#allocation4 + $0xf8] sm:$0xff]  ;;  %v3174_v61 = vld [vmem:[#allocation4 + $0xc0] sm:$0xff] }
 0x81f   : > { %v7663_v58 = vpop.eup %7662  ;;  %v3137_v42 = vmul.f32 %v7661_v23, %v7659_v2  ;;  %v3180_v2 = vld [vmem:[#allocation4 + $0xf0] sm:$0xff]  ;;  %v3171_v23 = vld [vmem:[#allocation4 + $0xa8] sm:$0xff] }
 0x820   : > { %7674 = vtanh.f32 %v3140_v53  ;;  %v3133_v50 = vmul.f32 %v7663_v58, %v10581_v62  ;;  %v7665_v30 = vpop.eup %7664  ;;  %v3177_v53 = vld [vmem:[#allocation4 + $0xd8] sm:$0xff]  ;;  %v3170_v58 = vld [vmem:[#allocation4 + $0xa0] sm:$0xff] }
 0x821   : > { %7676 = vrcp.f32 %v3101_v6  ;;  %v3176_v6 = vld [vmem:[#allocation4 + $0xd0] sm:$0xff] }
 0x822   : > { %v3141_v57 = vadd.f32 %v3137_v42, %v3133_v50  ;;  %v3167_v50 = vld [vmem:[#allocation4 + $0x88] sm:$0xff]  ;;  %v3173_v42 = vld [vmem:[#allocation4 + $0xb8] sm:$0xff] }
 0x824   : > { %7678 = vtanh.f32 %v3141_v57  ;;  %v3166_v57 = vld [vmem:[#allocation4 + $0x80] sm:$0xff] }
 0x825   : > { %v7667_v39 = vpop.eup %7666 }
 0x826   : > { %v10644_v27 = vmul.f32 %v7667_v39, %v7665_v30  ;;  %v7669_v29 = vpop.eup %7668  ;;  %v3172_v30 = vld [vmem:[#allocation4 + $0xb0] sm:$0xff]  ;;  %v3163_v39 = vld [vmem:[#allocation4 + $0x68] sm:$0xff] }
 0x828   : > { %3343 = vmatmul.mubr.f32.vlgmr.msra.gmra.mxu0 %v10644_v27  ;;  %3596 = vmatmul.mubr.f32.vlgmr.msra.gmra.mxu1 %v10644_v27 }
 0x829   : > { %v7671_v4 = vpop.eup %7670  ;;  %3789 = vmatpush1.msra.mxu0 %v3210_v11  ;;  %3347 = vmatprep.mubr.f32.mxu0 %v13216_v14  ;;  %v3169_v11 = vld [vmem:[#allocation4 + $0x98] sm:$0xff] }
 0x82a   : > { %3601 = vmatprep.mubr.f32.mxu1 %v13216_v14  ;;  %v10650_v62 = vmul.f32 %v7671_v4, %v7669_v29  ;;  %3790 = vmatprep.subr.mxu0 %v3207_v3  ;;  %v7673_v25 = vpop.eup %7672  ;;  %v3162_v3 = vld [vmem:[#allocation4 + $0x60] sm:$0xff]  ;;  %v3168_v29 = vld [vmem:[#allocation4 + $0x90] sm:$0xff] }
 0x82b   : > { %3791 = vmatpush1.msra.mxu0 %v3206_v19  ;;  %4042 = vmatpush1.msra.mxu1 %v3212_v26  ;;  %v3159_v19 = vld [vmem:[#allocation4 + $0x48] sm:$0xff]  ;;  %v3165_v26 = vld [vmem:[#allocation4 + $0x78] sm:$0xff]  ;;  %v13608_v4 = vld [vmem:[#allocation44_spill] sm:$0xff] }
 0x82c   : > { %3348 = vmatmul.mubr.f32.gmra.mxu0 %v10650_v62  ;;  %3602 = vmatmul.mubr.f32.gmra.mxu1 %v10650_v62 }
 0x82d   : > { %v7675_v20 = vpop.eup %7674  ;;  %3352 = vmatprep.mubr.f32.mxu0 %v13216_v14  ;;  %3607 = vmatprep.mubr.f32.mxu1 %v13216_v14 }
 0x82e   : > { %v10656_v12 = vmul.f32 %v7675_v20, %v7673_v25  ;;  %3792 = vmatprep.subr.mxu0 %v3203_v15  ;;  %4043 = vmatprep.subr.mxu1 %v3209_v17  ;;  %v7677_v9 = vpop.eup %7676  ;;  %v3158_v15 = vld [vmem:[#allocation4 + $0x40] sm:$0xff]  ;;  %v3164_v17 = vld [vmem:[#allocation4 + $0x70] sm:$0xff]  ;;  %v3155_v25 = vld [vmem:[#allocation4 + $0x28] sm:$0xff] }
 0x82f   : > { %3793 = vmatpush1.msra.mxu0 %v3202_v60  ;;  %4044 = vmatpush1.msra.mxu1 %v3208_v13  ;;  %v3161_v60 = vld [vmem:[#allocation4 + $0x58] sm:$0xff]  ;;  %v3154_v20 = vld [vmem:[#allocation4 + $0x20] sm:$0xff] }
 0x830   : > { %3353 = vmatmul.mubr.f32.gmra.mxu0 %v10656_v12  ;;  %3608 = vmatmul.mubr.f32.gmra.mxu1 %v10656_v12  ;;  %v13609_v13 = vld [vmem:[#allocation107_spill] sm:$0xff] }
 0x831   : > { %v7679_v16 = vpop.eup %7678  ;;  %3357 = vmatprep.mubr.f32.mxu0 %v13216_v14  ;;  %3613 = vmatprep.mubr.f32.mxu1 %v13216_v14 }
 0x832   : > { %v10662_v7 = vmul.f32 %v7679_v16, %v7677_v9  ;;  %3794 = vmatprep.subr.mxu0 %v3199_v10  ;;  %4045 = vmatprep.subr.mxu1 %v3205_v18  ;;  %v3160_v10 = vld [vmem:[#allocation4 + $0x50] sm:$0xff]  ;;  %v3151_v18 = vld [vmem:[#allocation4 + $0x8] sm:$0xff]  ;;  %v3157_v9 = vld [vmem:[#allocation4 + $0x38] sm:$0xff] }
 0x833   : > { %3795 = vmatpush1.msra.mxu0 %v3198_v47  ;;  %4046 = vmatpush1.msra.mxu1 %v3204_v21  ;;  %v13610_v47 = vld [vmem:[#allocation17_spill] sm:$0xff]  ;;  %v3150_v21 = vld [vmem:[#allocation4] sm:$0xff]  ;;  %v3156_v16 = vld [vmem:[#allocation4 + $0x30] sm:$0xff] }
 0x834   : > { %3358 = vmatmul.mubr.f32.gmra.mxu0 %v10662_v7  ;;  %3614 = vmatmul.mubr.f32.gmra.mxu1 %v10662_v7 }
 0x835   : > { %3362 = vmatprep.mubr.f32.mxu0 %v13216_v14  ;;  %3619 = vmatprep.mubr.f32.mxu1 %v13216_v14 }
 0x836   : > { %3796 = vmatprep.subr.mxu0 %v3195_v22  ;;  %4047 = vmatprep.subr.mxu1 %v3201_v24  ;;  %v3153_v22 = vld [vmem:[#allocation4 + $0x18] sm:$0xff]  ;;  %v13611_v24 = vld [vmem:[#allocation18_spill] sm:$0xff] }
 0x837   : > { %3797 = vmatpush1.msra.mxu0 %v3194_v31  ;;  %4048 = vmatpush1.msra.mxu1 %v3200_v0  ;;  %v3152_v31 = vld [vmem:[#allocation4 + $0x10] sm:$0xff] }
 0x838   : > { %3363 = vmatmul.mubr.f32.gmra.mxu0 %v10584_v38  ;;  %3620 = vmatmul.mubr.f32.gmra.mxu1 %v10584_v38  ;;  %v13612_v0 = vld [vmem:[#allocation42_spill] sm:$0xff] }
 0x839   : > { %3368 = vmatprep.mubr.f32.mxu0 %v13216_v14  ;;  %3625 = vmatprep.mubr.f32.mxu1 %v13216_v14 }
 0x83a   : > { %3798 = vmatprep.subr.mxu0 %v3191_v48  ;;  %4049 = vmatprep.subr.mxu1 %v3197_v8  ;;  %v13613_v48 = vld [vmem:[#allocation39_spill] sm:$0xff]  ;;  %v13614_v8 = vld [vmem:[#allocation41_spill] sm:$0xff] }
 0x83b   : > { %3799 = vmatpush1.msra.mxu0 %v3190_v49  ;;  %4050 = vmatpush1.msra.mxu1 %v3196_v5  ;;  %v13615_v49 = vld [vmem:[#allocation43_spill] sm:$0xff]  ;;  %v13616_v5 = vld [vmem:[#allocation141_spill] sm:$0xff] }
 0x83c   : > { %3369 = vmatmul.mubr.f32.gmra.mxu0 %v10590_v46  ;;  %3626 = vmatmul.mubr.f32.gmra.mxu1 %v10590_v46 }
 0x83d   : > { %3374 = vmatprep.mubr.f32.mxu0 %v13216_v14  ;;  %3631 = vmatprep.mubr.f32.mxu1 %v13216_v14 }
 0x83e   : > { %3800 = vmatprep.subr.mxu0 %v3187_v55  ;;  %4051 = vmatprep.subr.mxu1 %v3193_v40  ;;  %v13617_v55 = vld [vmem:[#allocation142_spill] sm:$0xff]  ;;  %v13618_v40 = vld [vmem:[#allocation143_spill] sm:$0xff] }
 0x83f   : > { %3801 = vmatpush1.msra.mxu0 %v3186_v28  ;;  %4052 = vmatpush1.msra.mxu1 %v3192_v59  ;;  %v13619_v28 = vld [vmem:[#allocation144_spill] sm:$0xff]  ;;  %v13620_v59 = vld [vmem:[#allocation37_spill] sm:$0xff] }
 0x840   : > { %3375 = vmatmul.mubr.f32.gmra.mxu0 %v10596_v32  ;;  %3632 = vmatmul.mubr.f32.gmra.mxu1 %v10596_v32 }
 0x841   : > { %3380 = vmatprep.mubr.f32.mxu0 %v13216_v14  ;;  %3637 = vmatprep.mubr.f32.mxu1 %v13216_v14 }
 0x842   : > { %3802 = vmatprep.subr.mxu0 %v3183_v52  ;;  %4053 = vmatprep.subr.mxu1 %v3189_v33  ;;  %v13621_v52 = vld [vmem:[#allocation35_spill] sm:$0xff]  ;;  %v13622_v33 = vld [vmem:[#allocation36_spill] sm:$0xff] }
 0x843   : > { %3803 = vmatpush1.msra.mxu0 %v3182_v45  ;;  %4054 = vmatpush1.msra.mxu1 %v3188_v44  ;;  %v13623_v45 = vld [vmem:[#allocation40_spill] sm:$0xff]  ;;  %v13624_v44 = vld [vmem:[#allocation45_spill] sm:$0xff] }
 0x844   : > { %3381 = vmatmul.mubr.f32.gmra.mxu0 %v10602_v56  ;;  %3638 = vmatmul.mubr.f32.gmra.mxu1 %v10602_v56 }
 0x845   : > { %3386 = vmatprep.mubr.f32.mxu0 %v13216_v14  ;;  %3643 = vmatprep.mubr.f32.mxu1 %v13216_v14 }
 0x846   : > { %3804 = vmatprep.subr.mxu0 %v3179_v51  ;;  %4055 = vmatprep.subr.mxu1 %v3185_v35  ;;  %v13625_v51 = vld [vmem:[#allocation46_spill] sm:$0xff]  ;;  %v10772_v35 = vld [vmem:[#allocation7 + $0x1e8] sm:$0xff] }
 0x847   : > { %3805 = vmatpush1.msra.mxu0 %v3178_v37  ;;  %4056 = vmatpush1.msra.mxu1 %v3184_v34  ;;  %v13626_v37 = vld [vmem:[#allocation47_spill] sm:$0xff]  ;;  %v13627_v34 = vld [vmem:[#allocation48_spill] sm:$0xff] }
 0x848   : > { %3387 = vmatmul.mubr.f32.gmra.mxu0 %v10450_v63  ;;  %3644 = vmatmul.mubr.f32.gmra.mxu1 %v10450_v63 }
 0x849   : > { %3392 = vmatprep.mubr.f32.mxu0 %v13216_v14  ;;  %3649 = vmatprep.mubr.f32.mxu1 %v13216_v14 }
 0x84a   : > { %3806 = vmatprep.subr.mxu0 %v3175_v36  ;;  %4057 = vmatprep.subr.mxu1 %v3181_v54  ;;  %v4504_v36 = vld [vmem:[#allocation7 + $0x1e0] sm:$0xff]  ;;  %v4501_v54 = vld [vmem:[#allocation7 + $0x1c8] sm:$0xff] }
 0x84b   : > { %3807 = vmatpush1.msra.mxu0 %v3174_v61  ;;  %4058 = vmatpush1.msra.mxu1 %v3180_v2  ;;  %v4500_v61 = vld [vmem:[#allocation7 + $0x1c0] sm:$0xff]  ;;  %v4497_v2 = vld [vmem:[#allocation7 + $0x1a8] sm:$0xff] }
 0x84c   : > { %3393 = vmatmul.mubr.f32.gmra.mxu0 %v10456_v43  ;;  %3650 = vmatmul.mubr.f32.gmra.mxu1 %v10456_v43 }
 0x84d   : > { %3398 = vmatprep.mubr.f32.mxu0 %v13216_v14  ;;  %3655 = vmatprep.mubr.f32.mxu1 %v13216_v14 }
 0x84e   : > { %3808 = vmatprep.subr.mxu0 %v3171_v23  ;;  %4059 = vmatprep.subr.mxu1 %v3177_v53  ;;  %v4496_v23 = vld [vmem:[#allocation7 + $0x1a0] sm:$0xff]  ;;  %v10793_v53 = vld [vmem:[#allocation7 + $0x1f8] sm:$0xff] }
 0x84f   : > { %3809 = vmatpush1.msra.mxu0 %v3170_v58  ;;  %4060 = vmatpush1.msra.mxu1 %v3176_v6  ;;  %v10795_v58 = vld [vmem:[#allocation7 + $0x1f0] sm:$0xff]  ;;  %v4493_v6 = vld [vmem:[#allocation7 + $0x188] sm:$0xff] }
 0x850   : > { %3399 = vmatmul.mubr.f32.gmra.mxu0 %v10466_v41  ;;  %3656 = vmatmul.mubr.f32.gmra.mxu1 %v10466_v41 }
 0x851   : > { %3404 = vmatprep.mubr.f32.mxu0 %v13216_v14  ;;  %3661 = vmatprep.mubr.f32.mxu1 %v13216_v14 }
 0x852   : > { %3810 = vmatprep.subr.mxu0 %v3167_v50  ;;  %4061 = vmatprep.subr.mxu1 %v3173_v42  ;;  %v4492_v50 = vld [vmem:[#allocation7 + $0x180] sm:$0xff]  ;;  %v10807_v42 = vld [vmem:[#allocation7 + $0x1d8] sm:$0xff] }
 0x853   : > { %3811 = vmatpush1.msra.mxu0 %v3166_v57  ;;  %4062 = vmatpush1.msra.mxu1 %v3172_v30  ;;  %v10809_v57 = vld [vmem:[#allocation7 + $0x1d0] sm:$0xff]  ;;  %v10819_v30 = vld [vmem:[#allocation7 + $0x168] sm:$0xff] }
 0x854   : > { %3405 = vmatmul.mubr.f32.gmra.mxu0 %v10476_v1  ;;  %3662 = vmatmul.mubr.f32.gmra.mxu1 %v10476_v1 }
 0x855   : > { %3410 = vmatprep.mubr.f32.mxu0 %v13216_v14  ;;  %3667 = vmatprep.mubr.f32.mxu1 %v13216_v14 }
 0x856   : > { %3812 = vmatprep.subr.mxu0 %v3163_v39  ;;  %4063 = vmatprep.subr.mxu1 %v3169_v11  ;;  %v10822_v39 = vld [vmem:[#allocation7 + $0x160] sm:$0xff]  ;;  %v10826_v11 = vld [vmem:[#allocation7 + $0x1b8] sm:$0xff] }
 0x857   : > { %3813 = vmatpush1.msra.mxu0 %v3162_v3  ;;  %4064 = vmatpush1.msra.mxu1 %v3168_v29  ;;  %v10828_v3 = vld [vmem:[#allocation7 + $0x1b0] sm:$0xff]  ;;  %v10839_v29 = vld [vmem:[#allocation7 + $0x148] sm:$0xff] }
 0x858   : > { %3411 = vmatmul.mubr.f32.gmra.mxu0 %v13608_v4  ;;  %3668 = vmatmul.mubr.f32.gmra.mxu1 %v13608_v4 }
 0x859   : > { %3416 = vmatprep.mubr.f32.mxu0 %v13216_v14  ;;  %3673 = vmatprep.mubr.f32.mxu1 %v13216_v14 }
 0x85a   : > { %3814 = vmatprep.subr.mxu0 %v3159_v19  ;;  %4065 = vmatprep.subr.mxu1 %v3165_v26  ;;  %v10842_v19 = vld [vmem:[#allocation7 + $0x140] sm:$0xff]  ;;  %v10846_v26 = vld [vmem:[#allocation7 + $0x198] sm:$0xff] }
 0x85b   : > { %3815 = vmatpush1.msra.mxu0 %v3158_v15  ;;  %4066 = vmatpush1.msra.mxu1 %v3164_v17  ;;  %v10848_v15 = vld [vmem:[#allocation7 + $0x190] sm:$0xff]  ;;  %v10859_v17 = vld [vmem:[#allocation7 + $0x128] sm:$0xff] }
 0x85c   : > { %3417 = vmatmul.mubr.f32.gmra.mxu0 %v13609_v13  ;;  %3674 = vmatmul.mubr.f32.gmra.mxu1 %v13609_v13 }
 0x85d   : > { %3422 = vmatprep.mubr.f32.mxu0 %v13216_v14  ;;  %3679 = vmatprep.mubr.f32.mxu1 %v13216_v14 }
 0x85e   : > { %3816 = vmatprep.subr.mxu0 %v3155_v25  ;;  %4067 = vmatprep.subr.mxu1 %v3161_v60  ;;  %v10862_v25 = vld [vmem:[#allocation7 + $0x120] sm:$0xff]  ;;  %v10866_v60 = vld [vmem:[#allocation7 + $0x178] sm:$0xff] }
 0x85f   : > { %3817 = vmatpush1.msra.mxu0 %v3154_v20  ;;  %4068 = vmatpush1.msra.mxu1 %v3160_v10  ;;  %v10868_v20 = vld [vmem:[#allocation7 + $0x170] sm:$0xff]  ;;  %v10879_v10 = vld [vmem:[#allocation7 + $0x108] sm:$0xff] }
 0x860   : > { %3423 = vmatmul.mubr.f32.gmra.mxu0 %v13610_v47  ;;  %3680 = vmatmul.mubr.f32.gmra.mxu1 %v13610_v47 }
 0x861   : > { %3428 = vmatprep.mubr.f32.mxu0 %v13216_v14  ;;  %3685 = vmatprep.mubr.f32.mxu1 %v13216_v14 }
 0x862   : > { %3818 = vmatprep.subr.mxu0 %v3151_v18  ;;  %4069 = vmatprep.subr.mxu1 %v3157_v9  ;;  %v10882_v18 = vld [vmem:[#allocation7 + $0x100] sm:$0xff]  ;;  %v10886_v9 = vld [vmem:[#allocation7 + $0x158] sm:$0xff] }
 0x863   : > { %3819 = vmatpush1.msra.mxu0 %v3150_v21  ;;  %4070 = vmatpush1.msra.mxu1 %v3156_v16  ;;  %v10888_v21 = vld [vmem:[#allocation7 + $0x150] sm:$0xff]  ;;  %v10899_v16 = vld [vmem:[#allocation7 + $0xe8] sm:$0xff] }
 0x864   : > { %3429 = vmatmul.mubr.f32.gmra.mxu0 %v13611_v24  ;;  %3686 = vmatmul.mubr.f32.gmra.mxu1 %v13611_v24 }
 0x865   : > { %3434 = vmatprep.mubr.f32.mxu0 %v13216_v14  ;;  %3691 = vmatprep.mubr.f32.mxu1 %v13216_v14 }
 0x866   : > { %4071 = vmatprep.subr.mxu1 %v3153_v22  ;;  %4572 = vmatprep.subr.mxu0 %v10772_v35  ;;  %v10902_v22 = vld [vmem:[#allocation7 + $0xe0] sm:$0xff] }
 0x867   : > { %4072 = vmatpush1.msra.mxu1 %v3152_v31  ;;  %v10906_v31 = vld [vmem:[#allocation7 + $0x138] sm:$0xff] }
 0x868   : > { %3435 = vmatmul.mubr.f32.gmra.mxu0 %v13612_v0  ;;  %3692 = vmatmul.mubr.f32.gmra.mxu1 %v13612_v0 }
 0x869   : > { %3440 = vmatprep.mubr.f32.mxu0 %v13216_v14  ;;  %3697 = vmatprep.mubr.f32.mxu1 %v13216_v14 }
 0x86a   : > { %4661 = vmatprep.subr.mxu1 %v10793_v53 }
 0x86c   : > { %3441 = vmatmul.mubr.f32.gmra.mxu0 %v13613_v48  ;;  %3698 = vmatmul.mubr.f32.gmra.mxu1 %v13613_v48 }
 0x86d   : > { %3446 = vmatprep.mubr.f32.mxu0 %v13216_v14  ;;  %3703 = vmatprep.mubr.f32.mxu1 %v13216_v14 }
 0x870   : > { %3447 = vmatmul.mubr.f32.gmra.mxu0 %v13614_v8  ;;  %3704 = vmatmul.mubr.f32.gmra.mxu1 %v13614_v8 }
 0x871   : > { %3452 = vmatprep.mubr.f32.mxu0 %v13216_v14  ;;  %3709 = vmatprep.mubr.f32.mxu1 %v13216_v14 }
 0x874   : > { %3453 = vmatmul.mubr.f32.gmra.mxu0 %v13615_v49  ;;  %3710 = vmatmul.mubr.f32.gmra.mxu1 %v13615_v49 }
 0x875   : > { %3458 = vmatprep.mubr.f32.mxu0 %v13216_v14  ;;  %3715 = vmatprep.mubr.f32.mxu1 %v13216_v14 }
 0x878   : > { %3459 = vmatmul.mubr.f32.gmra.mxu0 %v13616_v5  ;;  %3716 = vmatmul.mubr.f32.gmra.mxu1 %v13616_v5 }
 0x879   : > { %3464 = vmatprep.mubr.f32.mxu0 %v13216_v14  ;;  %3721 = vmatprep.mubr.f32.mxu1 %v13216_v14 }
 0x87c   : > { %3465 = vmatmul.mubr.f32.gmra.mxu0 %v13617_v55  ;;  %3722 = vmatmul.mubr.f32.gmra.mxu1 %v13617_v55 }
 0x87d   : > { %3470 = vmatprep.mubr.f32.mxu0 %v13216_v14  ;;  %3727 = vmatprep.mubr.f32.mxu1 %v13216_v14 }
 0x880   : > { %3471 = vmatmul.mubr.f32.gmra.mxu0 %v13618_v40  ;;  %3728 = vmatmul.mubr.f32.gmra.mxu1 %v13618_v40 }
 0x881   : > { %3476 = vmatprep.mubr.f32.mxu0 %v13216_v14  ;;  %3733 = vmatprep.mubr.f32.mxu1 %v13216_v14 }
 0x884   : > { %3477 = vmatmul.mubr.f32.gmra.mxu0 %v13619_v28  ;;  %3734 = vmatmul.mubr.f32.gmra.mxu1 %v13619_v28 }
 0x885   : > { %3482 = vmatprep.mubr.f32.mxu0 %v13216_v14  ;;  %3739 = vmatprep.mubr.f32.mxu1 %v13216_v14 }
 0x888   : > { %3483 = vmatmul.mubr.f32.gmra.mxu0 %v13620_v59  ;;  %3740 = vmatmul.mubr.f32.gmra.mxu1 %v13620_v59 }
 0x889   : > { %3488 = vmatprep.mubr.f32.mxu0 %v13216_v14  ;;  %3745 = vmatprep.mubr.f32.mxu1 %v13216_v14 }
 0x88c   : > { %3489 = vmatmul.mubr.f32.gmra.mxu0 %v13621_v52  ;;  %3746 = vmatmul.mubr.f32.gmra.mxu1 %v13621_v52 }
 0x88d   : > { %3494 = vmatprep.mubr.f32.mxu0 %v13216_v14  ;;  %3751 = vmatprep.mubr.f32.mxu1 %v13216_v14 }
 0x890   : > { %3495 = vmatmul.mubr.f32.gmra.mxu0 %v13622_v33  ;;  %3752 = vmatmul.mubr.f32.gmra.mxu1 %v13622_v33 }
 0x891   : > { %3500 = vmatprep.mubr.f32.mxu0 %v13216_v14  ;;  %3757 = vmatprep.mubr.f32.mxu1 %v13216_v14 }
 0x894   : > { %3501 = vmatmul.mubr.f32.gmra.mxu0 %v13623_v45  ;;  %3758 = vmatmul.mubr.f32.gmra.mxu1 %v13623_v45 }
 0x895   : > { %3506 = vmatprep.mubr.f32.mxu0 %v13216_v14  ;;  %3763 = vmatprep.mubr.f32.mxu1 %v13216_v14 }
 0x898   : > { %3507 = vmatmul.mubr.f32.gmra.mxu0 %v13624_v44  ;;  %3764 = vmatmul.mubr.f32.gmra.mxu1 %v13624_v44 }
 0x899   : > { %3512 = vmatprep.mubr.f32.mxu0 %v13216_v14  ;;  %3769 = vmatprep.mubr.f32.mxu1 %v13216_v14 }
 0x89c   : > { %3513 = vmatmul.mubr.f32.gmra.mxu0 %v13625_v51  ;;  %3770 = vmatmul.mubr.f32.gmra.mxu1 %v13625_v51 }
 0x89d   : > { %3518 = vmatprep.mubr.f32.mxu0 %v13216_v14  ;;  %3775 = vmatprep.mubr.f32.mxu1 %v13216_v14 }
 0x8a0   : > { %3519 = vmatmul.mubr.f32.gmra.mxu0 %v13626_v37  ;;  %3776 = vmatmul.mubr.f32.gmra.mxu1 %v13626_v37 }
 0x8a1   : > { %3524 = vmatprep.mubr.f32.mxu0 %v13216_v14  ;;  %3781 = vmatprep.mubr.f32.mxu1 %v13216_v14 }
 0x8a4   : > { %3525 = vmatmul.mubr.f32.gmra.mxu0 %v13627_v34  ;;  %3782 = vmatmul.mubr.f32.gmra.mxu1 %v13627_v34 }
 0x8a5   : > { %3852 = vmatprep.mubr.f32.mxu0 %v13216_v14  ;;  %4105 = vmatprep.mubr.f32.mxu1 %v13216_v14 }
 0x8a8   : > { %3853 = vmatmul.mubr.f32.vlgmr.msra.gmra.mxu0 %v13624_v44  ;;  %4106 = vmatmul.mubr.f32.vlgmr.msra.gmra.mxu1 %v13624_v44 }
 0x8a9   : > { %3857 = vmatprep.mubr.f32.mxu0 %v13216_v14  ;;  %4111 = vmatprep.mubr.f32.mxu1 %v13216_v14 }
 0x8aa   : > { %4573 = vmatpush1.msra.mxu0 %v4504_v36  ;;  %4662 = vmatpush1.msra.mxu1 %v10795_v58 }
 0x8ab   : > { %4574 = vmatprep.subr.mxu0 %v4501_v54  ;;  %4663 = vmatprep.subr.mxu1 %v10807_v42 }
 0x8ac   : > { %3858 = vmatmul.mubr.f32.gmra.mxu0 %v13625_v51  ;;  %4112 = vmatmul.mubr.f32.gmra.mxu1 %v13625_v51 }
 0x8ad   : > { %3862 = vmatprep.mubr.f32.mxu0 %v13216_v14  ;;  %4117 = vmatprep.mubr.f32.mxu1 %v13216_v14 }
 0x8ae   : > { %4575 = vmatpush1.msra.mxu0 %v4500_v61  ;;  %4664 = vmatpush1.msra.mxu1 %v10809_v57 }
 0x8af   : > { %4576 = vmatprep.subr.mxu0 %v4497_v2  ;;  %4665 = vmatprep.subr.mxu1 %v10826_v11 }
 0x8b0   : > { %3863 = vmatmul.mubr.f32.gmra.mxu0 %v13626_v37  ;;  %4118 = vmatmul.mubr.f32.gmra.mxu1 %v13626_v37 }
 0x8b1   : > { %3867 = vmatprep.mubr.f32.mxu0 %v13216_v14  ;;  %4123 = vmatprep.mubr.f32.mxu1 %v13216_v14 }
 0x8b2   : > { %4577 = vmatpush1.msra.mxu0 %v4496_v23  ;;  %4666 = vmatpush1.msra.mxu1 %v10828_v3 }
 0x8b3   : > { %4578 = vmatprep.subr.mxu0 %v4493_v6  ;;  %4667 = vmatprep.subr.mxu1 %v10846_v26 }
 0x8b4   : > { %3868 = vmatmul.mubr.f32.gmra.mxu0 %v13627_v34  ;;  %4124 = vmatmul.mubr.f32.gmra.mxu1 %v13627_v34 }
 0x8b5   : > { %3872 = vmatprep.mubr.f32.mxu0 %v13216_v14  ;;  %4129 = vmatprep.mubr.f32.mxu1 %v13216_v14 }
 0x8b6   : > { %4579 = vmatpush1.msra.mxu0 %v4492_v50  ;;  %4668 = vmatpush1.msra.mxu1 %v10848_v15 }
 0x8b7   : > { %4580 = vmatprep.subr.mxu0 %v10819_v30  ;;  %4669 = vmatprep.subr.mxu1 %v10866_v60 }
 0x8b8   : > { %3873 = vmatmul.mubr.f32.gmra.mxu0 %v13620_v59  ;;  %4130 = vmatmul.mubr.f32.gmra.mxu1 %v13620_v59 }
 0x8b9   : > { %3878 = vmatprep.mubr.f32.mxu0 %v13216_v14  ;;  %4135 = vmatprep.mubr.f32.mxu1 %v13216_v14 }
 0x8ba   : > { %4581 = vmatpush1.msra.mxu0 %v10822_v39  ;;  %4670 = vmatpush1.msra.mxu1 %v10868_v20 }
 0x8bb   : > { %4582 = vmatprep.subr.mxu0 %v10839_v29  ;;  %4671 = vmatprep.subr.mxu1 %v10886_v9 }
 0x8bc   : > { %3879 = vmatmul.mubr.f32.gmra.mxu0 %v13621_v52  ;;  %4136 = vmatmul.mubr.f32.gmra.mxu1 %v13621_v52 }
 0x8bd   : > { %3884 = vmatprep.mubr.f32.mxu0 %v13216_v14  ;;  %4141 = vmatprep.mubr.f32.mxu1 %v13216_v14 }
 0x8be   : > { %4583 = vmatpush1.msra.mxu0 %v10842_v19  ;;  %4672 = vmatpush1.msra.mxu1 %v10888_v21 }
 0x8bf   : > { %4584 = vmatprep.subr.mxu0 %v10859_v17  ;;  %4673 = vmatprep.subr.mxu1 %v10906_v31 }
 0x8c0   : > { %3885 = vmatmul.mubr.f32.gmra.mxu0 %v13622_v33  ;;  %4142 = vmatmul.mubr.f32.gmra.mxu1 %v13622_v33 }
 0x8c1   : > { %3890 = vmatprep.mubr.f32.mxu0 %v13216_v14  ;;  %4147 = vmatprep.mubr.f32.mxu1 %v13216_v14 }
 0x8c2   : > { %4585 = vmatpush1.msra.mxu0 %v10862_v25 }
 0x8c3   : > { %4586 = vmatprep.subr.mxu0 %v10879_v10 }
 0x8c4   : > { %3891 = vmatmul.mubr.f32.gmra.mxu0 %v13623_v45  ;;  %4148 = vmatmul.mubr.f32.gmra.mxu1 %v13623_v45 }
 0x8c5   : > { %3896 = vmatprep.mubr.f32.mxu0 %v13216_v14  ;;  %4153 = vmatprep.mubr.f32.mxu1 %v13216_v14 }
 0x8c6   : > { %4587 = vmatpush1.msra.mxu0 %v10882_v18 }
 0x8c7   : > { %4588 = vmatprep.subr.mxu0 %v10899_v16 }
 0x8c8   : > { %3897 = vmatmul.mubr.f32.gmra.mxu0 %v13616_v5  ;;  %4154 = vmatmul.mubr.f32.gmra.mxu1 %v13616_v5 }
 0x8c9   : > { %3902 = vmatprep.mubr.f32.mxu0 %v13216_v14  ;;  %4159 = vmatprep.mubr.f32.mxu1 %v13216_v14 }
 0x8ca   : > { %4589 = vmatpush1.msra.mxu0 %v10902_v22 }
 0x8cc   : > { %3903 = vmatmul.mubr.f32.gmra.mxu0 %v13617_v55  ;;  %4160 = vmatmul.mubr.f32.gmra.mxu1 %v13617_v55 }
 0x8cd   : > { %3908 = vmatprep.mubr.f32.mxu0 %v13216_v14  ;;  %4165 = vmatprep.mubr.f32.mxu1 %v13216_v14 }
 0x8d0   : > { %3909 = vmatmul.mubr.f32.gmra.mxu0 %v13618_v40  ;;  %4166 = vmatmul.mubr.f32.gmra.mxu1 %v13618_v40 }
 0x8d1   : > { %3914 = vmatprep.mubr.f32.mxu0 %v13216_v14  ;;  %4171 = vmatprep.mubr.f32.mxu1 %v13216_v14 }
 0x8d4   : > { %3915 = vmatmul.mubr.f32.gmra.mxu0 %v13619_v28  ;;  %4172 = vmatmul.mubr.f32.gmra.mxu1 %v13619_v28 }
 0x8d5   : > { %3920 = vmatprep.mubr.f32.mxu0 %v13216_v14  ;;  %4177 = vmatprep.mubr.f32.mxu1 %v13216_v14 }
 0x8d8   : > { %3921 = vmatmul.mubr.f32.gmra.mxu0 %v13612_v0  ;;  %4178 = vmatmul.mubr.f32.gmra.mxu1 %v13612_v0  ;;  %v10908_v0 = vld [vmem:[#allocation7 + $0x130] sm:$0xff] }
 0x8d9   : > { %3926 = vmatprep.mubr.f32.mxu0 %v13216_v14  ;;  %4183 = vmatprep.mubr.f32.mxu1 %v13216_v14 }
 0x8da   : > { %4674 = vmatpush1.msra.mxu1 %v10908_v0 }
 0x8dc   : > { %3927 = vmatmul.mubr.f32.gmra.mxu0 %v13613_v48  ;;  %4184 = vmatmul.mubr.f32.gmra.mxu1 %v13613_v48  ;;  %v10919_v48 = vld [vmem:[#allocation7 + $0xc8] sm:$0xff] }
 0x8dd   : > { %3932 = vmatprep.mubr.f32.mxu0 %v13216_v14  ;;  %4189 = vmatprep.mubr.f32.mxu1 %v13216_v14 }
 0x8de   : > { %4590 = vmatprep.subr.mxu0 %v10919_v48 }
 0x8e0   : > { %3933 = vmatmul.mubr.f32.gmra.mxu0 %v13614_v8  ;;  %4190 = vmatmul.mubr.f32.gmra.mxu1 %v13614_v8  ;;  %v10922_v8 = vld [vmem:[#allocation7 + $0xc0] sm:$0xff] }
 0x8e1   : > { %3938 = vmatprep.mubr.f32.mxu0 %v13216_v14  ;;  %4195 = vmatprep.mubr.f32.mxu1 %v13216_v14 }
 0x8e2   : > { %4591 = vmatpush1.msra.mxu0 %v10922_v8 }
 0x8e4   : > { %3939 = vmatmul.mubr.f32.gmra.mxu0 %v13615_v49  ;;  %4196 = vmatmul.mubr.f32.gmra.mxu1 %v13615_v49 }
 0x8e5   : > { %3944 = vmatprep.mubr.f32.mxu0 %v13216_v14  ;;  %4201 = vmatprep.mubr.f32.mxu1 %v13216_v14 }
 0x8e8   : > { %v10924_v5 = vpop.f32.mrf.mxu0  ;;  %v10926_v55 = vpop.f32.mrf.mxu1  ;;  %3945 = vmatmul.mubr.f32.gmra.mxu0 %v13608_v4  ;;  %4202 = vmatmul.mubr.f32.gmra.mxu1 %v13608_v4 }
 0x8e9   : > { %3950 = vmatprep.mubr.f32.mxu0 %v13216_v14  ;;  %4207 = vmatprep.mubr.f32.mxu1 %v13216_v14 }
 0x8ea   : > { %v3346_v49 = vpop.f32.mrf.mxu0  ;;  %v10932_v40 = vpop.f32.mrf.mxu1 }
 0x8ec   : > { %v10935_v28 = vpop.f32.mrf.mxu0  ;;  %v10937_v59 = vpop.f32.mrf.mxu1  ;;  %3951 = vmatmul.mubr.f32.gmra.mxu0 %v13609_v13  ;;  %4208 = vmatmul.mubr.f32.gmra.mxu1 %v13609_v13 }
 0x8ed   : > { %3956 = vmatprep.mubr.f32.mxu0 %v13216_v14  ;;  %4213 = vmatprep.mubr.f32.mxu1 %v13216_v14 }
 0x8ee   : > { %v3351_v4 = vpop.f32.mrf.mxu0  ;;  %v10943_v52 = vpop.f32.mrf.mxu1 }
 0x8ef   : > { %v10995_v4 = vld [vmem:[#allocation7 + $0x118] sm:$0xff] }
 0x8f0   : > { %v10945_v33 = vpop.f32.mrf.mxu0  ;;  %v10947_v45 = vpop.f32.mrf.mxu1  ;;  %3957 = vmatmul.mubr.f32.gmra.mxu0 %v13610_v47  ;;  %4214 = vmatmul.mubr.f32.gmra.mxu1 %v13610_v47 }
 0x8f1   : > { %3962 = vmatprep.mubr.f32.mxu0 %v13216_v14  ;;  %4219 = vmatprep.mubr.f32.mxu1 %v13216_v14 }
 0x8f2   : > { %v3356_v13 = vpop.f32.mrf.mxu0  ;;  %v10953_v44 = vpop.f32.mrf.mxu1  ;;  %4675 = vmatprep.subr.mxu1 %v10995_v4 }
 0x8f3   : > { %v10997_v13 = vld [vmem:[#allocation7 + $0x110] sm:$0xff] }
 0x8f4   : > { %v10955_v51 = vpop.f32.mrf.mxu0  ;;  %v10957_v37 = vpop.f32.mrf.mxu1  ;;  %3963 = vmatmul.mubr.f32.gmra.mxu0 %v13611_v24  ;;  %4220 = vmatmul.mubr.f32.gmra.mxu1 %v13611_v24 }
 0x8f5   : > { %3968 = vmatprep.mubr.f32.mxu0 %v13216_v14  ;;  %4225 = vmatprep.mubr.f32.mxu1 %v13216_v14 }
 0x8f6   : > { %v3361_v47 = vpop.f32.mrf.mxu0  ;;  %v10963_v34 = vpop.f32.mrf.mxu1  ;;  %4676 = vmatpush1.msra.mxu1 %v10997_v13 }
 0x8f8   : > { %v10965_v36 = vpop.f32.mrf.mxu0  ;;  %v10967_v54 = vpop.f32.mrf.mxu1  ;;  %3969 = vmatmul.mubr.f32.gmra.mxu0 %v10450_v63  ;;  %4226 = vmatmul.mubr.f32.gmra.mxu1 %v10450_v63 }
 0x8f9   : > { %13628 = vst [vmem:[#allocation126_spill] sm:$0xff] %v10965_v36  ;;  %13629 = vst [vmem:[#allocation127_spill] sm:$0xff] %v10967_v54  ;;  %3974 = vmatprep.mubr.f32.mxu0 %v13216_v14  ;;  %4231 = vmatprep.mubr.f32.mxu1 %v13216_v14 }
 0x8fa   : > { %v10973_v24 = vpop.f32.mrf.mxu0  ;;  %v10975_v61 = vpop.f32.mrf.mxu1 }
 0x8fb   : > { %13630 = vst [vmem:[#allocation128_spill] sm:$0xff] %v10973_v24  ;;  %13631 = vst [vmem:[#allocation129_spill] sm:$0xff] %v10975_v61 }
 0x8fc   : > { %v10977_v2 = vpop.f32.mrf.mxu0  ;;  %v10979_v23 = vpop.f32.mrf.mxu1  ;;  %3975 = vmatmul.mubr.f32.gmra.mxu0 %v10456_v43  ;;  %4232 = vmatmul.mubr.f32.gmra.mxu1 %v10456_v43 }
 0x8fd   : > { %13632 = vst [vmem:[#allocation130_spill] sm:$0xff] %v10977_v2  ;;  %13633 = vst [vmem:[#allocation131_spill] sm:$0xff] %v10979_v23  ;;  %3980 = vmatprep.mubr.f32.mxu0 %v13216_v14  ;;  %4237 = vmatprep.mubr.f32.mxu1 %v13216_v14 }
 0x8fe   : > { %v10985_v63 = vpop.f32.mrf.mxu0  ;;  %v10987_v6 = vpop.f32.mrf.mxu1 }
 0x8ff   : > { %13634 = vst [vmem:[#allocation132_spill] sm:$0xff] %v10985_v63  ;;  %13635 = vst [vmem:[#allocation133_spill] sm:$0xff] %v10987_v6 }
 0x900   : > { %v10989_v50 = vpop.f32.mrf.mxu0  ;;  %v10991_v49 = vpop.f32.mrf.mxu1  ;;  %3981 = vmatmul.mubr.f32.gmra.mxu0 %v10466_v41  ;;  %4238 = vmatmul.mubr.f32.gmra.mxu1 %v10466_v41 }
 0x901   : > { %13636 = vst [vmem:[#allocation134_spill] sm:$0xff] %v10989_v50  ;;  %13637 = vst [vmem:[#allocation135_spill] sm:$0xff] %v10991_v49  ;;  %3986 = vmatprep.mubr.f32.mxu0 %v13216_v14  ;;  %4243 = vmatprep.mubr.f32.mxu1 %v13216_v14 }
 0x902   : > { %v11001_v43 = vpop.f32.mrf.mxu0  ;;  %v11003_v47 = vpop.f32.mrf.mxu1 }
 0x903   : > { %13638 = vst [vmem:[#allocation136_spill] sm:$0xff] %v11001_v43  ;;  %13639 = vst [vmem:[#allocation137_spill] sm:$0xff] %v11003_v47 }
 0x904   : > { %v11007_v6 = vpop.f32.mrf.mxu0  ;;  %v11009_v49 = vpop.f32.mrf.mxu1  ;;  %3987 = vmatmul.mubr.f32.gmra.mxu0 %v10476_v1  ;;  %4244 = vmatmul.mubr.f32.gmra.mxu1 %v10476_v1 }
 0x905   : > { %13640 = vst [vmem:[#allocation138_spill] sm:$0xff] %v11007_v6  ;;  %13641 = vst [vmem:[#allocation139_spill] sm:$0xff] %v11009_v49  ;;  %3992 = vmatprep.mubr.f32.mxu0 %v13216_v14  ;;  %4249 = vmatprep.mubr.f32.mxu1 %v13216_v14 }
 0x906   : > { %v11015_v41 = vpop.f32.mrf.mxu0  ;;  %v11017_v61 = vpop.f32.mrf.mxu1 }
 0x907   : > { %13642 = vst [vmem:[#allocation38_spill] sm:$0xff] %v11015_v41  ;;  %13643 = vst [vmem:[#allocation140_spill] sm:$0xff] %v11017_v61 }
 0x908   : > { %v11019_v47 = vpop.f32.mrf.mxu0  ;;  %v11021_v23 = vpop.f32.mrf.mxu1  ;;  %3993 = vmatmul.mubr.f32.gmra.mxu0 %v10584_v38  ;;  %4250 = vmatmul.mubr.f32.gmra.mxu1 %v10584_v38 }
 0x909   : > { %13644 = vst [vmem:[#allocation31_spill] sm:$0xff] %v11019_v47  ;;  %13645 = vst [vmem:[#allocation32_spill] sm:$0xff] %v11021_v23  ;;  %3998 = vmatprep.mubr.f32.mxu0 %v13216_v14  ;;  %4255 = vmatprep.mubr.f32.mxu1 %v13216_v14 }
 0x90a   : > { %v11027_v1 = vpop.f32.mrf.mxu0  ;;  %v11029_v49 = vpop.f32.mrf.mxu1 }
 0x90b   : > { %13646 = vst [vmem:[#allocation49_spill] sm:$0xff] %v11027_v1  ;;  %13647 = vst [vmem:[#allocation51_spill] sm:$0xff] %v11029_v49 }
 0x90c   : > { %v11031_v6 = vpop.f32.mrf.mxu0  ;;  %v11033_v41 = vpop.f32.mrf.mxu1  ;;  %3999 = vmatmul.mubr.f32.gmra.mxu0 %v10590_v46  ;;  %4256 = vmatmul.mubr.f32.gmra.mxu1 %v10590_v46  ;;  %v11051_v46 = vld [vmem:[#allocation7 + $0xf8] sm:$0xff] }
 0x90d   : > { %13648 = vst [vmem:[#allocation53_spill] sm:$0xff] %v11031_v6  ;;  %13649 = vst [vmem:[#allocation55_spill] sm:$0xff] %v11033_v41  ;;  %4004 = vmatprep.mubr.f32.mxu0 %v13216_v14  ;;  %4261 = vmatprep.mubr.f32.mxu1 %v13216_v14 }
 0x90e   : > { %v11039_v38 = vpop.f32.mrf.mxu0  ;;  %v11041_v23 = vpop.f32.mrf.mxu1  ;;  %4677 = vmatprep.subr.mxu1 %v11051_v46 }
 0x90f   : > { %13650 = vst [vmem:[#allocation25_spill] sm:$0xff] %v11039_v38  ;;  %13651 = vst [vmem:[#allocation57_spill] sm:$0xff] %v11041_v23  ;;  %v11058_v23 = vld [vmem:[#allocation7 + $0xf0] sm:$0xff] }
 0x910   : > { %v11043_v47 = vpop.f32.mrf.mxu0  ;;  %v11045_v1 = vpop.f32.mrf.mxu1  ;;  %4005 = vmatmul.mubr.f32.gmra.mxu0 %v10596_v32  ;;  %4262 = vmatmul.mubr.f32.gmra.mxu1 %v10596_v32 }
 0x911   : > { %13652 = vst [vmem:[#allocation59_spill] sm:$0xff] %v11043_v47  ;;  %13653 = vst [vmem:[#allocation12_spill] sm:$0xff] %v11045_v1  ;;  %4010 = vmatprep.mubr.f32.mxu0 %v13216_v14  ;;  %4267 = vmatprep.mubr.f32.mxu1 %v13216_v14  ;;  %v11060_v47 = vld [vmem:[#allocation7 + $0xa8] sm:$0xff]  ;;  %v11063_v1 = vld [vmem:[#allocation7 + $0xd8] sm:$0xff] }
 0x912   : > { %v11053_v49 = vpop.f32.mrf.mxu0  ;;  %v11055_v41 = vpop.f32.mrf.mxu1  ;;  %4678 = vmatpush1.msra.mxu1 %v11058_v23  ;;  %4592 = vmatprep.subr.mxu0 %v11060_v47 }
 0x913   : > { %13654 = vst [vmem:[#allocation26_spill] sm:$0xff] %v11053_v49  ;;  %13655 = vst [vmem:[#allocation52_spill] sm:$0xff] %v11055_v41  ;;  %v11071_v49 = vld [vmem:[#allocation7 + $0xa0] sm:$0xff]  ;;  %v11073_v41 = vld [vmem:[#allocation7 + $0xd0] sm:$0xff]  ;;  %4679 = vmatprep.subr.mxu1 %v11063_v1 }
 0x914   : > { %v11065_v32 = vpop.f32.mrf.mxu0  ;;  %v11067_v38 = vpop.f32.mrf.mxu1  ;;  %4011 = vmatmul.mubr.f32.gmra.mxu0 %v10602_v56  ;;  %4268 = vmatmul.mubr.f32.gmra.mxu1 %v10602_v56  ;;  %13658 = vst [vmem:[#allocation54_spill] sm:$0xff] %v11071_v49  ;;  %v11087_v56 = vld [vmem:[#allocation7 + $0xb8] sm:$0xff] }
 0x915   : > { %13656 = vst [vmem:[#allocation50_spill] sm:$0xff] %v11065_v32  ;;  %13657 = vst [vmem:[#allocation56_spill] sm:$0xff] %v11067_v38  ;;  %4016 = vmatprep.mubr.f32.mxu0 %v13216_v14  ;;  %4273 = vmatprep.mubr.f32.mxu1 %v13216_v14  ;;  %v11084_v38 = vld [vmem:[#allocation7 + $0x88] sm:$0xff] }
 0x916   : > { %v11077_v6 = vpop.f32.mrf.mxu0  ;;  %v11079_v61 = vpop.f32.mrf.mxu1  ;;  %4593 = vmatpush1.msra.mxu0 %v11071_v49  ;;  %13661 = vst [vmem:[#allocation63_spill] sm:$0xff] %v11084_v38  ;;  %4680 = vmatpush1.msra.mxu1 %v11073_v41  ;;  %13662 = vst [vmem:[#allocation65_spill] sm:$0xff] %v11087_v56 }
 0x917   : > { %13659 = vst [vmem:[#allocation58_spill] sm:$0xff] %v11077_v6  ;;  %13660 = vst [vmem:[#allocation61_spill] sm:$0xff] %v11079_v61  ;;  %v11095_v61 = vld [vmem:[#allocation7 + $0x80] sm:$0xff]  ;;  %v11097_v6 = vld [vmem:[#allocation7 + $0xb0] sm:$0xff]  ;;  %4594 = vmatprep.subr.mxu0 %v11084_v38  ;;  %4681 = vmatprep.subr.mxu1 %v11087_v56 }
 0x918   : > { %v11089_v32 = vpop.f32.mrf.mxu0  ;;  %v11091_v43 = vpop.f32.mrf.mxu1  ;;  %4017 = vmatmul.mubr.f32.gmra.mxu0 %v10644_v27  ;;  %4274 = vmatmul.mubr.f32.gmra.mxu1 %v10644_v27  ;;  %13665 = vst [vmem:[#allocation71_spill] sm:$0xff] %v11095_v61  ;;  %13666 = vst [vmem:[#allocation60_spill] sm:$0xff] %v11097_v6  ;;  %v11111_v27 = vld [vmem:[#allocation7 + $0x98] sm:$0xff] }
 0x919   : > { %13663 = vst [vmem:[#allocation67_spill] sm:$0xff] %v11089_v32  ;;  %13664 = vst [vmem:[#allocation69_spill] sm:$0xff] %v11091_v43  ;;  %4022 = vmatprep.mubr.f32.mxu0 %v13216_v14  ;;  %4279 = vmatprep.mubr.f32.mxu1 %v13216_v14  ;;  %v11108_v43 = vld [vmem:[#allocation7 + $0x68] sm:$0xff] }
 0x91a   : > { %v11101_v54 = vpop.f32.mrf.mxu0  ;;  %v11103_v50 = vpop.f32.mrf.mxu1  ;;  %4595 = vmatpush1.msra.mxu0 %v11095_v61  ;;  %13669 = vst [vmem:[#allocation64_spill] sm:$0xff] %v11108_v43  ;;  %4682 = vmatpush1.msra.mxu1 %v11097_v6  ;;  %13670 = vst [vmem:[#allocation62_spill] sm:$0xff] %v11111_v27 }
 0x91b   : > { %13667 = vst [vmem:[#allocation73_spill] sm:$0xff] %v11101_v54  ;;  %13668 = vst [vmem:[#allocation75_spill] sm:$0xff] %v11103_v50  ;;  %v11119_v50 = vld [vmem:[#allocation7 + $0x60] sm:$0xff]  ;;  %v11121_v54 = vld [vmem:[#allocation7 + $0x90] sm:$0xff]  ;;  %4596 = vmatprep.subr.mxu0 %v11108_v43  ;;  %4683 = vmatprep.subr.mxu1 %v11111_v27 }
 0x91c   : > { %v11113_v32 = vpop.f32.mrf.mxu0  ;;  %v11115_v63 = vpop.f32.mrf.mxu1  ;;  %4023 = vmatmul.mubr.f32.gmra.mxu0 %v10650_v62  ;;  %4280 = vmatmul.mubr.f32.gmra.mxu1 %v10650_v62  ;;  %13673 = vst [vmem:[#allocation72_spill] sm:$0xff] %v11119_v50  ;;  %13674 = vst [vmem:[#allocation70_spill] sm:$0xff] %v11121_v54  ;;  %v11135_v62 = vld [vmem:[#allocation7 + $0x78] sm:$0xff] }
 0x91d   : > { %13671 = vst [vmem:[#allocation68_spill] sm:$0xff] %v11113_v32  ;;  %13672 = vst [vmem:[#allocation66_spill] sm:$0xff] %v11115_v63  ;;  %4028 = vmatprep.mubr.f32.mxu0 %v13216_v14  ;;  %4285 = vmatprep.mubr.f32.mxu1 %v13216_v14  ;;  %v11132_v63 = vld [vmem:[#allocation7 + $0x48] sm:$0xff] }
 0x91e   : > { %v11125_v2 = vpop.f32.mrf.mxu0  ;;  %v11127_v24 = vpop.f32.mrf.mxu1  ;;  %4597 = vmatpush1.msra.mxu0 %v11119_v50  ;;  %13677 = vst [vmem:[#allocation24_spill] sm:$0xff] %v11132_v63  ;;  %4684 = vmatpush1.msra.mxu1 %v11121_v54  ;;  %13678 = vst [vmem:[#allocation27_spill] sm:$0xff] %v11135_v62  ;;  %v11163_v54 = vld [vmem:[#allocation7 + $0x50] sm:$0xff] }
 0x91f   : > { %13675 = vst [vmem:[#allocation74_spill] sm:$0xff] %v11125_v2  ;;  %13676 = vst [vmem:[#allocation19_spill] sm:$0xff] %v11127_v24  ;;  %v11143_v24 = vld [vmem:[#allocation7 + $0x40] sm:$0xff]  ;;  %v11145_v2 = vld [vmem:[#allocation7 + $0x70] sm:$0xff]  ;;  %4598 = vmatprep.subr.mxu0 %v11132_v63  ;;  %4685 = vmatprep.subr.mxu1 %v11135_v62 }
 0x920   : > { %v11137_v32 = vpop.f32.mrf.mxu0  ;;  %v11139_v36 = vpop.f32.mrf.mxu1  ;;  %4029 = vmatmul.mubr.f32.gmra.mxu0 %v10656_v12  ;;  %4286 = vmatmul.mubr.f32.gmra.mxu1 %v10656_v12  ;;  %13681 = vst [vmem:[#allocation29_spill] sm:$0xff] %v11143_v24  ;;  %13682 = vst [vmem:[#allocation30_spill] sm:$0xff] %v11145_v2  ;;  %v11160_v12 = vld [vmem:[#allocation7 + $0x20] sm:$0xff]  ;;  %v11173_v63 = vld [vmem:[#allocation7 + $0x38] sm:$0xff] }
 0x921   : > { %13679 = vst [vmem:[#allocation28_spill] sm:$0xff] %v11137_v32  ;;  %13680 = vst [vmem:[#allocation13_spill] sm:$0xff] %v11139_v36  ;;  %4034 = vmatprep.mubr.f32.mxu0 %v13216_v14  ;;  %4291 = vmatprep.mubr.f32.mxu1 %v13216_v14  ;;  %v11154_v32 = vld [vmem:[#allocation7 + $0x28] sm:$0xff]  ;;  %v11157_v36 = vld [vmem:[#allocation7 + $0x58] sm:$0xff] }
 0x922   : > { %v11149_v50 = vpop.f32.mrf.mxu0  ;;  %v11151_v43 = vpop.f32.mrf.mxu1  ;;  %13685 = vst [vmem:[#allocation20_spill] sm:$0xff] %v11154_v32  ;;  %13686 = vst [vmem:[#allocation16_spill] sm:$0xff] %v11157_v36  ;;  %4599 = vmatpush1.msra.mxu0 %v11143_v24  ;;  %4686 = vmatpush1.msra.mxu1 %v11145_v2  ;;  %v11176_v24 = vld [vmem:[#allocation7] sm:$0xff]  ;;  %v11179_v2 = vld [vmem:[#allocation7 + $0x30] sm:$0xff] }
 0x923   : > { %13683 = vst [vmem:[#allocation15_spill] sm:$0xff] %v11149_v50  ;;  %13684 = vst [vmem:[#allocation14_spill] sm:$0xff] %v11151_v43  ;;  %v11171_v43 = vld [vmem:[#allocation7 + $0x8] sm:$0xff]  ;;  %4600 = vmatprep.subr.mxu0 %v11154_v32  ;;  %4687 = vmatprep.subr.mxu1 %v11157_v36 }
 0x924   : > { %13687 = vst [vmem:[#allocation22_spill] sm:$0xff] %v11160_v12  ;;  %13688 = vst [vmem:[#allocation21_spill] sm:$0xff] %v11163_v54  ;;  %v11165_v61 = vpop.f32.mrf.mxu0  ;;  %v11167_v50 = vpop.f32.mrf.mxu1  ;;  %4035 = vmatmul.mubr.f32.gmra.mxu0 %v10662_v7  ;;  %4292 = vmatmul.mubr.f32.gmra.mxu1 %v10662_v7  ;;  %v11187_v7 = vld [vmem:[#allocation7 + $0x18] sm:$0xff] }
 0x925   : > { %13689 = vst [vmem:[#allocation23_spill] sm:$0xff] %v11165_v61  ;;  %13690 = vst [vmem:[#allocation108_spill] sm:$0xff] %v11167_v50  ;;  %4601 = vmatpush1.msra.mxu0 %v11160_v12  ;;  %4688 = vmatpush1.msra.mxu1 %v11163_v54  ;;  %v11191_v50 = vld [vmem:[#allocation7 + $0x10] sm:$0xff] }
 0x926   : > { %13691 = vst [vmem:[#allocation109_spill] sm:$0xff] %v11171_v43  ;;  %13692 = vst [vmem:[#allocation110_spill] sm:$0xff] %v11173_v63  ;;  %v11181_v62 = vpop.f32.mrf.mxu0  ;;  %v11183_v61 = vpop.f32.mrf.mxu1  ;;  %4602 = vmatprep.subr.mxu0 %v11171_v43  ;;  %4689 = vmatprep.subr.mxu1 %v11173_v63 }
 0x927   : > { %13693 = vst [vmem:[#allocation111_spill] sm:$0xff] %v11176_v24  ;;  %13694 = vst [vmem:[#allocation112_spill] sm:$0xff] %v11179_v2  ;;  %4603 = vmatpush1.msra.mxu0 %v11176_v24  ;;  %4690 = vmatpush1.msra.mxu1 %v11179_v2 }
 0x928   : > { %13695 = vst [vmem:[#allocation113_spill] sm:$0xff] %v11181_v62  ;;  %13696 = vst [vmem:[#allocation114_spill] sm:$0xff] %v11183_v61  ;;  %v11193_v32 = vpop.f32.mrf.mxu0  ;;  %v11195_v36 = vpop.f32.mrf.mxu1  ;;  %4691 = vmatprep.subr.mxu1 %v11187_v7  ;;  %4636 = vmatprep.mubr.f32.mxu0 %v13216_v14 }
 0x929   : > { %13697 = vst [vmem:[#allocation115_spill] sm:$0xff] %v11187_v7  ;;  %13698 = vst [vmem:[#allocation116_spill] sm:$0xff] %v11191_v50  ;;  %4692 = vmatpush1.msra.mxu1 %v11191_v50  ;;  %4725 = vmatprep.mubr.f32.mxu1 %v13216_v14 }
 0x92a   : > { %13699 = vst [vmem:[#allocation117_spill] sm:$0xff] %v11193_v32  ;;  %13700 = vst [vmem:[#allocation118_spill] sm:$0xff] %v11195_v36  ;;  %v11201_v61 = vpop.f32.mrf.mxu0  ;;  %v11203_v62 = vpop.f32.mrf.mxu1  ;;  %4846 = vmatprep.subr.mxu0 %v10772_v35  ;;  %4935 = vmatprep.subr.mxu1 %v10793_v53 }
 0x92b   : > { %13701 = vst [vmem:[#allocation119_spill] sm:$0xff] %v11201_v61  ;;  %13702 = vst [vmem:[#allocation120_spill] sm:$0xff] %v11203_v62 }
 0x92c   : > { %v11209_v36 = vpop.f32.mrf.mxu0  ;;  %v11211_v32 = vpop.f32.mrf.mxu1 }
 0x92d   : > { %13703 = vst [vmem:[#allocation121_spill] sm:$0xff] %v11209_v36  ;;  %13704 = vst [vmem:[#allocation122_spill] sm:$0xff] %v11211_v32 }
 0x92e   : > { %v11213_v24 = vpop.f32.mrf.mxu0  ;;  %v11215_v7 = vpop.f32.mrf.mxu1 }
 0x92f   : > { %13705 = vst [vmem:[#allocation123_spill] sm:$0xff] %v11213_v24  ;;  %13706 = vst [vmem:[#allocation124_spill] sm:$0xff] %v11215_v7 }
 0x930   : > { %v11217_v43 = vpop.f32.mrf.mxu0  ;;  %v11219_v61 = vpop.f32.mrf.mxu1 }
 0x931   : > { %13707 = vst [vmem:[#allocation125_spill] sm:$0xff] %v11217_v43  ;;  %13708 = vst [vmem:[#allocation77_spill] sm:$0xff] %v11219_v61 }
 0x932   : > { %v11221_v62 = vpop.f32.mrf.mxu0  ;;  %v11223_v50 = vpop.f32.mrf.mxu1 }
 0x933   : > { %13709 = vst [vmem:[#allocation79_spill] sm:$0xff] %v11221_v62  ;;  %13710 = vst [vmem:[#allocation81_spill] sm:$0xff] %v11223_v50 }
 0x934   : > { %v11225_v2 = vpop.f32.mrf.mxu0  ;;  %v11227_v35 = vpop.f32.mrf.mxu1 }
 0x935   : > { %13711 = vst [vmem:[#allocation83_spill] sm:$0xff] %v11225_v2  ;;  %13712 = vst [vmem:[#allocation85_spill] sm:$0xff] %v11227_v35 }
 0x936   : > { %v11229_v53 = vpop.f32.mrf.mxu0  ;;  %v11231_v36 = vpop.f32.mrf.mxu1 }
 0x937   : > { %13713 = vst [vmem:[#allocation87_spill] sm:$0xff] %v11229_v53  ;;  %13714 = vst [vmem:[#allocation76_spill] sm:$0xff] %v11231_v36 }
 0x938   : > { %v11233_v32 = vpop.f32.mrf.mxu0  ;;  %v11235_v24 = vpop.f32.mrf.mxu1 }
 0x939   : > { %13715 = vst [vmem:[#allocation89_spill] sm:$0xff] %v11233_v32  ;;  %13716 = vst [vmem:[#allocation91_spill] sm:$0xff] %v11235_v24 }
 0x93a   : > { %v11237_v7 = vpop.f32.mrf.mxu0  ;;  %v11239_v43 = vpop.f32.mrf.mxu1 }
 0x93b   : > { %13717 = vst [vmem:[#allocation80_spill] sm:$0xff] %v11237_v7  ;;  %13718 = vst [vmem:[#allocation78_spill] sm:$0xff] %v11239_v43 }
 0x93c   : > { %v11241_v61 = vpop.f32.mrf.mxu0  ;;  %v11243_v62 = vpop.f32.mrf.mxu1 }
 0x93d   : > { %13719 = vst [vmem:[#allocation84_spill] sm:$0xff] %v11241_v61  ;;  %13720 = vst [vmem:[#allocation82_spill] sm:$0xff] %v11243_v62 }
 0x93e   : > { %v11245_v50 = vpop.f32.mrf.mxu0  ;;  %v11247_v2 = vpop.f32.mrf.mxu1 }
 0x93f   : > { %13721 = vst [vmem:[#allocation88_spill] sm:$0xff] %v11245_v50  ;;  %13722 = vst [vmem:[#allocation86_spill] sm:$0xff] %v11247_v2 }
 0x940   : > { %v11249_v35 = vpop.f32.mrf.mxu0  ;;  %v11251_v53 = vpop.f32.mrf.mxu1 }
 0x941   : > { %13723 = vst [vmem:[#allocation90_spill] sm:$0xff] %v11249_v35  ;;  %13724 = vst [vmem:[#allocation93_spill] sm:$0xff] %v11251_v53 }
 0x942   : > { %v11253_v36 = vpop.f32.mrf.mxu0  ;;  %v11255_v32 = vpop.f32.mrf.mxu1 }
 0x943   : > { %13725 = vst [vmem:[#allocation95_spill] sm:$0xff] %v11253_v36  ;;  %13726 = vst [vmem:[#allocation97_spill] sm:$0xff] %v11255_v32 }
 0x944   : > { %v11257_v24 = vpop.f32.mrf.mxu0  ;;  %v11259_v7 = vpop.f32.mrf.mxu1 }
 0x945   : > { %13727 = vst [vmem:[#allocation99_spill] sm:$0xff] %v11257_v24  ;;  %13728 = vst [vmem:[#allocation101_spill] sm:$0xff] %v11259_v7 }
 0x946   : > { %v11261_v43 = vpop.f32.mrf.mxu0  ;;  %v11263_v61 = vpop.f32.mrf.mxu1 }
 0x947   : > { %13729 = vst [vmem:[#allocation103_spill] sm:$0xff] %v11261_v43  ;;  %13730 = vst [vmem:[#allocation92_spill] sm:$0xff] %v11263_v61 }
 0x948   : > { %v11265_v62 = vpop.f32.mrf.mxu0  ;;  %v11267_v50 = vpop.f32.mrf.mxu1 }
 0x949   : > { %13731 = vst [vmem:[#allocation105_spill] sm:$0xff] %v11265_v62  ;;  %13732 = vst [vmem:[#allocation34_spill] sm:$0xff] %v11267_v50 }
 0x94a   : > { %v11269_v2 = vpop.f32.mrf.mxu0  ;;  %v11271_v35 = vpop.f32.mrf.mxu1 }
 0x94b   : > { %13733 = vst [vmem:[#allocation96_spill] sm:$0xff] %v11269_v2  ;;  %13734 = vst [vmem:[#allocation94_spill] sm:$0xff] %v11271_v35 }
 0x94c   : > { %v11273_v53 = vpop.f32.mrf.mxu0  ;;  %v11275_v36 = vpop.f32.mrf.mxu1 }
 0x94d   : > { %13735 = vst [vmem:[#allocation100_spill] sm:$0xff] %v11273_v53  ;;  %13736 = vst [vmem:[#allocation98_spill] sm:$0xff] %v11275_v36 }
 0x94e   : > { %v11277_v32 = vpop.f32.mrf.mxu0  ;;  %v11279_v24 = vpop.f32.mrf.mxu1 }
 0x94f   : > { %13737 = vst [vmem:[#allocation104_spill] sm:$0xff] %v11277_v32  ;;  %13738 = vst [vmem:[#allocation102_spill] sm:$0xff] %v11279_v24 }
 0x950   : > { %v11281_v7 = vpop.f32.mrf.mxu0  ;;  %v11283_v43 = vpop.f32.mrf.mxu1 }
 0x951   : > { %13739 = vst [vmem:[#allocation106_spill] sm:$0xff] %v11281_v7  ;;  %13740 = vst [vmem:[#allocation44_spill] sm:$0xff] %v11283_v43 }
 0x952   : > { %v11285_v61 = vpop.f32.mrf.mxu0  ;;  %v11287_v62 = vpop.f32.mrf.mxu1 }
 0x953   : > { %13741 = vst [vmem:[#allocation107_spill] sm:$0xff] %v11285_v61  ;;  %13742 = vst [vmem:[#allocation17_spill] sm:$0xff] %v11287_v62 }
 0x954   : > { %v11289_v50 = vpop.f32.mrf.mxu0  ;;  %v11291_v2 = vpop.f32.mrf.mxu1 }
 0x955   : > { %13743 = vst [vmem:[#allocation18_spill] sm:$0xff] %v11289_v50  ;;  %13744 = vst [vmem:[#allocation42_spill] sm:$0xff] %v11291_v2 }
 0x956   : > { %v11293_v35 = vpop.f32.mrf.mxu0  ;;  %v11295_v53 = vpop.f32.mrf.mxu1 }
 0x957   : > { %13745 = vst [vmem:[#allocation39_spill] sm:$0xff] %v11293_v35  ;;  %13746 = vst [vmem:[#allocation41_spill] sm:$0xff] %v11295_v53 }
 0x958   : > { %v11297_v36 = vpop.f32.mrf.mxu0  ;;  %v11299_v32 = vpop.f32.mrf.mxu1 }
 0x959   : > { %13747 = vst [vmem:[#allocation43_spill] sm:$0xff] %v11297_v36  ;;  %13748 = vst [vmem:[#allocation141_spill] sm:$0xff] %v11299_v32 }
 0x95a   : > { %v11301_v24 = vpop.f32.mrf.mxu0  ;;  %v11303_v7 = vpop.f32.mrf.mxu1 }
 0x95b   : > { %13749 = vst [vmem:[#allocation142_spill] sm:$0xff] %v11301_v24  ;;  %13750 = vst [vmem:[#allocation143_spill] sm:$0xff] %v11303_v7  ;;  %v11328_v7 = vld [vmem:[%s12851_s7] sm:$0xf] }
 0x95c   : > { %v11305_v43 = vpop.f32.mrf.mxu0  ;;  %v11307_v61 = vpop.f32.mrf.mxu1 }
 0x95d   : > { %13751 = vst [vmem:[#allocation144_spill] sm:$0xff] %v11305_v43  ;;  %13752 = vst [vmem:[#allocation37_spill] sm:$0xff] %v11307_v61 }
 0x95e   : > { %v11309_v62 = vpop.f32.mrf.mxu0  ;;  %v11311_v50 = vpop.f32.mrf.mxu1 }
 0x95f   : > { %13753 = vst [vmem:[#allocation35_spill] sm:$0xff] %v11309_v62  ;;  %13754 = vst [vmem:[#allocation36_spill] sm:$0xff] %v11311_v50 }
 0x960   : > { %v11313_v2 = vpop.f32.mrf.mxu0  ;;  %v11315_v35 = vpop.f32.mrf.mxu1 }
 0x961   : > { %13755 = vst [vmem:[#allocation40_spill] sm:$0xff] %v11313_v2  ;;  %13756 = vst [vmem:[#allocation45_spill] sm:$0xff] %v11315_v35  ;;  %v13763_v2 = vld [vmem:[#allocation33_spill] sm:$0xff] }
 0x962   : > { %v11317_v53 = vpop.f32.mrf.mxu0  ;;  %v11319_v36 = vpop.f32.mrf.mxu1  ;;  %v13764_v62 = vsub.s32 0, %v13763_v2  ;;  %v13765_v38 = vsub.s32 2, %v13763_v2 }
 0x963   : > { %13757 = vst [vmem:[#allocation46_spill] sm:$0xff] %v11317_v53  ;;  %13758 = vst [vmem:[#allocation47_spill] sm:$0xff] %v11319_v36 }
 0x964   : > { %v11321_v32 = vpop.f32.mrf.mxu0  ;;  %v11323_v24 = vpop.f32.mrf.mxu1  ;;  %v11337_v35 = vrot.slane %v11328_v7, %v13764_v62  ;;  %v11346_v62 = vrot.slane %v11328_v7, %v13765_v38 }
 0x965   : > { %13759 = vst [vmem:[#allocation48_spill] sm:$0xff] %v11321_v32  ;;  %13760 = vst [vmem:[#allocation145_spill] sm:$0xff] %v11323_v24 }
 0x966   : > { %v11330_v61 = vpop.f32.mrf.mxu0  ;;  %v11332_v50 = vpop.f32.mrf.mxu1 }
 0x967   : > { %13761 = vst [vmem:[#allocation146_spill] sm:$0xff] %v11330_v61  ;;  %13762 = vst [vmem:[#allocation147_spill] sm:$0xff] %v11332_v50 }
 0x968   : > { %v3854_v53 = vpop.f32.mrf.mxu0  ;;  %v4107_v36 = vpop.f32.mrf.mxu1 }
 0x969   : > { %v3855_v32 = vadd.f32 %v3854_v53, %v10924_v5  ;;  %v4108_v50 = vadd.f32 %v4107_v36, %v10926_v55 }
 0x96a   : > { %v3856_v43 = vpop.f32.mrf.mxu0  ;;  %v4109_v24 = vpop.f32.mrf.mxu1 }
 0x96b   : > { %v4320_v12 = vadd.f32 %v11337_v35, %v3855_v32 }
 0x96c   : > { %v3859_v63 = vpop.f32.mrf.mxu0  ;;  %v4113_v54 = vpop.f32.mrf.mxu1 }
 0x96d   : > { %v6920_v27 = vmul.f32 -1.442695, %v4320_v12  ;;  %v3860_v61 = vadd.f32 %v3859_v63, %v10935_v28  ;;  %v4321_v12 = vadd.f32 %v11346_v62, %v4108_v50  ;;  %v4114_v28 = vadd.f32 %v4113_v54, %v10937_v59 }
 0x96e   : > { %v3861_v6 = vpop.f32.mrf.mxu0  ;;  %v4115_v49 = vpop.f32.mrf.mxu1 }
 0x96f   : > { %7680 = vpow2.f32 %v6920_v27  ;;  %v4323_v5 = vadd.f32 %v11337_v35, %v3860_v61  ;;  %v4110_v6 = vadd.f32 %v4109_v24, %v10932_v40  ;;  %v13766_v27 = vsub.s32 3, %v13763_v2 }
 0x970   : > { %v3864_v43 = vpop.f32.mrf.mxu0  ;;  %v4119_v53 = vpop.f32.mrf.mxu1  ;;  %v4324_v50 = vadd.f32 %v11346_v62, %v4114_v28  ;;  %v4116_v24 = vadd.f32 %v4115_v49, %v10943_v52 }
 0x971   : > { %v6922_v32 = vmul.f32 -1.442695, %v4323_v5  ;;  %v3865_v56 = vadd.f32 %v3864_v43, %v10945_v33  ;;  %v11357_v61 = vrot.slane %v11328_v7, %v13766_v27  ;;  %v6921_v43 = vmul.f32 -1.442695, %v4321_v12 }
 0x972   : > { %v3866_v55 = vpop.f32.mrf.mxu0  ;;  %v4121_v63 = vpop.f32.mrf.mxu1  ;;  %v4120_v59 = vadd.f32 %v4119_v53, %v10947_v45  ;;  %v6923_v27 = vmul.f32 -1.442695, %v4324_v50 }
 0x973   : > { %7682 = vpow2.f32 %v6922_v32  ;;  %v4326_v36 = vadd.f32 %v11337_v35, %v3865_v56  ;;  %v4322_v40 = vadd.f32 %v11357_v61, %v4110_v6  ;;  %v4325_v45 = vadd.f32 %v11357_v61, %v4116_v24 }
 0x974   : > { %v3869_v38 = vpop.f32.mrf.mxu0  ;;  %v4125_v32 = vpop.f32.mrf.mxu1  ;;  %v4122_v53 = vadd.f32 %v4121_v63, %v10953_v44 }
 0x975   : > { %v6924_v5 = vmul.f32 -1.442695, %v4326_v36  ;;  %v3870_v33 = vadd.f32 %v3869_v38, %v10955_v51  ;;  %v4327_v36 = vadd.f32 %v11346_v62, %v4120_v59  ;;  %v4126_v51 = vadd.f32 %v4125_v32, %v10957_v37 }
 0x976   : > { %v3871_v54 = vpop.f32.mrf.mxu0  ;;  %v4127_v38 = vpop.f32.mrf.mxu1 }
 0x977   : > { %7684 = vpow2.f32 %v6924_v5  ;;  %v4329_v56 = vadd.f32 %v11337_v35, %v3870_v33  ;;  %v6925_v6 = vmul.f32 -1.442695, %v4327_v36  ;;  %v4330_v52 = vadd.f32 %v11346_v62, %v4126_v51 }
 0x978   : > { %7686 = vpow2.f32 %v6921_v43  ;;  %v4328_v33 = vadd.f32 %v11357_v61, %v4122_v53  ;;  %v11371_v37 = vpop.f32.mrf.mxu0  ;;  %v11373_v43 = vpop.f32.mrf.mxu1  ;;  %v4128_v59 = vadd.f32 %v4127_v38, %v10963_v34 }
 0x979   : > { %v6926_v55 = vmul.f32 -1.442695, %v4329_v56  ;;  %v6927_v50 = vmul.f32 -1.442695, %v4330_v52 }
 0x97a   : > { %v11376_v54 = vpop.f32.mrf.mxu0  ;;  %v11378_v56 = vpop.f32.mrf.mxu1  ;;  %v4331_v32 = vadd.f32 %v11357_v61, %v4128_v59 }
 0x97b   : > { %7688 = vpow2.f32 %v6926_v55 }
 0x97c   : > { %v7681_v12 = vpop.eup %7680  ;;  %7690 = vtanh.f32 %v4322_v40  ;;  %v11383_v36 = vpop.f32.mrf.mxu1 }
 0x97d   : > { %v4532_v28 = vadd.f32 1.0, %v7681_v12  ;;  %7692 = vpow2.f32 %v6923_v27  ;;  %v11381_v27 = vpop.f32.mrf.mxu0 }
 0x97e   : > { %v11389_v38 = vpop.f32.mrf.mxu1 }
 0x97f   : > { %7694 = vrcp.f32 %v4532_v28  ;;  %v11387_v53 = vpop.f32.mrf.mxu0 }
 0x980   : > { %v7683_v49 = vpop.eup %7682  ;;  %7696 = vtanh.f32 %v4325_v45  ;;  %v11396_v59 = vpop.f32.mrf.mxu1 }
 0x981   : > { %v4534_v5 = vadd.f32 1.0, %v7683_v49  ;;  %7698 = vpow2.f32 %v6925_v6 }
 0x983   : > { %7700 = vrcp.f32 %v4534_v5 }
 0x984   : > { %v7685_v44 = vpop.eup %7684  ;;  %7702 = vtanh.f32 %v4328_v33 }
 0x985   : > { %v4536_v63 = vadd.f32 1.0, %v7685_v44  ;;  %7704 = vpow2.f32 %v6927_v50  ;;  %v7687_v40 = vpop.eup %7686  ;;  %v11394_v50 = vpop.f32.mrf.mxu0 }
 0x986   : > { %v4533_v51 = vadd.f32 1.0, %v7687_v40 }
 0x987   : > { %7706 = vrcp.f32 %v4536_v63 }
 0x988   : > { %v7689_v24 = vpop.eup %7688  ;;  %7708 = vtanh.f32 %v4331_v32 }
 0x989   : > { %v4538_v55 = vadd.f32 1.0, %v7689_v24  ;;  %v7691_v34 = vpop.eup %7690 }
 0x98a   : > { %v7693_v12 = vpop.eup %7692 }
 0x98b   : > { %7710 = vrcp.f32 %v4538_v55  ;;  %v4535_v52 = vadd.f32 1.0, %v7693_v12  ;;  %v11401_v55 = vpop.f32.mrf.mxu0 }
 0x98c   : > { %v7695_v28 = vpop.eup %7694  ;;  %7712 = vrcp.f32 %v4533_v51 }
 0x98d   : > { %v11385_v45 = vmul.f32 %v7695_v28, %v7691_v34  ;;  %v7697_v6 = vpop.eup %7696  ;;  %v11403_v34 = vpop.f32.mrf.mxu1 }
 0x98e   : > { %v7699_v49 = vpop.eup %7698 }
 0x98f   : > { %7714 = vtanh.f32 %v11385_v45  ;;  %v4537_v63 = vadd.f32 1.0, %v7699_v49  ;;  %v11410_v49 = vpop.f32.mrf.mxu1 }
 0x990   : > { %v7701_v5 = vpop.eup %7700  ;;  %7716 = vrcp.f32 %v4535_v52  ;;  %v11408_v52 = vpop.f32.mrf.mxu0 }
 0x991   : > { %v11392_v33 = vmul.f32 %v7701_v5, %v7697_v6  ;;  %v7703_v44 = vpop.eup %7702 }
 0x992   : > { %v7705_v32 = vpop.eup %7704 }
 0x993   : > { %13767 = vst [vmem:[#allocation33_spill] sm:$0xff] %v11392_v33  ;;  %7718 = vtanh.f32 %v11392_v33  ;;  %v4539_v51 = vadd.f32 1.0, %v7705_v32  ;;  %v11415_v33 = vpop.f32.mrf.mxu1 }
 0x994   : > { %v7707_v40 = vpop.eup %7706  ;;  %7720 = vrcp.f32 %v4537_v63 }
 0x995   : > { %v11399_v24 = vmul.f32 %v7707_v40, %v7703_v44  ;;  %v7709_v12 = vpop.eup %7708  ;;  %v11413_v40 = vpop.f32.mrf.mxu0 }
 0x997   : > { %13768 = vst [vmem:[#allocation148_spill] sm:$0xff] %v11399_v24  ;;  %7722 = vtanh.f32 %v11399_v24 }
 0x998   : > { %v7711_v28 = vpop.eup %7710  ;;  %7724 = vrcp.f32 %v4539_v51  ;;  %v11421_v51 = vpop.f32.mrf.mxu1 }
 0x999   : > { %v11406_v6 = vmul.f32 %v7711_v28, %v7709_v12  ;;  %v7713_v5 = vpop.eup %7712  ;;  %v11419_v12 = vpop.f32.mrf.mxu0  ;;  %13771 = vst [vmem:[#allocation151_spill] sm:$0xff] %v11421_v51 }
 0x99a   : > { %13770 = vst [vmem:[#allocation150_spill] sm:$0xff] %v11419_v12 }
 0x99b   : > { %13769 = vst [vmem:[#allocation149_spill] sm:$0xff] %v11406_v6  ;;  %7726 = vtanh.f32 %v11406_v6  ;;  %v11423_v6 = vld [vmem:[#allocation7 + $0x1e0] sm:$0xff] }
 0x99c   : > { %v7715_v44 = vpop.eup %7714 }
 0x99d   : > { %v4568_v63 = vmul.f32 %v7715_v44, %v7713_v5  ;;  %v7717_v32 = vpop.eup %7716  ;;  %v11427_v5 = vld [vmem:[#allocation7 + $0x1c8] sm:$0xff] }
 0x99f   : > { %4637 = vmatmul.mubr.f32.vlgmr.msra.gmra.mxu0 %v4568_v63  ;;  %4726 = vmatmul.mubr.f32.vlgmr.msra.gmra.mxu1 %v4568_v63 }
 0x9a0   : > { %v7719_v24 = vpop.eup %7718  ;;  %4642 = vmatprep.mubr.f32.mxu0 %v13216_v14  ;;  %4731 = vmatprep.mubr.f32.mxu1 %v13216_v14 }
 0x9a1   : > { %v4569_v28 = vmul.f32 %v7719_v24, %v7717_v32  ;;  %4847 = vmatpush1.msra.mxu0 %v11423_v6  ;;  %4936 = vmatpush1.msra.mxu1 %v10795_v58  ;;  %v7721_v44 = vpop.eup %7720  ;;  %v11433_v24 = vpop.f32.mrf.mxu0  ;;  %v11437_v58 = vld [vmem:[#allocation7 + $0x1c0] sm:$0xff] }
 0x9a2   : > { %4848 = vmatprep.subr.mxu0 %v11427_v5  ;;  %4937 = vmatprep.subr.mxu1 %v10807_v42  ;;  %v11435_v32 = vpop.f32.mrf.mxu1  ;;  %v11441_v42 = vld [vmem:[#allocation7 + $0x1a8] sm:$0xff] }
 0x9a3   : > { %4643 = vmatmul.mubr.f32.gmra.mxu0 %v4569_v28  ;;  %4732 = vmatmul.mubr.f32.gmra.mxu1 %v4569_v28  ;;  %13772 = vst [vmem:[#allocation152_spill] sm:$0xff] %v11435_v32 }
 0x9a4   : > { %v7723_v63 = vpop.eup %7722  ;;  %4648 = vmatprep.mubr.f32.mxu0 %v13216_v14  ;;  %4737 = vmatprep.mubr.f32.mxu1 %v13216_v14 }
 0x9a5   : > { %v4570_v51 = vmul.f32 %v7723_v63, %v7721_v44  ;;  %4849 = vmatpush1.msra.mxu0 %v11437_v58  ;;  %4938 = vmatpush1.msra.mxu1 %v10809_v57  ;;  %v7725_v28 = vpop.eup %7724  ;;  %v11447_v44 = vpop.f32.mrf.mxu0  ;;  %v11451_v57 = vld [vmem:[#allocation7 + $0x1a0] sm:$0xff] }
 0x9a6   : > { %4850 = vmatprep.subr.mxu0 %v11441_v42  ;;  %4939 = vmatprep.subr.mxu1 %v10826_v11  ;;  %v11449_v63 = vpop.f32.mrf.mxu1  ;;  %v11455_v11 = vld [vmem:[#allocation7 + $0x188] sm:$0xff] }
 0x9a7   : > { %4649 = vmatmul.mubr.f32.gmra.mxu0 %v4570_v51  ;;  %4738 = vmatmul.mubr.f32.gmra.mxu1 %v4570_v51  ;;  %v11459_v51 = vld [vmem:[#allocation7 + $0x180] sm:$0xff] }
 0x9a8   : > { %v7727_v12 = vpop.eup %7726  ;;  %4654 = vmatprep.mubr.f32.mxu0 %v13216_v14  ;;  %4743 = vmatprep.mubr.f32.mxu1 %v13216_v14 }
 0x9a9   : > { %v4571_v32 = vmul.f32 %v7727_v12, %v7725_v28  ;;  %4851 = vmatpush1.msra.mxu0 %v11451_v57  ;;  %4940 = vmatpush1.msra.mxu1 %v10828_v3  ;;  %v11463_v12 = vpop.f32.mrf.mxu0  ;;  %v11465_v28 = vpop.f32.mrf.mxu1 }
 0x9aa   : > { %4852 = vmatprep.subr.mxu0 %v11455_v11  ;;  %4941 = vmatprep.subr.mxu1 %v10846_v26 }
 0x9ab   : > { %4655 = vmatmul.mubr.f32.gmra.mxu0 %v4571_v32  ;;  %4744 = vmatmul.mubr.f32.gmra.mxu1 %v4571_v32  ;;  %v11475_v3 = vpop.f32.mrf.mxu0  ;;  %v11477_v26 = vpop.f32.mrf.mxu1  ;;  %v13793_v32 = vld [vmem:[#allocation112_spill] sm:$0xff] }
 0x9ac   : > { %4853 = vmatpush1.msra.mxu0 %v11459_v51  ;;  %4942 = vmatpush1.msra.mxu1 %v10848_v15  ;;  %v13773_v15 = vld [vmem:[#allocation65_spill] sm:$0xff] }
 0x9ad   : > { %4854 = vmatprep.subr.mxu0 %v10819_v30  ;;  %4943 = vmatprep.subr.mxu1 %v10866_v60  ;;  %v11487_v30 = vpop.f32.mrf.mxu0  ;;  %v13776_v60 = vld [vmem:[#allocation63_spill] sm:$0xff] }
 0x9ae   : > { %4855 = vmatpush1.msra.mxu0 %v10822_v39  ;;  %4944 = vmatpush1.msra.mxu1 %v10868_v20  ;;  %v11489_v39 = vpop.f32.mrf.mxu1  ;;  %v13777_v20 = vld [vmem:[#allocation62_spill] sm:$0xff] }
 0x9af   : > { %4856 = vmatprep.subr.mxu0 %v10839_v29  ;;  %4945 = vmatprep.subr.mxu1 %v10886_v9  ;;  %v11499_v29 = vpop.f32.mrf.mxu0 }
 0x9b0   : > { %4857 = vmatpush1.msra.mxu0 %v10842_v19  ;;  %4946 = vmatpush1.msra.mxu1 %v10888_v21  ;;  %v11501_v19 = vpop.f32.mrf.mxu1 }
 0x9b1   : > { %4858 = vmatprep.subr.mxu0 %v10859_v17  ;;  %4947 = vmatprep.subr.mxu1 %v10906_v31  ;;  %v13774_v17 = vld [vmem:[#allocation54_spill] sm:$0xff]  ;;  %v11511_v9 = vpop.f32.mrf.mxu0  ;;  %v13782_v31 = vld [vmem:[#allocation72_spill] sm:$0xff] }
 0x9b2   : > { %4859 = vmatpush1.msra.mxu0 %v10862_v25  ;;  %4948 = vmatpush1.msra.mxu1 %v10908_v0  ;;  %v13775_v25 = vld [vmem:[#allocation60_spill] sm:$0xff]  ;;  %v11513_v21 = vpop.f32.mrf.mxu1  ;;  %v13783_v0 = vld [vmem:[#allocation30_spill] sm:$0xff] }
 0x9b3   : > { %4860 = vmatprep.subr.mxu0 %v10879_v10  ;;  %4949 = vmatprep.subr.mxu1 %v10995_v4  ;;  %v13778_v10 = vld [vmem:[#allocation71_spill] sm:$0xff]  ;;  %v13787_v4 = vld [vmem:[#allocation21_spill] sm:$0xff] }
 0x9b4   : > { %4861 = vmatpush1.msra.mxu0 %v10882_v18  ;;  %4950 = vmatpush1.msra.mxu1 %v10997_v13  ;;  %v13779_v18 = vld [vmem:[#allocation70_spill] sm:$0xff]  ;;  %v11523_v13 = vpop.f32.mrf.mxu0 }
 0x9b5   : > { %4862 = vmatprep.subr.mxu0 %v10899_v16  ;;  %4951 = vmatprep.subr.mxu1 %v11051_v46  ;;  %v13780_v16 = vld [vmem:[#allocation64_spill] sm:$0xff]  ;;  %13788 = vst [vmem:[#allocation65_spill] sm:$0xff] %v11523_v13  ;;  %v13792_v46 = vld [vmem:[#allocation22_spill] sm:$0xff]  ;;  %v11898_v13 = vld [vmem:[#allocation7 + $0x68] sm:$0xff] }
 0x9b6   : > { %4863 = vmatpush1.msra.mxu0 %v10902_v22  ;;  %4952 = vmatpush1.msra.mxu1 %v11058_v23  ;;  %v13781_v22 = vld [vmem:[#allocation27_spill] sm:$0xff]  ;;  %v13786_v23 = vld [vmem:[#allocation29_spill] sm:$0xff]  ;;  %13917 = vst [vmem:[#allocation212_spill] sm:$0xff] %v11898_v13 }
 0x9b7   : > { %4864 = vmatprep.subr.mxu0 %v10919_v48  ;;  %4953 = vmatprep.subr.mxu1 %v11063_v1  ;;  %v13784_v48 = vld [vmem:[#allocation24_spill] sm:$0xff]  ;;  %v13791_v1 = vld [vmem:[#allocation110_spill] sm:$0xff] }
 0x9b8   : > { %4865 = vmatpush1.msra.mxu0 %v10922_v8  ;;  %4954 = vmatpush1.msra.mxu1 %v11073_v41  ;;  %v13785_v8 = vld [vmem:[#allocation16_spill] sm:$0xff] }
 0x9b9   : > { %4866 = vmatprep.subr.mxu0 %v11060_v47  ;;  %4955 = vmatprep.subr.mxu1 %v13773_v15  ;;  %v11525_v47 = vpop.f32.mrf.mxu1  ;;  %v13790_v41 = vld [vmem:[#allocation20_spill] sm:$0xff]  ;;  %v13794_v15 = vld [vmem:[#allocation109_spill] sm:$0xff] }
 0x9ba   : > { %4867 = vmatpush1.msra.mxu0 %v13774_v17  ;;  %4956 = vmatpush1.msra.mxu1 %v13775_v25  ;;  %13789 = vst [vmem:[#allocation54_spill] sm:$0xff] %v11525_v47  ;;  %v13795_v17 = vld [vmem:[#allocation115_spill] sm:$0xff] }
 0x9bb   : > { %4868 = vmatprep.subr.mxu0 %v13776_v60  ;;  %4957 = vmatprep.subr.mxu1 %v13777_v20  ;;  %v13796_v25 = vld [vmem:[#allocation111_spill] sm:$0xff]  ;;  %v11535_v60 = vpop.f32.mrf.mxu0  ;;  %v11537_v20 = vpop.f32.mrf.mxu1 }
 0x9bc   : > { %4869 = vmatpush1.msra.mxu0 %v13778_v10  ;;  %4958 = vmatpush1.msra.mxu1 %v13779_v18  ;;  %13797 = vst [vmem:[#allocation60_spill] sm:$0xff] %v11535_v60  ;;  %13798 = vst [vmem:[#allocation63_spill] sm:$0xff] %v11537_v20  ;;  %v13799_v10 = vld [vmem:[#allocation116_spill] sm:$0xff]  ;;  %v11541_v18 = vld [vmem:[#allocation7 + $0x1e8] sm:$0xff] }
 0x9bd   : > { %4870 = vmatprep.subr.mxu0 %v13780_v16  ;;  %4959 = vmatprep.subr.mxu1 %v13781_v22  ;;  %v11544_v16 = vld [vmem:[#allocation7 + $0x1f8] sm:$0xff]  ;;  %v11547_v22 = vpop.f32.mrf.mxu0  ;;  %v11895_v60 = vld [vmem:[#allocation7 + $0x90] sm:$0xff] }
 0x9be   : > { %4871 = vmatpush1.msra.mxu0 %v13782_v31  ;;  %4960 = vmatpush1.msra.mxu1 %v13783_v0  ;;  %13800 = vst [vmem:[#allocation62_spill] sm:$0xff] %v11547_v22  ;;  %v11549_v31 = vpop.f32.mrf.mxu1  ;;  %13916 = vst [vmem:[#allocation211_spill] sm:$0xff] %v11895_v60 }
 0x9bf   : > { %4872 = vmatprep.subr.mxu0 %v13784_v48  ;;  %4961 = vmatprep.subr.mxu1 %v13785_v8  ;;  %13801 = vst [vmem:[#allocation71_spill] sm:$0xff] %v11549_v31  ;;  %v11551_v0 = vpop.f32.mrf.mxu0 }
 0x9c0   : > { %4873 = vmatpush1.msra.mxu0 %v13786_v23  ;;  %4962 = vmatpush1.msra.mxu1 %v13787_v4  ;;  %13802 = vst [vmem:[#allocation70_spill] sm:$0xff] %v11551_v0  ;;  %v11553_v48 = vpop.f32.mrf.mxu1 }
 0x9c1   : > { %4874 = vmatprep.subr.mxu0 %v13790_v41  ;;  %4963 = vmatprep.subr.mxu1 %v13791_v1  ;;  %13803 = vst [vmem:[#allocation64_spill] sm:$0xff] %v11553_v48  ;;  %v11555_v8 = vpop.f32.mrf.mxu0 }
 0x9c2   : > { %4875 = vmatpush1.msra.mxu0 %v13792_v46  ;;  %4964 = vmatpush1.msra.mxu1 %v13793_v32  ;;  %13804 = vst [vmem:[#allocation27_spill] sm:$0xff] %v11555_v8  ;;  %v11557_v23 = vpop.f32.mrf.mxu1 }
 0x9c3   : > { %4876 = vmatprep.subr.mxu0 %v13794_v15  ;;  %4965 = vmatprep.subr.mxu1 %v13795_v17  ;;  %13805 = vst [vmem:[#allocation72_spill] sm:$0xff] %v11557_v23  ;;  %v11559_v4 = vpop.f32.mrf.mxu0 }
 0x9c4   : > { %4877 = vmatpush1.msra.mxu0 %v13796_v25  ;;  %4910 = vmatprep.mubr.f32.mxu0 %v13216_v14  ;;  %13806 = vst [vmem:[#allocation30_spill] sm:$0xff] %v11559_v4  ;;  %v11561_v41 = vpop.f32.mrf.mxu1 }
 0x9c5   : > { %4966 = vmatpush1.msra.mxu1 %v13799_v10  ;;  %4999 = vmatprep.mubr.f32.mxu1 %v13216_v14  ;;  %13807 = vst [vmem:[#allocation24_spill] sm:$0xff] %v11561_v41  ;;  %v11563_v1 = vpop.f32.mrf.mxu0 }
 0x9c6   : > { %5120 = vmatprep.subr.mxu0 %v11541_v18  ;;  %5209 = vmatprep.subr.mxu1 %v11544_v16  ;;  %13808 = vst [vmem:[#allocation16_spill] sm:$0xff] %v11563_v1  ;;  %v11565_v46 = vpop.f32.mrf.mxu1 }
 0x9c7   : > { %13809 = vst [vmem:[#allocation29_spill] sm:$0xff] %v11565_v46  ;;  %v11567_v32 = vpop.f32.mrf.mxu0 }
 0x9c8   : > { %13810 = vst [vmem:[#allocation21_spill] sm:$0xff] %v11567_v32  ;;  %v11569_v15 = vpop.f32.mrf.mxu1 }
 0x9c9   : > { %13811 = vst [vmem:[#allocation20_spill] sm:$0xff] %v11569_v15  ;;  %v11571_v17 = vpop.f32.mrf.mxu0 }
 0x9ca   : > { %13812 = vst [vmem:[#allocation110_spill] sm:$0xff] %v11571_v17  ;;  %v11573_v25 = vpop.f32.mrf.mxu1 }
 0x9cb   : > { %13813 = vst [vmem:[#allocation22_spill] sm:$0xff] %v11573_v25  ;;  %v11575_v10 = vpop.f32.mrf.mxu0 }
 0x9cc   : > { %13814 = vst [vmem:[#allocation112_spill] sm:$0xff] %v11575_v10  ;;  %v11577_v48 = vpop.f32.mrf.mxu1 }
 0x9cd   : > { %13815 = vst [vmem:[#allocation109_spill] sm:$0xff] %v11577_v48  ;;  %v11579_v23 = vpop.f32.mrf.mxu0 }
 0x9ce   : > { %13816 = vst [vmem:[#allocation115_spill] sm:$0xff] %v11579_v23  ;;  %v11581_v20 = vpop.f32.mrf.mxu1 }
 0x9cf   : > { %13817 = vst [vmem:[#allocation111_spill] sm:$0xff] %v11581_v20  ;;  %v11583_v41 = vpop.f32.mrf.mxu0 }
 0x9d0   : > { %13818 = vst [vmem:[#allocation116_spill] sm:$0xff] %v11583_v41  ;;  %v11585_v31 = vpop.f32.mrf.mxu1 }
 0x9d1   : > { %13819 = vst [vmem:[#allocation153_spill] sm:$0xff] %v11585_v31  ;;  %v11587_v46 = vpop.f32.mrf.mxu0 }
 0x9d2   : > { %13820 = vst [vmem:[#allocation154_spill] sm:$0xff] %v11587_v46  ;;  %v11589_v32 = vpop.f32.mrf.mxu1 }
 0x9d3   : > { %13821 = vst [vmem:[#allocation155_spill] sm:$0xff] %v11589_v32  ;;  %v11591_v15 = vpop.f32.mrf.mxu0 }
 0x9d4   : > { %13822 = vst [vmem:[#allocation156_spill] sm:$0xff] %v11591_v15  ;;  %v11593_v17 = vpop.f32.mrf.mxu1 }
 0x9d5   : > { %13823 = vst [vmem:[#allocation157_spill] sm:$0xff] %v11593_v17  ;;  %v11595_v25 = vpop.f32.mrf.mxu0 }
 0x9d6   : > { %13824 = vst [vmem:[#allocation158_spill] sm:$0xff] %v11595_v25  ;;  %v11597_v10 = vpop.f32.mrf.mxu1 }
 0x9d7   : > { %13825 = vst [vmem:[#allocation159_spill] sm:$0xff] %v11597_v10  ;;  %v11599_v48 = vpop.f32.mrf.mxu0 }
 0x9d8   : > { %13826 = vst [vmem:[#allocation160_spill] sm:$0xff] %v11599_v48  ;;  %v11601_v23 = vpop.f32.mrf.mxu1 }
 0x9d9   : > { %13827 = vst [vmem:[#allocation161_spill] sm:$0xff] %v11601_v23  ;;  %v11603_v20 = vpop.f32.mrf.mxu0 }
 0x9da   : > { %13828 = vst [vmem:[#allocation162_spill] sm:$0xff] %v11603_v20  ;;  %v11605_v41 = vpop.f32.mrf.mxu1 }
 0x9db   : > { %13829 = vst [vmem:[#allocation163_spill] sm:$0xff] %v11605_v41  ;;  %v11607_v31 = vpop.f32.mrf.mxu0 }
 0x9dc   : > { %13830 = vst [vmem:[#allocation164_spill] sm:$0xff] %v11607_v31  ;;  %v11609_v46 = vpop.f32.mrf.mxu1 }
 0x9dd   : > { %13831 = vst [vmem:[#allocation165_spill] sm:$0xff] %v11609_v46  ;;  %v11611_v32 = vpop.f32.mrf.mxu0 }
 0x9de   : > { %13832 = vst [vmem:[#allocation166_spill] sm:$0xff] %v11611_v32  ;;  %v11613_v15 = vpop.f32.mrf.mxu1 }
 0x9df   : > { %13833 = vst [vmem:[#allocation167_spill] sm:$0xff] %v11613_v15  ;;  %v11615_v17 = vpop.f32.mrf.mxu0 }
 0x9e0   : > { %13834 = vst [vmem:[#allocation168_spill] sm:$0xff] %v11615_v17  ;;  %v11617_v25 = vpop.f32.mrf.mxu1 }
 0x9e1   : > { %13835 = vst [vmem:[#allocation169_spill] sm:$0xff] %v11617_v25  ;;  %v11619_v10 = vpop.f32.mrf.mxu0 }
 0x9e2   : > { %13836 = vst [vmem:[#allocation170_spill] sm:$0xff] %v11619_v10  ;;  %v11621_v48 = vpop.f32.mrf.mxu1 }
 0x9e3   : > { %13837 = vst [vmem:[#allocation171_spill] sm:$0xff] %v11621_v48  ;;  %v11623_v23 = vpop.f32.mrf.mxu0 }
 0x9e4   : > { %13838 = vst [vmem:[#allocation172_spill] sm:$0xff] %v11623_v23  ;;  %v11625_v20 = vpop.f32.mrf.mxu1 }
 0x9e5   : > { %13839 = vst [vmem:[#allocation173_spill] sm:$0xff] %v11625_v20  ;;  %v11627_v41 = vpop.f32.mrf.mxu0 }
 0x9e6   : > { %13840 = vst [vmem:[#allocation174_spill] sm:$0xff] %v11627_v41  ;;  %v11629_v31 = vpop.f32.mrf.mxu1 }
 0x9e7   : > { %13841 = vst [vmem:[#allocation175_spill] sm:$0xff] %v11629_v31  ;;  %v11631_v46 = vpop.f32.mrf.mxu0 }
 0x9e8   : > { %13842 = vst [vmem:[#allocation176_spill] sm:$0xff] %v11631_v46  ;;  %v11633_v32 = vpop.f32.mrf.mxu1 }
 0x9e9   : > { %13843 = vst [vmem:[#allocation177_spill] sm:$0xff] %v11633_v32  ;;  %v11635_v15 = vpop.f32.mrf.mxu0 }
 0x9ea   : > { %13844 = vst [vmem:[#allocation178_spill] sm:$0xff] %v11635_v15  ;;  %v11637_v17 = vpop.f32.mrf.mxu1 }
 0x9eb   : > { %13845 = vst [vmem:[#allocation179_spill] sm:$0xff] %v11637_v17  ;;  %v11639_v25 = vpop.f32.mrf.mxu0 }
 0x9ec   : > { %13846 = vst [vmem:[#allocation180_spill] sm:$0xff] %v11639_v25  ;;  %v11641_v10 = vpop.f32.mrf.mxu1 }
 0x9ed   : > { %13847 = vst [vmem:[#allocation181_spill] sm:$0xff] %v11641_v10  ;;  %v11643_v48 = vpop.f32.mrf.mxu0 }
 0x9ee   : > { %13848 = vst [vmem:[#allocation182_spill] sm:$0xff] %v11643_v48  ;;  %v11645_v23 = vpop.f32.mrf.mxu1 }
 0x9ef   : > { %13849 = vst [vmem:[#allocation183_spill] sm:$0xff] %v11645_v23  ;;  %v11647_v20 = vpop.f32.mrf.mxu0 }
 0x9f0   : > { %13850 = vst [vmem:[#allocation184_spill] sm:$0xff] %v11647_v20  ;;  %v11649_v41 = vpop.f32.mrf.mxu1 }
 0x9f1   : > { %13851 = vst [vmem:[#allocation185_spill] sm:$0xff] %v11649_v41  ;;  %v11651_v31 = vpop.f32.mrf.mxu0 }
 0x9f2   : > { %13852 = vst [vmem:[#allocation186_spill] sm:$0xff] %v11651_v31  ;;  %v11653_v46 = vpop.f32.mrf.mxu1 }
 0x9f3   : > { %13853 = vst [vmem:[#allocation187_spill] sm:$0xff] %v11653_v46  ;;  %v11655_v32 = vpop.f32.mrf.mxu0 }
 0x9f4   : > { %13854 = vst [vmem:[#allocation188_spill] sm:$0xff] %v11655_v32  ;;  %v11657_v15 = vpop.f32.mrf.mxu1 }
 0x9f5   : > { %13855 = vst [vmem:[#allocation189_spill] sm:$0xff] %v11657_v15  ;;  %v11659_v17 = vpop.f32.mrf.mxu0 }
 0x9f6   : > { %13856 = vst [vmem:[#allocation190_spill] sm:$0xff] %v11659_v17  ;;  %v11661_v25 = vpop.f32.mrf.mxu1 }
 0x9f7   : > { %13857 = vst [vmem:[#allocation191_spill] sm:$0xff] %v11661_v25  ;;  %v11663_v10 = vpop.f32.mrf.mxu0 }
 0x9f8   : > { %13858 = vst [vmem:[#allocation192_spill] sm:$0xff] %v11663_v10  ;;  %v11665_v48 = vpop.f32.mrf.mxu1 }
 0x9f9   : > { %13859 = vst [vmem:[#allocation193_spill] sm:$0xff] %v11665_v48  ;;  %v11667_v23 = vpop.f32.mrf.mxu0 }
 0x9fa   : > { %13860 = vst [vmem:[#allocation194_spill] sm:$0xff] %v11667_v23  ;;  %v11669_v20 = vpop.f32.mrf.mxu1 }
 0x9fb   : > { %13861 = vst [vmem:[#allocation195_spill] sm:$0xff] %v11669_v20  ;;  %v11671_v41 = vpop.f32.mrf.mxu0 }
 0x9fc   : > { %13862 = vst [vmem:[#allocation196_spill] sm:$0xff] %v11671_v41  ;;  %v11673_v31 = vpop.f32.mrf.mxu1 }
 0x9fd   : > { %13863 = vst [vmem:[#allocation197_spill] sm:$0xff] %v11673_v31  ;;  %v11675_v46 = vpop.f32.mrf.mxu0  ;;  %v13874_v31 = vld [vmem:[#allocation126_spill] sm:$0xff] }
 0x9fe   : > { %13864 = vst [vmem:[#allocation198_spill] sm:$0xff] %v11675_v46  ;;  %v11677_v32 = vpop.f32.mrf.mxu1  ;;  %v3875_v46 = vadd.f32 %v11371_v37, %v13874_v31  ;;  %v13880_v37 = vld [vmem:[#allocation132_spill] sm:$0xff] }
 0x9ff   : > { %13865 = vst [vmem:[#allocation199_spill] sm:$0xff] %v11677_v32  ;;  %v11679_v15 = vpop.f32.mrf.mxu0  ;;  %v13875_v32 = vld [vmem:[#allocation128_spill] sm:$0xff]  ;;  %v3883_v31 = vadd.f32 %v11387_v53, %v13880_v37 }
 0xa00   : > { %13866 = vst [vmem:[#allocation200_spill] sm:$0xff] %v11679_v15  ;;  %v11681_v17 = vpop.f32.mrf.mxu1  ;;  %v3877_v15 = vadd.f32 %v11376_v54, %v13875_v32  ;;  %v13881_v32 = vld [vmem:[#allocation134_spill] sm:$0xff] }
 0xa01   : > { %13867 = vst [vmem:[#allocation201_spill] sm:$0xff] %v11681_v17  ;;  %v11683_v25 = vpop.f32.mrf.mxu0  ;;  %v13876_v17 = vsub.s32 1, %v13763_v2 }
 0xa02   : > { %13868 = vst [vmem:[#allocation202_spill] sm:$0xff] %v11683_v25  ;;  %v11685_v10 = vpop.f32.mrf.mxu1 }
 0xa03   : > { %13869 = vst [vmem:[#allocation203_spill] sm:$0xff] %v11685_v10  ;;  %v11687_v48 = vpop.f32.mrf.mxu0  ;;  %v11702_v25 = vrot.slane %v11328_v7, %v13876_v17  ;;  %v3887_v7 = vadd.f32 %v11394_v50, %v13881_v32 }
 0xa04   : > { %13870 = vst [vmem:[#allocation204_spill] sm:$0xff] %v11687_v48  ;;  %v11689_v23 = vpop.f32.mrf.mxu1 }
 0xa05   : > { %13871 = vst [vmem:[#allocation205_spill] sm:$0xff] %v11689_v23  ;;  %v11691_v20 = vpop.f32.mrf.mxu0  ;;  %v13879_v23 = vld [vmem:[#allocation130_spill] sm:$0xff]  ;;  %v4333_v2 = vadd.f32 %v11702_v25, %v3877_v15  ;;  %v4337_v15 = vadd.f32 %v11702_v25, %v3883_v31  ;;  %v4340_v37 = vadd.f32 %v11337_v35, %v3887_v7 }
 0xa06   : > { %13872 = vst [vmem:[#allocation206_spill] sm:$0xff] %v11691_v20  ;;  %v11693_v41 = vpop.f32.mrf.mxu1  ;;  %v3881_v20 = vadd.f32 %v11381_v27, %v13879_v23  ;;  %v13882_v27 = vld [vmem:[#allocation127_spill] sm:$0xff] }
 0xa07   : > { %13873 = vst [vmem:[#allocation207_spill] sm:$0xff] %v11693_v41  ;;  %v11704_v10 = vpop.f32.mrf.mxu0  ;;  %v4332_v41 = vadd.f32 %v11337_v35, %v3875_v46  ;;  %v4132_v23 = vadd.f32 %v11373_v43, %v13882_v27  ;;  %v13883_v46 = vld [vmem:[#allocation136_spill] sm:$0xff] }
 0xa08   : > { %13877 = vst [vmem:[#allocation126_spill] sm:$0xff] %v11704_v10  ;;  %v11706_v48 = vpop.f32.mrf.mxu1  ;;  %v4336_v8 = vadd.f32 %v11337_v35, %v3881_v20  ;;  %v3889_v0 = vadd.f32 %v11401_v55, %v13883_v46  ;;  %v13887_v46 = vld [vmem:[#allocation129_spill] sm:$0xff] }
 0xa09   : > { %13878 = vst [vmem:[#allocation128_spill] sm:$0xff] %v11706_v48  ;;  %v4334_v27 = vadd.f32 %v11346_v62, %v4132_v23 }
 0xa5f   : > { %v4638_v1 = vpop.f32.mrf.mxu0  ;;  %v4727_v4 = vpop.f32.mrf.mxu1 }
 0xa60   : > { %v4639_v54 = vadd.f32 %v4638_v1, %v4332_v41 }
 0xa61   : > { %v4640_v17 = vpop.f32.mrf.mxu0  ;;  %v4729_v10 = vpop.f32.mrf.mxu1 }
 0xa62   : > { %v6928_v47 = vmul.f32 -1.442695, %v4639_v54  ;;  %v4641_v48 = vadd.f32 %v4640_v17, %v4333_v2  ;;  %v13884_v54 = vld [vmem:[#allocation138_spill] sm:$0xff]  ;;  %v13885_v17 = vld [vmem:[#allocation131_spill] sm:$0xff] }
 0xa63   : > { %v4644_v22 = vpop.f32.mrf.mxu0  ;;  %v4733_v53 = vpop.f32.mrf.mxu1  ;;  %v3893_v2 = vadd.f32 %v11408_v52, %v13884_v54  ;;  %v4138_v55 = vadd.f32 %v11383_v36, %v13885_v17  ;;  %v4134_v52 = vadd.f32 %v11378_v56, %v13887_v46  ;;  %v13888_v54 = vld [vmem:[#allocation135_spill] sm:$0xff]  ;;  %v13889_v56 = vld [vmem:[#allocation133_spill] sm:$0xff] }
 0xa64   : > { %7728 = vpow2.f32 %v6928_v47  ;;  %v6929_v41 = vmul.f32 -1.442695, %v4641_v48  ;;  %v4645_v1 = vadd.f32 %v4644_v22, %v4336_v8  ;;  %v4341_v22 = vadd.f32 %v11702_v25, %v3889_v0  ;;  %v13886_v48 = vld [vmem:[#allocation38_spill] sm:$0xff] }
 0xa65   : > { %v4646_v50 = vpop.f32.mrf.mxu0  ;;  %v4735_v43 = vpop.f32.mrf.mxu1  ;;  %v3895_v8 = vadd.f32 %v11413_v40, %v13886_v48  ;;  %v4344_v23 = vadd.f32 %v11337_v35, %v3893_v2  ;;  %v4144_v0 = vadd.f32 %v11396_v59, %v13888_v54  ;;  %v4338_v17 = vadd.f32 %v11346_v62, %v4138_v55 }
 0xa66   : > { %7730 = vpow2.f32 %v6929_v41  ;;  %v6931_v20 = vmul.f32 -1.442695, %v4645_v1  ;;  %v4647_v32 = vadd.f32 %v4646_v50, %v4337_v15  ;;  %v4728_v41 = vadd.f32 %v4727_v4, %v4334_v27 }
 0xa67   : > { %v4650_v47 = vpop.f32.mrf.mxu0  ;;  %v4739_v50 = vpop.f32.mrf.mxu1  ;;  %v4140_v4 = vadd.f32 %v11389_v38, %v13889_v56 }
 0xa68   : > { %7732 = vpow2.f32 %v6931_v20  ;;  %v6932_v31 = vmul.f32 -1.442695, %v4647_v32  ;;  %v4651_v7 = vadd.f32 %v4650_v47, %v4340_v37  ;;  %v4345_v32 = vadd.f32 %v11702_v25, %v3895_v8 }
 0xa69   : > { %v4652_v1 = vpop.f32.mrf.mxu0  ;;  %v6930_v27 = vmul.f32 -1.442695, %v4728_v41  ;;  %v4335_v47 = vadd.f32 %v11357_v61, %v4134_v52  ;;  %v4741_v2 = vpop.f32.mrf.mxu1 }
 0xa6a   : > { %7734 = vpow2.f32 %v6932_v31  ;;  %v6934_v15 = vmul.f32 -1.442695, %v4651_v7  ;;  %v4653_v36 = vadd.f32 %v4652_v1, %v4341_v22  ;;  %v4734_v22 = vadd.f32 %v4733_v53, %v4338_v17  ;;  %v13890_v7 = vld [vmem:[#allocation139_spill] sm:$0xff] }
 0xa6b   : > { %v4656_v40 = vpop.f32.mrf.mxu0  ;;  %v4150_v55 = vadd.f32 %v11410_v49, %v13890_v7  ;;  %v4730_v46 = vadd.f32 %v4729_v10, %v4335_v47  ;;  %v4342_v1 = vadd.f32 %v11346_v62, %v4144_v0  ;;  %v4339_v53 = vadd.f32 %v11357_v61, %v4140_v4  ;;  %v4745_v54 = vpop.f32.mrf.mxu1 }
 0xa6c   : > { %7736 = vpow2.f32 %v6934_v15  ;;  %v6935_v20 = vmul.f32 -1.442695, %v4653_v36  ;;  %v4657_v37 = vadd.f32 %v4656_v40, %v4344_v23  ;;  %v13891_v15 = vld [vmem:[#allocation137_spill] sm:$0xff]  ;;  %v6933_v52 = vmul.f32 -1.442695, %v4734_v22 }
 0xa6d   : > { %v4658_v48 = vpop.f32.mrf.mxu0  ;;  %v4146_v8 = vadd.f32 %v11403_v34, %v13891_v15  ;;  %v4740_v36 = vadd.f32 %v4739_v50, %v4342_v1  ;;  %v4736_v49 = vadd.f32 %v4735_v43, %v4339_v53  ;;  %v4346_v10 = vadd.f32 %v11346_v62, %v4150_v55  ;;  %v4747_v47 = vpop.f32.mrf.mxu1 }
 0xa6e   : > { %7738 = vpow2.f32 %v6935_v20  ;;  %v6937_v31 = vmul.f32 -1.442695, %v4657_v37  ;;  %v4659_v59 = vadd.f32 %v4658_v48, %v4345_v32  ;;  %v13892_v20 = vld [vmem:[#allocation140_spill] sm:$0xff] }
 0xa6f   : > { %v4343_v34 = vadd.f32 %v11357_v61, %v4146_v8  ;;  %v4152_v37 = vadd.f32 %v11415_v33, %v13892_v20  ;;  %v6936_v32 = vmul.f32 -1.442695, %v4740_v36  ;;  %v4746_v56 = vadd.f32 %v4745_v54, %v4346_v10 }
 0xa70   : > { %7740 = vpow2.f32 %v6937_v31  ;;  %v6938_v38 = vmul.f32 -1.442695, %v4659_v59 }
 0xa71   : > { %v7729_v41 = vpop.eup %7728  ;;  %7742 = vpow2.f32 %v6930_v27  ;;  %v4742_v27 = vadd.f32 %v4741_v2, %v4343_v34  ;;  %v6939_v48 = vmul.f32 -1.442695, %v4746_v56  ;;  %v4347_v31 = vadd.f32 %v11357_v61, %v4152_v37  ;;  %v13893_v37 = vld [vmem:[#allocation33_spill] sm:$0xff] }
 0xa72   : > { %v4786_v23 = vadd.f32 1.0, %v7729_v41  ;;  %7744 = vpow2.f32 %v6938_v38 }
 0xa73   : > { %v7731_v17 = vpop.eup %7730  ;;  %7746 = vtanh.f32 %v4730_v46  ;;  %v4748_v33 = vadd.f32 %v4747_v47, %v4347_v31 }
 0xa74   : > { %7748 = vrcp.f32 %v4786_v23  ;;  %v4787_v0 = vadd.f32 1.0, %v7731_v17 }
 0xa75   : > { %v7733_v40 = vpop.eup %7732  ;;  %7750 = vpow2.f32 %v6933_v52 }
 0xa76   : > { %7752 = vrcp.f32 %v4787_v0  ;;  %v4789_v50 = vadd.f32 1.0, %v7733_v40 }
 0xa77   : > { %v7735_v4 = vpop.eup %7734  ;;  %7754 = vtanh.f32 %v4736_v49 }
 0xa78   : > { %7756 = vrcp.f32 %v4789_v50  ;;  %v4790_v43 = vadd.f32 1.0, %v7735_v4 }
 0xa79   : > { %v7737_v22 = vpop.eup %7736  ;;  %7758 = vpow2.f32 %v6936_v32 }
 0xa7a   : > { %7760 = vrcp.f32 %v4790_v43  ;;  %v4792_v59 = vadd.f32 1.0, %v7737_v22 }
 0xa7b   : > { %v7739_v7 = vpop.eup %7738  ;;  %7762 = vtanh.f32 %v4742_v27 }
 0xa7c   : > { %7764 = vrcp.f32 %v4792_v59  ;;  %v4793_v55 = vadd.f32 1.0, %v7739_v7 }
 0xa7d   : > { %v7741_v46 = vpop.eup %7740  ;;  %7766 = vpow2.f32 %v6939_v48  ;;  %v13894_v48 = vld [vmem:[#allocation148_spill] sm:$0xff] }
 0xa7e   : > { %v7743_v1 = vpop.eup %7742  ;;  %7768 = vrcp.f32 %v4793_v55  ;;  %v4795_v2 = vadd.f32 1.0, %v7741_v46 }
 0xa7f   : > { %v7745_v15 = vpop.eup %7744  ;;  %7770 = vtanh.f32 %v4748_v33  ;;  %v4788_v36 = vadd.f32 1.0, %v7743_v1  ;;  %v13895_v1 = vld [vmem:[#allocation149_spill] sm:$0xff] }
 0xa80   : > { %v7747_v8 = vpop.eup %7746  ;;  %7772 = vrcp.f32 %v4795_v2  ;;  %v4796_v38 = vadd.f32 1.0, %v7745_v15 }
 0xa81   : > { %v7749_v41 = vpop.eup %7748 }
 0xa82   : > { %v7751_v52 = vpop.eup %7750  ;;  %7774 = vrcp.f32 %v4796_v38  ;;  %v4830_v17 = vmul.f32 %v7749_v41, %v7747_v8 }
 0xa83   : > { %v7753_v53 = vpop.eup %7752  ;;  %7776 = vrcp.f32 %v4788_v36  ;;  %v4791_v40 = vadd.f32 1.0, %v7751_v52 }
 0xa84   : > { %v7755_v23 = vpop.eup %7754  ;;  %v4826_v54 = vmul.f32 %v7753_v53, %v11385_v45 }
 0xa85   : > { %v7757_v49 = vpop.eup %7756 }
 0xa86   : > { %v7759_v10 = vpop.eup %7758  ;;  %v11753_v0 = vadd.f32 %v4830_v17, %v4826_v54  ;;  %v4831_v56 = vmul.f32 %v7757_v49, %v7755_v23  ;;  %v11771_v23 = vld [vmem:[#allocation7 + $0x1f0] sm:$0xff]  ;;  %v11775_v54 = vld [vmem:[#allocation7 + $0x1d8] sm:$0xff] }
 0xa87   : > { %v7761_v34 = vpop.eup %7760  ;;  %v4794_v47 = vadd.f32 1.0, %v7759_v10 }
 0xa88   : > { %v7763_v20 = vpop.eup %7762  ;;  %7778 = vtanh.f32 %v11753_v0  ;;  %v4827_v32 = vmul.f32 %v7761_v34, %v13893_v37  ;;  %v11799_v37 = vld [vmem:[#allocation7 + $0x190] sm:$0xff] }
 0xa89   : > { %v7765_v50 = vpop.eup %7764  ;;  %7780 = vrcp.f32 %v4791_v40 }
 0xa8a   : > { %v7767_v4 = vpop.eup %7766  ;;  %v11757_v27 = vadd.f32 %v4831_v56, %v4827_v32  ;;  %v4832_v43 = vmul.f32 %v7765_v50, %v7763_v20  ;;  %v11802_v32 = vld [vmem:[#allocation7 + $0x168] sm:$0xff]  ;;  %v11811_v56 = vld [vmem:[#allocation7 + $0x170] sm:$0xff]  ;;  %v11817_v50 = vld [vmem:[#allocation7 + $0x158] sm:$0xff] }
 0xa8b   : > { %v7769_v45 = vpop.eup %7768  ;;  %v4797_v46 = vadd.f32 1.0, %v7767_v4  ;;  %v11820_v4 = vld [vmem:[#allocation7 + $0x140] sm:$0xff] }
 0xa8c   : > { %v7771_v22 = vpop.eup %7770  ;;  %7782 = vtanh.f32 %v11757_v27  ;;  %v4828_v31 = vmul.f32 %v7769_v45, %v13894_v48  ;;  %v11826_v45 = vld [vmem:[#allocation7 + $0x128] sm:$0xff]  ;;  %v11835_v48 = vld [vmem:[#allocation7 + $0x130] sm:$0xff] }
 0xa8d   : > { %v7773_v59 = vpop.eup %7772  ;;  %7784 = vrcp.f32 %v4794_v47  ;;  %v11829_v47 = vld [vmem:[#allocation7 + $0x138] sm:$0xff]  ;;  %13896 = vst [vmem:[#allocation130_spill] sm:$0xff] %v11835_v48 }
 0xa8e   : > { %v11761_v7 = vadd.f32 %v4832_v43, %v4828_v31  ;;  %v4833_v33 = vmul.f32 %v7773_v59, %v7771_v22  ;;  %v11823_v43 = vld [vmem:[#allocation7 + $0x150] sm:$0xff]  ;;  %v11832_v22 = vld [vmem:[#allocation7 + $0x120] sm:$0xff]  ;;  %v11838_v31 = vld [vmem:[#allocation7 + $0x108] sm:$0xff] }
 0xa8f   : > { %v7775_v55 = vpop.eup %7774  ;;  %13897 = vst [vmem:[#allocation132_spill] sm:$0xff] %v11838_v31  ;;  %v11841_v59 = vld [vmem:[#allocation7 + $0x118] sm:$0xff] }
 0xa90   : > { %7786 = vtanh.f32 %v11761_v7  ;;  %v4829_v2 = vmul.f32 %v7775_v55, %v13895_v1  ;;  %v7777_v8 = vpop.eup %7776  ;;  %13898 = vst [vmem:[#allocation134_spill] sm:$0xff] %v11841_v59  ;;  %v11847_v55 = vld [vmem:[#allocation7 + $0x110] sm:$0xff]  ;;  %v11853_v1 = vld [vmem:[#allocation7 + $0xf8] sm:$0xff] }
 0xa91   : > { %7788 = vrcp.f32 %v4797_v46  ;;  %13900 = vst [vmem:[#allocation136_spill] sm:$0xff] %v11847_v55  ;;  %v11850_v46 = vld [vmem:[#allocation7 + $0xe8] sm:$0xff]  ;;  %13902 = vst [vmem:[#allocation131_spill] sm:$0xff] %v11853_v1 }
 0xa92   : > { %v11765_v15 = vadd.f32 %v4833_v33, %v4829_v2  ;;  %v11844_v33 = vld [vmem:[#allocation7 + $0x100] sm:$0xff]  ;;  %13901 = vst [vmem:[#allocation138_spill] sm:$0xff] %v11850_v46 }
 0xa93   : > { %13899 = vst [vmem:[#allocation127_spill] sm:$0xff] %v11844_v33  ;;  %v11856_v2 = vld [vmem:[#allocation7 + $0xe0] sm:$0xff] }
 0xa94   : > { %7790 = vtanh.f32 %v11765_v15  ;;  %13903 = vst [vmem:[#allocation38_spill] sm:$0xff] %v11856_v2 }
 0xa95   : > { %v7779_v38 = vpop.eup %7778 }
 0xa96   : > { %v4842_v41 = vmul.f32 %v7779_v38, %v7777_v8  ;;  %v7781_v52 = vpop.eup %7780  ;;  %v11859_v8 = vld [vmem:[#allocation7 + $0xf0] sm:$0xff]  ;;  %v11862_v38 = vld [vmem:[#allocation7 + $0xc8] sm:$0xff] }
 0xa97   : > { %13904 = vst [vmem:[#allocation129_spill] sm:$0xff] %v11859_v8  ;;  %13905 = vst [vmem:[#allocation135_spill] sm:$0xff] %v11862_v38 }
 0xa98   : > { %4911 = vmatmul.mubr.f32.vlgmr.msra.gmra.mxu0 %v4842_v41  ;;  %5000 = vmatmul.mubr.f32.vlgmr.msra.gmra.mxu1 %v4842_v41  ;;  %v11865_v41 = vld [vmem:[#allocation7 + $0xd8] sm:$0xff] }
 0xa99   : > { %v7783_v53 = vpop.eup %7782  ;;  %4916 = vmatprep.mubr.f32.mxu0 %v13216_v14  ;;  %5005 = vmatprep.mubr.f32.mxu1 %v13216_v14  ;;  %13906 = vst [vmem:[#allocation133_spill] sm:$0xff] %v11865_v41 }
 0xa9a   : > { %v4843_v36 = vmul.f32 %v7783_v53, %v7781_v52  ;;  %5121 = vmatpush1.msra.mxu0 %v11423_v6  ;;  %5210 = vmatpush1.msra.mxu1 %v11771_v23  ;;  %v7785_v17 = vpop.eup %7784  ;;  %v11781_v6 = vld [vmem:[#allocation7 + $0x1d0] sm:$0xff]  ;;  %v11868_v52 = vld [vmem:[#allocation7 + $0xc0] sm:$0xff] }
 0xa9b   : > { %5122 = vmatprep.subr.mxu0 %v11427_v5  ;;  %5211 = vmatprep.subr.mxu1 %v11775_v54  ;;  %v11785_v5 = vld [vmem:[#allocation7 + $0x1b8] sm:$0xff]  ;;  %13907 = vst [vmem:[#allocation139_spill] sm:$0xff] %v11868_v52  ;;  %v11871_v53 = vld [vmem:[#allocation7 + $0xd0] sm:$0xff] }
 0xa9c   : > { %4917 = vmatmul.mubr.f32.gmra.mxu0 %v4843_v36  ;;  %5006 = vmatmul.mubr.f32.gmra.mxu1 %v4843_v36  ;;  %13908 = vst [vmem:[#allocation137_spill] sm:$0xff] %v11871_v53  ;;  %v11874_v36 = vld [vmem:[#allocation7 + $0xa8] sm:$0xff] }
 0xa9d   : > { %v7787_v49 = vpop.eup %7786  ;;  %4922 = vmatprep.mubr.f32.mxu0 %v13216_v14  ;;  %5011 = vmatprep.mubr.f32.mxu1 %v13216_v14  ;;  %13909 = vst [vmem:[#allocation140_spill] sm:$0xff] %v11874_v36 }
 0xa9e   : > { %v4844_v10 = vmul.f32 %v7787_v49, %v7785_v17  ;;  %5123 = vmatpush1.msra.mxu0 %v11437_v58  ;;  %5212 = vmatpush1.msra.mxu1 %v11781_v6  ;;  %v7789_v34 = vpop.eup %7788  ;;  %v11791_v58 = vld [vmem:[#allocation7 + $0x1b0] sm:$0xff]  ;;  %v11877_v17 = vld [vmem:[#allocation7 + $0xb8] sm:$0xff]  ;;  %v11880_v49 = vld [vmem:[#allocation7 + $0xa0] sm:$0xff] }
 0xa9f   : > { %5124 = vmatprep.subr.mxu0 %v11441_v42  ;;  %5213 = vmatprep.subr.mxu1 %v11785_v5  ;;  %v11795_v42 = vld [vmem:[#allocation7 + $0x198] sm:$0xff]  ;;  %13910 = vst [vmem:[#allocation33_spill] sm:$0xff] %v11877_v17  ;;  %13911 = vst [vmem:[#allocation148_spill] sm:$0xff] %v11880_v49 }
 0xaa0   : > { %4923 = vmatmul.mubr.f32.gmra.mxu0 %v4844_v10  ;;  %5012 = vmatmul.mubr.f32.gmra.mxu1 %v4844_v10  ;;  %v11883_v10 = vld [vmem:[#allocation7 + $0xb0] sm:$0xff] }
 0xaa1   : > { %v7791_v40 = vpop.eup %7790  ;;  %4928 = vmatprep.mubr.f32.mxu0 %v13216_v14  ;;  %5017 = vmatprep.mubr.f32.mxu1 %v13216_v14  ;;  %13912 = vst [vmem:[#allocation149_spill] sm:$0xff] %v11883_v10 }
 0xaa2   : > { %v4845_v20 = vmul.f32 %v7791_v40, %v7789_v34  ;;  %5125 = vmatpush1.msra.mxu0 %v11451_v57  ;;  %5214 = vmatpush1.msra.mxu1 %v11791_v58  ;;  %v11805_v57 = vld [vmem:[#allocation7 + $0x178] sm:$0xff]  ;;  %v11886_v34 = vld [vmem:[#allocation7 + $0x88] sm:$0xff] }
 0xaa3   : > { %5126 = vmatprep.subr.mxu0 %v11455_v11  ;;  %5215 = vmatprep.subr.mxu1 %v11795_v42  ;;  %v11808_v11 = vld [vmem:[#allocation7 + $0x160] sm:$0xff]  ;;  %13913 = vst [vmem:[#allocation208_spill] sm:$0xff] %v11886_v34  ;;  %v11889_v40 = vld [vmem:[#allocation7 + $0x98] sm:$0xff] }
 0xaa4   : > { %4929 = vmatmul.mubr.f32.gmra.mxu0 %v4845_v20  ;;  %5018 = vmatmul.mubr.f32.gmra.mxu1 %v4845_v20  ;;  %13914 = vst [vmem:[#allocation209_spill] sm:$0xff] %v11889_v40  ;;  %v11892_v20 = vld [vmem:[#allocation7 + $0x80] sm:$0xff] }
 0xaa5   : > { %5127 = vmatpush1.msra.mxu0 %v11459_v51  ;;  %5216 = vmatpush1.msra.mxu1 %v11799_v37  ;;  %v11814_v51 = vld [vmem:[#allocation7 + $0x148] sm:$0xff]  ;;  %13915 = vst [vmem:[#allocation210_spill] sm:$0xff] %v11892_v20 }
 0xaa6   : > { %5128 = vmatprep.subr.mxu0 %v11802_v32  ;;  %5217 = vmatprep.subr.mxu1 %v11805_v57 }
 0xaa7   : > { %5129 = vmatpush1.msra.mxu0 %v11808_v11  ;;  %5218 = vmatpush1.msra.mxu1 %v11811_v56 }
 0xaa8   : > { %5130 = vmatprep.subr.mxu0 %v11814_v51  ;;  %5219 = vmatprep.subr.mxu1 %v11817_v50 }
 0xaa9   : > { %5131 = vmatpush1.msra.mxu0 %v11820_v4  ;;  %5220 = vmatpush1.msra.mxu1 %v11823_v43 }
 0xaaa   : > { %5132 = vmatprep.subr.mxu0 %v11826_v45  ;;  %5221 = vmatprep.subr.mxu1 %v11829_v47 }
 0xaab   : > { %5133 = vmatpush1.msra.mxu0 %v11832_v22  ;;  %5222 = vmatpush1.msra.mxu1 %v11835_v48 }
 0xaac   : > { %5134 = vmatprep.subr.mxu0 %v11838_v31  ;;  %5223 = vmatprep.subr.mxu1 %v11841_v59 }
 0xaad   : > { %5135 = vmatpush1.msra.mxu0 %v11844_v33  ;;  %5224 = vmatpush1.msra.mxu1 %v11847_v55 }
 0xaae   : > { %5136 = vmatprep.subr.mxu0 %v11850_v46  ;;  %5225 = vmatprep.subr.mxu1 %v11853_v1  ;;  %v13941_v1 = vld [vmem:[#allocation26_spill] sm:$0xff] }
 0xaaf   : > { %5137 = vmatpush1.msra.mxu0 %v11856_v2  ;;  %5226 = vmatpush1.msra.mxu1 %v11859_v8  ;;  %v3913_v46 = vadd.f32 %v11487_v30, %v13941_v1 }
 0xab0   : > { %5138 = vmatprep.subr.mxu0 %v11862_v38  ;;  %5227 = vmatprep.subr.mxu1 %v11865_v41 }
 0xab1   : > { %5139 = vmatpush1.msra.mxu0 %v11868_v52  ;;  %5228 = vmatpush1.msra.mxu1 %v11871_v53 }
 0xab2   : > { %5140 = vmatprep.subr.mxu0 %v11874_v36  ;;  %5229 = vmatprep.subr.mxu1 %v11877_v17  ;;  %v13936_v17 = vld [vmem:[#allocation53_spill] sm:$0xff] }
 0xab3   : > { %5141 = vmatpush1.msra.mxu0 %v11880_v49  ;;  %5230 = vmatpush1.msra.mxu1 %v11883_v10  ;;  %v11901_v10 = vld [vmem:[#allocation7 + $0x78] sm:$0xff] }
 0xab4   : > { %5142 = vmatprep.subr.mxu0 %v11886_v34  ;;  %5231 = vmatprep.subr.mxu1 %v11889_v40  ;;  %13918 = vst [vmem:[#allocation213_spill] sm:$0xff] %v11901_v10  ;;  %v11904_v34 = vld [vmem:[#allocation7 + $0x60] sm:$0xff]  ;;  %v11907_v40 = vld [vmem:[#allocation7 + $0x70] sm:$0xff] }
 0xab5   : > { %5143 = vmatpush1.msra.mxu0 %v11892_v20  ;;  %5232 = vmatpush1.msra.mxu1 %v11895_v60  ;;  %13919 = vst [vmem:[#allocation214_spill] sm:$0xff] %v11904_v34  ;;  %13920 = vst [vmem:[#allocation215_spill] sm:$0xff] %v11907_v40  ;;  %v11910_v20 = vld [vmem:[#allocation7 + $0x48] sm:$0xff]  ;;  %v11913_v60 = vld [vmem:[#allocation7 + $0x58] sm:$0xff] }
 0xab6   : > { %5144 = vmatprep.subr.mxu0 %v11898_v13  ;;  %5233 = vmatprep.subr.mxu1 %v11901_v10  ;;  %13921 = vst [vmem:[#allocation216_spill] sm:$0xff] %v11910_v20  ;;  %13922 = vst [vmem:[#allocation217_spill] sm:$0xff] %v11913_v60  ;;  %v11916_v13 = vld [vmem:[#allocation7 + $0x40] sm:$0xff]  ;;  %v11919_v10 = vld [vmem:[#allocation7 + $0x50] sm:$0xff] }
 0xab7   : > { %5145 = vmatpush1.msra.mxu0 %v11904_v34  ;;  %5234 = vmatpush1.msra.mxu1 %v11907_v40  ;;  %13923 = vst [vmem:[#allocation218_spill] sm:$0xff] %v11916_v13  ;;  %13924 = vst [vmem:[#allocation219_spill] sm:$0xff] %v11919_v10  ;;  %v11922_v34 = vld [vmem:[#allocation7 + $0x28] sm:$0xff]  ;;  %v11925_v40 = vld [vmem:[#allocation7 + $0x38] sm:$0xff] }
 0xab8   : > { %5146 = vmatprep.subr.mxu0 %v11910_v20  ;;  %5235 = vmatprep.subr.mxu1 %v11913_v60  ;;  %13925 = vst [vmem:[#allocation220_spill] sm:$0xff] %v11922_v34  ;;  %13926 = vst [vmem:[#allocation221_spill] sm:$0xff] %v11925_v40  ;;  %v11928_v20 = vld [vmem:[#allocation7 + $0x20] sm:$0xff]  ;;  %v11931_v60 = vld [vmem:[#allocation7 + $0x30] sm:$0xff] }
 0xab9   : > { %5147 = vmatpush1.msra.mxu0 %v11916_v13  ;;  %5236 = vmatpush1.msra.mxu1 %v11919_v10  ;;  %13927 = vst [vmem:[#allocation222_spill] sm:$0xff] %v11928_v20  ;;  %13928 = vst [vmem:[#allocation223_spill] sm:$0xff] %v11931_v60  ;;  %v11934_v13 = vld [vmem:[#allocation7 + $0x8] sm:$0xff]  ;;  %v11937_v10 = vld [vmem:[#allocation7 + $0x18] sm:$0xff] }
 0xaba   : > { %5148 = vmatprep.subr.mxu0 %v11922_v34  ;;  %5237 = vmatprep.subr.mxu1 %v11925_v40  ;;  %13929 = vst [vmem:[#allocation224_spill] sm:$0xff] %v11934_v13  ;;  %13930 = vst [vmem:[#allocation225_spill] sm:$0xff] %v11937_v10  ;;  %v11940_v34 = vld [vmem:[#allocation7] sm:$0xff]  ;;  %v11944_v40 = vld [vmem:[#allocation7 + $0x10] sm:$0xff] }
 0xabb   : > { %5149 = vmatpush1.msra.mxu0 %v11928_v20  ;;  %5238 = vmatpush1.msra.mxu1 %v11931_v60  ;;  %13931 = vst [vmem:[#allocation226_spill] sm:$0xff] %v11940_v34  ;;  %13932 = vst [vmem:[#allocation227_spill] sm:$0xff] %v11944_v40  ;;  %v13934_v60 = vld [vmem:[#allocation150_spill] sm:$0xff] }
 0xabc   : > { %5150 = vmatprep.subr.mxu0 %v11934_v13  ;;  %5239 = vmatprep.subr.mxu1 %v11937_v10  ;;  %v13933_v13 = vld [vmem:[#allocation31_spill] sm:$0xff]  ;;  %v13935_v10 = vld [vmem:[#allocation49_spill] sm:$0xff] }
 0xabd   : > { %5151 = vmatpush1.msra.mxu0 %v11940_v34  ;;  %5184 = vmatprep.mubr.f32.mxu0 %v13216_v14  ;;  %v3899_v20 = vadd.f32 %v13934_v60, %v13933_v13  ;;  %v3901_v49 = vadd.f32 %v11433_v24, %v13935_v10  ;;  %v3905_v34 = vadd.f32 %v11447_v44, %v13936_v17  ;;  %v13939_v44 = vld [vmem:[#allocation32_spill] sm:$0xff]  ;;  %v13940_v17 = vld [vmem:[#allocation151_spill] sm:$0xff] }
 0xabe   : > { %5240 = vmatpush1.msra.mxu1 %v11944_v40  ;;  %5273 = vmatprep.mubr.f32.mxu1 %v13216_v14  ;;  %v13937_v40 = vld [vmem:[#allocation25_spill] sm:$0xff] }
 0xabf   : > { %5394 = vmatprep.subr.mxu0 %v11541_v18  ;;  %5483 = vmatprep.subr.mxu1 %v11544_v16  ;;  %v4348_v36 = vadd.f32 %v11337_v35, %v3899_v20  ;;  %v3907_v41 = vadd.f32 %v11463_v12, %v13937_v40  ;;  %v4349_v18 = vadd.f32 %v11702_v25, %v3901_v49  ;;  %v13938_v16 = vld [vmem:[#allocation59_spill] sm:$0xff] }
 0xac0   : > { %v3911_v8 = vadd.f32 %v11475_v3, %v13938_v16  ;;  %v4352_v10 = vadd.f32 %v11337_v35, %v3905_v34  ;;  %v4156_v20 = vadd.f32 %v13940_v17, %v13939_v44  ;;  %v13943_v44 = vld [vmem:[#allocation55_spill] sm:$0xff] }
 0xac1   : > { %v4353_v49 = vadd.f32 %v11702_v25, %v3907_v41  ;;  %v4162_v30 = vadd.f32 %v11449_v63, %v13943_v44  ;;  %v13945_v17 = vld [vmem:[#allocation51_spill] sm:$0xff]  ;;  %v13947_v44 = vld [vmem:[#allocation12_spill] sm:$0xff] }
 0xac2   : > { %v4356_v40 = vadd.f32 %v11337_v35, %v3911_v8  ;;  %v4350_v1 = vadd.f32 %v11346_v62, %v4156_v20 }
 0xac3   : > { %v4354_v33 = vadd.f32 %v11346_v62, %v4162_v30 }
 0xb58   : > { %v4912_v53 = vpop.f32.mrf.mxu0  ;;  %v5001_v52 = vpop.f32.mrf.mxu1 }
 0xb59   : > { %v4913_v38 = vadd.f32 %v4912_v53, %v4348_v36 }
 0xb5a   : > { %v4914_v13 = vpop.f32.mrf.mxu0  ;;  %v5003_v60 = vpop.f32.mrf.mxu1 }
 0xb5b   : > { %v6940_v2 = vmul.f32 -1.442695, %v4913_v38  ;;  %v4915_v24 = vadd.f32 %v4914_v13, %v4349_v18  ;;  %v13942_v38 = vld [vmem:[#allocation50_spill] sm:$0xff] }
 0xb5c   : > { %v4918_v55 = vpop.f32.mrf.mxu0  ;;  %v5007_v12 = vpop.f32.mrf.mxu1  ;;  %v3917_v18 = vadd.f32 %v11499_v29, %v13942_v38  ;;  %v13946_v29 = vld [vmem:[#allocation152_spill] sm:$0xff] }
 0xb5d   : > { %7792 = vpow2.f32 %v6940_v2  ;;  %v6941_v53 = vmul.f32 -1.442695, %v4915_v24  ;;  %v4919_v36 = vadd.f32 %v4918_v55, %v4352_v10  ;;  %v4357_v55 = vadd.f32 %v11702_v25, %v3913_v46  ;;  %v13944_v24 = vld [vmem:[#allocation58_spill] sm:$0xff] }
 0xb5e   : > { %v4920_v3 = vpop.f32.mrf.mxu0  ;;  %v5009_v13 = vpop.f32.mrf.mxu1  ;;  %v3919_v41 = vadd.f32 %v11511_v9, %v13944_v24  ;;  %v4360_v20 = vadd.f32 %v11337_v35, %v3917_v18  ;;  %v4168_v46 = vadd.f32 %v11477_v26, %v13947_v44 }
 0xb5f   : > { %7794 = vpow2.f32 %v6941_v53  ;;  %v6943_v34 = vmul.f32 -1.442695, %v4919_v36  ;;  %v4921_v16 = vadd.f32 %v4920_v3, %v4353_v49  ;;  %v4158_v53 = vadd.f32 %v13946_v29, %v13945_v17  ;;  %v13949_v17 = vld [vmem:[#allocation56_spill] sm:$0xff] }
 0xb60   : > { %v4924_v2 = vpop.f32.mrf.mxu0  ;;  %v5002_v36 = vadd.f32 %v5001_v52, %v4350_v1  ;;  %v5013_v38 = vpop.f32.mrf.mxu1  ;;  %v4174_v30 = vadd.f32 %v11501_v19, %v13949_v17 }
 0xb61   : > { %7796 = vpow2.f32 %v6943_v34  ;;  %v6944_v8 = vmul.f32 -1.442695, %v4921_v16  ;;  %v4925_v10 = vadd.f32 %v4924_v2, %v4356_v40  ;;  %v4361_v16 = vadd.f32 %v11702_v25, %v3919_v41  ;;  %v13948_v2 = vld [vmem:[#allocation57_spill] sm:$0xff] }
 0xb62   : > { %v4926_v49 = vpop.f32.mrf.mxu0  ;;  %v4164_v52 = vadd.f32 %v11465_v28, %v13948_v2  ;;  %v6942_v1 = vmul.f32 -1.442695, %v5002_v36  ;;  %v4351_v24 = vadd.f32 %v11357_v61, %v4158_v53  ;;  %v5015_v18 = vpop.f32.mrf.mxu1 }
 0xb63   : > { %7798 = vpow2.f32 %v6944_v8  ;;  %v6946_v3 = vmul.f32 -1.442695, %v4925_v10  ;;  %v4927_v63 = vadd.f32 %v4926_v49, %v4357_v55  ;;  %v5008_v55 = vadd.f32 %v5007_v12, %v4354_v33 }
 0xb64   : > { %v4930_v9 = vpop.f32.mrf.mxu0  ;;  %v5004_v29 = vadd.f32 %v5003_v60, %v4351_v24  ;;  %v4358_v49 = vadd.f32 %v11346_v62, %v4168_v46  ;;  %v4355_v33 = vadd.f32 %v11357_v61, %v4164_v52  ;;  %v4362_v60 = vadd.f32 %v11346_v62, %v4174_v30 }
 0xb65   : > { %7800 = vpow2.f32 %v6946_v3  ;;  %v6947_v34 = vmul.f32 -1.442695, %v4927_v63  ;;  %v4931_v40 = vadd.f32 %v4930_v9, %v4360_v20  ;;  %v13950_v3 = vld [vmem:[#allocation52_spill] sm:$0xff]  ;;  %v6945_v53 = vmul.f32 -1.442695, %v5008_v55  ;;  %v5019_v20 = vpop.f32.mrf.mxu1 }
 0xb66   : > { %v4932_v8 = vpop.f32.mrf.mxu0  ;;  %v4170_v41 = vadd.f32 %v11489_v39, %v13950_v3  ;;  %v5014_v12 = vadd.f32 %v5013_v38, %v4358_v49  ;;  %v5010_v19 = vadd.f32 %v5009_v13, %v4355_v33  ;;  %v5020_v2 = vadd.f32 %v5019_v20, %v4362_v60 }
 0xb67   : > { %7802 = vpow2.f32 %v6947_v34  ;;  %v6949_v10 = vmul.f32 -1.442695, %v4931_v40  ;;  %v4933_v26 = vadd.f32 %v4932_v8, %v4361_v16  ;;  %v13951_v34 = vld [vmem:[#allocation61_spill] sm:$0xff]  ;;  %v5021_v24 = vpop.f32.mrf.mxu1 }
 0xb68   : > { %v4359_v39 = vadd.f32 %v11357_v61, %v4170_v41  ;;  %v4176_v40 = vadd.f32 %v11513_v21, %v13951_v34  ;;  %v6948_v16 = vmul.f32 -1.442695, %v5014_v12  ;;  %v6951_v8 = vmul.f32 -1.442695, %v5020_v2 }
 0xb69   : > { %7804 = vpow2.f32 %v6949_v10  ;;  %v6950_v28 = vmul.f32 -1.442695, %v4933_v26 }
 0xb6a   : > { %v7793_v36 = vpop.eup %7792  ;;  %7806 = vpow2.f32 %v6942_v1  ;;  %v5016_v1 = vadd.f32 %v5015_v18, %v4359_v39  ;;  %v4363_v10 = vadd.f32 %v11357_v61, %v4176_v40 }
 0xb6b   : > { %v5060_v63 = vadd.f32 1.0, %v7793_v36  ;;  %7808 = vpow2.f32 %v6950_v28 }
 0xb6c   : > { %v7795_v44 = vpop.eup %7794  ;;  %7810 = vtanh.f32 %v5004_v29  ;;  %v5022_v21 = vadd.f32 %v5021_v24, %v4363_v10 }
 0xb6d   : > { %7812 = vrcp.f32 %v5060_v63  ;;  %v5061_v46 = vadd.f32 1.0, %v7795_v44 }
 0xb6e   : > { %v7797_v9 = vpop.eup %7796  ;;  %7814 = vpow2.f32 %v6945_v53 }
 0xb6f   : > { %7816 = vrcp.f32 %v5061_v46  ;;  %v5063_v38 = vadd.f32 1.0, %v7797_v9 }
 0xb70   : > { %v7799_v52 = vpop.eup %7798  ;;  %7818 = vtanh.f32 %v5010_v19 }
 0xb71   : > { %7820 = vrcp.f32 %v5063_v38  ;;  %v5064_v13 = vadd.f32 1.0, %v7799_v52 }
 0xb72   : > { %v7801_v55 = vpop.eup %7800  ;;  %7822 = vpow2.f32 %v6948_v16 }
 0xb73   : > { %7824 = vrcp.f32 %v5064_v13  ;;  %v5066_v26 = vadd.f32 1.0, %v7801_v55 }
 0xb74   : > { %v7803_v17 = vpop.eup %7802  ;;  %7826 = vtanh.f32 %v5016_v1 }
 0xb75   : > { %7828 = vrcp.f32 %v5066_v26  ;;  %v5067_v30 = vadd.f32 1.0, %v7803_v17 }
 0xb76   : > { %v7805_v29 = vpop.eup %7804  ;;  %7830 = vpow2.f32 %v6951_v8 }
 0xb77   : > { %v7807_v49 = vpop.eup %7806  ;;  %7832 = vrcp.f32 %v5067_v30  ;;  %v5069_v18 = vadd.f32 1.0, %v7805_v29 }
 0xb78   : > { %v7809_v3 = vpop.eup %7808  ;;  %7834 = vtanh.f32 %v5022_v21  ;;  %v5062_v63 = vadd.f32 1.0, %v7807_v49 }
 0xb79   : > { %v7811_v41 = vpop.eup %7810  ;;  %7836 = vrcp.f32 %v5069_v18  ;;  %v5070_v28 = vadd.f32 1.0, %v7809_v3 }
 0xb7a   : > { %v7813_v36 = vpop.eup %7812 }
 0xb7b   : > { %v7815_v53 = vpop.eup %7814  ;;  %v5104_v33 = vmul.f32 %v7813_v36, %v7811_v41  ;;  %7838 = vrcp.f32 %v5070_v28  ;;  %v12016_v28 = vld [vmem:[#allocation7 + $0x1e0] sm:$0xff] }
 0xb7c   : > { %v7817_v12 = vpop.eup %7816  ;;  %7840 = vrcp.f32 %v5062_v63  ;;  %v5065_v34 = vadd.f32 1.0, %v7815_v53  ;;  %v12030_v63 = vld [vmem:[#allocation7 + $0x1a8] sm:$0xff] }
 0xb7d   : > { %v7819_v20 = vpop.eup %7818  ;;  %v5100_v44 = vmul.f32 %v7817_v12, %v11753_v0  ;;  %v12026_v12 = vld [vmem:[#allocation7 + $0x1c0] sm:$0xff] }
 0xb7e   : > { %v7821_v19 = vpop.eup %7820 }
 0xb7f   : > { %v7823_v60 = vpop.eup %7822  ;;  %v11999_v46 = vadd.f32 %v5104_v33, %v5100_v44  ;;  %v5105_v39 = vmul.f32 %v7821_v19, %v7819_v20 }
 0xb80   : > { %v7825_v9 = vpop.eup %7824  ;;  %v5068_v0 = vadd.f32 1.0, %v7823_v60  ;;  %v12036_v60 = vld [vmem:[#allocation7 + $0x1a0] sm:$0xff] }
 0xb81   : > { %v7827_v40 = vpop.eup %7826  ;;  %7842 = vtanh.f32 %v11999_v46  ;;  %v5101_v16 = vmul.f32 %v7825_v9, %v11757_v27  ;;  %v12044_v9 = vld [vmem:[#allocation7 + $0x180] sm:$0xff] }
 0xb82   : > { %v7829_v2 = vpop.eup %7828  ;;  %7844 = vrcp.f32 %v5065_v34  ;;  %v13952_v34 = vld [vmem:[#allocation127_spill] sm:$0xff] }
 0xb83   : > { %v7831_v38 = vpop.eup %7830  ;;  %v12003_v52 = vadd.f32 %v5105_v39, %v5101_v16  ;;  %v5106_v1 = vmul.f32 %v7829_v2, %v7827_v40  ;;  %v12040_v39 = vld [vmem:[#allocation7 + $0x188] sm:$0xff]  ;;  %v13953_v40 = vld [vmem:[#allocation136_spill] sm:$0xff]  ;;  %v13954_v16 = vld [vmem:[#allocation138_spill] sm:$0xff] }
 0xb84   : > { %v7833_v13 = vpop.eup %7832  ;;  %v5071_v27 = vadd.f32 1.0, %v7831_v38  ;;  %v13955_v2 = vld [vmem:[#allocation131_spill] sm:$0xff]  ;;  %v13956_v38 = vld [vmem:[#allocation38_spill] sm:$0xff] }
 0xb85   : > { %v7835_v24 = vpop.eup %7834  ;;  %7846 = vtanh.f32 %v12003_v52  ;;  %v5102_v55 = vmul.f32 %v7833_v13, %v11761_v7  ;;  %v13958_v13 = vld [vmem:[#allocation135_spill] sm:$0xff] }
 0xb86   : > { %v7837_v8 = vpop.eup %7836  ;;  %7848 = vrcp.f32 %v5068_v0  ;;  %v13959_v0 = vld [vmem:[#allocation133_spill] sm:$0xff] }
 0xb87   : > { %v12007_v10 = vadd.f32 %v5106_v1, %v5102_v55  ;;  %v5107_v26 = vmul.f32 %v7837_v8, %v7835_v24  ;;  %v13957_v1 = vld [vmem:[#allocation129_spill] sm:$0xff]  ;;  %v13960_v24 = vld [vmem:[#allocation139_spill] sm:$0xff]  ;;  %v13962_v8 = vld [vmem:[#allocation140_spill] sm:$0xff] }
 0xb88   : > { %v7839_v17 = vpop.eup %7838  ;;  %v13961_v55 = vld [vmem:[#allocation137_spill] sm:$0xff] }
 0xb89   : > { %7850 = vtanh.f32 %v12007_v10  ;;  %v5103_v21 = vmul.f32 %v7839_v17, %v11765_v15  ;;  %v7841_v29 = vpop.eup %7840  ;;  %v12020_v15 = vld [vmem:[#allocation7 + $0x1c8] sm:$0xff]  ;;  %v13964_v17 = vld [vmem:[#allocation148_spill] sm:$0xff] }
 0xb8a   : > { %7852 = vrcp.f32 %v5071_v27  ;;  %v13965_v27 = vld [vmem:[#allocation149_spill] sm:$0xff] }
 0xb8b   : > { %v12011_v30 = vadd.f32 %v5107_v26, %v5103_v21  ;;  %v13963_v26 = vld [vmem:[#allocation33_spill] sm:$0xff]  ;;  %v13966_v21 = vld [vmem:[#allocation208_spill] sm:$0xff] }
 0xb8d   : > { %7854 = vtanh.f32 %v12011_v30 }
 0xb8e   : > { %v7843_v49 = vpop.eup %7842 }
 0xb8f   : > { %v5116_v18 = vmul.f32 %v7843_v49, %v7841_v29  ;;  %v7845_v7 = vpop.eup %7844  ;;  %v13967_v29 = vld [vmem:[#allocation209_spill] sm:$0xff]  ;;  %v13968_v49 = vld [vmem:[#allocation210_spill] sm:$0xff] }
 0xb91   : > { %5185 = vmatmul.mubr.f32.vlgmr.msra.gmra.mxu0 %v5116_v18  ;;  %5274 = vmatmul.mubr.f32.vlgmr.msra.gmra.mxu1 %v5116_v18  ;;  %v13969_v18 = vld [vmem:[#allocation211_spill] sm:$0xff] }
 0xb92   : > { %v7847_v3 = vpop.eup %7846  ;;  %5190 = vmatprep.mubr.f32.mxu0 %v13216_v14  ;;  %5279 = vmatprep.mubr.f32.mxu1 %v13216_v14 }
 0xb93   : > { %v5117_v41 = vmul.f32 %v7847_v3, %v7845_v7  ;;  %5395 = vmatpush1.msra.mxu0 %v12016_v28  ;;  %5484 = vmatpush1.msra.mxu1 %v11771_v23  ;;  %v7849_v36 = vpop.eup %7848  ;;  %v13970_v7 = vld [vmem:[#allocation212_spill] sm:$0xff]  ;;  %v13971_v3 = vld [vmem:[#allocation213_spill] sm:$0xff] }
 0xb94   : > { %5396 = vmatprep.subr.mxu0 %v12020_v15  ;;  %5485 = vmatprep.subr.mxu1 %v11775_v54 }
 0xb95   : > { %5191 = vmatmul.mubr.f32.gmra.mxu0 %v5117_v41  ;;  %5280 = vmatmul.mubr.f32.gmra.mxu1 %v5117_v41  ;;  %v13972_v41 = vld [vmem:[#allocation214_spill] sm:$0xff] }
 0xb96   : > { %v7851_v53 = vpop.eup %7850  ;;  %5196 = vmatprep.mubr.f32.mxu0 %v13216_v14  ;;  %5285 = vmatprep.mubr.f32.mxu1 %v13216_v14 }
 0xb97   : > { %v5118_v33 = vmul.f32 %v7851_v53, %v7849_v36  ;;  %5397 = vmatpush1.msra.mxu0 %v12026_v12  ;;  %5486 = vmatpush1.msra.mxu1 %v11781_v6  ;;  %v7853_v20 = vpop.eup %7852  ;;  %v13973_v36 = vld [vmem:[#allocation215_spill] sm:$0xff]  ;;  %v13974_v53 = vld [vmem:[#allocation216_spill] sm:$0xff] }
 0xb98   : > { %5398 = vmatprep.subr.mxu0 %v12030_v63  ;;  %5487 = vmatprep.subr.mxu1 %v11785_v5 }
 0xb99   : > { %5197 = vmatmul.mubr.f32.gmra.mxu0 %v5118_v33  ;;  %5286 = vmatmul.mubr.f32.gmra.mxu1 %v5118_v33  ;;  %v13975_v33 = vld [vmem:[#allocation217_spill] sm:$0xff] }
 0xb9a   : > { %v7855_v44 = vpop.eup %7854  ;;  %5202 = vmatprep.mubr.f32.mxu0 %v13216_v14  ;;  %5291 = vmatprep.mubr.f32.mxu1 %v13216_v14 }
 0xb9b   : > { %v5119_v19 = vmul.f32 %v7855_v44, %v7853_v20  ;;  %5399 = vmatpush1.msra.mxu0 %v12036_v60  ;;  %5488 = vmatpush1.msra.mxu1 %v11791_v58  ;;  %v13976_v20 = vld [vmem:[#allocation218_spill] sm:$0xff]  ;;  %v13977_v44 = vld [vmem:[#allocation219_spill] sm:$0xff] }
 0xb9c   : > { %5400 = vmatprep.subr.mxu0 %v12040_v39  ;;  %5489 = vmatprep.subr.mxu1 %v11795_v42 }
 0xb9d   : > { %5203 = vmatmul.mubr.f32.gmra.mxu0 %v5119_v19  ;;  %5292 = vmatmul.mubr.f32.gmra.mxu1 %v5119_v19  ;;  %v13978_v19 = vld [vmem:[#allocation220_spill] sm:$0xff] }
 0xb9e   : > { %5401 = vmatpush1.msra.mxu0 %v12044_v9  ;;  %5490 = vmatpush1.msra.mxu1 %v11799_v37 }
 0xb9f   : > { %5402 = vmatprep.subr.mxu0 %v11802_v32  ;;  %5491 = vmatprep.subr.mxu1 %v11805_v57 }
 0xba0   : > { %5403 = vmatpush1.msra.mxu0 %v11808_v11  ;;  %5492 = vmatpush1.msra.mxu1 %v11811_v56 }
 0xba1   : > { %5404 = vmatprep.subr.mxu0 %v11814_v51  ;;  %5493 = vmatprep.subr.mxu1 %v11817_v50 }
 0xba2   : > { %5405 = vmatpush1.msra.mxu0 %v11820_v4  ;;  %5494 = vmatpush1.msra.mxu1 %v11823_v43 }
 0xba3   : > { %5406 = vmatprep.subr.mxu0 %v11826_v45  ;;  %5495 = vmatprep.subr.mxu1 %v11829_v47 }
 0xba4   : > { %5407 = vmatpush1.msra.mxu0 %v11832_v22  ;;  %5496 = vmatpush1.msra.mxu1 %v11835_v48 }
 0xba5   : > { %5408 = vmatprep.subr.mxu0 %v11838_v31  ;;  %5497 = vmatprep.subr.mxu1 %v11841_v59  ;;  %v14008_v59 = vld [vmem:[#allocation75_spill] sm:$0xff]  ;;  %v14011_v31 = vld [vmem:[#allocation72_spill] sm:$0xff] }
 0xba6   : > { %5409 = vmatpush1.msra.mxu0 %v13952_v34  ;;  %5498 = vmatpush1.msra.mxu1 %v13953_v40  ;;  %v14005_v40 = vld [vmem:[#allocation71_spill] sm:$0xff] }
 0xba7   : > { %5410 = vmatprep.subr.mxu0 %v13954_v16  ;;  %5499 = vmatprep.subr.mxu1 %v13955_v2 }
 0xba8   : > { %5411 = vmatpush1.msra.mxu0 %v13956_v38  ;;  %5500 = vmatpush1.msra.mxu1 %v13957_v1  ;;  %v14000_v1 = vld [vmem:[#allocation15_spill] sm:$0xff]  ;;  %v14001_v38 = vld [vmem:[#allocation30_spill] sm:$0xff] }
 0xba9   : > { %5412 = vmatprep.subr.mxu0 %v13958_v13  ;;  %5501 = vmatprep.subr.mxu1 %v13959_v0  ;;  %v3937_v2 = vadd.f32 %v14001_v38, %v14000_v1 }
 0xbaa   : > { %5413 = vmatpush1.msra.mxu0 %v13960_v24  ;;  %5502 = vmatpush1.msra.mxu1 %v13961_v55  ;;  %v13997_v24 = vld [vmem:[#allocation27_spill] sm:$0xff] }
 0xbab   : > { %5414 = vmatprep.subr.mxu0 %v13962_v8  ;;  %5503 = vmatprep.subr.mxu1 %v13963_v26  ;;  %v13995_v26 = vld [vmem:[#allocation70_spill] sm:$0xff] }
 0xbac   : > { %5415 = vmatpush1.msra.mxu0 %v13964_v17  ;;  %5504 = vmatpush1.msra.mxu1 %v13965_v27  ;;  %v13994_v17 = vld [vmem:[#allocation74_spill] sm:$0xff] }
 0xbad   : > { %5416 = vmatprep.subr.mxu0 %v13966_v21  ;;  %5505 = vmatprep.subr.mxu1 %v13967_v29 }
 0xbae   : > { %5417 = vmatpush1.msra.mxu0 %v13968_v49  ;;  %5506 = vmatpush1.msra.mxu1 %v13969_v18  ;;  %v13979_v49 = vld [vmem:[#allocation221_spill] sm:$0xff]  ;;  %v13980_v18 = vld [vmem:[#allocation222_spill] sm:$0xff] }
 0xbaf   : > { %5418 = vmatprep.subr.mxu0 %v13970_v7  ;;  %5507 = vmatprep.subr.mxu1 %v13971_v3  ;;  %v13981_v7 = vld [vmem:[#allocation223_spill] sm:$0xff]  ;;  %v13982_v3 = vld [vmem:[#allocation224_spill] sm:$0xff] }
 0xbb0   : > { %5419 = vmatpush1.msra.mxu0 %v13972_v41  ;;  %5508 = vmatpush1.msra.mxu1 %v13973_v36  ;;  %v13983_v41 = vld [vmem:[#allocation225_spill] sm:$0xff]  ;;  %v13984_v36 = vld [vmem:[#allocation226_spill] sm:$0xff] }
 0xbb1   : > { %5420 = vmatprep.subr.mxu0 %v13974_v53  ;;  %5509 = vmatprep.subr.mxu1 %v13975_v33  ;;  %v13985_v33 = vld [vmem:[#allocation227_spill] sm:$0xff]  ;;  %v13993_v53 = vld [vmem:[#allocation62_spill] sm:$0xff] }
 0xbb2   : > { %5421 = vmatpush1.msra.mxu0 %v13976_v20  ;;  %5510 = vmatpush1.msra.mxu1 %v13977_v44  ;;  %v12098_v44 = vld [vmem:[#allocation7 + $0x1e8] sm:$0xff]  ;;  %v13992_v20 = vld [vmem:[#allocation68_spill] sm:$0xff] }
 0xbb3   : > { %5422 = vmatprep.subr.mxu0 %v13978_v19  ;;  %5511 = vmatprep.subr.mxu1 %v13979_v49  ;;  %13986 = vst [vmem:[#allocation31_spill] sm:$0xff] %v12098_v44  ;;  %v12101_v49 = vld [vmem:[#allocation7 + $0x1f8] sm:$0xff]  ;;  %v13991_v19 = vld [vmem:[#allocation60_spill] sm:$0xff]  ;;  %v3929_v29 = vadd.f32 %v13993_v53, %v13992_v20  ;;  %v13998_v53 = vld [vmem:[#allocation69_spill] sm:$0xff] }
 0xbb4   : > { %5423 = vmatpush1.msra.mxu0 %v13980_v18  ;;  %5512 = vmatpush1.msra.mxu1 %v13981_v7  ;;  %13987 = vst [vmem:[#allocation150_spill] sm:$0xff] %v12101_v49  ;;  %v13988_v7 = vld [vmem:[#allocation67_spill] sm:$0xff]  ;;  %v13999_v20 = vld [vmem:[#allocation54_spill] sm:$0xff] }
 0xbb5   : > { %5424 = vmatprep.subr.mxu0 %v13982_v3  ;;  %5513 = vmatprep.subr.mxu1 %v13983_v41  ;;  %v13989_v3 = vld [vmem:[#allocation65_spill] sm:$0xff] }
 0xbb6   : > { %5425 = vmatpush1.msra.mxu0 %v13984_v36  ;;  %5458 = vmatprep.mubr.f32.mxu0 %v13216_v14  ;;  %v3923_v18 = vadd.f32 %v13989_v3, %v13988_v7  ;;  %v13990_v41 = vld [vmem:[#allocation73_spill] sm:$0xff] }
 0xbb7   : > { %5514 = vmatpush1.msra.mxu1 %v13985_v33  ;;  %5547 = vmatprep.mubr.f32.mxu1 %v13216_v14  ;;  %v3925_v36 = vadd.f32 %v13991_v19, %v13990_v41  ;;  %v4368_v19 = vadd.f32 %v11337_v35, %v3929_v29 }
 0xbb8   : > { %5668 = vmatprep.subr.mxu0 %v12098_v44  ;;  %5757 = vmatprep.subr.mxu1 %v12101_v49  ;;  %v4364_v33 = vadd.f32 %v11337_v35, %v3923_v18  ;;  %v3931_v44 = vadd.f32 %v13995_v26, %v13994_v17  ;;  %v13996_v49 = vld [vmem:[#allocation28_spill] sm:$0xff]  ;;  %v4180_v18 = vadd.f32 %v13999_v20, %v13998_v53  ;;  %v14004_v20 = vld [vmem:[#allocation66_spill] sm:$0xff] }
 0xbb9   : > { %v4365_v55 = vadd.f32 %v11702_v25, %v3925_v36  ;;  %v3935_v0 = vadd.f32 %v13997_v24, %v13996_v49  ;;  %v4186_v38 = vadd.f32 %v14005_v40, %v14004_v20  ;;  %v14010_v20 = vld [vmem:[#allocation13_spill] sm:$0xff] }
 0xbba   : > { %v4369_v36 = vadd.f32 %v11702_v25, %v3931_v44  ;;  %v4366_v1 = vadd.f32 %v11346_v62, %v4180_v18  ;;  %v14007_v44 = vld [vmem:[#allocation21_spill] sm:$0xff] }
 0xbbb   : > { %v4372_v49 = vadd.f32 %v11337_v35, %v3935_v0  ;;  %v4370_v48 = vadd.f32 %v11346_v62, %v4186_v38  ;;  %v14015_v38 = vld [vmem:[#allocation29_spill] sm:$0xff] }
 0xc51   : > { %v5186_v21 = vpop.f32.mrf.mxu0  ;;  %v5275_v27 = vpop.f32.mrf.mxu1 }
 0xc52   : > { %v5187_v8 = vadd.f32 %v5186_v21, %v4364_v33 }
 0xc53   : > { %v5188_v7 = vpop.f32.mrf.mxu0  ;;  %v5277_v3 = vpop.f32.mrf.mxu1 }
 0xc54   : > { %v6952_v13 = vmul.f32 -1.442695, %v5187_v8  ;;  %v5189_v41 = vadd.f32 %v5188_v7, %v4365_v55  ;;  %v14002_v8 = vld [vmem:[#allocation23_spill] sm:$0xff]  ;;  %v14003_v55 = vld [vmem:[#allocation16_spill] sm:$0xff] }
 0xc55   : > { %v5192_v16 = vpop.f32.mrf.mxu0  ;;  %v5281_v26 = vpop.f32.mrf.mxu1  ;;  %v3941_v33 = vadd.f32 %v14003_v55, %v14002_v8  ;;  %v14009_v8 = vld [vmem:[#allocation63_spill] sm:$0xff] }
 0xc56   : > { %7856 = vpow2.f32 %v6952_v13  ;;  %v6953_v17 = vmul.f32 -1.442695, %v5189_v41  ;;  %v5193_v21 = vadd.f32 %v5192_v16, %v4368_v19  ;;  %v4373_v16 = vadd.f32 %v11702_v25, %v3937_v2  ;;  %v14006_v41 = vld [vmem:[#allocation113_spill] sm:$0xff] }
 0xc57   : > { %v5194_v24 = vpop.f32.mrf.mxu0  ;;  %v5283_v53 = vpop.f32.mrf.mxu1  ;;  %v3943_v19 = vadd.f32 %v14007_v44, %v14006_v41  ;;  %v4376_v18 = vadd.f32 %v11337_v35, %v3941_v33  ;;  %v4192_v2 = vadd.f32 %v14011_v31, %v14010_v20 }
 0xc58   : > { %7858 = vpow2.f32 %v6953_v17  ;;  %v6955_v29 = vmul.f32 -1.442695, %v5193_v21  ;;  %v5195_v7 = vadd.f32 %v5194_v24, %v4369_v36  ;;  %v4182_v17 = vadd.f32 %v14009_v8, %v14008_v59  ;;  %v14012_v59 = vld [vmem:[#allocation19_spill] sm:$0xff]  ;;  %v14014_v8 = vld [vmem:[#allocation108_spill] sm:$0xff] }
 0xc59   : > { %v5198_v13 = vpop.f32.mrf.mxu0  ;;  %v5276_v21 = vadd.f32 %v5275_v27, %v4366_v1  ;;  %v5287_v55 = vpop.f32.mrf.mxu1  ;;  %v14013_v27 = vld [vmem:[#allocation64_spill] sm:$0xff] }
 0xc5a   : > { %7860 = vpow2.f32 %v6955_v29  ;;  %v6956_v0 = vmul.f32 -1.442695, %v5195_v7  ;;  %v5199_v34 = vadd.f32 %v5198_v13, %v4372_v49  ;;  %v4377_v7 = vadd.f32 %v11702_v25, %v3943_v19  ;;  %v14017_v19 = vld [vmem:[#allocation24_spill] sm:$0xff] }
 0xc5b   : > { %v5200_v36 = vpop.f32.mrf.mxu0  ;;  %v4188_v1 = vadd.f32 %v14013_v27, %v14012_v59  ;;  %v6954_v13 = vmul.f32 -1.442695, %v5276_v21  ;;  %v5289_v33 = vpop.f32.mrf.mxu1 }
 0xc5c   : > { %7862 = vpow2.f32 %v6956_v0  ;;  %v6958_v24 = vmul.f32 -1.442695, %v5199_v34  ;;  %v5201_v40 = vadd.f32 %v5200_v36, %v4373_v16  ;;  %v4367_v34 = vadd.f32 %v11357_v61, %v4182_v17 }
 0xc5d   : > { %v5204_v41 = vpop.f32.mrf.mxu0  ;;  %v5282_v16 = vadd.f32 %v5281_v26, %v4370_v48  ;;  %v4198_v36 = vadd.f32 %v14015_v38, %v14014_v8  ;;  %v4371_v48 = vadd.f32 %v11357_v61, %v4188_v1 }
 0xc5e   : > { %7864 = vpow2.f32 %v6958_v24  ;;  %v6959_v29 = vmul.f32 -1.442695, %v5201_v40  ;;  %v5205_v49 = vadd.f32 %v5204_v41, %v4376_v18  ;;  %v5278_v24 = vadd.f32 %v5277_v3, %v4367_v34  ;;  %v14016_v18 = vld [vmem:[#allocation14_spill] sm:$0xff] }
 0xc5f   : > { %v5206_v44 = vpop.f32.mrf.mxu0  ;;  %v4374_v40 = vadd.f32 %v11346_v62, %v4192_v2  ;;  %v4194_v20 = vadd.f32 %v14017_v19, %v14016_v18  ;;  %v6957_v17 = vmul.f32 -1.442695, %v5282_v16  ;;  %v5284_v59 = vadd.f32 %v5283_v53, %v4371_v48 }
 0xc60   : > { %7866 = vpow2.f32 %v6959_v29  ;;  %v6961_v0 = vmul.f32 -1.442695, %v5205_v49  ;;  %v5207_v31 = vadd.f32 %v5206_v44, %v4377_v7  ;;  %v5293_v49 = vpop.f32.mrf.mxu1  ;;  %v4378_v3 = vadd.f32 %v11346_v62, %v4198_v36  ;;  %v14018_v44 = vld [vmem:[#allocation114_spill] sm:$0xff] }
 0xc61   : > { %v5288_v26 = vadd.f32 %v5287_v55, %v4374_v40  ;;  %v4375_v27 = vadd.f32 %v11357_v61, %v4194_v20 }
 0xc62   : > { %7868 = vpow2.f32 %v6961_v0  ;;  %v6962_v41 = vmul.f32 -1.442695, %v5207_v31  ;;  %v14019_v0 = vld [vmem:[#allocation20_spill] sm:$0xff]  ;;  %v5294_v1 = vadd.f32 %v5293_v49, %v4378_v3  ;;  %v5295_v38 = vpop.f32.mrf.mxu1 }
 0xc63   : > { %v7857_v21 = vpop.eup %7856  ;;  %7870 = vpow2.f32 %v6954_v13  ;;  %v4200_v13 = vadd.f32 %v14019_v0, %v14018_v44  ;;  %v6960_v16 = vmul.f32 -1.442695, %v5288_v26  ;;  %v5290_v8 = vadd.f32 %v5289_v33, %v4375_v27 }
 0xc64   : > { %v5334_v29 = vadd.f32 1.0, %v7857_v21  ;;  %7872 = vpow2.f32 %v6962_v41 }
 0xc65   : > { %v7859_v7 = vpop.eup %7858  ;;  %7874 = vtanh.f32 %v5278_v24  ;;  %v6963_v24 = vmul.f32 -1.442695, %v5294_v1  ;;  %v4379_v40 = vadd.f32 %v11357_v61, %v4200_v13 }
 0xc66   : > { %7876 = vrcp.f32 %v5334_v29  ;;  %v5335_v2 = vadd.f32 1.0, %v7859_v7 }
 0xc67   : > { %v7861_v34 = vpop.eup %7860  ;;  %7878 = vpow2.f32 %v6957_v17  ;;  %v5296_v20 = vadd.f32 %v5295_v38, %v4379_v40 }
 0xc68   : > { %7880 = vrcp.f32 %v5335_v2  ;;  %v5337_v55 = vadd.f32 1.0, %v7861_v34 }
 0xc69   : > { %v7863_v31 = vpop.eup %7862  ;;  %7882 = vtanh.f32 %v5284_v59 }
 0xc6a   : > { %7884 = vrcp.f32 %v5337_v55  ;;  %v5338_v53 = vadd.f32 1.0, %v7863_v31 }
 0xc6b   : > { %v7865_v36 = vpop.eup %7864  ;;  %7886 = vpow2.f32 %v6960_v16 }
 0xc6c   : > { %7888 = vrcp.f32 %v5338_v53  ;;  %v5340_v18 = vadd.f32 1.0, %v7865_v36 }
 0xc6d   : > { %v7867_v19 = vpop.eup %7866  ;;  %7890 = vtanh.f32 %v5290_v8 }
 0xc6e   : > { %7892 = vrcp.f32 %v5340_v18  ;;  %v5341_v41 = vadd.f32 1.0, %v7867_v19 }
 0xc6f   : > { %v7869_v21 = vpop.eup %7868  ;;  %7894 = vpow2.f32 %v6963_v24 }
 0xc70   : > { %v7871_v17 = vpop.eup %7870  ;;  %7896 = vrcp.f32 %v5341_v41  ;;  %v5343_v33 = vadd.f32 1.0, %v7869_v21 }
 0xc71   : > { %v7873_v48 = vpop.eup %7872  ;;  %7898 = vtanh.f32 %v5296_v20  ;;  %v5336_v2 = vadd.f32 1.0, %v7871_v17 }
 0xc72   : > { %v7875_v26 = vpop.eup %7874  ;;  %7900 = vrcp.f32 %v5343_v33  ;;  %v5344_v29 = vadd.f32 1.0, %v7873_v48 }
 0xc73   : > { %v7877_v49 = vpop.eup %7876 }
 0xc74   : > { %v7879_v7 = vpop.eup %7878  ;;  %v5378_v59 = vmul.f32 %v7877_v49, %v7875_v26  ;;  %7902 = vrcp.f32 %v5344_v29 }
 0xc75   : > { %v7881_v3 = vpop.eup %7880  ;;  %7904 = vrcp.f32 %v5336_v2  ;;  %v5339_v55 = vadd.f32 1.0, %v7879_v7 }
 0xc76   : > { %v7883_v27 = vpop.eup %7882  ;;  %v5374_v34 = vmul.f32 %v7881_v3, %v11999_v46 }
 0xc77   : > { %v7885_v44 = vpop.eup %7884 }
 0xc78   : > { %v7887_v0 = vpop.eup %7886  ;;  %v12153_v13 = vadd.f32 %v5378_v59, %v5374_v34  ;;  %v5379_v16 = vmul.f32 %v7885_v44, %v7883_v27  ;;  %v14036_v34 = vld [vmem:[#allocation149_spill] sm:$0xff]  ;;  %v14037_v44 = vld [vmem:[#allocation208_spill] sm:$0xff] }
 0xc79   : > { %v7889_v1 = vpop.eup %7888  ;;  %v5342_v46 = vadd.f32 1.0, %v7887_v0  ;;  %v14038_v0 = vld [vmem:[#allocation209_spill] sm:$0xff] }
 0xc7a   : > { %v7891_v31 = vpop.eup %7890  ;;  %7906 = vtanh.f32 %v12153_v13  ;;  %v5375_v8 = vmul.f32 %v7889_v1, %v12003_v52  ;;  %v14040_v1 = vld [vmem:[#allocation211_spill] sm:$0xff] }
 0xc7b   : > { %v7893_v53 = vpop.eup %7892  ;;  %7908 = vrcp.f32 %v5339_v55  ;;  %v14041_v55 = vld [vmem:[#allocation212_spill] sm:$0xff] }
 0xc7c   : > { %v7895_v38 = vpop.eup %7894  ;;  %v12157_v36 = vadd.f32 %v5379_v16, %v5375_v8  ;;  %v5380_v24 = vmul.f32 %v7893_v53, %v7891_v31  ;;  %v14039_v16 = vld [vmem:[#allocation210_spill] sm:$0xff]  ;;  %v14042_v31 = vld [vmem:[#allocation213_spill] sm:$0xff]  ;;  %v14044_v53 = vld [vmem:[#allocation215_spill] sm:$0xff] }
 0xc7d   : > { %v7897_v40 = vpop.eup %7896  ;;  %v5345_v52 = vadd.f32 1.0, %v7895_v38  ;;  %v14043_v8 = vld [vmem:[#allocation214_spill] sm:$0xff]  ;;  %v14045_v38 = vld [vmem:[#allocation216_spill] sm:$0xff] }
 0xc7e   : > { %v7899_v18 = vpop.eup %7898  ;;  %7910 = vtanh.f32 %v12157_v36  ;;  %v5376_v19 = vmul.f32 %v7897_v40, %v12007_v10  ;;  %v14047_v40 = vld [vmem:[#allocation218_spill] sm:$0xff] }
 0xc7f   : > { %v7901_v20 = vpop.eup %7900  ;;  %7912 = vrcp.f32 %v5342_v46  ;;  %v14048_v46 = vld [vmem:[#allocation219_spill] sm:$0xff] }
 0xc80   : > { %v12161_v41 = vadd.f32 %v5380_v24, %v5376_v19  ;;  %v5381_v21 = vmul.f32 %v7901_v20, %v7899_v18  ;;  %v14046_v24 = vld [vmem:[#allocation217_spill] sm:$0xff]  ;;  %v14049_v18 = vld [vmem:[#allocation220_spill] sm:$0xff]  ;;  %v14051_v20 = vld [vmem:[#allocation222_spill] sm:$0xff] }
 0xc81   : > { %v7903_v17 = vpop.eup %7902  ;;  %v14050_v19 = vld [vmem:[#allocation221_spill] sm:$0xff] }
 0xc82   : > { %7914 = vtanh.f32 %v12161_v41  ;;  %v5377_v33 = vmul.f32 %v7903_v17, %v12011_v30  ;;  %v7905_v26 = vpop.eup %7904  ;;  %v14053_v17 = vld [vmem:[#allocation224_spill] sm:$0xff] }
 0xc83   : > { %7916 = vrcp.f32 %v5345_v52  ;;  %v14054_v52 = vld [vmem:[#allocation225_spill] sm:$0xff] }
 0xc84   : > { %v12165_v48 = vadd.f32 %v5381_v21, %v5377_v33  ;;  %v14052_v21 = vld [vmem:[#allocation223_spill] sm:$0xff]  ;;  %v14055_v33 = vld [vmem:[#allocation226_spill] sm:$0xff] }
 0xc86   : > { %7918 = vtanh.f32 %v12165_v48 }
 0xc87   : > { %v7907_v29 = vpop.eup %7906 }
 0xc88   : > { %v5390_v49 = vmul.f32 %v7907_v29, %v7905_v26  ;;  %v7909_v10 = vpop.eup %7908  ;;  %v14056_v26 = vld [vmem:[#allocation227_spill] sm:$0xff] }
 0xc89   : > { %v14057_v29 = vld [vmem:[#allocation31_spill] sm:$0xff] }
 0xc8a   : > { %5459 = vmatmul.mubr.f32.vlgmr.msra.gmra.mxu0 %v5390_v49  ;;  %5548 = vmatmul.mubr.f32.vlgmr.msra.gmra.mxu1 %v5390_v49  ;;  %v14058_v49 = vld [vmem:[#allocation150_spill] sm:$0xff] }
 0xc8b   : > { %v7911_v7 = vpop.eup %7910  ;;  %5464 = vmatprep.mubr.f32.mxu0 %v13216_v14  ;;  %5553 = vmatprep.mubr.f32.mxu1 %v13216_v14 }
 0xc8c   : > { %v5391_v59 = vmul.f32 %v7911_v7, %v7909_v10  ;;  %5669 = vmatpush1.msra.mxu0 %v12016_v28  ;;  %5758 = vmatpush1.msra.mxu1 %v11771_v23  ;;  %v7913_v30 = vpop.eup %7912  ;;  %v14059_v10 = vld [vmem:[#allocation117_spill] sm:$0xff]  ;;  %v14060_v7 = vld [vmem:[#allocation110_spill] sm:$0xff] }
 0xc8d   : > { %5670 = vmatprep.subr.mxu0 %v12020_v15  ;;  %5759 = vmatprep.subr.mxu1 %v11775_v54 }
 0xc8e   : > { %5465 = vmatmul.mubr.f32.gmra.mxu0 %v5391_v59  ;;  %5554 = vmatmul.mubr.f32.gmra.mxu1 %v5391_v59  ;;  %v3947_v59 = vadd.f32 %v14060_v7, %v14059_v10 }
 0xc8f   : > { %v7915_v3 = vpop.eup %7914  ;;  %5470 = vmatprep.mubr.f32.mxu0 %v13216_v14  ;;  %5559 = vmatprep.mubr.f32.mxu1 %v13216_v14 }
 0xc90   : > { %v5392_v2 = vmul.f32 %v7915_v3, %v7913_v30  ;;  %5671 = vmatpush1.msra.mxu0 %v12026_v12  ;;  %5760 = vmatpush1.msra.mxu1 %v11781_v6  ;;  %v7917_v23 = vpop.eup %7916  ;;  %v14020_v6 = vld [vmem:[#allocation130_spill] sm:$0xff]  ;;  %v14061_v30 = vld [vmem:[#allocation119_spill] sm:$0xff]  ;;  %v14062_v3 = vld [vmem:[#allocation112_spill] sm:$0xff] }
 0xc91   : > { %5672 = vmatprep.subr.mxu0 %v12030_v63  ;;  %5761 = vmatprep.subr.mxu1 %v11785_v5  ;;  %v14021_v5 = vld [vmem:[#allocation132_spill] sm:$0xff] }
 0xc92   : > { %5471 = vmatmul.mubr.f32.gmra.mxu0 %v5392_v2  ;;  %5560 = vmatmul.mubr.f32.gmra.mxu1 %v5392_v2  ;;  %v3949_v2 = vadd.f32 %v14062_v3, %v14061_v30  ;;  %v14077_v3 = vld [vmem:[#allocation87_spill] sm:$0xff] }
 0xc93   : > { %v7919_v54 = vpop.eup %7918  ;;  %5476 = vmatprep.mubr.f32.mxu0 %v13216_v14  ;;  %5565 = vmatprep.mubr.f32.mxu1 %v13216_v14 }
 0xc94   : > { %v5393_v27 = vmul.f32 %v7919_v54, %v7917_v23  ;;  %5673 = vmatpush1.msra.mxu0 %v12036_v60  ;;  %5762 = vmatpush1.msra.mxu1 %v11791_v58  ;;  %v14022_v58 = vld [vmem:[#allocation134_spill] sm:$0xff]  ;;  %v14063_v23 = vld [vmem:[#allocation121_spill] sm:$0xff]  ;;  %v14064_v54 = vld [vmem:[#allocation115_spill] sm:$0xff] }
 0xc95   : > { %5674 = vmatprep.subr.mxu0 %v12040_v39  ;;  %5763 = vmatprep.subr.mxu1 %v11795_v42  ;;  %v14023_v42 = vld [vmem:[#allocation127_spill] sm:$0xff] }
 0xc96   : > { %5477 = vmatmul.mubr.f32.gmra.mxu0 %v5393_v27  ;;  %5566 = vmatmul.mubr.f32.gmra.mxu1 %v5393_v27  ;;  %v3953_v27 = vadd.f32 %v14064_v54, %v14063_v23 }
 0xc97   : > { %5675 = vmatpush1.msra.mxu0 %v12044_v9  ;;  %5764 = vmatpush1.msra.mxu1 %v11799_v37  ;;  %v14024_v37 = vld [vmem:[#allocation136_spill] sm:$0xff] }
 0xc98   : > { %5676 = vmatprep.subr.mxu0 %v11802_v32  ;;  %5765 = vmatprep.subr.mxu1 %v11805_v57  ;;  %v14025_v32 = vld [vmem:[#allocation138_spill] sm:$0xff]  ;;  %v14026_v57 = vld [vmem:[#allocation131_spill] sm:$0xff] }
 0xc99   : > { %5677 = vmatpush1.msra.mxu0 %v11808_v11  ;;  %5766 = vmatpush1.msra.mxu1 %v11811_v56  ;;  %v14027_v11 = vld [vmem:[#allocation38_spill] sm:$0xff]  ;;  %v14028_v56 = vld [vmem:[#allocation129_spill] sm:$0xff] }
 0xc9a   : > { %5678 = vmatprep.subr.mxu0 %v11814_v51  ;;  %5767 = vmatprep.subr.mxu1 %v11817_v50  ;;  %v14029_v51 = vld [vmem:[#allocation135_spill] sm:$0xff]  ;;  %v14030_v50 = vld [vmem:[#allocation133_spill] sm:$0xff] }
 0xc9b   : > { %5679 = vmatpush1.msra.mxu0 %v11820_v4  ;;  %5768 = vmatpush1.msra.mxu1 %v11823_v43  ;;  %v14031_v4 = vld [vmem:[#allocation139_spill] sm:$0xff]  ;;  %v14032_v43 = vld [vmem:[#allocation137_spill] sm:$0xff] }
 0xc9c   : > { %5680 = vmatprep.subr.mxu0 %v11826_v45  ;;  %5769 = vmatprep.subr.mxu1 %v11829_v47  ;;  %v14033_v45 = vld [vmem:[#allocation140_spill] sm:$0xff]  ;;  %v14034_v47 = vld [vmem:[#allocation33_spill] sm:$0xff] }
 0xc9d   : > { %5681 = vmatpush1.msra.mxu0 %v11832_v22  ;;  %5770 = vmatpush1.msra.mxu1 %v14020_v6  ;;  %v14035_v22 = vld [vmem:[#allocation148_spill] sm:$0xff]  ;;  %v4380_v6 = vadd.f32 %v11337_v35, %v3947_v59 }
 0xc9e   : > { %5682 = vmatprep.subr.mxu0 %v14021_v5  ;;  %5771 = vmatprep.subr.mxu1 %v14022_v58 }
 0xc9f   : > { %5683 = vmatpush1.msra.mxu0 %v14023_v42  ;;  %5772 = vmatpush1.msra.mxu1 %v14024_v37  ;;  %v14065_v42 = vld [vmem:[#allocation123_spill] sm:$0xff]  ;;  %v14066_v37 = vld [vmem:[#allocation116_spill] sm:$0xff] }
 0xca0   : > { %5684 = vmatprep.subr.mxu0 %v14025_v32  ;;  %5773 = vmatprep.subr.mxu1 %v14026_v57  ;;  %v3955_v32 = vadd.f32 %v14066_v37, %v14065_v42 }
 0xca1   : > { %5685 = vmatpush1.msra.mxu0 %v14027_v11  ;;  %5774 = vmatpush1.msra.mxu1 %v14028_v56  ;;  %v4381_v11 = vadd.f32 %v11702_v25, %v3949_v2  ;;  %v14067_v56 = vld [vmem:[#allocation125_spill] sm:$0xff]  ;;  %v14078_v2 = vld [vmem:[#allocation160_spill] sm:$0xff] }
 0xca2   : > { %5686 = vmatprep.subr.mxu0 %v14029_v51  ;;  %5775 = vmatprep.subr.mxu1 %v14030_v50  ;;  %v14068_v51 = vld [vmem:[#allocation154_spill] sm:$0xff]  ;;  %v3967_v23 = vadd.f32 %v14078_v2, %v14077_v3 }
 0xca3   : > { %5687 = vmatpush1.msra.mxu0 %v14031_v4  ;;  %5776 = vmatpush1.msra.mxu1 %v14032_v43  ;;  %v3959_v50 = vadd.f32 %v14068_v51, %v14067_v56 }
 0xca4   : > { %5688 = vmatprep.subr.mxu0 %v14033_v45  ;;  %5777 = vmatprep.subr.mxu1 %v14034_v47 }
 0xca5   : > { %5689 = vmatpush1.msra.mxu0 %v14035_v22  ;;  %5778 = vmatpush1.msra.mxu1 %v14036_v34  ;;  %v4384_v22 = vadd.f32 %v11337_v35, %v3953_v27  ;;  %v14069_v34 = vld [vmem:[#allocation118_spill] sm:$0xff] }
 0xca6   : > { %5690 = vmatprep.subr.mxu0 %v14037_v44  ;;  %5779 = vmatprep.subr.mxu1 %v14038_v0  ;;  %v14070_v44 = vld [vmem:[#allocation22_spill] sm:$0xff] }
 0xca7   : > { %5691 = vmatpush1.msra.mxu0 %v14039_v16  ;;  %5780 = vmatpush1.msra.mxu1 %v14040_v1  ;;  %v4204_v0 = vadd.f32 %v14070_v44, %v14069_v34  ;;  %v14071_v16 = vld [vmem:[#allocation79_spill] sm:$0xff]  ;;  %v14072_v1 = vld [vmem:[#allocation156_spill] sm:$0xff] }
 0xca8   : > { %5692 = vmatprep.subr.mxu0 %v14041_v55  ;;  %5781 = vmatprep.subr.mxu1 %v14042_v31  ;;  %v3961_v55 = vadd.f32 %v14072_v1, %v14071_v16  ;;  %v14083_v16 = vld [vmem:[#allocation124_spill] sm:$0xff] }
 0xca9   : > { %5693 = vmatpush1.msra.mxu0 %v14043_v8  ;;  %5782 = vmatpush1.msra.mxu1 %v14044_v53  ;;  %v4382_v7 = vadd.f32 %v11346_v62, %v4204_v0  ;;  %v4393_v0 = vadd.f32 %v11702_v25, %v3967_v23 }
 0xcaa   : > { %5694 = vmatprep.subr.mxu0 %v14045_v38  ;;  %5783 = vmatprep.subr.mxu1 %v14046_v24  ;;  %v4385_v24 = vadd.f32 %v11702_v25, %v3955_v32  ;;  %v4389_v30 = vadd.f32 %v11702_v25, %v3961_v55 }
 0xcab   : > { %5695 = vmatpush1.msra.mxu0 %v14047_v40  ;;  %5784 = vmatpush1.msra.mxu1 %v14048_v46  ;;  %v4388_v46 = vadd.f32 %v11337_v35, %v3959_v50  ;;  %v14081_v50 = vld [vmem:[#allocation77_spill] sm:$0xff] }
 0xcac   : > { %5696 = vmatprep.subr.mxu0 %v14049_v18  ;;  %5785 = vmatprep.subr.mxu1 %v14050_v19  ;;  %v14073_v18 = vld [vmem:[#allocation83_spill] sm:$0xff]  ;;  %v14074_v19 = vld [vmem:[#allocation158_spill] sm:$0xff] }
 0xcad   : > { %5697 = vmatpush1.msra.mxu0 %v14051_v20  ;;  %5786 = vmatpush1.msra.mxu1 %v14052_v21  ;;  %v3965_v20 = vadd.f32 %v14074_v19, %v14073_v18  ;;  %v14085_v18 = vld [vmem:[#allocation85_spill] sm:$0xff]  ;;  %v14086_v19 = vld [vmem:[#allocation159_spill] sm:$0xff] }
 0xcae   : > { %5698 = vmatprep.subr.mxu0 %v14053_v17  ;;  %5787 = vmatprep.subr.mxu1 %v14054_v52 }
 0xcaf   : > { %5699 = vmatpush1.msra.mxu0 %v14055_v33  ;;  %5732 = vmatprep.mubr.f32.mxu0 %v13216_v14  ;;  %v14075_v33 = vld [vmem:[#allocation122_spill] sm:$0xff]  ;;  %v4392_v51 = vadd.f32 %v11337_v35, %v3965_v20  ;;  %v4222_v20 = vadd.f32 %v14086_v19, %v14085_v18 }
 0xcb0   : > { %5788 = vmatpush1.msra.mxu1 %v14056_v26  ;;  %5821 = vmatprep.mubr.f32.mxu1 %v13216_v14  ;;  %v14076_v26 = vld [vmem:[#allocation111_spill] sm:$0xff] }
 0xcb1   : > { %5942 = vmatprep.subr.mxu0 %v14057_v29  ;;  %6031 = vmatprep.subr.mxu1 %v14058_v49  ;;  %v4210_v10 = vadd.f32 %v14076_v26, %v14075_v33  ;;  %v14087_v33 = vld [vmem:[#allocation81_spill] sm:$0xff] }
 0xcb2   : > { %v14088_v26 = vld [vmem:[#allocation157_spill] sm:$0xff] }
 0xd4a   : > { %v5460_v5 = vpop.f32.mrf.mxu0  ;;  %v5549_v58 = vpop.f32.mrf.mxu1 }
 0xd4b   : > { %v5461_v57 = vadd.f32 %v5460_v5, %v4380_v6  ;;  %v14079_v6 = vld [vmem:[#allocation120_spill] sm:$0xff]  ;;  %v14080_v5 = vld [vmem:[#allocation109_spill] sm:$0xff]  ;;  %v5550_v37 = vadd.f32 %v5549_v58, %v4382_v7 }
 0xd4c   : > { %v5462_v4 = vpop.f32.mrf.mxu0  ;;  %v5551_v43 = vpop.f32.mrf.mxu1  ;;  %v4206_v42 = vadd.f32 %v14080_v5, %v14079_v6  ;;  %v14084_v58 = vld [vmem:[#allocation153_spill] sm:$0xff] }
 0xd4d   : > { %v6964_v45 = vmul.f32 -1.442695, %v5461_v57  ;;  %v5463_v47 = vadd.f32 %v5462_v4, %v4381_v11  ;;  %v14082_v4 = vld [vmem:[#allocation155_spill] sm:$0xff]  ;;  %v4212_v1 = vadd.f32 %v14084_v58, %v14083_v16  ;;  %v6966_v55 = vmul.f32 -1.442695, %v5550_v37  ;;  %v14089_v37 = vld [vmem:[#allocation76_spill] sm:$0xff] }
 0xd4e   : > { %v5466_v31 = vpop.f32.mrf.mxu0  ;;  %v5555_v8 = vpop.f32.mrf.mxu1 }
 0xd4f   : > { %7920 = vpow2.f32 %v6964_v45  ;;  %v6965_v53 = vmul.f32 -1.442695, %v5463_v47  ;;  %v5467_v38 = vadd.f32 %v5466_v31, %v4384_v22  ;;  %v4216_v45 = vadd.f32 %v14082_v4, %v14081_v50 }
 0xd50   : > { %v5468_v40 = vpop.f32.mrf.mxu0  ;;  %v5557_v52 = vpop.f32.mrf.mxu1  ;;  %v4386_v47 = vadd.f32 %v11346_v62, %v4210_v10  ;;  %v4383_v31 = vadd.f32 %v11357_v61, %v4206_v42  ;;  %v4218_v10 = vadd.f32 %v14088_v26, %v14087_v33 }
 0xd51   : > { %7922 = vpow2.f32 %v6965_v53  ;;  %v6967_v21 = vmul.f32 -1.442695, %v5467_v38  ;;  %v5469_v17 = vadd.f32 %v5468_v40, %v4385_v24 }
 0xd52   : > { %v5472_v59 = vpop.f32.mrf.mxu0  ;;  %v5561_v11 = vpop.f32.mrf.mxu1  ;;  %v5556_v53 = vadd.f32 %v5555_v8, %v4386_v47  ;;  %v4387_v8 = vadd.f32 %v11357_v61, %v4212_v1  ;;  %v4391_v5 = vadd.f32 %v11357_v61, %v4218_v10 }
 0xd53   : > { %7924 = vpow2.f32 %v6967_v21  ;;  %v6968_v54 = vmul.f32 -1.442695, %v5469_v17  ;;  %v5473_v27 = vadd.f32 %v5472_v59, %v4388_v46  ;;  %v5552_v21 = vadd.f32 %v5551_v43, %v4383_v31 }
 0xd54   : > { %v5474_v32 = vpop.f32.mrf.mxu0  ;;  %v5563_v24 = vpop.f32.mrf.mxu1  ;;  %v4390_v17 = vadd.f32 %v11346_v62, %v4216_v45  ;;  %v4394_v43 = vadd.f32 %v11346_v62, %v4222_v20 }
 0xd55   : > { %7926 = vpow2.f32 %v6968_v54  ;;  %v6970_v57 = vmul.f32 -1.442695, %v5473_v27  ;;  %v5475_v56 = vadd.f32 %v5474_v32, %v4389_v30  ;;  %v6969_v30 = vmul.f32 -1.442695, %v5556_v53  ;;  %v14090_v32 = vld [vmem:[#allocation161_spill] sm:$0xff] }
 0xd56   : > { %v5478_v22 = vpop.f32.mrf.mxu0  ;;  %v5562_v3 = vadd.f32 %v5561_v11, %v4390_v17  ;;  %v5567_v23 = vpop.f32.mrf.mxu1  ;;  %v5558_v27 = vadd.f32 %v5557_v52, %v4387_v8  ;;  %v5564_v4 = vadd.f32 %v5563_v24, %v4391_v5 }
 0xd57   : > { %7928 = vpow2.f32 %v6970_v57  ;;  %v6971_v34 = vmul.f32 -1.442695, %v5475_v56  ;;  %v5479_v44 = vadd.f32 %v5478_v22, %v4392_v51  ;;  %v4224_v57 = vadd.f32 %v14090_v32, %v14089_v37 }
 0xd58   : > { %v5480_v38 = vpop.f32.mrf.mxu0  ;;  %v6972_v56 = vmul.f32 -1.442695, %v5562_v3  ;;  %v5568_v51 = vadd.f32 %v5567_v23, %v4394_v43  ;;  %v5569_v45 = vpop.f32.mrf.mxu1 }
 0xd59   : > { %7930 = vpow2.f32 %v6971_v34  ;;  %v6973_v40 = vmul.f32 -1.442695, %v5479_v44  ;;  %v5481_v46 = vadd.f32 %v5480_v38, %v4393_v0  ;;  %v4395_v34 = vadd.f32 %v11357_v61, %v4224_v57 }
 0xd5a   : > { %v6975_v22 = vmul.f32 -1.442695, %v5568_v51 }
 0xd5b   : > { %7932 = vpow2.f32 %v6973_v40  ;;  %v6974_v7 = vmul.f32 -1.442695, %v5481_v46  ;;  %v5570_v16 = vadd.f32 %v5569_v45, %v4395_v34 }
 0xd5c   : > { %v7921_v59 = vpop.eup %7920  ;;  %7934 = vpow2.f32 %v6966_v55 }
 0xd5d   : > { %v5608_v2 = vadd.f32 1.0, %v7921_v59  ;;  %7936 = vpow2.f32 %v6974_v7 }
 0xd5e   : > { %v7923_v54 = vpop.eup %7922  ;;  %7938 = vtanh.f32 %v5552_v21 }
 0xd5f   : > { %7940 = vrcp.f32 %v5608_v2  ;;  %v5609_v6 = vadd.f32 1.0, %v7923_v54 }
 0xd60   : > { %v7925_v42 = vpop.eup %7924  ;;  %7942 = vpow2.f32 %v6969_v30 }
 0xd61   : > { %7944 = vrcp.f32 %v5609_v6  ;;  %v5611_v11 = vadd.f32 1.0, %v7925_v42 }
 0xd62   : > { %v7927_v50 = vpop.eup %7926  ;;  %7946 = vtanh.f32 %v5558_v27 }
 0xd63   : > { %7948 = vrcp.f32 %v5611_v11  ;;  %v5612_v52 = vadd.f32 1.0, %v7927_v50 }
 0xd64   : > { %v7929_v47 = vpop.eup %7928  ;;  %7950 = vpow2.f32 %v6972_v56 }
 0xd65   : > { %7952 = vrcp.f32 %v5612_v52  ;;  %v5614_v44 = vadd.f32 1.0, %v7929_v47  ;;  %v12311_v47 = vld [vmem:[#allocation7 + $0x1d8] sm:$0xff] }
 0xd66   : > { %v7931_v0 = vpop.eup %7930  ;;  %7954 = vtanh.f32 %v5564_v4 }
 0xd67   : > { %7956 = vrcp.f32 %v5614_v44  ;;  %v5615_v58 = vadd.f32 1.0, %v7931_v0 }
 0xd68   : > { %v7933_v1 = vpop.eup %7932  ;;  %7958 = vpow2.f32 %v6975_v22 }
 0xd69   : > { %v7935_v55 = vpop.eup %7934  ;;  %7960 = vrcp.f32 %v5615_v58  ;;  %v5617_v31 = vadd.f32 1.0, %v7933_v1  ;;  %v12335_v1 = vld [vmem:[#allocation7 + $0x190] sm:$0xff] }
 0xd6a   : > { %v7937_v53 = vpop.eup %7936  ;;  %7962 = vtanh.f32 %v5570_v16  ;;  %v5610_v20 = vadd.f32 1.0, %v7935_v55  ;;  %v12338_v55 = vld [vmem:[#allocation7 + $0x168] sm:$0xff] }
 0xd6b   : > { %v7939_v38 = vpop.eup %7938  ;;  %7964 = vrcp.f32 %v5617_v31  ;;  %v5618_v24 = vadd.f32 1.0, %v7937_v53  ;;  %v12347_v31 = vld [vmem:[#allocation7 + $0x170] sm:$0xff]  ;;  %v12353_v53 = vld [vmem:[#allocation7 + $0x158] sm:$0xff] }
 0xd6c   : > { %v7941_v40 = vpop.eup %7940 }
 0xd6d   : > { %v7943_v46 = vpop.eup %7942  ;;  %v5652_v18 = vmul.f32 %v7941_v40, %v7939_v38  ;;  %7966 = vrcp.f32 %v5618_v24  ;;  %v12356_v38 = vld [vmem:[#allocation7 + $0x140] sm:$0xff]  ;;  %v12359_v24 = vld [vmem:[#allocation7 + $0x150] sm:$0xff]  ;;  %v12362_v40 = vld [vmem:[#allocation7 + $0x128] sm:$0xff] }
 0xd6e   : > { %v7945_v19 = vpop.eup %7944  ;;  %7968 = vrcp.f32 %v5610_v20  ;;  %v5613_v30 = vadd.f32 1.0, %v7943_v46  ;;  %v12365_v46 = vld [vmem:[#allocation7 + $0x138] sm:$0xff]  ;;  %v12374_v20 = vld [vmem:[#allocation7 + $0x108] sm:$0xff] }
 0xd6f   : > { %v7947_v21 = vpop.eup %7946  ;;  %v5648_v17 = vmul.f32 %v7945_v19, %v12153_v13  ;;  %v12371_v19 = vld [vmem:[#allocation7 + $0x130] sm:$0xff] }
 0xd70   : > { %v7949_v33 = vpop.eup %7948 }
 0xd71   : > { %v7951_v26 = vpop.eup %7950  ;;  %v12289_v10 = vadd.f32 %v5652_v18, %v5648_v17  ;;  %v5653_v7 = vmul.f32 %v7949_v33, %v7947_v21  ;;  %v12368_v18 = vld [vmem:[#allocation7 + $0x120] sm:$0xff]  ;;  %v12377_v21 = vld [vmem:[#allocation7 + $0x118] sm:$0xff]  ;;  %v12383_v33 = vld [vmem:[#allocation7 + $0x110] sm:$0xff] }
 0xd72   : > { %v7953_v59 = vpop.eup %7952  ;;  %v5616_v13 = vadd.f32 1.0, %v7951_v26  ;;  %v12380_v17 = vld [vmem:[#allocation7 + $0x100] sm:$0xff]  ;;  %v12386_v26 = vld [vmem:[#allocation7 + $0xe8] sm:$0xff] }
 0xd73   : > { %v7955_v8 = vpop.eup %7954  ;;  %7970 = vtanh.f32 %v12289_v10  ;;  %v5649_v3 = vmul.f32 %v7953_v59, %v12157_v36  ;;  %v12392_v59 = vld [vmem:[#allocation7 + $0xe0] sm:$0xff] }
 0xd74   : > { %v7957_v2 = vpop.eup %7956  ;;  %7972 = vrcp.f32 %v5613_v30  ;;  %14091 = vst [vmem:[#allocation49_spill] sm:$0xff] %v12392_v59  ;;  %v12395_v30 = vld [vmem:[#allocation7 + $0xf0] sm:$0xff] }
 0xd75   : > { %v7959_v23 = vpop.eup %7958  ;;  %v12293_v54 = vadd.f32 %v5653_v7, %v5649_v3  ;;  %v5654_v27 = vmul.f32 %v7957_v2, %v7955_v8  ;;  %v12389_v7 = vld [vmem:[#allocation7 + $0xf8] sm:$0xff]  ;;  %14092 = vst [vmem:[#allocation53_spill] sm:$0xff] %v12395_v30  ;;  %v12398_v8 = vld [vmem:[#allocation7 + $0xc8] sm:$0xff]  ;;  %v12404_v2 = vld [vmem:[#allocation7 + $0xc0] sm:$0xff] }
 0xd76   : > { %v7961_v43 = vpop.eup %7960  ;;  %v5619_v36 = vadd.f32 1.0, %v7959_v23  ;;  %14093 = vst [vmem:[#allocation25_spill] sm:$0xff] %v12398_v8  ;;  %v12401_v3 = vld [vmem:[#allocation7 + $0xd8] sm:$0xff]  ;;  %14095 = vst [vmem:[#allocation32_spill] sm:$0xff] %v12404_v2  ;;  %v12407_v23 = vld [vmem:[#allocation7 + $0xd0] sm:$0xff] }
 0xd77   : > { %v7963_v6 = vpop.eup %7962  ;;  %7974 = vtanh.f32 %v12293_v54  ;;  %v5650_v5 = vmul.f32 %v7961_v43, %v12161_v41  ;;  %14094 = vst [vmem:[#allocation59_spill] sm:$0xff] %v12401_v3  ;;  %14096 = vst [vmem:[#allocation151_spill] sm:$0xff] %v12407_v23  ;;  %v12413_v43 = vld [vmem:[#allocation7 + $0xb8] sm:$0xff] }
 0xd78   : > { %v7965_v42 = vpop.eup %7964  ;;  %7976 = vrcp.f32 %v5616_v13  ;;  %14098 = vst [vmem:[#allocation50_spill] sm:$0xff] %v12413_v43  ;;  %v12416_v13 = vld [vmem:[#allocation7 + $0xa0] sm:$0xff] }
 0xd79   : > { %v12297_v37 = vadd.f32 %v5654_v27, %v5650_v5  ;;  %v5655_v32 = vmul.f32 %v7965_v42, %v7963_v6  ;;  %v12410_v27 = vld [vmem:[#allocation7 + $0xa8] sm:$0xff]  ;;  %14099 = vst [vmem:[#allocation55_spill] sm:$0xff] %v12416_v13  ;;  %v12419_v6 = vld [vmem:[#allocation7 + $0xb0] sm:$0xff]  ;;  %v12425_v42 = vld [vmem:[#allocation7 + $0x98] sm:$0xff] }
 0xd7a   : > { %v7967_v57 = vpop.eup %7966  ;;  %14097 = vst [vmem:[#allocation26_spill] sm:$0xff] %v12410_v27  ;;  %14100 = vst [vmem:[#allocation58_spill] sm:$0xff] %v12419_v6  ;;  %v12422_v5 = vld [vmem:[#allocation7 + $0x88] sm:$0xff] }
 0xd7b   : > { %7978 = vtanh.f32 %v12297_v37  ;;  %v5651_v56 = vmul.f32 %v7967_v57, %v12165_v48  ;;  %v7969_v11 = vpop.eup %7968  ;;  %v12307_v48 = vld [vmem:[#allocation7 + $0x1f0] sm:$0xff]  ;;  %14101 = vst [vmem:[#allocation51_spill] sm:$0xff] %v12422_v5  ;;  %14102 = vst [vmem:[#allocation152_spill] sm:$0xff] %v12425_v42 }
 0xd7c   : > { %7980 = vrcp.f32 %v5619_v36  ;;  %v12431_v57 = vld [vmem:[#allocation7 + $0x90] sm:$0xff]  ;;  %v12434_v36 = vld [vmem:[#allocation7 + $0x68] sm:$0xff] }
 0xd7d   : > { %v12301_v51 = vadd.f32 %v5655_v32, %v5651_v56  ;;  %v12428_v32 = vld [vmem:[#allocation7 + $0x80] sm:$0xff]  ;;  %14104 = vst [vmem:[#allocation57_spill] sm:$0xff] %v12431_v57  ;;  %14105 = vst [vmem:[#allocation56_spill] sm:$0xff] %v12434_v36  ;;  %v12437_v56 = vld [vmem:[#allocation7 + $0x78] sm:$0xff] }
 0xd7e   : > { %14103 = vst [vmem:[#allocation12_spill] sm:$0xff] %v12428_v32  ;;  %14106 = vst [vmem:[#allocation52_spill] sm:$0xff] %v12437_v56 }
 0xd7f   : > { %7982 = vtanh.f32 %v12301_v51 }
 0xd80   : > { %v7971_v50 = vpop.eup %7970 }
 0xd81   : > { %v5664_v4 = vmul.f32 %v7971_v50, %v7969_v11  ;;  %v7973_v41 = vpop.eup %7972  ;;  %v12440_v11 = vld [vmem:[#allocation7 + $0x60] sm:$0xff]  ;;  %v12443_v50 = vld [vmem:[#allocation7 + $0x70] sm:$0xff] }
 0xd82   : > { %14107 = vst [vmem:[#allocation61_spill] sm:$0xff] %v12440_v11  ;;  %14108 = vst [vmem:[#allocation67_spill] sm:$0xff] %v12443_v50 }
 0xd83   : > { %5733 = vmatmul.mubr.f32.vlgmr.msra.gmra.mxu0 %v5664_v4  ;;  %5822 = vmatmul.mubr.f32.vlgmr.msra.gmra.mxu1 %v5664_v4  ;;  %v12446_v4 = vld [vmem:[#allocation7 + $0x48] sm:$0xff] }
 0xd84   : > { %v7975_v52 = vpop.eup %7974  ;;  %5738 = vmatprep.mubr.f32.mxu0 %v13216_v14  ;;  %5827 = vmatprep.mubr.f32.mxu1 %v13216_v14  ;;  %14109 = vst [vmem:[#allocation65_spill] sm:$0xff] %v12446_v4 }
 0xd85   : > { %v5665_v45 = vmul.f32 %v7975_v52, %v7973_v41  ;;  %5943 = vmatpush1.msra.mxu0 %v12016_v28  ;;  %6032 = vmatpush1.msra.mxu1 %v12307_v48  ;;  %v7977_v22 = vpop.eup %7976  ;;  %v12317_v28 = vld [vmem:[#allocation7 + $0x1d0] sm:$0xff]  ;;  %v12449_v41 = vld [vmem:[#allocation7 + $0x58] sm:$0xff]  ;;  %v12452_v52 = vld [vmem:[#allocation7 + $0x40] sm:$0xff] }
 0xd86   : > { %5944 = vmatprep.subr.mxu0 %v12020_v15  ;;  %6033 = vmatprep.subr.mxu1 %v12311_v47  ;;  %v12321_v15 = vld [vmem:[#allocation7 + $0x1b8] sm:$0xff]  ;;  %14110 = vst [vmem:[#allocation73_spill] sm:$0xff] %v12449_v41  ;;  %14111 = vst [vmem:[#allocation60_spill] sm:$0xff] %v12452_v52 }
 0xd87   : > { %5739 = vmatmul.mubr.f32.gmra.mxu0 %v5665_v45  ;;  %5828 = vmatmul.mubr.f32.gmra.mxu1 %v5665_v45  ;;  %v12455_v45 = vld [vmem:[#allocation7 + $0x50] sm:$0xff] }
 0xd88   : > { %v7979_v34 = vpop.eup %7978  ;;  %5744 = vmatprep.mubr.f32.mxu0 %v13216_v14  ;;  %5833 = vmatprep.mubr.f32.mxu1 %v13216_v14  ;;  %14112 = vst [vmem:[#allocation68_spill] sm:$0xff] %v12455_v45 }
 0xd89   : > { %v5666_v44 = vmul.f32 %v7979_v34, %v7977_v22  ;;  %5945 = vmatpush1.msra.mxu0 %v12026_v12  ;;  %6034 = vmatpush1.msra.mxu1 %v12317_v28  ;;  %v7981_v0 = vpop.eup %7980  ;;  %v12327_v12 = vld [vmem:[#allocation7 + $0x1b0] sm:$0xff]  ;;  %v12458_v22 = vld [vmem:[#allocation7 + $0x28] sm:$0xff]  ;;  %v12461_v34 = vld [vmem:[#allocation7 + $0x38] sm:$0xff] }
 0xd8a   : > { %5946 = vmatprep.subr.mxu0 %v12030_v63  ;;  %6035 = vmatprep.subr.mxu1 %v12321_v15  ;;  %v12331_v63 = vld [vmem:[#allocation7 + $0x198] sm:$0xff]  ;;  %14113 = vst [vmem:[#allocation62_spill] sm:$0xff] %v12458_v22  ;;  %14114 = vst [vmem:[#allocation74_spill] sm:$0xff] %v12461_v34 }
 0xd8b   : > { %5745 = vmatmul.mubr.f32.gmra.mxu0 %v5666_v44  ;;  %5834 = vmatmul.mubr.f32.gmra.mxu1 %v5666_v44  ;;  %v12464_v44 = vld [vmem:[#allocation7 + $0x20] sm:$0xff] }
 0xd8c   : > { %v7983_v16 = vpop.eup %7982  ;;  %5750 = vmatprep.mubr.f32.mxu0 %v13216_v14  ;;  %5839 = vmatprep.mubr.f32.mxu1 %v13216_v14  ;;  %14115 = vst [vmem:[#allocation70_spill] sm:$0xff] %v12464_v44 }
 0xd8d   : > { %v5667_v58 = vmul.f32 %v7983_v16, %v7981_v0  ;;  %5947 = vmatpush1.msra.mxu0 %v12036_v60  ;;  %6036 = vmatpush1.msra.mxu1 %v12327_v12  ;;  %v12341_v60 = vld [vmem:[#allocation7 + $0x178] sm:$0xff]  ;;  %v12467_v0 = vld [vmem:[#allocation7 + $0x30] sm:$0xff]  ;;  %v12470_v16 = vld [vmem:[#allocation7 + $0x8] sm:$0xff] }
 0xd8e   : > { %5948 = vmatprep.subr.mxu0 %v12040_v39  ;;  %6037 = vmatprep.subr.mxu1 %v12331_v63  ;;  %v12344_v39 = vld [vmem:[#allocation7 + $0x160] sm:$0xff]  ;;  %14116 = vst [vmem:[#allocation28_spill] sm:$0xff] %v12467_v0  ;;  %14117 = vst [vmem:[#allocation27_spill] sm:$0xff] %v12470_v16 }
 0xd8f   : > { %5751 = vmatmul.mubr.f32.gmra.mxu0 %v5667_v58  ;;  %5840 = vmatmul.mubr.f32.gmra.mxu1 %v5667_v58  ;;  %v12473_v58 = vld [vmem:[#allocation7 + $0x18] sm:$0xff] }
 0xd90   : > { %5949 = vmatpush1.msra.mxu0 %v12044_v9  ;;  %6038 = vmatpush1.msra.mxu1 %v12335_v1  ;;  %v12350_v9 = vld [vmem:[#allocation7 + $0x148] sm:$0xff]  ;;  %14118 = vst [vmem:[#allocation69_spill] sm:$0xff] %v12473_v58 }
 0xd91   : > { %5950 = vmatprep.subr.mxu0 %v12338_v55  ;;  %6039 = vmatprep.subr.mxu1 %v12341_v60 }
 0xd92   : > { %5951 = vmatpush1.msra.mxu0 %v12344_v39  ;;  %6040 = vmatpush1.msra.mxu1 %v12347_v31 }
 0xd93   : > { %5952 = vmatprep.subr.mxu0 %v12350_v9  ;;  %6041 = vmatprep.subr.mxu1 %v12353_v53 }
 0xd94   : > { %5953 = vmatpush1.msra.mxu0 %v12356_v38  ;;  %6042 = vmatpush1.msra.mxu1 %v12359_v24 }
 0xd95   : > { %5954 = vmatprep.subr.mxu0 %v12362_v40  ;;  %6043 = vmatprep.subr.mxu1 %v12365_v46 }
 0xd96   : > { %5955 = vmatpush1.msra.mxu0 %v12368_v18  ;;  %6044 = vmatpush1.msra.mxu1 %v12371_v19 }
 0xd97   : > { %5956 = vmatprep.subr.mxu0 %v12374_v20  ;;  %6045 = vmatprep.subr.mxu1 %v12377_v21 }
 0xd98   : > { %5957 = vmatpush1.msra.mxu0 %v12380_v17  ;;  %6046 = vmatpush1.msra.mxu1 %v12383_v33 }
 0xd99   : > { %5958 = vmatprep.subr.mxu0 %v12386_v26  ;;  %6047 = vmatprep.subr.mxu1 %v12389_v7 }
 0xd9a   : > { %5959 = vmatpush1.msra.mxu0 %v12392_v59  ;;  %6048 = vmatpush1.msra.mxu1 %v12395_v30  ;;  %v14144_v30 = vld [vmem:[#allocation171_spill] sm:$0xff] }
 0xd9b   : > { %5960 = vmatprep.subr.mxu0 %v12398_v8  ;;  %6049 = vmatprep.subr.mxu1 %v12401_v3  ;;  %v14141_v8 = vld [vmem:[#allocation78_spill] sm:$0xff] }
 0xd9c   : > { %5961 = vmatpush1.msra.mxu0 %v12404_v2  ;;  %6050 = vmatpush1.msra.mxu1 %v12407_v23  ;;  %v14138_v2 = vld [vmem:[#allocation167_spill] sm:$0xff] }
 0xd9d   : > { %5962 = vmatprep.subr.mxu0 %v12410_v27  ;;  %6051 = vmatprep.subr.mxu1 %v12413_v43  ;;  %v14134_v43 = vld [vmem:[#allocation172_spill] sm:$0xff] }
 0xd9e   : > { %5963 = vmatpush1.msra.mxu0 %v12416_v13  ;;  %6052 = vmatpush1.msra.mxu1 %v12419_v6  ;;  %v14133_v13 = vld [vmem:[#allocation95_spill] sm:$0xff] }
 0xd9f   : > { %5964 = vmatprep.subr.mxu0 %v12422_v5  ;;  %6053 = vmatprep.subr.mxu1 %v12425_v42  ;;  %v14130_v42 = vld [vmem:[#allocation170_spill] sm:$0xff]  ;;  %v3985_v27 = vadd.f32 %v14134_v43, %v14133_v13 }
 0xda0   : > { %5965 = vmatpush1.msra.mxu0 %v12428_v32  ;;  %6054 = vmatpush1.msra.mxu1 %v12431_v57 }
 0xda1   : > { %5966 = vmatprep.subr.mxu0 %v12434_v36  ;;  %6055 = vmatprep.subr.mxu1 %v12437_v56  ;;  %v14128_v36 = vld [vmem:[#allocation168_spill] sm:$0xff] }
 0xda2   : > { %5967 = vmatpush1.msra.mxu0 %v12440_v11  ;;  %6056 = vmatpush1.msra.mxu1 %v12443_v50 }
 0xda3   : > { %5968 = vmatprep.subr.mxu0 %v12446_v4  ;;  %6057 = vmatprep.subr.mxu1 %v12449_v41  ;;  %v14125_v41 = vld [vmem:[#allocation84_spill] sm:$0xff] }
 0xda4   : > { %5969 = vmatpush1.msra.mxu0 %v12452_v52  ;;  %6058 = vmatpush1.msra.mxu1 %v12455_v45  ;;  %v14124_v45 = vld [vmem:[#allocation164_spill] sm:$0xff] }
 0xda5   : > { %5970 = vmatprep.subr.mxu0 %v12458_v22  ;;  %6059 = vmatprep.subr.mxu1 %v12461_v34  ;;  %v12476_v22 = vld [vmem:[#allocation7] sm:$0xff]  ;;  %v12480_v34 = vld [vmem:[#allocation7 + $0x10] sm:$0xff] }
 0xda6   : > { %5971 = vmatpush1.msra.mxu0 %v12464_v44  ;;  %6060 = vmatpush1.msra.mxu1 %v12467_v0  ;;  %14119 = vst [vmem:[#allocation54_spill] sm:$0xff] %v12476_v22  ;;  %14120 = vst [vmem:[#allocation15_spill] sm:$0xff] %v12480_v34  ;;  %v14122_v0 = vld [vmem:[#allocation162_spill] sm:$0xff] }
 0xda7   : > { %5972 = vmatprep.subr.mxu0 %v12470_v16  ;;  %6061 = vmatprep.subr.mxu1 %v12473_v58  ;;  %v14121_v16 = vld [vmem:[#allocation89_spill] sm:$0xff]  ;;  %v14123_v58 = vld [vmem:[#allocation80_spill] sm:$0xff] }
 0xda8   : > { %5973 = vmatpush1.msra.mxu0 %v12476_v22  ;;  %6006 = vmatprep.mubr.f32.mxu0 %v13216_v14  ;;  %v3971_v44 = vadd.f32 %v14122_v0, %v14121_v16  ;;  %v3973_v52 = vadd.f32 %v14124_v45, %v14123_v58  ;;  %v14126_v22 = vld [vmem:[#allocation166_spill] sm:$0xff] }
 0xda9   : > { %6062 = vmatpush1.msra.mxu1 %v12480_v34  ;;  %6095 = vmatprep.mubr.f32.mxu1 %v13216_v14  ;;  %v3977_v4 = vadd.f32 %v14126_v22, %v14125_v41  ;;  %v14127_v34 = vld [vmem:[#allocation88_spill] sm:$0xff]  ;;  %v14131_v41 = vld [vmem:[#allocation91_spill] sm:$0xff] }
 0xdaa   : > { %6216 = vmatprep.subr.mxu0 %v14057_v29  ;;  %6305 = vmatprep.subr.mxu1 %v14058_v49  ;;  %v4396_v50 = vadd.f32 %v11337_v35, %v3971_v44  ;;  %v3979_v57 = vadd.f32 %v14128_v36, %v14127_v34  ;;  %v4397_v29 = vadd.f32 %v11702_v25, %v3973_v52  ;;  %v14129_v49 = vld [vmem:[#allocation90_spill] sm:$0xff]  ;;  %v14132_v22 = vld [vmem:[#allocation163_spill] sm:$0xff] }
 0xdab   : > { %v3983_v5 = vadd.f32 %v14130_v42, %v14129_v49  ;;  %v4400_v58 = vadd.f32 %v11337_v35, %v3977_v4  ;;  %v4228_v44 = vadd.f32 %v14132_v22, %v14131_v41  ;;  %v14137_v22 = vld [vmem:[#allocation82_spill] sm:$0xff] }
 0xdac   : > { %v4401_v52 = vadd.f32 %v11702_v25, %v3979_v57  ;;  %v4234_v43 = vadd.f32 %v14138_v2, %v14137_v22  ;;  %v14140_v57 = vld [vmem:[#allocation176_spill] sm:$0xff]  ;;  %v14143_v22 = vld [vmem:[#allocation93_spill] sm:$0xff] }
 0xdad   : > { %v4404_v34 = vadd.f32 %v11337_v35, %v3983_v5  ;;  %v4398_v13 = vadd.f32 %v11346_v62, %v4228_v44 }
 0xdae   : > { %v4402_v59 = vadd.f32 %v11346_v62, %v4234_v43  ;;  %v14148_v43 = vld [vmem:[#allocation175_spill] sm:$0xff] }
 0xe43   : > { %v5734_v11 = vpop.f32.mrf.mxu0  ;;  %v5823_v56 = vpop.f32.mrf.mxu1 }
 0xe44   : > { %v5735_v32 = vadd.f32 %v5734_v11, %v4396_v50 }
 0xe45   : > { %v5736_v0 = vpop.f32.mrf.mxu0  ;;  %v5825_v16 = vpop.f32.mrf.mxu1 }
 0xe46   : > { %v6976_v6 = vmul.f32 -1.442695, %v5735_v32  ;;  %v5737_v45 = vadd.f32 %v5736_v0, %v4397_v29  ;;  %v14135_v32 = vld [vmem:[#allocation99_spill] sm:$0xff]  ;;  %v14136_v29 = vld [vmem:[#allocation174_spill] sm:$0xff] }
 0xe47   : > { %v5740_v23 = vpop.f32.mrf.mxu0  ;;  %v5829_v36 = vpop.f32.mrf.mxu1  ;;  %v3989_v49 = vadd.f32 %v14136_v29, %v14135_v32  ;;  %v14142_v32 = vld [vmem:[#allocation165_spill] sm:$0xff] }
 0xe48   : > { %7984 = vpow2.f32 %v6976_v6  ;;  %v6977_v11 = vmul.f32 -1.442695, %v5737_v45  ;;  %v5741_v50 = vadd.f32 %v5740_v23, %v4400_v58  ;;  %v4405_v23 = vadd.f32 %v11702_v25, %v3985_v27  ;;  %v14139_v45 = vld [vmem:[#allocation103_spill] sm:$0xff] }
 0xe49   : > { %v5742_v42 = vpop.f32.mrf.mxu0  ;;  %v5831_v41 = vpop.f32.mrf.mxu1  ;;  %v3991_v58 = vadd.f32 %v14140_v57, %v14139_v45  ;;  %v4408_v44 = vadd.f32 %v11337_v35, %v3989_v49  ;;  %v4240_v27 = vadd.f32 %v14144_v30, %v14143_v22 }
 0xe4a   : > { %7986 = vpow2.f32 %v6977_v11  ;;  %v6979_v4 = vmul.f32 -1.442695, %v5741_v50  ;;  %v5743_v0 = vadd.f32 %v5742_v42, %v4401_v52  ;;  %v4230_v11 = vadd.f32 %v14142_v32, %v14141_v8  ;;  %v14145_v8 = vld [vmem:[#allocation86_spill] sm:$0xff]  ;;  %v14147_v32 = vld [vmem:[#allocation101_spill] sm:$0xff] }
 0xe4b   : > { %v5746_v6 = vpop.f32.mrf.mxu0  ;;  %v5824_v50 = vadd.f32 %v5823_v56, %v4398_v13  ;;  %v5835_v29 = vpop.f32.mrf.mxu1  ;;  %v14146_v56 = vld [vmem:[#allocation169_spill] sm:$0xff] }
 0xe4c   : > { %7988 = vpow2.f32 %v6979_v4  ;;  %v6980_v5 = vmul.f32 -1.442695, %v5743_v0  ;;  %v5747_v3 = vadd.f32 %v5746_v6, %v4404_v34  ;;  %v4409_v0 = vadd.f32 %v11702_v25, %v3991_v58  ;;  %v14150_v58 = vld [vmem:[#allocation173_spill] sm:$0xff] }
 0xe4d   : > { %v5748_v52 = vpop.f32.mrf.mxu0  ;;  %v4236_v13 = vadd.f32 %v14146_v56, %v14145_v8  ;;  %v6978_v6 = vmul.f32 -1.442695, %v5824_v50  ;;  %v5837_v49 = vpop.f32.mrf.mxu1 }
 0xe4e   : > { %7990 = vpow2.f32 %v6980_v5  ;;  %v6982_v42 = vmul.f32 -1.442695, %v5747_v3  ;;  %v5749_v2 = vadd.f32 %v5748_v52, %v4405_v23  ;;  %v4399_v3 = vadd.f32 %v11357_v61, %v4230_v11 }
 0xe4f   : > { %v5752_v45 = vpop.f32.mrf.mxu0  ;;  %v5830_v23 = vadd.f32 %v5829_v36, %v4402_v59  ;;  %v4246_v52 = vadd.f32 %v14148_v43, %v14147_v32  ;;  %v4403_v59 = vadd.f32 %v11357_v61, %v4236_v13 }
 0xe50   : > { %7992 = vpow2.f32 %v6982_v42  ;;  %v6983_v4 = vmul.f32 -1.442695, %v5749_v2  ;;  %v5753_v34 = vadd.f32 %v5752_v45, %v4408_v44  ;;  %v5826_v42 = vadd.f32 %v5825_v16, %v4399_v3  ;;  %v14149_v44 = vld [vmem:[#allocation97_spill] sm:$0xff] }
 0xe51   : > { %v5754_v57 = vpop.f32.mrf.mxu0  ;;  %v4406_v2 = vadd.f32 %v11346_v62, %v4240_v27  ;;  %v4242_v22 = vadd.f32 %v14150_v58, %v14149_v44  ;;  %v6981_v11 = vmul.f32 -1.442695, %v5830_v23  ;;  %v5832_v8 = vadd.f32 %v5831_v41, %v4403_v59 }
 0xe52   : > { %7994 = vpow2.f32 %v6983_v4  ;;  %v6985_v5 = vmul.f32 -1.442695, %v5753_v34  ;;  %v5755_v30 = vadd.f32 %v5754_v57, %v4409_v0  ;;  %v5841_v34 = vpop.f32.mrf.mxu1  ;;  %v4410_v16 = vadd.f32 %v11346_v62, %v4246_v52  ;;  %v14151_v57 = vld [vmem:[#allocation92_spill] sm:$0xff] }
 0xe53   : > { %v5836_v36 = vadd.f32 %v5835_v29, %v4406_v2  ;;  %v4407_v56 = vadd.f32 %v11357_v61, %v4242_v22 }
 0xe54   : > { %7996 = vpow2.f32 %v6985_v5  ;;  %v6986_v45 = vmul.f32 -1.442695, %v5755_v30  ;;  %v14152_v5 = vld [vmem:[#allocation177_spill] sm:$0xff]  ;;  %v5842_v13 = vadd.f32 %v5841_v34, %v4410_v16  ;;  %v5843_v43 = vpop.f32.mrf.mxu1 }
 0xe55   : > { %v7985_v50 = vpop.eup %7984  ;;  %7998 = vpow2.f32 %v6978_v6  ;;  %v4248_v6 = vadd.f32 %v14152_v5, %v14151_v57  ;;  %v6984_v23 = vmul.f32 -1.442695, %v5836_v36  ;;  %v5838_v32 = vadd.f32 %v5837_v49, %v4407_v56 }
 0xe56   : > { %v5882_v4 = vadd.f32 1.0, %v7985_v50  ;;  %8000 = vpow2.f32 %v6986_v45 }
 0xe57   : > { %v7987_v0 = vpop.eup %7986  ;;  %8002 = vtanh.f32 %v5826_v42  ;;  %v6987_v42 = vmul.f32 -1.442695, %v5842_v13  ;;  %v4411_v2 = vadd.f32 %v11357_v61, %v4248_v6 }
 0xe58   : > { %8004 = vrcp.f32 %v5882_v4  ;;  %v5883_v27 = vadd.f32 1.0, %v7987_v0 }
 0xe59   : > { %v7989_v3 = vpop.eup %7988  ;;  %8006 = vpow2.f32 %v6981_v11  ;;  %v5844_v22 = vadd.f32 %v5843_v43, %v4411_v2 }
 0xe5a   : > { %8008 = vrcp.f32 %v5883_v27  ;;  %v5885_v29 = vadd.f32 1.0, %v7989_v3 }
 0xe5b   : > { %v7991_v30 = vpop.eup %7990  ;;  %8010 = vtanh.f32 %v5832_v8 }
 0xe5c   : > { %8012 = vrcp.f32 %v5885_v29  ;;  %v5886_v41 = vadd.f32 1.0, %v7991_v30 }
 0xe5d   : > { %v7993_v52 = vpop.eup %7992  ;;  %8014 = vpow2.f32 %v6984_v23 }
 0xe5e   : > { %8016 = vrcp.f32 %v5886_v41  ;;  %v5888_v44 = vadd.f32 1.0, %v7993_v52 }
 0xe5f   : > { %v7995_v58 = vpop.eup %7994  ;;  %8018 = vtanh.f32 %v5838_v32 }
 0xe60   : > { %8020 = vrcp.f32 %v5888_v44  ;;  %v5889_v45 = vadd.f32 1.0, %v7995_v58 }
 0xe61   : > { %v7997_v50 = vpop.eup %7996  ;;  %8022 = vpow2.f32 %v6987_v42 }
 0xe62   : > { %v7999_v11 = vpop.eup %7998  ;;  %8024 = vrcp.f32 %v5889_v45  ;;  %v5891_v49 = vadd.f32 1.0, %v7997_v50 }
 0xe63   : > { %v8001_v59 = vpop.eup %8000  ;;  %8026 = vtanh.f32 %v5844_v22  ;;  %v5884_v27 = vadd.f32 1.0, %v7999_v11 }
 0xe64   : > { %v8003_v36 = vpop.eup %8002  ;;  %8028 = vrcp.f32 %v5891_v49  ;;  %v5892_v4 = vadd.f32 1.0, %v8001_v59 }
 0xe65   : > { %v8005_v34 = vpop.eup %8004 }
 0xe66   : > { %v8007_v0 = vpop.eup %8006  ;;  %v5926_v8 = vmul.f32 %v8005_v34, %v8003_v36  ;;  %8030 = vrcp.f32 %v5892_v4 }
 0xe67   : > { %v8009_v16 = vpop.eup %8008  ;;  %8032 = vrcp.f32 %v5884_v27  ;;  %v5887_v29 = vadd.f32 1.0, %v8007_v0 }
 0xe68   : > { %v8011_v56 = vpop.eup %8010  ;;  %v5922_v3 = vmul.f32 %v8009_v16, %v12289_v10  ;;  %v8432_v16 = vld [vmem:[#allocation7 + $0x1e0] sm:$0xff] }
 0xe69   : > { %v8013_v57 = vpop.eup %8012 }
 0xe6a   : > { %v8015_v5 = vpop.eup %8014  ;;  %v12535_v6 = vadd.f32 %v5926_v8, %v5922_v3  ;;  %v5927_v23 = vmul.f32 %v8013_v57, %v8011_v56  ;;  %v8434_v57 = vld [vmem:[#allocation7 + $0x1c0] sm:$0xff] }
 0xe6b   : > { %v8017_v13 = vpop.eup %8016  ;;  %v5890_v10 = vadd.f32 1.0, %v8015_v5  ;;  %v8435_v5 = vld [vmem:[#allocation7 + $0x1a8] sm:$0xff] }
 0xe6c   : > { %v8019_v30 = vpop.eup %8018  ;;  %8034 = vtanh.f32 %v12535_v6  ;;  %v5923_v32 = vmul.f32 %v8017_v13, %v12293_v54  ;;  %v8436_v13 = vld [vmem:[#allocation7 + $0x1a0] sm:$0xff] }
 0xe6d   : > { %v8021_v41 = vpop.eup %8020  ;;  %8036 = vrcp.f32 %v5887_v29  ;;  %v8437_v29 = vld [vmem:[#allocation7 + $0x188] sm:$0xff] }
 0xe6e   : > { %v8023_v43 = vpop.eup %8022  ;;  %v12539_v52 = vadd.f32 %v5927_v23, %v5923_v32  ;;  %v5928_v42 = vmul.f32 %v8021_v41, %v8019_v30  ;;  %v14175_v30 = vld [vmem:[#allocation62_spill] sm:$0xff] }
 0xe6f   : > { %v8025_v2 = vpop.eup %8024  ;;  %v5893_v54 = vadd.f32 1.0, %v8023_v43  ;;  %v14176_v32 = vld [vmem:[#allocation74_spill] sm:$0xff]  ;;  %v14178_v43 = vld [vmem:[#allocation28_spill] sm:$0xff] }
 0xe70   : > { %v8027_v44 = vpop.eup %8026  ;;  %8038 = vtanh.f32 %v12539_v52  ;;  %v5924_v58 = vmul.f32 %v8025_v2, %v12297_v37  ;;  %v14177_v41 = vld [vmem:[#allocation70_spill] sm:$0xff]  ;;  %v14180_v2 = vld [vmem:[#allocation69_spill] sm:$0xff] }
 0xe71   : > { %v8029_v22 = vpop.eup %8028  ;;  %8040 = vrcp.f32 %v5890_v10  ;;  %v14181_v10 = vld [vmem:[#allocation54_spill] sm:$0xff] }
 0xe72   : > { %v12543_v45 = vadd.f32 %v5928_v42, %v5924_v58  ;;  %v5929_v50 = vmul.f32 %v8029_v22, %v8027_v44  ;;  %v14179_v42 = vld [vmem:[#allocation27_spill] sm:$0xff]  ;;  %v14183_v58 = vld [vmem:[#allocation105_spill] sm:$0xff]  ;;  %v14184_v22 = vld [vmem:[#allocation178_spill] sm:$0xff] }
 0xe73   : > { %v8031_v11 = vpop.eup %8030  ;;  %v14182_v44 = vld [vmem:[#allocation15_spill] sm:$0xff] }
 0xe74   : > { %8042 = vtanh.f32 %v12543_v45  ;;  %v5925_v49 = vmul.f32 %v8031_v11, %v12301_v51  ;;  %v8033_v36 = vpop.eup %8032  ;;  %v8433_v51 = vld [vmem:[#allocation7 + $0x1c8] sm:$0xff]  ;;  %v14185_v11 = vld [vmem:[#allocation96_spill] sm:$0xff] }
 0xe75   : > { %8044 = vrcp.f32 %v5893_v54  ;;  %v14186_v54 = vld [vmem:[#allocation180_spill] sm:$0xff] }
 0xe76   : > { %v12547_v59 = vadd.f32 %v5929_v50, %v5925_v49  ;;  %v3995_v50 = vadd.f32 %v14184_v22, %v14183_v58  ;;  %v3997_v49 = vadd.f32 %v14186_v54, %v14185_v11  ;;  %v14203_v58 = vld [vmem:[#allocation94_spill] sm:$0xff]  ;;  %v14204_v22 = vld [vmem:[#allocation181_spill] sm:$0xff] }
 0xe78   : > { %8046 = vtanh.f32 %v12547_v59 }
 0xe79   : > { %v8035_v4 = vpop.eup %8034 }
 0xe7a   : > { %v5938_v34 = vmul.f32 %v8035_v4, %v8033_v36  ;;  %v8037_v37 = vpop.eup %8036  ;;  %v14187_v36 = vld [vmem:[#allocation100_spill] sm:$0xff]  ;;  %v14188_v4 = vld [vmem:[#allocation182_spill] sm:$0xff] }
 0xe7c   : > { %6007 = vmatmul.mubr.f32.vlgmr.msra.gmra.mxu0 %v5938_v34  ;;  %6096 = vmatmul.mubr.f32.vlgmr.msra.gmra.mxu1 %v5938_v34  ;;  %v4001_v34 = vadd.f32 %v14188_v4, %v14187_v36 }
 0xe7d   : > { %v8039_v0 = vpop.eup %8038  ;;  %6012 = vmatprep.mubr.f32.mxu0 %v13216_v14  ;;  %6101 = vmatprep.mubr.f32.mxu1 %v13216_v14 }
 0xe7e   : > { %v5939_v8 = vmul.f32 %v8039_v0, %v8037_v37  ;;  %6217 = vmatpush1.msra.mxu0 %v8432_v16  ;;  %6306 = vmatpush1.msra.mxu1 %v12307_v48  ;;  %v8041_v27 = vpop.eup %8040  ;;  %v4412_v37 = vadd.f32 %v11337_v35, %v3995_v50  ;;  %v14189_v16 = vld [vmem:[#allocation104_spill] sm:$0xff]  ;;  %v4254_v50 = vadd.f32 %v14204_v22, %v14203_v58 }
 0xe7f   : > { %6218 = vmatprep.subr.mxu0 %v8433_v51  ;;  %6307 = vmatprep.subr.mxu1 %v12311_v47  ;;  %v14190_v51 = vld [vmem:[#allocation184_spill] sm:$0xff] }
 0xe80   : > { %6013 = vmatmul.mubr.f32.gmra.mxu0 %v5939_v8  ;;  %6102 = vmatmul.mubr.f32.gmra.mxu1 %v5939_v8 }
 0xe81   : > { %v8043_v56 = vpop.eup %8042  ;;  %6018 = vmatprep.mubr.f32.mxu0 %v13216_v14  ;;  %6107 = vmatprep.mubr.f32.mxu1 %v13216_v14 }
 0xe82   : > { %v5940_v3 = vmul.f32 %v8043_v56, %v8041_v27  ;;  %6219 = vmatpush1.msra.mxu0 %v8434_v57  ;;  %6308 = vmatpush1.msra.mxu1 %v12317_v28  ;;  %v8045_v48 = vpop.eup %8044  ;;  %v8438_v28 = vld [vmem:[#allocation7 + $0x180] sm:$0xff]  ;;  %v4003_v27 = vadd.f32 %v14190_v51, %v14189_v16  ;;  %v14191_v57 = vld [vmem:[#allocation106_spill] sm:$0xff] }
 0xe83   : > { %6220 = vmatprep.subr.mxu0 %v8435_v5  ;;  %6309 = vmatprep.subr.mxu1 %v12321_v15  ;;  %v14153_v15 = vld [vmem:[#allocation49_spill] sm:$0xff]  ;;  %v14192_v5 = vld [vmem:[#allocation186_spill] sm:$0xff] }
 0xe84   : > { %6019 = vmatmul.mubr.f32.gmra.mxu0 %v5940_v3  ;;  %6108 = vmatmul.mubr.f32.gmra.mxu1 %v5940_v3  ;;  %v4413_v3 = vadd.f32 %v11702_v25, %v3997_v49 }
 0xe85   : > { %v8047_v47 = vpop.eup %8046  ;;  %6024 = vmatprep.mubr.f32.mxu0 %v13216_v14  ;;  %6113 = vmatprep.mubr.f32.mxu1 %v13216_v14 }
 0xe86   : > { %v5941_v23 = vmul.f32 %v8047_v47, %v8045_v48  ;;  %6221 = vmatpush1.msra.mxu0 %v8436_v13  ;;  %6310 = vmatpush1.msra.mxu1 %v12327_v12  ;;  %v14154_v12 = vld [vmem:[#allocation53_spill] sm:$0xff]  ;;  %v4007_v48 = vadd.f32 %v14192_v5, %v14191_v57  ;;  %v14207_v5 = vld [vmem:[#allocation102_spill] sm:$0xff] }
 0xe87   : > { %6222 = vmatprep.subr.mxu0 %v8437_v29  ;;  %6311 = vmatprep.subr.mxu1 %v12331_v63  ;;  %v14155_v63 = vld [vmem:[#allocation25_spill] sm:$0xff] }
 0xe88   : > { %6025 = vmatmul.mubr.f32.gmra.mxu0 %v5941_v23  ;;  %6114 = vmatmul.mubr.f32.gmra.mxu1 %v5941_v23 }
 0xe89   : > { %6223 = vmatpush1.msra.mxu0 %v8438_v28  ;;  %6312 = vmatpush1.msra.mxu1 %v12335_v1  ;;  %v14156_v1 = vld [vmem:[#allocation59_spill] sm:$0xff]  ;;  %v4416_v28 = vadd.f32 %v11337_v35, %v4001_v34 }
 0xe8a   : > { %6224 = vmatprep.subr.mxu0 %v12338_v55  ;;  %6313 = vmatprep.subr.mxu1 %v12341_v60  ;;  %v14157_v55 = vld [vmem:[#allocation32_spill] sm:$0xff]  ;;  %v14158_v60 = vld [vmem:[#allocation151_spill] sm:$0xff] }
 0xe8b   : > { %6225 = vmatpush1.msra.mxu0 %v12344_v39  ;;  %6314 = vmatpush1.msra.mxu1 %v12347_v31  ;;  %v14159_v39 = vld [vmem:[#allocation26_spill] sm:$0xff] }
 0xe8c   : > { %6226 = vmatprep.subr.mxu0 %v12350_v9  ;;  %6315 = vmatprep.subr.mxu1 %v12353_v53  ;;  %v14160_v31 = vld [vmem:[#allocation50_spill] sm:$0xff]  ;;  %v14161_v9 = vld [vmem:[#allocation55_spill] sm:$0xff] }
 0xe8d   : > { %6227 = vmatpush1.msra.mxu0 %v12356_v38  ;;  %6316 = vmatpush1.msra.mxu1 %v12359_v24  ;;  %v14162_v53 = vld [vmem:[#allocation58_spill] sm:$0xff]  ;;  %v14163_v38 = vld [vmem:[#allocation51_spill] sm:$0xff]  ;;  %v14164_v24 = vld [vmem:[#allocation152_spill] sm:$0xff] }
 0xe8e   : > { %6228 = vmatprep.subr.mxu0 %v12362_v40  ;;  %6317 = vmatprep.subr.mxu1 %v12365_v46  ;;  %v14165_v40 = vld [vmem:[#allocation12_spill] sm:$0xff]  ;;  %v14166_v46 = vld [vmem:[#allocation57_spill] sm:$0xff] }
 0xe8f   : > { %6229 = vmatpush1.msra.mxu0 %v12368_v18  ;;  %6318 = vmatpush1.msra.mxu1 %v12371_v19  ;;  %v14167_v18 = vld [vmem:[#allocation56_spill] sm:$0xff] }
 0xe90   : > { %6230 = vmatprep.subr.mxu0 %v12374_v20  ;;  %6319 = vmatprep.subr.mxu1 %v12377_v21  ;;  %v14168_v19 = vld [vmem:[#allocation52_spill] sm:$0xff]  ;;  %v14169_v20 = vld [vmem:[#allocation61_spill] sm:$0xff]  ;;  %v14170_v21 = vld [vmem:[#allocation67_spill] sm:$0xff] }
 0xe91   : > { %6231 = vmatpush1.msra.mxu0 %v12380_v17  ;;  %6320 = vmatpush1.msra.mxu1 %v12383_v33  ;;  %v14171_v17 = vld [vmem:[#allocation65_spill] sm:$0xff] }
 0xe92   : > { %6232 = vmatprep.subr.mxu0 %v12386_v26  ;;  %6321 = vmatprep.subr.mxu1 %v12389_v7  ;;  %v14172_v33 = vld [vmem:[#allocation73_spill] sm:$0xff]  ;;  %v14173_v26 = vld [vmem:[#allocation60_spill] sm:$0xff] }
 0xe93   : > { %6233 = vmatpush1.msra.mxu0 %v14153_v15  ;;  %6322 = vmatpush1.msra.mxu1 %v14154_v12  ;;  %v14174_v7 = vld [vmem:[#allocation68_spill] sm:$0xff]  ;;  %v14193_v15 = vld [vmem:[#allocation34_spill] sm:$0xff]  ;;  %v14194_v12 = vld [vmem:[#allocation179_spill] sm:$0xff] }
 0xe94   : > { %6234 = vmatprep.subr.mxu0 %v14155_v63  ;;  %6323 = vmatprep.subr.mxu1 %v14156_v1  ;;  %v4252_v63 = vadd.f32 %v14194_v12, %v14193_v15  ;;  %v14195_v1 = vld [vmem:[#allocation107_spill] sm:$0xff] }
 0xe95   : > { %6235 = vmatpush1.msra.mxu0 %v14157_v55  ;;  %6324 = vmatpush1.msra.mxu1 %v14158_v60  ;;  %v14196_v55 = vld [vmem:[#allocation188_spill] sm:$0xff] }
 0xe96   : > { %6236 = vmatprep.subr.mxu0 %v14159_v39  ;;  %6325 = vmatprep.subr.mxu1 %v14160_v31  ;;  %v4009_v60 = vadd.f32 %v14196_v55, %v14195_v1  ;;  %v14209_v1 = vld [vmem:[#allocation42_spill] sm:$0xff]  ;;  %v14210_v55 = vld [vmem:[#allocation191_spill] sm:$0xff] }
 0xe97   : > { %6237 = vmatpush1.msra.mxu0 %v14161_v9  ;;  %6326 = vmatpush1.msra.mxu1 %v14162_v53 }
 0xe98   : > { %6238 = vmatprep.subr.mxu0 %v14163_v38  ;;  %6327 = vmatprep.subr.mxu1 %v14164_v24  ;;  %v4417_v38 = vadd.f32 %v11702_v25, %v4003_v27 }
 0xe99   : > { %6239 = vmatpush1.msra.mxu0 %v14165_v40  ;;  %6328 = vmatpush1.msra.mxu1 %v14166_v46  ;;  %v4420_v40 = vadd.f32 %v11337_v35, %v4007_v48  ;;  %v14197_v46 = vld [vmem:[#allocation18_spill] sm:$0xff] }
 0xe9a   : > { %6240 = vmatprep.subr.mxu0 %v14167_v18  ;;  %6329 = vmatprep.subr.mxu1 %v14168_v19  ;;  %v14198_v18 = vld [vmem:[#allocation190_spill] sm:$0xff] }
 0xe9b   : > { %6241 = vmatpush1.msra.mxu0 %v14169_v20  ;;  %6330 = vmatpush1.msra.mxu1 %v14170_v21  ;;  %v4013_v19 = vadd.f32 %v14198_v18, %v14197_v46 }
 0xe9c   : > { %6242 = vmatprep.subr.mxu0 %v14171_v17  ;;  %6331 = vmatprep.subr.mxu1 %v14172_v33  ;;  %v14199_v33 = vld [vmem:[#allocation98_spill] sm:$0xff] }
 0xe9d   : > { %6243 = vmatpush1.msra.mxu0 %v14173_v26  ;;  %6332 = vmatpush1.msra.mxu1 %v14174_v7  ;;  %v14200_v26 = vld [vmem:[#allocation183_spill] sm:$0xff]  ;;  %v4424_v34 = vadd.f32 %v11337_v35, %v4013_v19 }
 0xe9e   : > { %6244 = vmatprep.subr.mxu0 %v14175_v30  ;;  %6333 = vmatprep.subr.mxu1 %v14176_v32  ;;  %v4258_v7 = vadd.f32 %v14200_v26, %v14199_v33  ;;  %v4414_v30 = vadd.f32 %v11346_v62, %v4252_v63 }
 0xe9f   : > { %6245 = vmatpush1.msra.mxu0 %v14177_v41  ;;  %6334 = vmatpush1.msra.mxu1 %v14178_v43  ;;  %v4421_v41 = vadd.f32 %v11702_v25, %v4009_v60  ;;  %v14201_v43 = vld [vmem:[#allocation39_spill] sm:$0xff]  ;;  %v4270_v60 = vadd.f32 %v14210_v55, %v14209_v1 }
 0xea0   : > { %6246 = vmatprep.subr.mxu0 %v14179_v42  ;;  %6335 = vmatprep.subr.mxu1 %v14180_v2  ;;  %v14202_v42 = vld [vmem:[#allocation192_spill] sm:$0xff]  ;;  %v4418_v51 = vadd.f32 %v11346_v62, %v4258_v7 }
 0xea1   : > { %6247 = vmatpush1.msra.mxu0 %v14181_v10  ;;  %6280 = vmatprep.mubr.f32.mxu0 %v13216_v14  ;;  %v4015_v2 = vadd.f32 %v14202_v42, %v14201_v43  ;;  %v14214_v43 = vld [vmem:[#allocation193_spill] sm:$0xff] }
 0xea2   : > { %6336 = vmatpush1.msra.mxu1 %v14182_v44  ;;  %6369 = vmatprep.mubr.f32.mxu1 %v13216_v14 }
 0xea3   : > { %v4425_v57 = vadd.f32 %v11702_v25, %v4015_v2 }
 0xf3c   : > { %v6008_v0 = vpop.f32.mrf.mxu0  ;;  %v6097_v8 = vpop.f32.mrf.mxu1 }
 0xf3d   : > { %v6009_v56 = vadd.f32 %v6008_v0, %v4412_v37  ;;  %v6098_v11 = vadd.f32 %v6097_v8, %v4414_v30  ;;  %v14205_v37 = vld [vmem:[#allocation44_spill] sm:$0xff]  ;;  %v14206_v0 = vld [vmem:[#allocation187_spill] sm:$0xff]  ;;  %v14208_v8 = vld [vmem:[#allocation185_spill] sm:$0xff] }
 0xf3e   : > { %v6010_v47 = vpop.f32.mrf.mxu0  ;;  %v6099_v23 = vpop.f32.mrf.mxu1  ;;  %v4264_v16 = vadd.f32 %v14206_v0, %v14205_v37  ;;  %v4260_v48 = vadd.f32 %v14208_v8, %v14207_v5 }
 0xf3f   : > { %v6988_v13 = vmul.f32 -1.442695, %v6009_v56  ;;  %v6011_v29 = vadd.f32 %v6010_v47, %v4413_v3  ;;  %v6990_v47 = vmul.f32 -1.442695, %v6098_v11 }
 0xf40   : > { %v6014_v39 = vpop.f32.mrf.mxu0  ;;  %v6103_v31 = vpop.f32.mrf.mxu1 }
 0xf41   : > { %8048 = vpow2.f32 %v6988_v13  ;;  %v6989_v9 = vmul.f32 -1.442695, %v6011_v29  ;;  %v6015_v53 = vadd.f32 %v6014_v39, %v4416_v28  ;;  %v4415_v13 = vadd.f32 %v11357_v61, %v4254_v50 }
 0xf42   : > { %v6016_v24 = vpop.f32.mrf.mxu0  ;;  %v6105_v17 = vpop.f32.mrf.mxu1  ;;  %v6104_v29 = vadd.f32 %v6103_v31, %v4418_v51  ;;  %v4419_v31 = vadd.f32 %v11357_v61, %v4260_v48 }
 0xf43   : > { %8050 = vpow2.f32 %v6989_v9  ;;  %v6991_v20 = vmul.f32 -1.442695, %v6015_v53  ;;  %v6017_v21 = vadd.f32 %v6016_v24, %v4417_v38  ;;  %v6100_v39 = vadd.f32 %v6099_v23, %v4415_v13  ;;  %v14211_v53 = vld [vmem:[#allocation17_spill] sm:$0xff] }
 0xf44   : > { %v6020_v32 = vpop.f32.mrf.mxu0  ;;  %v6109_v36 = vpop.f32.mrf.mxu1  ;;  %v4422_v9 = vadd.f32 %v11346_v62, %v4264_v16  ;;  %v14212_v38 = vld [vmem:[#allocation189_spill] sm:$0xff]  ;;  %v6993_v18 = vmul.f32 -1.442695, %v6104_v29  ;;  %v6106_v26 = vadd.f32 %v6105_v17, %v4419_v31  ;;  %v4426_v23 = vadd.f32 %v11346_v62, %v4270_v60 }
 0xf45   : > { %8052 = vpow2.f32 %v6991_v20  ;;  %v6992_v10 = vmul.f32 -1.442695, %v6017_v21  ;;  %v6021_v44 = vadd.f32 %v6020_v32, %v4420_v40  ;;  %v4266_v24 = vadd.f32 %v14212_v38, %v14211_v53 }
 0xf46   : > { %v6022_v54 = vpop.f32.mrf.mxu0  ;;  %v6111_v15 = vpop.f32.mrf.mxu1  ;;  %v6110_v19 = vadd.f32 %v6109_v36, %v4422_v9 }
 0xf47   : > { %8054 = vpow2.f32 %v6992_v10  ;;  %v6994_v49 = vmul.f32 -1.442695, %v6021_v44  ;;  %v6023_v4 = vadd.f32 %v6022_v54, %v4421_v41  ;;  %v4423_v30 = vadd.f32 %v11357_v61, %v4266_v24  ;;  %v14213_v41 = vld [vmem:[#allocation41_spill] sm:$0xff] }
 0xf48   : > { %v6026_v27 = vpop.f32.mrf.mxu0  ;;  %v6115_v21 = vpop.f32.mrf.mxu1  ;;  %v4272_v42 = vadd.f32 %v14214_v43, %v14213_v41  ;;  %v6996_v2 = vmul.f32 -1.442695, %v6110_v19 }
 0xf49   : > { %8056 = vpow2.f32 %v6994_v49  ;;  %v6995_v56 = vmul.f32 -1.442695, %v6023_v4  ;;  %v6027_v3 = vadd.f32 %v6026_v27, %v4424_v34  ;;  %v6116_v10 = vadd.f32 %v6115_v21, %v4426_v23 }
 0xf4a   : > { %v6028_v28 = vpop.f32.mrf.mxu0  ;;  %v6112_v22 = vadd.f32 %v6111_v15, %v4423_v30  ;;  %v6117_v50 = vpop.f32.mrf.mxu1  ;;  %v4427_v49 = vadd.f32 %v11357_v61, %v4272_v42 }
 0xf4b   : > { %8058 = vpow2.f32 %v6995_v56  ;;  %v6997_v12 = vmul.f32 -1.442695, %v6027_v3  ;;  %v6029_v63 = vadd.f32 %v6028_v28, %v4425_v57  ;;  %v6999_v54 = vmul.f32 -1.442695, %v6116_v10 }
 0xf4c   : > { %v6118_v34 = vadd.f32 %v6117_v50, %v4427_v49  ;;  %v6501_v50 = vld [vmem:[%s12852_s8 + $0x58] sm:$0xff]  ;;  %v6498_v49 = vld [vmem:[%s12852_s8 + $0x40] sm:$0xff] }
 0xf4d   : > { %8060 = vpow2.f32 %v6997_v12  ;;  %v6998_v40 = vmul.f32 -1.442695, %v6029_v63 }
 0xf4e   : > { %v8049_v46 = vpop.eup %8048  ;;  %8062 = vpow2.f32 %v6990_v47 }
 0xf4f   : > { %v6156_v20 = vadd.f32 1.0, %v8049_v46  ;;  %8064 = vpow2.f32 %v6998_v40 }
 0xf50   : > { %v8051_v33 = vpop.eup %8050  ;;  %8066 = vtanh.f32 %v6100_v39 }
 0xf51   : > { %8068 = vrcp.f32 %v6156_v20  ;;  %v6157_v7 = vadd.f32 1.0, %v8051_v33 }
 0xf52   : > { %v8053_v32 = vpop.eup %8052  ;;  %8070 = vpow2.f32 %v6993_v18 }
 0xf53   : > { %8072 = vrcp.f32 %v6157_v7  ;;  %v6159_v44 = vadd.f32 1.0, %v8053_v32 }
 0xf54   : > { %v8055_v58 = vpop.eup %8054  ;;  %8074 = vtanh.f32 %v6106_v26 }
 0xf55   : > { %8076 = vrcp.f32 %v6159_v44  ;;  %v6160_v17 = vadd.f32 1.0, %v8055_v58  ;;  %v6505_v58 = vld [vmem:[%s12852_s8 + $0x78] sm:$0xff] }
 0xf56   : > { %v8057_v11 = vpop.eup %8056  ;;  %8078 = vpow2.f32 %v6996_v2  ;;  %7056 = vmatprep.subr.mxu0 %v6505_v58 }
 0xf57   : > { %8080 = vrcp.f32 %v6160_v17  ;;  %v6162_v36 = vadd.f32 1.0, %v8057_v11  ;;  %v6503_v17 = vld [vmem:[%s12852_s8 + $0x68] sm:$0xff]  ;;  %v6500_v11 = vld [vmem:[%s12852_s8 + $0x50] sm:$0xff] }
 0xf58   : > { %v8059_v4 = vpop.eup %8058  ;;  %8082 = vtanh.f32 %v6112_v22  ;;  %v6504_v22 = vld [vmem:[%s12852_s8 + $0x70] sm:$0xff] }
 0xf59   : > { %8084 = vrcp.f32 %v6162_v36  ;;  %v6163_v37 = vadd.f32 1.0, %v8059_v4  ;;  %v6497_v36 = vld [vmem:[%s12852_s8 + $0x38] sm:$0xff]  ;;  %v6496_v4 = vld [vmem:[%s12852_s8 + $0x30] sm:$0xff] }
 0xf5a   : > { %v8061_v0 = vpop.eup %8060  ;;  %8086 = vpow2.f32 %v6999_v54  ;;  %v6499_v54 = vld [vmem:[%s12852_s8 + $0x48] sm:$0xff] }
 0xf5b   : > { %v8063_v16 = vpop.eup %8062  ;;  %8088 = vrcp.f32 %v6163_v37  ;;  %v6165_v51 = vadd.f32 1.0, %v8061_v0  ;;  %v6494_v37 = vld [vmem:[%s12852_s8 + $0x20] sm:$0xff]  ;;  %v6493_v0 = vld [vmem:[%s12852_s8 + $0x18] sm:$0xff] }
 0xf5c   : > { %v8065_v27 = vpop.eup %8064  ;;  %8090 = vtanh.f32 %v6118_v34  ;;  %v6158_v47 = vadd.f32 1.0, %v8063_v16  ;;  %v6495_v34 = vld [vmem:[%s12852_s8 + $0x28] sm:$0xff]  ;;  %v6492_v16 = vld [vmem:[%s12852_s8 + $0x10] sm:$0xff] }
 0xf5d   : > { %v8067_v56 = vpop.eup %8066  ;;  %8092 = vrcp.f32 %v6165_v51  ;;  %v6166_v3 = vadd.f32 1.0, %v8065_v27  ;;  %v6491_v51 = vld [vmem:[%s12852_s8 + $0x8] sm:$0xff]  ;;  %v6490_v27 = vld [vmem:[%s12852_s8] sm:$0xff] }
 0xf5e   : > { %v8069_v57 = vpop.eup %8068 }
 0xf5f   : > { %v8071_v5 = vpop.eup %8070  ;;  %v6200_v8 = vmul.f32 %v8069_v57, %v8067_v56  ;;  %8094 = vrcp.f32 %v6166_v3  ;;  %v6617_v56 = vld [vmem:[%s12854_s10 + $0x78] sm:$0xff]  ;;  %v6616_v3 = vld [vmem:[%s12854_s10 + $0x70] sm:$0xff]  ;;  %v6615_v57 = vld [vmem:[%s12854_s10 + $0x68] sm:$0xff] }
 0xf60   : > { %v8073_v48 = vpop.eup %8072  ;;  %8096 = vrcp.f32 %v6158_v47  ;;  %v6161_v55 = vadd.f32 1.0, %v8071_v5  ;;  %7094 = vmatprep.subr.mxu1 %v6617_v56  ;;  %v6614_v5 = vld [vmem:[%s12854_s10 + $0x60] sm:$0xff]  ;;  %v6611_v47 = vld [vmem:[%s12854_s10 + $0x48] sm:$0xff] }
 0xf61   : > { %v8075_v13 = vpop.eup %8074  ;;  %v6196_v29 = vmul.f32 %v8073_v48, %v12535_v6  ;;  %v6612_v48 = vld [vmem:[%s12854_s10 + $0x50] sm:$0xff] }
 0xf62   : > { %v8077_v28 = vpop.eup %8076 }
 0xf63   : > { %v8079_v15 = vpop.eup %8078  ;;  %v12662_v12 = vadd.f32 %v6200_v8, %v6196_v29  ;;  %v6201_v63 = vmul.f32 %v8077_v28, %v8075_v13  ;;  %v6613_v8 = vld [vmem:[%s12854_s10 + $0x58] sm:$0xff]  ;;  %v6610_v13 = vld [vmem:[%s12854_s10 + $0x40] sm:$0xff]  ;;  %v6608_v28 = vld [vmem:[%s12854_s10 + $0x30] sm:$0xff] }
 0xf64   : > { %v8081_v1 = vpop.eup %8080  ;;  %v6164_v6 = vadd.f32 1.0, %v8079_v15  ;;  %v6609_v29 = vld [vmem:[%s12854_s10 + $0x38] sm:$0xff]  ;;  %v6607_v15 = vld [vmem:[%s12854_s10 + $0x28] sm:$0xff] }
 0xf65   : > { %v8083_v60 = vpop.eup %8082  ;;  %8098 = vtanh.f32 %v12662_v12  ;;  %v6197_v39 = vmul.f32 %v8081_v1, %v12539_v52  ;;  %v14215_v1 = vld [vmem:[#allocation43_spill] sm:$0xff] }
 0xf66   : > { %v8085_v9 = vpop.eup %8084  ;;  %8100 = vrcp.f32 %v6161_v55  ;;  %v14216_v55 = vld [vmem:[#allocation194_spill] sm:$0xff] }
 0xf67   : > { %v8087_v53 = vpop.eup %8086  ;;  %v12666_v38 = vadd.f32 %v6201_v63, %v6197_v39  ;;  %v6202_v24 = vmul.f32 %v8085_v9, %v8083_v60  ;;  %v6606_v63 = vld [vmem:[%s12854_s10 + $0x20] sm:$0xff]  ;;  %v4019_v60 = vadd.f32 %v14216_v55, %v14215_v1  ;;  %v14217_v39 = vld [vmem:[#allocation142_spill] sm:$0xff]  ;;  %v14236_v1 = vld [vmem:[#allocation197_spill] sm:$0xff] }
 0xf68   : > { %v8089_v40 = vpop.eup %8088  ;;  %v6167_v52 = vadd.f32 1.0, %v8087_v53  ;;  %v14218_v9 = vld [vmem:[#allocation196_spill] sm:$0xff] }
 0xf69   : > { %v8091_v46 = vpop.eup %8090  ;;  %8102 = vtanh.f32 %v12666_v38  ;;  %v6198_v18 = vmul.f32 %v8089_v40, %v12543_v45  ;;  %v4021_v53 = vadd.f32 %v14218_v9, %v14217_v39  ;;  %v14220_v40 = vld [vmem:[#allocation198_spill] sm:$0xff] }
 0xf6a   : > { %v8093_v31 = vpop.eup %8092  ;;  %8104 = vrcp.f32 %v6164_v6 }
 0xf6b   : > { %v12670_v19 = vadd.f32 %v6202_v24, %v6198_v18  ;;  %v6203_v20 = vmul.f32 %v8093_v31, %v8091_v46  ;;  %v14219_v24 = vld [vmem:[#allocation144_spill] sm:$0xff]  ;;  %v4428_v46 = vadd.f32 %v11337_v35, %v4019_v60 }
 0xf6c   : > { %v8095_v21 = vpop.eup %8094  ;;  %v4025_v6 = vadd.f32 %v14220_v40, %v14219_v24  ;;  %v14237_v40 = vld [vmem:[#allocation36_spill] sm:$0xff] }
 0xf6d   : > { %8106 = vtanh.f32 %v12670_v19  ;;  %v6199_v33 = vmul.f32 %v8095_v21, %v12547_v59  ;;  %v8097_v23 = vpop.eup %8096  ;;  %v14222_v21 = vld [vmem:[#allocation200_spill] sm:$0xff] }
 0xf6e   : > { %8108 = vrcp.f32 %v6167_v52 }
 0xf6f   : > { %v12674_v26 = vadd.f32 %v6203_v20, %v6199_v33  ;;  %v14221_v20 = vld [vmem:[#allocation35_spill] sm:$0xff] }
 0xf70   : > { %v4027_v52 = vadd.f32 %v14222_v21, %v14221_v20  ;;  %v14240_v20 = vld [vmem:[#allocation203_spill] sm:$0xff] }
 0xf71   : > { %8110 = vtanh.f32 %v12674_v26 }
 0xf72   : > { %v8099_v7 = vpop.eup %8098 }
 0xf73   : > { %v6212_v30 = vmul.f32 %v8099_v7, %v8097_v23  ;;  %v8101_v45 = vpop.eup %8100  ;;  %v4429_v23 = vadd.f32 %v11702_v25, %v4021_v53  ;;  %v14223_v7 = vld [vmem:[#allocation40_spill] sm:$0xff] }
 0xf75   : > { %6281 = vmatmul.mubr.f32.vlgmr.msra.gmra.mxu0 %v6212_v30  ;;  %6370 = vmatmul.mubr.f32.vlgmr.msra.gmra.mxu1 %v6212_v30  ;;  %v14224_v30 = vld [vmem:[#allocation202_spill] sm:$0xff] }
 0xf76   : > { %v8103_v32 = vpop.eup %8102  ;;  %6286 = vmatprep.mubr.f32.mxu0 %v13216_v14  ;;  %6375 = vmatprep.mubr.f32.mxu1 %v13216_v14 }
 0xf77   : > { %v6213_v41 = vmul.f32 %v8103_v32, %v8101_v45  ;;  %v8105_v43 = vpop.eup %8104  ;;  %7057 = vmatpush3.msra.mxu0 %v6505_v58  ;;  %7095 = vmatpush3.msra.mxu1 %v6617_v56  ;;  %v4031_v45 = vadd.f32 %v14224_v30, %v14223_v7  ;;  %v14227_v58 = vld [vmem:[#allocation46_spill] sm:$0xff]  ;;  %v14232_v56 = vld [vmem:[#allocation199_spill] sm:$0xff] }
 0xf78   : > { %7058 = vmatprep.subr.mxu0 %v6504_v22  ;;  %7096 = vmatprep.subr.mxu1 %v6616_v3 }
 0xf79   : > { %6287 = vmatmul.mubr.f32.gmra.mxu0 %v6213_v41  ;;  %6376 = vmatmul.mubr.f32.gmra.mxu1 %v6213_v41 }
 0xf7a   : > { %v8107_v59 = vpop.eup %8106  ;;  %6292 = vmatprep.mubr.f32.mxu0 %v13216_v14  ;;  %6381 = vmatprep.mubr.f32.mxu1 %v13216_v14 }
 0xf7b   : > { %v6214_v42 = vmul.f32 %v8107_v59, %v8105_v43  ;;  %v8109_v2 = vpop.eup %8108  ;;  %7059 = vmatpush3.msra.mxu0 %v6504_v22  ;;  %7097 = vmatpush3.msra.mxu1 %v6616_v3  ;;  %v14228_v22 = vld [vmem:[#allocation204_spill] sm:$0xff] }
 0xf7c   : > { %7060 = vmatprep.subr.mxu0 %v6503_v17  ;;  %7098 = vmatprep.subr.mxu1 %v6615_v57 }
 0xf7d   : > { %6293 = vmatmul.mubr.f32.gmra.mxu0 %v6214_v42  ;;  %6382 = vmatmul.mubr.f32.gmra.mxu1 %v6214_v42  ;;  %v4432_v42 = vadd.f32 %v11337_v35, %v4025_v6  ;;  %v14238_v6 = vld [vmem:[#allocation201_spill] sm:$0xff] }
 0xf7e   : > { %v8111_v10 = vpop.eup %8110  ;;  %6298 = vmatprep.mubr.f32.mxu0 %v13216_v14  ;;  %6387 = vmatprep.mubr.f32.mxu1 %v13216_v14  ;;  %v6502_v14 = vld [vmem:[%s12852_s8 + $0x60] sm:$0xff] }
 0xf7f   : > { %v6215_v44 = vmul.f32 %v8111_v10, %v8109_v2  ;;  %7061 = vmatpush3.msra.mxu0 %v6503_v17  ;;  %7099 = vmatpush3.msra.mxu1 %v6615_v57  ;;  %v14225_v2 = vld [vmem:[#allocation141_spill] sm:$0xff]  ;;  %v14226_v10 = vld [vmem:[#allocation195_spill] sm:$0xff]  ;;  %v4033_v17 = vadd.f32 %v14228_v22, %v14227_v58 }
 0xf80   : > { %7062 = vmatprep.subr.mxu0 %v6502_v14  ;;  %7100 = vmatprep.subr.mxu1 %v6614_v5  ;;  %v14242_v58 = vld [vmem:[#allocation205_spill] sm:$0xff] }
 0xf81   : > { %6299 = vmatmul.mubr.f32.gmra.mxu0 %v6215_v44  ;;  %6388 = vmatmul.mubr.f32.gmra.mxu1 %v6215_v44  ;;  %v4276_v44 = vadd.f32 %v14226_v10, %v14225_v2 }
 0xf82   : > { %7063 = vmatpush3.msra.mxu0 %v6502_v14  ;;  %7101 = vmatpush3.msra.mxu1 %v6614_v5 }
 0xf83   : > { %7064 = vmatprep.subr.mxu0 %v6501_v50  ;;  %7102 = vmatprep.subr.mxu1 %v6613_v8  ;;  %v4430_v57 = vadd.f32 %v11346_v62, %v4276_v44  ;;  %v14241_v44 = vld [vmem:[#allocation47_spill] sm:$0xff] }
 0xf84   : > { %7065 = vmatpush3.msra.mxu0 %v6501_v50  ;;  %7103 = vmatpush3.msra.mxu1 %v6613_v8  ;;  %v4437_v8 = vadd.f32 %v11702_v25, %v4033_v17  ;;  %v4290_v22 = vadd.f32 %v14242_v58, %v14241_v44 }
 0xf85   : > { %7066 = vmatprep.subr.mxu0 %v6500_v11  ;;  %7104 = vmatprep.subr.mxu1 %v6612_v48 }
 0xf86   : > { %7067 = vmatpush3.msra.mxu0 %v6500_v11  ;;  %7105 = vmatpush3.msra.mxu1 %v6612_v48  ;;  %v14233_v48 = vld [vmem:[#allocation146_spill] sm:$0xff] }
 0xf87   : > { %7068 = vmatprep.subr.mxu0 %v6499_v54  ;;  %7106 = vmatprep.subr.mxu1 %v6611_v47 }
 0xf88   : > { %7069 = vmatpush3.msra.mxu0 %v6499_v54  ;;  %7107 = vmatpush3.msra.mxu1 %v6611_v47  ;;  %v14234_v47 = vld [vmem:[#allocation126_spill] sm:$0xff] }
 0xf89   : > { %7070 = vmatprep.subr.mxu0 %v6498_v49  ;;  %7108 = vmatprep.subr.mxu1 %v6610_v13 }
 0xf8a   : > { %7071 = vmatpush3.msra.mxu0 %v6498_v49  ;;  %7109 = vmatpush3.msra.mxu1 %v6610_v13  ;;  %v4433_v49 = vadd.f32 %v11702_v25, %v4027_v52  ;;  %v4039_v13 = vadd.f32 %v14234_v47, %v14233_v48  ;;  %v14246_v48 = vld [vmem:[#allocation128_spill] sm:$0xff] }
 0xf8b   : > { %7072 = vmatprep.subr.mxu0 %v6497_v36  ;;  %7110 = vmatprep.subr.mxu1 %v6609_v29 }
 0xf8c   : > { %7073 = vmatpush3.msra.mxu0 %v6497_v36  ;;  %7111 = vmatpush3.msra.mxu1 %v6609_v29 }
 0xf8d   : > { %7074 = vmatprep.subr.mxu0 %v6496_v4  ;;  %7112 = vmatprep.subr.mxu1 %v6608_v28 }
 0xf8e   : > { %7075 = vmatpush3.msra.mxu0 %v6496_v4  ;;  %7113 = vmatpush3.msra.mxu1 %v6608_v28  ;;  %v4436_v4 = vadd.f32 %v11337_v35, %v4031_v45 }
 0xf8f   : > { %7076 = vmatprep.subr.mxu0 %v6495_v34  ;;  %7114 = vmatprep.subr.mxu1 %v6607_v15 }
 0xf90   : > { %7077 = vmatpush3.msra.mxu0 %v6495_v34  ;;  %7115 = vmatpush3.msra.mxu1 %v6607_v15  ;;  %v14229_v34 = vld [vmem:[#allocation48_spill] sm:$0xff] }
 0xf91   : > { %7078 = vmatprep.subr.mxu0 %v6494_v37  ;;  %7116 = vmatprep.subr.mxu1 %v6606_v63 }
 0xf92   : > { %7079 = vmatpush3.msra.mxu0 %v6494_v37  ;;  %7117 = vmatpush3.msra.mxu1 %v6606_v63  ;;  %v14230_v37 = vld [vmem:[#allocation206_spill] sm:$0xff]  ;;  %v14235_v63 = vld [vmem:[#allocation143_spill] sm:$0xff] }
 0xf93   : > { %7080 = vmatprep.subr.mxu0 %v6493_v0  ;;  %v4278_v55 = vadd.f32 %v14236_v1, %v14235_v63 }
 0xf94   : > { %7081 = vmatpush3.msra.mxu0 %v6493_v0  ;;  %v4037_v0 = vadd.f32 %v14230_v37, %v14229_v34 }
 0xf95   : > { %7082 = vmatprep.subr.mxu0 %v6492_v16 }
 0xf96   : > { %7083 = vmatpush3.msra.mxu0 %v6492_v16  ;;  %v4440_v24 = vadd.f32 %v11337_v35, %v4037_v0 }
 0xf97   : > { %7084 = vmatprep.subr.mxu0 %v6491_v51 }
 0xf98   : > { %7085 = vmatpush3.msra.mxu0 %v6491_v51 }
 0xf99   : > { %7086 = vmatprep.subr.mxu0 %v6490_v27 }
 0xf9a   : > { %7087 = vmatpush3.msra.mxu0 %v6490_v27  ;;  %v14231_v27 = vld [vmem:[#allocation37_spill] sm:$0xff] }
 0xf9b   : > { %v4282_v3 = vadd.f32 %v14232_v56, %v14231_v27  ;;  %v4439_v56 = vadd.f32 %v11357_v61, %v4290_v22 }
 0xf9d   : > { %v4434_v52 = vadd.f32 %v11346_v62, %v4282_v3 }
0x1035   : > { %v6282_v18 = vpop.f32.mrf.mxu0  ;;  %v6371_v31 = vpop.f32.mrf.mxu1 }
0x1036   : > { %v6283_v33 = vadd.f32 %v6282_v18, %v4428_v46  ;;  %v6372_v60 = vadd.f32 %v6371_v31, %v4430_v57  ;;  %v4284_v46 = vadd.f32 %v14238_v6, %v14237_v40  ;;  %v14239_v18 = vld [vmem:[#allocation45_spill] sm:$0xff]  ;;  %v4441_v31 = vadd.f32 %v11702_v25, %v4039_v13 }
0x1037   : > { %v6284_v32 = vpop.f32.mrf.mxu0  ;;  %v6373_v41 = vpop.f32.mrf.mxu1  ;;  %v4288_v21 = vadd.f32 %v14240_v20, %v14239_v18 }
0x1038   : > { %v7000_v43 = vmul.f32 -1.442695, %v6283_v33  ;;  %v6285_v59 = vadd.f32 %v6284_v32, %v4429_v23  ;;  %v7002_v45 = vmul.f32 -1.442695, %v6372_v60  ;;  %v4431_v32 = vadd.f32 %v11357_v61, %v4278_v55 }
0x1039   : > { %v6288_v14 = vpop.f32.mrf.mxu0  ;;  %v6377_v54 = vpop.f32.mrf.mxu1  ;;  %v4438_v10 = vadd.f32 %v11346_v62, %v4288_v21  ;;  %v4435_v17 = vadd.f32 %v11357_v61, %v4284_v46 }
0x103a   : > { %8112 = vpow2.f32 %v7000_v43  ;;  %v7001_v50 = vmul.f32 -1.442695, %v6285_v59  ;;  %v6289_v11 = vadd.f32 %v6288_v14, %v4432_v42  ;;  %v6378_v43 = vadd.f32 %v6377_v54, %v4434_v52 }
0x103b   : > { %v6290_v36 = vpop.f32.mrf.mxu0  ;;  %v6379_v28 = vpop.f32.mrf.mxu1  ;;  %v6374_v2 = vadd.f32 %v6373_v41, %v4431_v32 }
0x103c   : > { %8114 = vpow2.f32 %v7001_v50  ;;  %v7003_v16 = vmul.f32 -1.442695, %v6289_v11  ;;  %v6291_v51 = vadd.f32 %v6290_v36, %v4433_v49  ;;  %v14243_v11 = vld [vmem:[#allocation145_spill] sm:$0xff]  ;;  %v14244_v49 = vld [vmem:[#allocation207_spill] sm:$0xff]  ;;  %v7005_v54 = vmul.f32 -1.442695, %v6378_v43 }
0x103d   : > { %v6294_v5 = vpop.f32.mrf.mxu0  ;;  %v6383_v23 = vpop.f32.mrf.mxu1  ;;  %v4294_v36 = vadd.f32 %v14244_v49, %v14243_v11  ;;  %v6380_v37 = vadd.f32 %v6379_v28, %v4435_v17 }
0x103e   : > { %8116 = vpow2.f32 %v7003_v16  ;;  %v7004_v29 = vmul.f32 -1.442695, %v6291_v51  ;;  %v6295_v15 = vadd.f32 %v6294_v5, %v4436_v4  ;;  %v6384_v4 = vadd.f32 %v6383_v23, %v4438_v10 }
0x103f   : > { %v6296_v39 = vpop.f32.mrf.mxu0  ;;  %v6385_v14 = vpop.f32.mrf.mxu1  ;;  %v4442_v3 = vadd.f32 %v11346_v62, %v4294_v36 }
0x1040   : > { %8118 = vpow2.f32 %v7004_v29  ;;  %v7006_v9 = vmul.f32 -1.442695, %v6295_v15  ;;  %v6297_v53 = vadd.f32 %v6296_v39, %v4437_v8  ;;  %v7008_v27 = vmul.f32 -1.442695, %v6384_v4  ;;  %v14245_v8 = vld [vmem:[#allocation147_spill] sm:$0xff] }
0x1041   : > { %v6300_v33 = vpop.f32.mrf.mxu0  ;;  %v6389_v16 = vpop.f32.mrf.mxu1  ;;  %v4296_v47 = vadd.f32 %v14246_v48, %v14245_v8  ;;  %v6386_v13 = vadd.f32 %v6385_v14, %v4439_v56  ;;  %v6603_v8 = vld [vmem:[%s12854_s10 + $0x8] sm:$0xff]  ;;  %v6602_v48 = vld [vmem:[%s12854_s10] sm:$0xff] }
0x1042   : > { %8120 = vpow2.f32 %v7006_v9  ;;  %v7007_v7 = vmul.f32 -1.442695, %v6297_v53  ;;  %v6301_v30 = vadd.f32 %v6300_v33, %v4440_v24  ;;  %v6390_v29 = vadd.f32 %v6389_v16, %v4442_v3 }
0x1043   : > { %v6302_v35 = vpop.f32.mrf.mxu0  ;;  %v6391_v1 = vpop.f32.mrf.mxu1  ;;  %v4443_v62 = vadd.f32 %v11357_v61, %v4296_v47  ;;  %v7012_v47 = vld [vmem:[%s12853_s9] ss:$0 sm:$0xff] }
0x1044   : > { %8122 = vpow2.f32 %v7007_v7  ;;  %v7009_v59 = vmul.f32 -1.442695, %v6301_v30  ;;  %v6303_v42 = vadd.f32 %v6302_v35, %v4441_v31  ;;  %v7011_v60 = vmul.f32 -1.442695, %v6390_v29 }
0x1045   : > { %v6392_v53 = vadd.f32 %v6391_v1, %v4443_v62 }
0x1046   : > { %8124 = vpow2.f32 %v7009_v59  ;;  %v7010_v50 = vmul.f32 -1.442695, %v6303_v42 }
0x1047   : > { %v8113_v25 = vpop.eup %8112  ;;  %8126 = vpow2.f32 %v7002_v45 }
0x1048   : > { %v6430_v34 = vadd.f32 1.0, %v8113_v25  ;;  %8128 = vpow2.f32 %v7010_v50 }
0x1049   : > { %v8115_v41 = vpop.eup %8114  ;;  %8130 = vtanh.f32 %v6374_v2 }
0x104a   : > { %8132 = vrcp.f32 %v6430_v34  ;;  %v6431_v0 = vadd.f32 1.0, %v8115_v41 }
0x104b   : > { %v8117_v51 = vpop.eup %8116  ;;  %8134 = vpow2.f32 %v7005_v54 }
0x104c   : > { %8136 = vrcp.f32 %v6431_v0  ;;  %v6433_v57 = vadd.f32 1.0, %v8117_v51 }
0x104d   : > { %v8119_v5 = vpop.eup %8118  ;;  %8138 = vtanh.f32 %v6380_v37 }
0x104e   : > { %8140 = vrcp.f32 %v6433_v57  ;;  %v6434_v28 = vadd.f32 1.0, %v8119_v5  ;;  %v6604_v5 = vld [vmem:[%s12854_s10 + $0x10] sm:$0xff] }
0x104f   : > { %v8121_v15 = vpop.eup %8120  ;;  %8142 = vpow2.f32 %v7008_v27 }
0x1050   : > { %8144 = vrcp.f32 %v6434_v28  ;;  %v6436_v63 = vadd.f32 1.0, %v8121_v15 }
0x1051   : > { %v8123_v55 = vpop.eup %8122  ;;  %8146 = vtanh.f32 %v6386_v13 }
0x1052   : > { %8148 = vrcp.f32 %v6436_v63  ;;  %v6437_v39 = vadd.f32 1.0, %v8123_v55 }
0x1053   : > { %v8125_v9 = vpop.eup %8124 }
0x1054   : > { %v8127_v24 = vpop.eup %8126  ;;  %8150 = vrcp.f32 %v6437_v39  ;;  %v6439_v40 = vadd.f32 1.0, %v8125_v9 }
0x1055   : > { %v8129_v6 = vpop.eup %8128  ;;  %8152 = vpow2.f32 %v7011_v60  ;;  %v6432_v23 = vadd.f32 1.0, %v8127_v24 }
0x1056   : > { %v8131_v46 = vpop.eup %8130  ;;  %8154 = vrcp.f32 %v6439_v40  ;;  %v6440_v18 = vadd.f32 1.0, %v8129_v6  ;;  %v7013_v40 = vld [vmem:[%s12855_s11] ss:$0 sm:$0xff] }
0x1057   : > { %v8133_v20 = vpop.eup %8132  ;;  %8156 = vtanh.f32 %v6392_v53 }
0x1058   : > { %v8135_v21 = vpop.eup %8134  ;;  %v6474_v52 = vmul.f32 %v8133_v20, %v8131_v46  ;;  %8158 = vrcp.f32 %v6440_v18 }
0x1059   : > { %v8137_v33 = vpop.eup %8136  ;;  %8160 = vrcp.f32 %v6432_v23  ;;  %v6435_v35 = vadd.f32 1.0, %v8135_v21 }
0x105a   : > { %v8139_v61 = vpop.eup %8138  ;;  %v6470_v7 = vmul.f32 %v8137_v33, %v12662_v12 }
0x105b   : > { %v8141_v30 = vpop.eup %8140 }
0x105c   : > { %v8143_v31 = vpop.eup %8142  ;;  %v6478_v45 = vadd.f32 %v6474_v52, %v6470_v7  ;;  %v6475_v32 = vmul.f32 %v8141_v30, %v8139_v61 }
0x105d   : > { %v8145_v43 = vpop.eup %8144  ;;  %v6438_v22 = vadd.f32 1.0, %v8143_v31 }
0x105e   : > { %v8147_v59 = vpop.eup %8146  ;;  %8162 = vtanh.f32 %v6478_v45  ;;  %v6471_v42 = vmul.f32 %v8145_v43, %v12666_v38 }
0x105f   : > { %v8149_v2 = vpop.eup %8148  ;;  %8164 = vrcp.f32 %v6435_v35 }
0x1060   : > { %v6479_v10 = vadd.f32 %v6475_v32, %v6471_v42  ;;  %v6476_v44 = vmul.f32 %v8149_v2, %v8147_v59 }
0x1061   : > { %v8151_v58 = vpop.eup %8150 }
0x1062   : > { %v8153_v17 = vpop.eup %8152  ;;  %8166 = vtanh.f32 %v6479_v10  ;;  %v6472_v12 = vmul.f32 %v8151_v58, %v12670_v19 }
0x1063   : > { %v8155_v14 = vpop.eup %8154  ;;  %8168 = vrcp.f32 %v6438_v22  ;;  %v6441_v49 = vadd.f32 1.0, %v8153_v17 }
0x1064   : > { %v8157_v50 = vpop.eup %8156  ;;  %v6480_v25 = vadd.f32 %v6476_v44, %v6472_v12 }
0x1065   : > { %v8159_v11 = vpop.eup %8158  ;;  %v6477_v38 = vmul.f32 %v8157_v50, %v8155_v14 }
0x1066   : > { %8170 = vtanh.f32 %v6480_v25  ;;  %v6473_v36 = vmul.f32 %v8159_v11, %v12674_v26  ;;  %v8161_v4 = vpop.eup %8160  ;;  %v6605_v26 = vld [vmem:[%s12854_s10 + $0x18] sm:$0xff] }
0x1067   : > { %8172 = vrcp.f32 %v6441_v49  ;;  %7118 = vmatprep.subr.mxu1 %v6605_v26 }
0x1068   : > { %v6481_v54 = vadd.f32 %v6477_v38, %v6473_v36  ;;  %7119 = vmatpush3.msra.mxu1 %v6605_v26 }
0x1069   : > { %7120 = vmatprep.subr.mxu1 %v6604_v5 }
0x106a   : > { %8174 = vtanh.f32 %v6481_v54  ;;  %7121 = vmatpush3.msra.mxu1 %v6604_v5 }
0x106b   : > { %v8163_v34 = vpop.eup %8162  ;;  %7122 = vmatprep.subr.mxu1 %v6603_v8 }
0x106c   : > { %v6486_v41 = vmul.f32 %v8163_v34, %v8161_v4  ;;  %v8165_v37 = vpop.eup %8164  ;;  %7123 = vmatpush3.msra.mxu1 %v6603_v8 }
0x106d   : > { %7124 = vmatprep.subr.mxu1 %v6602_v48 }
0x106e   : > { %7088 = vmatprep.mubr.f32.mxu0 %v6486_v41  ;;  %7125 = vmatpush3.msra.mxu1 %v6602_v48 }
0x106f   : > { %v8167_v0 = vpop.eup %8166 }
0x1070   : > { %v6487_v19 = vmul.f32 %v8167_v0, %v8165_v37  ;;  %v8169_v16 = vpop.eup %8168 }
0x1072   : > { %7089 = vmatmul.mubr.f32.vlgmr.msra.gmra.mxu0 %v6487_v19 }
0x1073   : > { %v8171_v51 = vpop.eup %8170 }
0x1074   : > { %v6488_v27 = vmul.f32 %v8171_v51, %v8169_v16  ;;  %v8173_v56 = vpop.eup %8172 }
0x1076   : > { %7091 = vmatprep.mubr.f32.mxu0 %v6488_v27 }
0x1077   : > { %v8175_v3 = vpop.eup %8174 }
0x1078   : > { %v6489_v57 = vmul.f32 %v8175_v3, %v8173_v56 }
0x107a   : > { %7092 = vmatmul.mubr.f32.gmra.mxu0 %v6489_v57 }
0x1132   : > { %v7090_v13 = vpop.f32.mrf.mxu0 }
0x1133   : > { %v6585_v29 = vadd.f32 %v7090_v13, %v7012_v47 }
0x1134   : > { %v6579_v28 = vpop.f32.mrf.mxu0 }
0x1135   : > { %v6580_v15 = vadd.f32 %v7012_v47, %v6579_v28  ;;  %v6599_v1 = vmax.f32 %v6585_v29, 0.0 }
0x1137   : > { %v6598_v63 = vmax.f32 %v6580_v15, 0.0 }
0x1139   : > { %7126 = vmatprep.mubr.f32.mxu1 %v6598_v63 }
0x113a   : > { %v7093_v55 = vpop.f32.mrf.mxu0  ;;  %7127 = vmatmul.mubr.f32.vlgmr.msra.gmra.mxu1 %v6599_v1 }
0x113b   : > { %v6595_v60 = vadd.f32 %v7093_v55, %v7012_v47 }
0x113c   : > { %v6589_v62 = vpop.f32.mrf.mxu0 }
0x113d   : > { %v6590_v39 = vadd.f32 %v7012_v47, %v6589_v62  ;;  %v6601_v53 = vmax.f32 %v6595_v60, 0.0 }
0x113f   : > { %v6600_v9 = vmax.f32 %v6590_v39, 0.0 }
0x1141   : > { %7129 = vmatprep.mubr.f32.mxu1 %v6600_v9 }
0x1142   : > { %7130 = vmatmul.mubr.f32.gmra.mxu1 %v6601_v53 }
0x11fa   : > { %v7128_v24 = vpop.f32.mrf.mxu1 }
0x11fb   : > { %v6697_v18 = vadd.f32 %v7128_v24, %v7013_v40 }
0x11fc   : > { %v6691_v6 = vpop.f32.mrf.mxu1 }
0x11fd   : > { %v6692_v46 = vadd.f32 %v7013_v40, %v6691_v6  ;;  %6711 = vst [vmem:[%s474_s24 + $0x8] sm:$0xff] %v6697_v18 }
0x11ff   : > { %6710 = vst [vmem:[%s474_s24] sm:$0xff] %v6692_v46 }
0x1202   : > { %v7131_v20 = vpop.f32.mrf.mxu1 }
0x1203   : > { %v6707_v33 = vadd.f32 %v7131_v20, %v7013_v40 }
0x1204   : > { %v6701_v21 = vpop.f32.mrf.mxu1 }
0x1205   : > { %v6702_v52 = vadd.f32 %v7013_v40, %v6701_v21  ;;  %6713 = vst [vmem:[%s474_s24 + $0x18] sm:$0xff] %v6707_v33 }
0x1207   : > { %6712 = vst [vmem:[%s474_s24 + $0x10] sm:$0xff] %v6702_v52 }
0x1208 PF: > { %s25_s21 = sadd.s32 1, %s8561_s21  }
0x1209   : > { %p22_p5 = scmp.ge.s32.totalorder %s25_s21, 4  }
0x120b   :  { %24 = sbr.rel (!%p22_p5) target bundleno = 3 (0x3), region = 115 }
0x1210   :  { %6736 = vsyncpa [#allocation3], 1 }
0x1211   :  { %6738 = vsyncpa [#allocation3 + $0x1], 1 }
0x1212   :  { %6739 = vsyncpa [#allocation5], 1 }
0x1213   :  { %6740 = vsyncpa [#allocation8], 1 }

</bundles_post_ra>
